<compile_context>
chip_gen: v7x
topology: tpu7x:2x2x1
jax: 0.10.0
libtpu: 0.0.40
codegen_flags: <defaults>
</compile_context>

<pallas_src>
import functools
import math

import jax
import jax.numpy as jnp
from jax.experimental import pallas as pl
from jax.experimental.pallas import tpu as pltpu

LANE = 128


def _round_up(n, m):
    return ((n + m - 1) // m) * m


# ---------------------------------------------------------------------------
# Fused residual-block kernel (all `repeat` units in one pallas_call)
# ---------------------------------------------------------------------------
def _block_kernel(skips, H, W, cmid, TH, *refs):
    """refs = (x_ref, *per-unit param refs, o_ref, pad_ref, col_ref, act_ref).

    Per-unit params (skip):     (w1|w3b concat, b1, b3b, w2f, b2, w3a, b3a)
    Per-unit params (identity): (w1,            b1,       w2f, b2, w3a, b3a)
    Conv weights have the BN scale folded in and are bf16; biases are f32.
    """
    f32 = jnp.float32
    bf16 = jnp.bfloat16
    HW = H * W
    k_real = 9 * cmid

    x_ref = refs[0]
    o_ref, pad_ref, col_ref, act_ref = refs[-4], refs[-3], refs[-2], refs[-1]
    prefs = refs[1:-4]

    cmidp = pad_ref.shape[-1]
    coutp = o_ref.shape[-1]
    kp = col_ref.shape[-1]
    wp = pad_ref.shape[1]

    cin0 = x_ref.shape[-1]
    x = x_ref[...].reshape(HW, cin0)              # f32 activation (VMEM value)

    # Zero only the 1-element halo border (interior is fully rewritten every
    # unit) plus the never-written K-tail of the im2col chunk.  Cheap, so done
    # unconditionally per grid step (safe under megacore grid sharding).
    zrow = jnp.zeros((1, wp, cmidp), bf16)
    pad_ref[0:1, :, :] = zrow
    pad_ref[H + 1:H + 2, :, :] = zrow
    zcol = jnp.zeros((H, 1, cmidp), bf16)
    pad_ref[1:H + 1, 0:1, :] = zcol
    pad_ref[1:H + 1, W + 1:W + 2, :] = zcol
    if kp > k_real:
        col_ref[:, :, k_real:] = jnp.zeros((TH, W, kp - k_real), bf16)

    idx = 0
    n_units = len(skips)
    for u, skip in enumerate(skips):
        last = (u == n_units - 1)
        if skip:
            w1c_ref, b1_ref, b3b_ref, w2_ref, b2_ref, w3a_ref, b3a_ref = \
                prefs[idx:idx + 7]
            idx += 7
        else:
            w1c_ref, b1_ref, w2_ref, b2_ref, w3a_ref, b3a_ref = \
                prefs[idx:idx + 6]
            idx += 6

        x_bf = x.astype(bf16)

        # conv_1 (1x1, BN folded) [+ fused conv_3b skip projection] -> one dot
        # with N = Cmidp (+ Coutp) to better fill the 256-wide MXU on v6e/v7x.
        yz = jnp.dot(x_bf, w1c_ref[...], preferred_element_type=f32)
        y1 = jnp.maximum(yz[:, :cmidp] + b1_ref[...], 0.0)
        if skip:
            xs_full = yz[:, cmidp:] + b3b_ref[...]
        else:
            xs_full = x

        # conv_2 halo scratch (bf16): interior written once per unit.
        pad_ref[1:H + 1, 1:W + 1, :] = y1.reshape(H, W, cmidp).astype(bf16)

        # conv_2 + conv_3a + residual epilogue, chunked over H rows so the
        # im2col slab stays small and tap traffic overlaps the MXU.
        for h0 in range(0, H, TH):
            th = min(TH, H - h0)
            rows = th * W
            r0 = h0 * W

            # Pack K with the UNPADDED cmid per tap (rows of w2f match).
            for t in range(9):
                kh, kw = divmod(t, 3)
                col_ref[:th, :, t * cmid:(t + 1) * cmid] = \
                    pad_ref[h0 + kh:h0 + kh + th, kw:kw + W, :cmid]

            colv = col_ref[:th, :, :].reshape(rows, kp)
            y2 = jnp.dot(colv, w2_ref[...], preferred_element_type=f32)
            y2 = jnp.maximum(y2 + b2_ref[...], 0.0)

            y3 = jnp.dot(y2.astype(bf16), w3a_ref[...],
                         preferred_element_type=f32) + b3a_ref[...]

            out_chunk = jnp.maximum(xs_full[r0:r0 + rows] + y3, 0.0)

            if last:
                o_ref[:, h0:h0 + th, :, :] = \
                    out_chunk.reshape(1, th, W, coutp).astype(o_ref.dtype)
            else:
                act_ref[r0:r0 + rows, :] = out_chunk

        if not last:
            x = act_ref[...]                      # next unit's input (f32)


# ---------------------------------------------------------------------------
# Host-side param prep: fold BN scale into weights, pad channels, cast bf16
# ---------------------------------------------------------------------------
def _pad2(a, r, c):
    return jnp.pad(a, ((0, r - a.shape[0]), (0, c - a.shape[1])))


def _prep_unit(p):
    cin, cmid = p["w1"].shape
    cout = p["w3a"].shape[1]
    cinp, cmidp, coutp = (_round_up(c, LANE) for c in (cin, cmid, cout))
    kp = _round_up(9 * cmid, LANE)

    w1 = _pad2(p["w1"] * p["s1"], cinp, cmidp)
    b1 = _pad2(p["b1"], 1, cmidp)

    skip = "w3b" in p
    if skip:
        w3b = _pad2(p["w3b"] * p["s3b"], cinp, coutp)
        w1c = jnp.concatenate([w1, w3b], axis=1).astype(jnp.bfloat16)
        b3b = _pad2(p["b3b"], 1, coutp)
    else:
        w1c = w1.astype(jnp.bfloat16)

    # (3,3,Cmid,Cmid) HWIO, BN scale on O; rows packed (kh, kw, ci) with the
    # REAL cmid -- only the total K is rounded up to a multiple of 128.
    w2 = p["w2"] * p["s2"].reshape(1, 1, 1, cmid)
    w2f = w2.reshape(9 * cmid, cmid)
    w2f = jnp.pad(w2f, ((0, kp - 9 * cmid), (0, cmidp - cmid))).astype(jnp.bfloat16)
    b2 = _pad2(p["b2"], 1, cmidp)
    w3a = _pad2(p["w3a"] * p["s3a"], cmidp, coutp).astype(jnp.bfloat16)
    b3a = _pad2(p["b3a"], 1, coutp)

    if skip:
        args = [w1c, b1, b3b, w2f, b2, w3a, b3a]
    else:
        args = [w1c, b1, w2f, b2, w3a, b3a]
    return args, skip, (cin, cmid, cout, cinp, cmidp, coutp, kp)


def _vmem_limit_bytes(need):
    cap = 64 * 1024 * 1024                 # conservative fallback (v7x per-TC)
    try:
        info = pltpu.get_tpu_info()
        cap = int(getattr(info, "vmem_capacity_bytes", cap))
    except Exception:
        pass
    lo = 32 * 1024 * 1024
    hi = int(cap * 7 // 8)
    return int(min(max(need, lo), hi))


# ---------------------------------------------------------------------------
# Wrapper: one pallas_call for the whole block
# ---------------------------------------------------------------------------
def ic_residual_block(x, params_list, row_chunk=512, out_dtype=None):
    """x: (N, H, W, Cin) NHWC float32.  Returns (N, H, W, Cout) NHWC."""
    N, H, W, cin = x.shape
    cout = params_list[-1]["w3a"].shape[1]
    out_dtype = out_dtype or x.dtype

    unit_args, skips, dims = [], [], []
    prev_cout = cin
    for p in params_list:
        a, s, d = _prep_unit(p)
        assert d[0] == prev_cout, "unit Cin must equal previous unit Cout"
        prev_cout = d[2]
        unit_args += a
        skips.append(s)
        dims.append(d)

    cmid = dims[0][1]
    cinp0 = dims[0][3]
    cmidp = dims[0][4]
    coutp = dims[-1][5]
    kp = dims[0][6]
    assert all(d[1] == cmid for d in dims), "Cmid must match across units"
    assert all(d[5] == coutp for d in dims), "Cout must match across units"
    assert cinp0 == _round_up(cin, LANE)

    # H-row chunk for the in-kernel conv_2 pipeline (~row_chunk im2col rows).
    TH = max(1, min(H, row_chunk // max(W, 1)))
    Wp = _round_up(W + 2, 16)                    # bf16-sublane-friendly halo rows

    # Pad input channels to a multiple of 128 (lane-dense matmuls / stores).
    x_p = jnp.pad(x, ((0, 0), (0, 0), (0, 0), (0, cinp0 - cin)))

    in_specs = [pl.BlockSpec((1, H, W, cinp0), lambda n: (n, 0, 0, 0))]
    for a in unit_args:
        in_specs.append(pl.BlockSpec(a.shape, lambda n: (0, 0)))

    # Advisory cost estimate: flops from REAL (unpadded) dims, bytes from the
    # actual padded DMA traffic.
    flops = 0
    for (ci, cm, co, *_), skip in zip(dims, skips):
        kops = ci * cm + 9 * cm * cm + cm * co + (ci * co if skip else 0)
        flops += 2 * N * H * W * kops
    wbytes = sum(int(a.size) * a.dtype.itemsize for a in unit_args)
    cost = pl.CostEstimate(
        flops=int(flops), transcendentals=0,
        bytes_accessed=int(x_p.size * 4 + N * H * W * coutp * 4 + wbytes))

    scratch = [
        pltpu.VMEM((H + 2, Wp, cmidp), jnp.bfloat16),   # 3x3 halo buffer (bf16)
        pltpu.VMEM((TH, W, kp), jnp.bfloat16),          # chunked im2col slab
        pltpu.VMEM((H * W, coutp), jnp.float32),        # inter-unit activation
    ]

    # VMEM budget from actual residency (double-buffered in/out blocks, weight
    # buffers, scratch, full-plane value temporaries), clamped per generation.
    need = (2 * H * W * cinp0 * 4
            + 2 * H * W * coutp * 4
            + 2 * wbytes
            + (H + 2) * Wp * cmidp * 2
            + TH * W * kp * 2
            + H * W * coutp * 4
            + H * W * (3 * cmidp + 3 * coutp) * 4)
    vmem_limit = _vmem_limit_bytes(need * 3 // 2 + (8 << 20))

    kernel = functools.partial(_block_kernel, tuple(skips), H, W, cmid, TH)
    out_p = pl.pallas_call(
        kernel,
        out_shape=jax.ShapeDtypeStruct((N, H, W, coutp), out_dtype),
        grid=(N,),
        in_specs=in_specs,
        out_specs=pl.BlockSpec((1, H, W, coutp), lambda n: (n, 0, 0, 0)),
        scratch_shapes=scratch,
        compiler_params=pltpu.CompilerParams(
            dimension_semantics=("parallel",),
            vmem_limit_bytes=vmem_limit),
        cost_estimate=cost,
    )(x_p, *unit_args)
    return out_p[..., :cout]


# ---------------------------------------------------------------------------
# Deterministic parameter construction (shapes per ICResidualUnit.__init__)
# ---------------------------------------------------------------------------
def _kaiming(key, oikk):
    """PyTorch kaiming_normal_(nonlinearity='relu') on (out,in,kh,kw)."""
    fan_in = oikk[1] * oikk[2] * oikk[3]
    std = math.sqrt(2.0 / fan_in)
    return jax.random.normal(key, oikk, jnp.float32) * std


def _bn_fold(key, c, eps=1e-5):
    k1, k2, k3 = jax.random.split(key, 3)
    gamma = 1.0 + 0.1 * jax.random.normal(k1, (c,), jnp.float32)
    beta = 0.1 * jax.random.normal(k2, (c,), jnp.float32)
    mean = 0.1 * jax.random.normal(k3, (c,), jnp.float32)
    var = jnp.ones((c,), jnp.float32)
    scale = gamma / jnp.sqrt(var + eps)
    bias = beta - mean * scale
    return scale.reshape(1, c), bias.reshape(1, c)


def make_unit_params(key, cin, cout):
    cmid = cout // 4
    ks = jax.random.split(key, 8)
    p = {}
    p["w1"] = _kaiming(ks[0], (cmid, cin, 1, 1)).reshape(cmid, cin).T      # (Cin, Cmid)
    p["s1"], p["b1"] = _bn_fold(ks[1], cmid)
    p["w2"] = _kaiming(ks[2], (cmid, cmid, 3, 3)).transpose(2, 3, 1, 0)    # (3,3,Cmid,Cmid)
    p["s2"], p["b2"] = _bn_fold(ks[3], cmid)
    p["w3a"] = _kaiming(ks[4], (cout, cmid, 1, 1)).reshape(cout, cmid).T   # (Cmid, Cout)
    p["s3a"], p["b3a"] = _bn_fold(ks[5], cout)
    if cin != cout:
        p["w3b"] = _kaiming(ks[6], (cout, cin, 1, 1)).reshape(cout, cin).T
        p["s3b"], p["b3b"] = _bn_fold(ks[7], cout)
    return p


# ---------------------------------------------------------------------------
# Pure-JAX f32 reference (for correctness check)
# ---------------------------------------------------------------------------
def _unit_ref(x, p):
    def c1x1(z, w):
        return jnp.einsum("nhwc,cd->nhwd", z, w)

    y = jnp.maximum(c1x1(x, p["w1"]) * p["s1"] + p["b1"], 0.0)
    y = jax.lax.conv_general_dilated(
        y, p["w2"], window_strides=(1, 1), padding=((1, 1), (1, 1)),
        dimension_numbers=("NHWC", "HWIO", "NHWC"))
    y = jnp.maximum(y * p["s2"] + p["b2"], 0.0)
    y = c1x1(y, p["w3a"]) * p["s3a"] + p["b3a"]
    xs = (c1x1(x, p["w3b"]) * p["s3b"] + p["b3b"]) if "w3b" in p else x
    return jnp.maximum(xs + y, 0.0)


# ---------------------------------------------------------------------------
if __name__ == "__main__":
    key = jax.random.PRNGKey(0)
    kx, kp_ = jax.random.split(key)

    N, H, W = 2, 16, 16
    in_channels, out_channels, repeat = 16, 32, 2

    # PyTorch input convention is NCHW; transpose once to NHWC for the kernel.
    x_nchw = jax.random.normal(kx, (N, in_channels, H, W), jnp.float32)
    x = jnp.transpose(x_nchw, (0, 2, 3, 1))  # NHWC

    params_list = []
    pk = kp_
    for i in range(repeat):
        pk, sub = jax.random.split(pk)
        cin = in_channels if i == 0 else out_channels
        params_list.append(make_unit_params(sub, cin, out_channels))

    # row_chunk=128 -> 2 H-chunks at this spatial size (exercises the chunked
    # conv_2 path); default 512 is the perf setting for real ICNet shapes.
    out = ic_residual_block(x, params_list, row_chunk=128)
    out = jax.block_until_ready(out)

    ref = x
    for p in params_list:
        ref = _unit_ref(ref, p)
    ref = jax.block_until_ready(ref)

    # Tolerance accounts for bf16 MXU inputs (f32 accumulation / epilogue).
    if not bool(jnp.allclose(out, ref, atol=5e-2, rtol=5e-2)):
        raise AssertionError(
            "Pallas output mismatch vs JAX reference: max abs err = "
            f"{float(jnp.max(jnp.abs(out - ref)))}")

    print("KERNEL_OK")
</pallas_src>

<mosaic_0001>
module attributes {stable_mosaic.version = 11 : i64} {
  func.func @_block_kernel(%arg0: i32, %arg1: memref<1x16x16x128xf32, #tpu.memory_space<vmem>>, %arg2: memref<128x256xbf16, #tpu.memory_space<vmem>>, %arg3: memref<1x128xf32, #tpu.memory_space<vmem>>, %arg4: memref<1x128xf32, #tpu.memory_space<vmem>>, %arg5: memref<128x128xbf16, #tpu.memory_space<vmem>>, %arg6: memref<1x128xf32, #tpu.memory_space<vmem>>, %arg7: memref<128x128xbf16, #tpu.memory_space<vmem>>, %arg8: memref<1x128xf32, #tpu.memory_space<vmem>>, %arg9: memref<128x128xbf16, #tpu.memory_space<vmem>>, %arg10: memref<1x128xf32, #tpu.memory_space<vmem>>, %arg11: memref<128x128xbf16, #tpu.memory_space<vmem>>, %arg12: memref<1x128xf32, #tpu.memory_space<vmem>>, %arg13: memref<128x128xbf16, #tpu.memory_space<vmem>>, %arg14: memref<1x128xf32, #tpu.memory_space<vmem>>, %arg15: memref<1x16x16x128xf32, #tpu.memory_space<vmem>>, %arg16: memref<18x32x128xbf16, #tpu.memory_space<vmem>>, %arg17: memref<8x16x128xbf16, #tpu.memory_space<vmem>>, %arg18: memref<256x128xf32, #tpu.memory_space<vmem>>) attributes {dimension_semantics = [#tpu.dimension_semantics<parallel>], iteration_bounds = array<i64: 2>, scalar_prefetch = 0 : i64, scratch_operands = 3 : i64, tpu.core_type = #tpu.core_type<tc>, window_params = [{transform_indices = @transform_0, window_bounds = array<i64: 1, 16, 16, 128>}, {pipeline_mode = #tpu.pipeline_mode<synchronous>, transform_indices = @transform_1, window_bounds = array<i64: 128, 256>}, {pipeline_mode = #tpu.pipeline_mode<synchronous>, transform_indices = @transform_2, window_bounds = array<i64: 1, 128>}, {pipeline_mode = #tpu.pipeline_mode<synchronous>, transform_indices = @transform_3, window_bounds = array<i64: 1, 128>}, {pipeline_mode = #tpu.pipeline_mode<synchronous>, transform_indices = @transform_4, window_bounds = array<i64: 128, 128>}, {pipeline_mode = #tpu.pipeline_mode<synchronous>, transform_indices = @transform_5, window_bounds = array<i64: 1, 128>}, {pipeline_mode = #tpu.pipeline_mode<synchronous>, transform_indices = @transform_6, window_bounds = array<i64: 128, 128>}, {pipeline_mode = #tpu.pipeline_mode<synchronous>, transform_indices = @transform_7, window_bounds = array<i64: 1, 128>}, {pipeline_mode = #tpu.pipeline_mode<synchronous>, transform_indices = @transform_8, window_bounds = array<i64: 128, 128>}, {pipeline_mode = #tpu.pipeline_mode<synchronous>, transform_indices = @transform_9, window_bounds = array<i64: 1, 128>}, {pipeline_mode = #tpu.pipeline_mode<synchronous>, transform_indices = @transform_10, window_bounds = array<i64: 128, 128>}, {pipeline_mode = #tpu.pipeline_mode<synchronous>, transform_indices = @transform_11, window_bounds = array<i64: 1, 128>}, {pipeline_mode = #tpu.pipeline_mode<synchronous>, transform_indices = @transform_12, window_bounds = array<i64: 128, 128>}, {pipeline_mode = #tpu.pipeline_mode<synchronous>, transform_indices = @transform_13, window_bounds = array<i64: 1, 128>}, {transform_indices = @transform_14, window_bounds = array<i64: 1, 16, 16, 128>}]} {
    %c0 = arith.constant 0 : index
    %c0_0 = arith.constant 0 : index
    %c0_1 = arith.constant 0 : index
    %c0_2 = arith.constant 0 : index
    %0 = vector.load %arg1[%c0, %c0_0, %c0_1, %c0_2] : memref<1x16x16x128xf32, #tpu.memory_space<vmem>>, vector<1x16x16x128xf32>
    %1 = vector.shape_cast %0 : vector<1x16x16x128xf32> to vector<256x128xf32>
    %cst = arith.constant 0.000000e+00 : bf16
    %2 = vector.broadcast %cst : bf16 to vector<1x32x128xbf16>
    %c0_3 = arith.constant 0 : index
    %c0_4 = arith.constant 0 : index
    %c0_5 = arith.constant 0 : index
    %3 = vector.load %arg16[%c0_3, %c0_4, %c0_5] : memref<18x32x128xbf16, #tpu.memory_space<vmem>>, vector<1x32x128xbf16>
    tpu.vector_store %arg16[%c0_3, %c0_4, %c0_5], %2 {strides = array<i32>} : memref<18x32x128xbf16, #tpu.memory_space<vmem>>, vector<1x32x128xbf16>,
    %c17 = arith.constant 17 : index
    %c0_6 = arith.constant 0 : index
    %c0_7 = arith.constant 0 : index
    %4 = vector.load %arg16[%c17, %c0_6, %c0_7] : memref<18x32x128xbf16, #tpu.memory_space<vmem>>, vector<1x32x128xbf16>
    tpu.vector_store %arg16[%c17, %c0_6, %c0_7], %2 {strides = array<i32>} : memref<18x32x128xbf16, #tpu.memory_space<vmem>>, vector<1x32x128xbf16>,
    %cst_8 = arith.constant 0.000000e+00 : bf16
    %5 = vector.broadcast %cst_8 : bf16 to vector<16x1x128xbf16>
    %c1 = arith.constant 1 : index
    %c0_9 = arith.constant 0 : index
    %c0_10 = arith.constant 0 : index
    %6 = vector.load %arg16[%c1, %c0_9, %c0_10] : memref<18x32x128xbf16, #tpu.memory_space<vmem>>, vector<16x1x128xbf16>
    tpu.vector_store %arg16[%c1, %c0_9, %c0_10], %5 {strides = array<i32>} : memref<18x32x128xbf16, #tpu.memory_space<vmem>>, vector<16x1x128xbf16>,
    %c1_11 = arith.constant 1 : index
    %c17_12 = arith.constant 17 : index
    %c0_13 = arith.constant 0 : index
    %7 = vector.load %arg16[%c1_11, %c17_12, %c0_13] : memref<18x32x128xbf16, #tpu.memory_space<vmem>>, vector<16x1x128xbf16>
    tpu.vector_store %arg16[%c1_11, %c17_12, %c0_13], %5 {strides = array<i32>} : memref<18x32x128xbf16, #tpu.memory_space<vmem>>, vector<16x1x128xbf16>,
    %cst_14 = arith.constant 0.000000e+00 : bf16
    %8 = vector.broadcast %cst_14 : bf16 to vector<8x16x56xbf16>
    %c0_15 = arith.constant 0 : index
    %c0_16 = arith.constant 0 : index
    %c72 = arith.constant 72 : index
    %9 = vector.load %arg17[%c0_15, %c0_16, %c72] : memref<8x16x128xbf16, #tpu.memory_space<vmem>>, vector<8x16x56xbf16>
    tpu.vector_store %arg17[%c0_15, %c0_16, %c72], %8 {strides = array<i32>} : memref<8x16x128xbf16, #tpu.memory_space<vmem>>, vector<8x16x56xbf16>,
    %10 = arith.truncf %1 : vector<256x128xf32> to vector<256x128xbf16>
    %c0_17 = arith.constant 0 : index
    %c0_18 = arith.constant 0 : index
    %11 = vector.load %arg2[%c0_17, %c0_18] : memref<128x256xbf16, #tpu.memory_space<vmem>>, vector<128x256xbf16>
    %cst_19 = arith.constant dense<0.000000e+00> : vector<256x256xf32>
    %12 = tpu.matmul %10, %11, %cst_19 {dimension_numbers = #tpu.dot_dimension_numbers<[1], [0], [0], [1], [0, 0, 1, 1], [], []>} : vector<256x128xbf16>, vector<128x256xbf16>, vector<256x256xf32> -> vector<256x256xf32>
    %13 = vector.extract_strided_slice %12 {offsets = [0, 0], sizes = [256, 128], strides = [1, 1]} : vector<256x256xf32> to vector<256x128xf32>
    %c0_20 = arith.constant 0 : index
    %c0_21 = arith.constant 0 : index
    %14 = vector.load %arg3[%c0_20, %c0_21] : memref<1x128xf32, #tpu.memory_space<vmem>>, vector<1x128xf32>
    %15 = vector.broadcast %14 : vector<1x128xf32> to vector<256x128xf32>
    %16 = arith.addf %13, %15 : vector<256x128xf32>
    %cst_22 = arith.constant 0.000000e+00 : f32
    %17 = vector.broadcast %cst_22 : f32 to vector<256x128xf32>
    %18 = arith.maximumf %16, %17 : vector<256x128xf32>
    %19 = vector.extract_strided_slice %12 {offsets = [0, 128], sizes = [256, 128], strides = [1, 1]} : vector<256x256xf32> to vector<256x128xf32>
    %c0_23 = arith.constant 0 : index
    %c0_24 = arith.constant 0 : index
    %20 = vector.load %arg4[%c0_23, %c0_24] : memref<1x128xf32, #tpu.memory_space<vmem>>, vector<1x128xf32>
    %21 = vector.broadcast %20 : vector<1x128xf32> to vector<256x128xf32>
    %22 = arith.addf %19, %21 : vector<256x128xf32>
    %23 = vector.shape_cast %18 : vector<256x128xf32> to vector<16x16x128xf32>
    %24 = arith.truncf %23 : vector<16x16x128xf32> to vector<16x16x128xbf16>
    %c1_25 = arith.constant 1 : index
    %c1_26 = arith.constant 1 : index
    %c0_27 = arith.constant 0 : index
    %25 = vector.load %arg16[%c1_25, %c1_26, %c0_27] : memref<18x32x128xbf16, #tpu.memory_space<vmem>>, vector<16x16x128xbf16>
    tpu.vector_store %arg16[%c1_25, %c1_26, %c0_27], %24 {strides = array<i32>} : memref<18x32x128xbf16, #tpu.memory_space<vmem>>, vector<16x16x128xbf16>,
    %c0_28 = arith.constant 0 : index
    %c0_29 = arith.constant 0 : index
    %c0_30 = arith.constant 0 : index
    %26 = vector.load %arg16[%c0_28, %c0_29, %c0_30] : memref<18x32x128xbf16, #tpu.memory_space<vmem>>, vector<8x16x8xbf16>
    %c0_31 = arith.constant 0 : index
    %c0_32 = arith.constant 0 : index
    %c0_33 = arith.constant 0 : index
    %27 = vector.load %arg17[%c0_31, %c0_32, %c0_33] : memref<8x16x128xbf16, #tpu.memory_space<vmem>>, vector<8x16x8xbf16>
    tpu.vector_store %arg17[%c0_31, %c0_32, %c0_33], %26 {strides = array<i32>} : memref<8x16x128xbf16, #tpu.memory_space<vmem>>, vector<8x16x8xbf16>,
    %c0_34 = arith.constant 0 : index
    %c1_35 = arith.constant 1 : index
    %c0_36 = arith.constant 0 : index
    %28 = vector.load %arg16[%c0_34, %c1_35, %c0_36] : memref<18x32x128xbf16, #tpu.memory_space<vmem>>, vector<8x16x8xbf16>
    %c0_37 = arith.constant 0 : index
    %c0_38 = arith.constant 0 : index
    %c8 = arith.constant 8 : index
    %29 = vector.load %arg17[%c0_37, %c0_38, %c8] : memref<8x16x128xbf16, #tpu.memory_space<vmem>>, vector<8x16x8xbf16>
    tpu.vector_store %arg17[%c0_37, %c0_38, %c8], %28 {strides = array<i32>} : memref<8x16x128xbf16, #tpu.memory_space<vmem>>, vector<8x16x8xbf16>,
    %c0_39 = arith.constant 0 : index
    %c2 = arith.constant 2 : index
    %c0_40 = arith.constant 0 : index
    %30 = vector.load %arg16[%c0_39, %c2, %c0_40] : memref<18x32x128xbf16, #tpu.memory_space<vmem>>, vector<8x16x8xbf16>
    %c0_41 = arith.constant 0 : index
    %c0_42 = arith.constant 0 : index
    %c16 = arith.constant 16 : index
    %31 = vector.load %arg17[%c0_41, %c0_42, %c16] : memref<8x16x128xbf16, #tpu.memory_space<vmem>>, vector<8x16x8xbf16>
    tpu.vector_store %arg17[%c0_41, %c0_42, %c16], %30 {strides = array<i32>} : memref<8x16x128xbf16, #tpu.memory_space<vmem>>, vector<8x16x8xbf16>,
    %c1_43 = arith.constant 1 : index
    %c0_44 = arith.constant 0 : index
    %c0_45 = arith.constant 0 : index
    %32 = vector.load %arg16[%c1_43, %c0_44, %c0_45] : memref<18x32x128xbf16, #tpu.memory_space<vmem>>, vector<8x16x8xbf16>
    %c0_46 = arith.constant 0 : index
    %c0_47 = arith.constant 0 : index
    %c24 = arith.constant 24 : index
    %33 = vector.load %arg17[%c0_46, %c0_47, %c24] : memref<8x16x128xbf16, #tpu.memory_space<vmem>>, vector<8x16x8xbf16>
    tpu.vector_store %arg17[%c0_46, %c0_47, %c24], %32 {strides = array<i32>} : memref<8x16x128xbf16, #tpu.memory_space<vmem>>, vector<8x16x8xbf16>,
    %c1_48 = arith.constant 1 : index
    %c1_49 = arith.constant 1 : index
    %c0_50 = arith.constant 0 : index
    %34 = vector.load %arg16[%c1_48, %c1_49, %c0_50] : memref<18x32x128xbf16, #tpu.memory_space<vmem>>, vector<8x16x8xbf16>
    %c0_51 = arith.constant 0 : index
    %c0_52 = arith.constant 0 : index
    %c32 = arith.constant 32 : index
    %35 = vector.load %arg17[%c0_51, %c0_52, %c32] : memref<8x16x128xbf16, #tpu.memory_space<vmem>>, vector<8x16x8xbf16>
    tpu.vector_store %arg17[%c0_51, %c0_52, %c32], %34 {strides = array<i32>} : memref<8x16x128xbf16, #tpu.memory_space<vmem>>, vector<8x16x8xbf16>,
    %c1_53 = arith.constant 1 : index
    %c2_54 = arith.constant 2 : index
    %c0_55 = arith.constant 0 : index
    %36 = vector.load %arg16[%c1_53, %c2_54, %c0_55] : memref<18x32x128xbf16, #tpu.memory_space<vmem>>, vector<8x16x8xbf16>
    %c0_56 = arith.constant 0 : index
    %c0_57 = arith.constant 0 : index
    %c40 = arith.constant 40 : index
    %37 = vector.load %arg17[%c0_56, %c0_57, %c40] : memref<8x16x128xbf16, #tpu.memory_space<vmem>>, vector<8x16x8xbf16>
    tpu.vector_store %arg17[%c0_56, %c0_57, %c40], %36 {strides = array<i32>} : memref<8x16x128xbf16, #tpu.memory_space<vmem>>, vector<8x16x8xbf16>,
    %c2_58 = arith.constant 2 : index
    %c0_59 = arith.constant 0 : index
    %c0_60 = arith.constant 0 : index
    %38 = vector.load %arg16[%c2_58, %c0_59, %c0_60] : memref<18x32x128xbf16, #tpu.memory_space<vmem>>, vector<8x16x8xbf16>
    %c0_61 = arith.constant 0 : index
    %c0_62 = arith.constant 0 : index
    %c48 = arith.constant 48 : index
    %39 = vector.load %arg17[%c0_61, %c0_62, %c48] : memref<8x16x128xbf16, #tpu.memory_space<vmem>>, vector<8x16x8xbf16>
    tpu.vector_store %arg17[%c0_61, %c0_62, %c48], %38 {strides = array<i32>} : memref<8x16x128xbf16, #tpu.memory_space<vmem>>, vector<8x16x8xbf16>,
    %c2_63 = arith.constant 2 : index
    %c1_64 = arith.constant 1 : index
    %c0_65 = arith.constant 0 : index
    %40 = vector.load %arg16[%c2_63, %c1_64, %c0_65] : memref<18x32x128xbf16, #tpu.memory_space<vmem>>, vector<8x16x8xbf16>
    %c0_66 = arith.constant 0 : index
    %c0_67 = arith.constant 0 : index
    %c56 = arith.constant 56 : index
    %41 = vector.load %arg17[%c0_66, %c0_67, %c56] : memref<8x16x128xbf16, #tpu.memory_space<vmem>>, vector<8x16x8xbf16>
    tpu.vector_store %arg17[%c0_66, %c0_67, %c56], %40 {strides = array<i32>} : memref<8x16x128xbf16, #tpu.memory_space<vmem>>, vector<8x16x8xbf16>,
    %c2_68 = arith.constant 2 : index
    %c2_69 = arith.constant 2 : index
    %c0_70 = arith.constant 0 : index
    %42 = vector.load %arg16[%c2_68, %c2_69, %c0_70] : memref<18x32x128xbf16, #tpu.memory_space<vmem>>, vector<8x16x8xbf16>
    %c0_71 = arith.constant 0 : index
    %c0_72 = arith.constant 0 : index
    %c64 = arith.constant 64 : index
    %43 = vector.load %arg17[%c0_71, %c0_72, %c64] : memref<8x16x128xbf16, #tpu.memory_space<vmem>>, vector<8x16x8xbf16>
    tpu.vector_store %arg17[%c0_71, %c0_72, %c64], %42 {strides = array<i32>} : memref<8x16x128xbf16, #tpu.memory_space<vmem>>, vector<8x16x8xbf16>,
    %c0_73 = arith.constant 0 : index
    %c0_74 = arith.constant 0 : index
    %c0_75 = arith.constant 0 : index
    %44 = vector.load %arg17[%c0_73, %c0_74, %c0_75] : memref<8x16x128xbf16, #tpu.memory_space<vmem>>, vector<8x16x128xbf16>
    %45 = vector.shape_cast %44 : vector<8x16x128xbf16> to vector<128x128xbf16>
    %c0_76 = arith.constant 0 : index
    %c0_77 = arith.constant 0 : index
    %46 = vector.load %arg5[%c0_76, %c0_77] : memref<128x128xbf16, #tpu.memory_space<vmem>>, vector<128x128xbf16>
    %cst_78 = arith.constant dense<0.000000e+00> : vector<128x128xf32>
    %47 = tpu.matmul %45, %46, %cst_78 {dimension_numbers = #tpu.dot_dimension_numbers<[1], [0], [0], [1], [0, 0, 1, 1], [], []>} : vector<128x128xbf16>, vector<128x128xbf16>, vector<128x128xf32> -> vector<128x128xf32>
    %c0_79 = arith.constant 0 : index
    %c0_80 = arith.constant 0 : index
    %48 = vector.load %arg6[%c0_79, %c0_80] : memref<1x128xf32, #tpu.memory_space<vmem>>, vector<1x128xf32>
    %49 = vector.broadcast %48 : vector<1x128xf32> to vector<128x128xf32>
    %50 = arith.addf %47, %49 : vector<128x128xf32>
    %cst_81 = arith.constant 0.000000e+00 : f32
    %51 = vector.broadcast %cst_81 : f32 to vector<128x128xf32>
    %52 = arith.maximumf %50, %51 : vector<128x128xf32>
    %53 = arith.truncf %52 : vector<128x128xf32> to vector<128x128xbf16>
    %c0_82 = arith.constant 0 : index
    %c0_83 = arith.constant 0 : index
    %54 = vector.load %arg7[%c0_82, %c0_83] : memref<128x128xbf16, #tpu.memory_space<vmem>>, vector<128x128xbf16>
    %cst_84 = arith.constant dense<0.000000e+00> : vector<128x128xf32>
    %55 = tpu.matmul %53, %54, %cst_84 {dimension_numbers = #tpu.dot_dimension_numbers<[1], [0], [0], [1], [0, 0, 1, 1], [], []>} : vector<128x128xbf16>, vector<128x128xbf16>, vector<128x128xf32> -> vector<128x128xf32>
    %c0_85 = arith.constant 0 : index
    %c0_86 = arith.constant 0 : index
    %56 = vector.load %arg8[%c0_85, %c0_86] : memref<1x128xf32, #tpu.memory_space<vmem>>, vector<1x128xf32>
    %57 = vector.broadcast %56 : vector<1x128xf32> to vector<128x128xf32>
    %58 = arith.addf %55, %57 : vector<128x128xf32>
    %59 = vector.extract_strided_slice %22 {offsets = [0, 0], sizes = [128, 128], strides = [1, 1]} : vector<256x128xf32> to vector<128x128xf32>
    %60 = arith.addf %59, %58 : vector<128x128xf32>
    %cst_87 = arith.constant 0.000000e+00 : f32
    %61 = vector.broadcast %cst_87 : f32 to vector<128x128xf32>
    %62 = arith.maximumf %60, %61 : vector<128x128xf32>
    %c0_88 = arith.constant 0 : index
    %c0_89 = arith.constant 0 : index
    %63 = vector.load %arg18[%c0_88, %c0_89] : memref<256x128xf32, #tpu.memory_space<vmem>>, vector<128x128xf32>
    tpu.vector_store %arg18[%c0_88, %c0_89], %62 {strides = array<i32>} : memref<256x128xf32, #tpu.memory_space<vmem>>, vector<128x128xf32>,
    %c8_90 = arith.constant 8 : index
    %c0_91 = arith.constant 0 : index
    %c0_92 = arith.constant 0 : index
    %64 = vector.load %arg16[%c8_90, %c0_91, %c0_92] : memref<18x32x128xbf16, #tpu.memory_space<vmem>>, vector<8x16x8xbf16>
    %c0_93 = arith.constant 0 : index
    %c0_94 = arith.constant 0 : index
    %c0_95 = arith.constant 0 : index
    %65 = vector.load %arg17[%c0_93, %c0_94, %c0_95] : memref<8x16x128xbf16, #tpu.memory_space<vmem>>, vector<8x16x8xbf16>
    tpu.vector_store %arg17[%c0_93, %c0_94, %c0_95], %64 {strides = array<i32>} : memref<8x16x128xbf16, #tpu.memory_space<vmem>>, vector<8x16x8xbf16>,
    %c8_96 = arith.constant 8 : index
    %c1_97 = arith.constant 1 : index
    %c0_98 = arith.constant 0 : index
    %66 = vector.load %arg16[%c8_96, %c1_97, %c0_98] : memref<18x32x128xbf16, #tpu.memory_space<vmem>>, vector<8x16x8xbf16>
    %c0_99 = arith.constant 0 : index
    %c0_100 = arith.constant 0 : index
    %c8_101 = arith.constant 8 : index
    %67 = vector.load %arg17[%c0_99, %c0_100, %c8_101] : memref<8x16x128xbf16, #tpu.memory_space<vmem>>, vector<8x16x8xbf16>
    tpu.vector_store %arg17[%c0_99, %c0_100, %c8_101], %66 {strides = array<i32>} : memref<8x16x128xbf16, #tpu.memory_space<vmem>>, vector<8x16x8xbf16>,
    %c8_102 = arith.constant 8 : index
    %c2_103 = arith.constant 2 : index
    %c0_104 = arith.constant 0 : index
    %68 = vector.load %arg16[%c8_102, %c2_103, %c0_104] : memref<18x32x128xbf16, #tpu.memory_space<vmem>>, vector<8x16x8xbf16>
    %c0_105 = arith.constant 0 : index
    %c0_106 = arith.constant 0 : index
    %c16_107 = arith.constant 16 : index
    %69 = vector.load %arg17[%c0_105, %c0_106, %c16_107] : memref<8x16x128xbf16, #tpu.memory_space<vmem>>, vector<8x16x8xbf16>
    tpu.vector_store %arg17[%c0_105, %c0_106, %c16_107], %68 {strides = array<i32>} : memref<8x16x128xbf16, #tpu.memory_space<vmem>>, vector<8x16x8xbf16>,
    %c9 = arith.constant 9 : index
    %c0_108 = arith.constant 0 : index
    %c0_109 = arith.constant 0 : index
    %70 = vector.load %arg16[%c9, %c0_108, %c0_109] : memref<18x32x128xbf16, #tpu.memory_space<vmem>>, vector<8x16x8xbf16>
    %c0_110 = arith.constant 0 : index
    %c0_111 = arith.constant 0 : index
    %c24_112 = arith.constant 24 : index
    %71 = vector.load %arg17[%c0_110, %c0_111, %c24_112] : memref<8x16x128xbf16, #tpu.memory_space<vmem>>, vector<8x16x8xbf16>
    tpu.vector_store %arg17[%c0_110, %c0_111, %c24_112], %70 {strides = array<i32>} : memref<8x16x128xbf16, #tpu.memory_space<vmem>>, vector<8x16x8xbf16>,
    %c9_113 = arith.constant 9 : index
    %c1_114 = arith.constant 1 : index
    %c0_115 = arith.constant 0 : index
    %72 = vector.load %arg16[%c9_113, %c1_114, %c0_115] : memref<18x32x128xbf16, #tpu.memory_space<vmem>>, vector<8x16x8xbf16>
    %c0_116 = arith.constant 0 : index
    %c0_117 = arith.constant 0 : index
    %c32_118 = arith.constant 32 : index
    %73 = vector.load %arg17[%c0_116, %c0_117, %c32_118] : memref<8x16x128xbf16, #tpu.memory_space<vmem>>, vector<8x16x8xbf16>
    tpu.vector_store %arg17[%c0_116, %c0_117, %c32_118], %72 {strides = array<i32>} : memref<8x16x128xbf16, #tpu.memory_space<vmem>>, vector<8x16x8xbf16>,
    %c9_119 = arith.constant 9 : index
    %c2_120 = arith.constant 2 : index
    %c0_121 = arith.constant 0 : index
    %74 = vector.load %arg16[%c9_119, %c2_120, %c0_121] : memref<18x32x128xbf16, #tpu.memory_space<vmem>>, vector<8x16x8xbf16>
    %c0_122 = arith.constant 0 : index
    %c0_123 = arith.constant 0 : index
    %c40_124 = arith.constant 40 : index
    %75 = vector.load %arg17[%c0_122, %c0_123, %c40_124] : memref<8x16x128xbf16, #tpu.memory_space<vmem>>, vector<8x16x8xbf16>
    tpu.vector_store %arg17[%c0_122, %c0_123, %c40_124], %74 {strides = array<i32>} : memref<8x16x128xbf16, #tpu.memory_space<vmem>>, vector<8x16x8xbf16>,
    %c10 = arith.constant 10 : index
    %c0_125 = arith.constant 0 : index
    %c0_126 = arith.constant 0 : index
    %76 = vector.load %arg16[%c10, %c0_125, %c0_126] : memref<18x32x128xbf16, #tpu.memory_space<vmem>>, vector<8x16x8xbf16>
    %c0_127 = arith.constant 0 : index
    %c0_128 = arith.constant 0 : index
    %c48_129 = arith.constant 48 : index
    %77 = vector.load %arg17[%c0_127, %c0_128, %c48_129] : memref<8x16x128xbf16, #tpu.memory_space<vmem>>, vector<8x16x8xbf16>
    tpu.vector_store %arg17[%c0_127, %c0_128, %c48_129], %76 {strides = array<i32>} : memref<8x16x128xbf16, #tpu.memory_space<vmem>>, vector<8x16x8xbf16>,
    %c10_130 = arith.constant 10 : index
    %c1_131 = arith.constant 1 : index
    %c0_132 = arith.constant 0 : index
    %78 = vector.load %arg16[%c10_130, %c1_131, %c0_132] : memref<18x32x128xbf16, #tpu.memory_space<vmem>>, vector<8x16x8xbf16>
    %c0_133 = arith.constant 0 : index
    %c0_134 = arith.constant 0 : index
    %c56_135 = arith.constant 56 : index
    %79 = vector.load %arg17[%c0_133, %c0_134, %c56_135] : memref<8x16x128xbf16, #tpu.memory_space<vmem>>, vector<8x16x8xbf16>
    tpu.vector_store %arg17[%c0_133, %c0_134, %c56_135], %78 {strides = array<i32>} : memref<8x16x128xbf16, #tpu.memory_space<vmem>>, vector<8x16x8xbf16>,
    %c10_136 = arith.constant 10 : index
    %c2_137 = arith.constant 2 : index
    %c0_138 = arith.constant 0 : index
    %80 = vector.load %arg16[%c10_136, %c2_137, %c0_138] : memref<18x32x128xbf16, #tpu.memory_space<vmem>>, vector<8x16x8xbf16>
    %c0_139 = arith.constant 0 : index
    %c0_140 = arith.constant 0 : index
    %c64_141 = arith.constant 64 : index
    %81 = vector.load %arg17[%c0_139, %c0_140, %c64_141] : memref<8x16x128xbf16, #tpu.memory_space<vmem>>, vector<8x16x8xbf16>
    tpu.vector_store %arg17[%c0_139, %c0_140, %c64_141], %80 {strides = array<i32>} : memref<8x16x128xbf16, #tpu.memory_space<vmem>>, vector<8x16x8xbf16>,
    %c0_142 = arith.constant 0 : index
    %c0_143 = arith.constant 0 : index
    %c0_144 = arith.constant 0 : index
    %82 = vector.load %arg17[%c0_142, %c0_143, %c0_144] : memref<8x16x128xbf16, #tpu.memory_space<vmem>>, vector<8x16x128xbf16>
    %83 = vector.shape_cast %82 : vector<8x16x128xbf16> to vector<128x128xbf16>
    %c0_145 = arith.constant 0 : index
    %c0_146 = arith.constant 0 : index
    %84 = vector.load %arg5[%c0_145, %c0_146] : memref<128x128xbf16, #tpu.memory_space<vmem>>, vector<128x128xbf16>
    %cst_147 = arith.constant dense<0.000000e+00> : vector<128x128xf32>
    %85 = tpu.matmul %83, %84, %cst_147 {dimension_numbers = #tpu.dot_dimension_numbers<[1], [0], [0], [1], [0, 0, 1, 1], [], []>} : vector<128x128xbf16>, vector<128x128xbf16>, vector<128x128xf32> -> vector<128x128xf32>
    %c0_148 = arith.constant 0 : index
    %c0_149 = arith.constant 0 : index
    %86 = vector.load %arg6[%c0_148, %c0_149] : memref<1x128xf32, #tpu.memory_space<vmem>>, vector<1x128xf32>
    %87 = vector.broadcast %86 : vector<1x128xf32> to vector<128x128xf32>
    %88 = arith.addf %85, %87 : vector<128x128xf32>
    %cst_150 = arith.constant 0.000000e+00 : f32
    %89 = vector.broadcast %cst_150 : f32 to vector<128x128xf32>
    %90 = arith.maximumf %88, %89 : vector<128x128xf32>
    %91 = arith.truncf %90 : vector<128x128xf32> to vector<128x128xbf16>
    %c0_151 = arith.constant 0 : index
    %c0_152 = arith.constant 0 : index
    %92 = vector.load %arg7[%c0_151, %c0_152] : memref<128x128xbf16, #tpu.memory_space<vmem>>, vector<128x128xbf16>
    %cst_153 = arith.constant dense<0.000000e+00> : vector<128x128xf32>
    %93 = tpu.matmul %91, %92, %cst_153 {dimension_numbers = #tpu.dot_dimension_numbers<[1], [0], [0], [1], [0, 0, 1, 1], [], []>} : vector<128x128xbf16>, vector<128x128xbf16>, vector<128x128xf32> -> vector<128x128xf32>
    %c0_154 = arith.constant 0 : index
    %c0_155 = arith.constant 0 : index
    %94 = vector.load %arg8[%c0_154, %c0_155] : memref<1x128xf32, #tpu.memory_space<vmem>>, vector<1x128xf32>
    %95 = vector.broadcast %94 : vector<1x128xf32> to vector<128x128xf32>
    %96 = arith.addf %93, %95 : vector<128x128xf32>
    %97 = vector.extract_strided_slice %22 {offsets = [128, 0], sizes = [128, 128], strides = [1, 1]} : vector<256x128xf32> to vector<128x128xf32>
    %98 = arith.addf %97, %96 : vector<128x128xf32>
    %cst_156 = arith.constant 0.000000e+00 : f32
    %99 = vector.broadcast %cst_156 : f32 to vector<128x128xf32>
    %100 = arith.maximumf %98, %99 : vector<128x128xf32>
    %c128 = arith.constant 128 : index
    %c0_157 = arith.constant 0 : index
    %101 = vector.load %arg18[%c128, %c0_157] : memref<256x128xf32, #tpu.memory_space<vmem>>, vector<128x128xf32>
    tpu.vector_store %arg18[%c128, %c0_157], %100 {strides = array<i32>} : memref<256x128xf32, #tpu.memory_space<vmem>>, vector<128x128xf32>,
    %c0_158 = arith.constant 0 : index
    %c0_159 = arith.constant 0 : index
    %102 = vector.load %arg18[%c0_158, %c0_159] : memref<256x128xf32, #tpu.memory_space<vmem>>, vector<256x128xf32>
    %103 = arith.truncf %102 : vector<256x128xf32> to vector<256x128xbf16>
    %c0_160 = arith.constant 0 : index
    %c0_161 = arith.constant 0 : index
    %104 = vector.load %arg9[%c0_160, %c0_161] : memref<128x128xbf16, #tpu.memory_space<vmem>>, vector<128x128xbf16>
    %cst_162 = arith.constant dense<0.000000e+00> : vector<256x128xf32>
    %105 = tpu.matmul %103, %104, %cst_162 {dimension_numbers = #tpu.dot_dimension_numbers<[1], [0], [0], [1], [0, 0, 1, 1], [], []>} : vector<256x128xbf16>, vector<128x128xbf16>, vector<256x128xf32> -> vector<256x128xf32>
    %c0_163 = arith.constant 0 : index
    %c0_164 = arith.constant 0 : index
    %106 = vector.load %arg10[%c0_163, %c0_164] : memref<1x128xf32, #tpu.memory_space<vmem>>, vector<1x128xf32>
    %107 = vector.broadcast %106 : vector<1x128xf32> to vector<256x128xf32>
    %108 = arith.addf %105, %107 : vector<256x128xf32>
    %cst_165 = arith.constant 0.000000e+00 : f32
    %109 = vector.broadcast %cst_165 : f32 to vector<256x128xf32>
    %110 = arith.maximumf %108, %109 : vector<256x128xf32>
    %111 = vector.shape_cast %110 : vector<256x128xf32> to vector<16x16x128xf32>
    %112 = arith.truncf %111 : vector<16x16x128xf32> to vector<16x16x128xbf16>
    %c1_166 = arith.constant 1 : index
    %c1_167 = arith.constant 1 : index
    %c0_168 = arith.constant 0 : index
    %113 = vector.load %arg16[%c1_166, %c1_167, %c0_168] : memref<18x32x128xbf16, #tpu.memory_space<vmem>>, vector<16x16x128xbf16>
    tpu.vector_store %arg16[%c1_166, %c1_167, %c0_168], %112 {strides = array<i32>} : memref<18x32x128xbf16, #tpu.memory_space<vmem>>, vector<16x16x128xbf16>,
    %c0_169 = arith.constant 0 : index
    %c0_170 = arith.constant 0 : index
    %c0_171 = arith.constant 0 : index
    %114 = vector.load %arg16[%c0_169, %c0_170, %c0_171] : memref<18x32x128xbf16, #tpu.memory_space<vmem>>, vector<8x16x8xbf16>
    %c0_172 = arith.constant 0 : index
    %c0_173 = arith.constant 0 : index
    %c0_174 = arith.constant 0 : index
    %115 = vector.load %arg17[%c0_172, %c0_173, %c0_174] : memref<8x16x128xbf16, #tpu.memory_space<vmem>>, vector<8x16x8xbf16>
    tpu.vector_store %arg17[%c0_172, %c0_173, %c0_174], %114 {strides = array<i32>} : memref<8x16x128xbf16, #tpu.memory_space<vmem>>, vector<8x16x8xbf16>,
    %c0_175 = arith.constant 0 : index
    %c1_176 = arith.constant 1 : index
    %c0_177 = arith.constant 0 : index
    %116 = vector.load %arg16[%c0_175, %c1_176, %c0_177] : memref<18x32x128xbf16, #tpu.memory_space<vmem>>, vector<8x16x8xbf16>
    %c0_178 = arith.constant 0 : index
    %c0_179 = arith.constant 0 : index
    %c8_180 = arith.constant 8 : index
    %117 = vector.load %arg17[%c0_178, %c0_179, %c8_180] : memref<8x16x128xbf16, #tpu.memory_space<vmem>>, vector<8x16x8xbf16>
    tpu.vector_store %arg17[%c0_178, %c0_179, %c8_180], %116 {strides = array<i32>} : memref<8x16x128xbf16, #tpu.memory_space<vmem>>, vector<8x16x8xbf16>,
    %c0_181 = arith.constant 0 : index
    %c2_182 = arith.constant 2 : index
    %c0_183 = arith.constant 0 : index
    %118 = vector.load %arg16[%c0_181, %c2_182, %c0_183] : memref<18x32x128xbf16, #tpu.memory_space<vmem>>, vector<8x16x8xbf16>
    %c0_184 = arith.constant 0 : index
    %c0_185 = arith.constant 0 : index
    %c16_186 = arith.constant 16 : index
    %119 = vector.load %arg17[%c0_184, %c0_185, %c16_186] : memref<8x16x128xbf16, #tpu.memory_space<vmem>>, vector<8x16x8xbf16>
    tpu.vector_store %arg17[%c0_184, %c0_185, %c16_186], %118 {strides = array<i32>} : memref<8x16x128xbf16, #tpu.memory_space<vmem>>, vector<8x16x8xbf16>,
    %c1_187 = arith.constant 1 : index
    %c0_188 = arith.constant 0 : index
    %c0_189 = arith.constant 0 : index
    %120 = vector.load %arg16[%c1_187, %c0_188, %c0_189] : memref<18x32x128xbf16, #tpu.memory_space<vmem>>, vector<8x16x8xbf16>
    %c0_190 = arith.constant 0 : index
    %c0_191 = arith.constant 0 : index
    %c24_192 = arith.constant 24 : index
    %121 = vector.load %arg17[%c0_190, %c0_191, %c24_192] : memref<8x16x128xbf16, #tpu.memory_space<vmem>>, vector<8x16x8xbf16>
    tpu.vector_store %arg17[%c0_190, %c0_191, %c24_192], %120 {strides = array<i32>} : memref<8x16x128xbf16, #tpu.memory_space<vmem>>, vector<8x16x8xbf16>,
    %c1_193 = arith.constant 1 : index
    %c1_194 = arith.constant 1 : index
    %c0_195 = arith.constant 0 : index
    %122 = vector.load %arg16[%c1_193, %c1_194, %c0_195] : memref<18x32x128xbf16, #tpu.memory_space<vmem>>, vector<8x16x8xbf16>
    %c0_196 = arith.constant 0 : index
    %c0_197 = arith.constant 0 : index
    %c32_198 = arith.constant 32 : index
    %123 = vector.load %arg17[%c0_196, %c0_197, %c32_198] : memref<8x16x128xbf16, #tpu.memory_space<vmem>>, vector<8x16x8xbf16>
    tpu.vector_store %arg17[%c0_196, %c0_197, %c32_198], %122 {strides = array<i32>} : memref<8x16x128xbf16, #tpu.memory_space<vmem>>, vector<8x16x8xbf16>,
    %c1_199 = arith.constant 1 : index
    %c2_200 = arith.constant 2 : index
    %c0_201 = arith.constant 0 : index
    %124 = vector.load %arg16[%c1_199, %c2_200, %c0_201] : memref<18x32x128xbf16, #tpu.memory_space<vmem>>, vector<8x16x8xbf16>
    %c0_202 = arith.constant 0 : index
    %c0_203 = arith.constant 0 : index
    %c40_204 = arith.constant 40 : index
    %125 = vector.load %arg17[%c0_202, %c0_203, %c40_204] : memref<8x16x128xbf16, #tpu.memory_space<vmem>>, vector<8x16x8xbf16>
    tpu.vector_store %arg17[%c0_202, %c0_203, %c40_204], %124 {strides = array<i32>} : memref<8x16x128xbf16, #tpu.memory_space<vmem>>, vector<8x16x8xbf16>,
    %c2_205 = arith.constant 2 : index
    %c0_206 = arith.constant 0 : index
    %c0_207 = arith.constant 0 : index
    %126 = vector.load %arg16[%c2_205, %c0_206, %c0_207] : memref<18x32x128xbf16, #tpu.memory_space<vmem>>, vector<8x16x8xbf16>
    %c0_208 = arith.constant 0 : index
    %c0_209 = arith.constant 0 : index
    %c48_210 = arith.constant 48 : index
    %127 = vector.load %arg17[%c0_208, %c0_209, %c48_210] : memref<8x16x128xbf16, #tpu.memory_space<vmem>>, vector<8x16x8xbf16>
    tpu.vector_store %arg17[%c0_208, %c0_209, %c48_210], %126 {strides = array<i32>} : memref<8x16x128xbf16, #tpu.memory_space<vmem>>, vector<8x16x8xbf16>,
    %c2_211 = arith.constant 2 : index
    %c1_212 = arith.constant 1 : index
    %c0_213 = arith.constant 0 : index
    %128 = vector.load %arg16[%c2_211, %c1_212, %c0_213] : memref<18x32x128xbf16, #tpu.memory_space<vmem>>, vector<8x16x8xbf16>
    %c0_214 = arith.constant 0 : index
    %c0_215 = arith.constant 0 : index
    %c56_216 = arith.constant 56 : index
    %129 = vector.load %arg17[%c0_214, %c0_215, %c56_216] : memref<8x16x128xbf16, #tpu.memory_space<vmem>>, vector<8x16x8xbf16>
    tpu.vector_store %arg17[%c0_214, %c0_215, %c56_216], %128 {strides = array<i32>} : memref<8x16x128xbf16, #tpu.memory_space<vmem>>, vector<8x16x8xbf16>,
    %c2_217 = arith.constant 2 : index
    %c2_218 = arith.constant 2 : index
    %c0_219 = arith.constant 0 : index
    %130 = vector.load %arg16[%c2_217, %c2_218, %c0_219] : memref<18x32x128xbf16, #tpu.memory_space<vmem>>, vector<8x16x8xbf16>
    %c0_220 = arith.constant 0 : index
    %c0_221 = arith.constant 0 : index
    %c64_222 = arith.constant 64 : index
    %131 = vector.load %arg17[%c0_220, %c0_221, %c64_222] : memref<8x16x128xbf16, #tpu.memory_space<vmem>>, vector<8x16x8xbf16>
    tpu.vector_store %arg17[%c0_220, %c0_221, %c64_222], %130 {strides = array<i32>} : memref<8x16x128xbf16, #tpu.memory_space<vmem>>, vector<8x16x8xbf16>,
    %c0_223 = arith.constant 0 : index
    %c0_224 = arith.constant 0 : index
    %c0_225 = arith.constant 0 : index
    %132 = vector.load %arg17[%c0_223, %c0_224, %c0_225] : memref<8x16x128xbf16, #tpu.memory_space<vmem>>, vector<8x16x128xbf16>
    %133 = vector.shape_cast %132 : vector<8x16x128xbf16> to vector<128x128xbf16>
    %c0_226 = arith.constant 0 : index
    %c0_227 = arith.constant 0 : index
    %134 = vector.load %arg11[%c0_226, %c0_227] : memref<128x128xbf16, #tpu.memory_space<vmem>>, vector<128x128xbf16>
    %cst_228 = arith.constant dense<0.000000e+00> : vector<128x128xf32>
    %135 = tpu.matmul %133, %134, %cst_228 {dimension_numbers = #tpu.dot_dimension_numbers<[1], [0], [0], [1], [0, 0, 1, 1], [], []>} : vector<128x128xbf16>, vector<128x128xbf16>, vector<128x128xf32> -> vector<128x128xf32>
    %c0_229 = arith.constant 0 : index
    %c0_230 = arith.constant 0 : index
    %136 = vector.load %arg12[%c0_229, %c0_230] : memref<1x128xf32, #tpu.memory_space<vmem>>, vector<1x128xf32>
    %137 = vector.broadcast %136 : vector<1x128xf32> to vector<128x128xf32>
    %138 = arith.addf %135, %137 : vector<128x128xf32>
    %cst_231 = arith.constant 0.000000e+00 : f32
    %139 = vector.broadcast %cst_231 : f32 to vector<128x128xf32>
    %140 = arith.maximumf %138, %139 : vector<128x128xf32>
    %141 = arith.truncf %140 : vector<128x128xf32> to vector<128x128xbf16>
    %c0_232 = arith.constant 0 : index
    %c0_233 = arith.constant 0 : index
    %142 = vector.load %arg13[%c0_232, %c0_233] : memref<128x128xbf16, #tpu.memory_space<vmem>>, vector<128x128xbf16>
    %cst_234 = arith.constant dense<0.000000e+00> : vector<128x128xf32>
    %143 = tpu.matmul %141, %142, %cst_234 {dimension_numbers = #tpu.dot_dimension_numbers<[1], [0], [0], [1], [0, 0, 1, 1], [], []>} : vector<128x128xbf16>, vector<128x128xbf16>, vector<128x128xf32> -> vector<128x128xf32>
    %c0_235 = arith.constant 0 : index
    %c0_236 = arith.constant 0 : index
    %144 = vector.load %arg14[%c0_235, %c0_236] : memref<1x128xf32, #tpu.memory_space<vmem>>, vector<1x128xf32>
    %145 = vector.broadcast %144 : vector<1x128xf32> to vector<128x128xf32>
    %146 = arith.addf %143, %145 : vector<128x128xf32>
    %147 = vector.extract_strided_slice %102 {offsets = [0, 0], sizes = [128, 128], strides = [1, 1]} : vector<256x128xf32> to vector<128x128xf32>
    %148 = arith.addf %147, %146 : vector<128x128xf32>
    %cst_237 = arith.constant 0.000000e+00 : f32
    %149 = vector.broadcast %cst_237 : f32 to vector<128x128xf32>
    %150 = arith.maximumf %148, %149 : vector<128x128xf32>
    %151 = vector.shape_cast %150 : vector<128x128xf32> to vector<1x8x16x128xf32>
    %c0_238 = arith.constant 0 : index
    %c0_239 = arith.constant 0 : index
    %c0_240 = arith.constant 0 : index
    %c0_241 = arith.constant 0 : index
    %152 = vector.load %arg15[%c0_238, %c0_239, %c0_240, %c0_241] : memref<1x16x16x128xf32, #tpu.memory_space<vmem>>, vector<1x8x16x128xf32>
    tpu.vector_store %arg15[%c0_238, %c0_239, %c0_240, %c0_241], %151 {strides = array<i32>} : memref<1x16x16x128xf32, #tpu.memory_space<vmem>>, vector<1x8x16x128xf32>,
    %c8_242 = arith.constant 8 : index
    %c0_243 = arith.constant 0 : index
    %c0_244 = arith.constant 0 : index
    %153 = vector.load %arg16[%c8_242, %c0_243, %c0_244] : memref<18x32x128xbf16, #tpu.memory_space<vmem>>, vector<8x16x8xbf16>
    %c0_245 = arith.constant 0 : index
    %c0_246 = arith.constant 0 : index
    %c0_247 = arith.constant 0 : index
    %154 = vector.load %arg17[%c0_245, %c0_246, %c0_247] : memref<8x16x128xbf16, #tpu.memory_space<vmem>>, vector<8x16x8xbf16>
    tpu.vector_store %arg17[%c0_245, %c0_246, %c0_247], %153 {strides = array<i32>} : memref<8x16x128xbf16, #tpu.memory_space<vmem>>, vector<8x16x8xbf16>,
    %c8_248 = arith.constant 8 : index
    %c1_249 = arith.constant 1 : index
    %c0_250 = arith.constant 0 : index
    %155 = vector.load %arg16[%c8_248, %c1_249, %c0_250] : memref<18x32x128xbf16, #tpu.memory_space<vmem>>, vector<8x16x8xbf16>
    %c0_251 = arith.constant 0 : index
    %c0_252 = arith.constant 0 : index
    %c8_253 = arith.constant 8 : index
    %156 = vector.load %arg17[%c0_251, %c0_252, %c8_253] : memref<8x16x128xbf16, #tpu.memory_space<vmem>>, vector<8x16x8xbf16>
    tpu.vector_store %arg17[%c0_251, %c0_252, %c8_253], %155 {strides = array<i32>} : memref<8x16x128xbf16, #tpu.memory_space<vmem>>, vector<8x16x8xbf16>,
    %c8_254 = arith.constant 8 : index
    %c2_255 = arith.constant 2 : index
    %c0_256 = arith.constant 0 : index
    %157 = vector.load %arg16[%c8_254, %c2_255, %c0_256] : memref<18x32x128xbf16, #tpu.memory_space<vmem>>, vector<8x16x8xbf16>
    %c0_257 = arith.constant 0 : index
    %c0_258 = arith.constant 0 : index
    %c16_259 = arith.constant 16 : index
    %158 = vector.load %arg17[%c0_257, %c0_258, %c16_259] : memref<8x16x128xbf16, #tpu.memory_space<vmem>>, vector<8x16x8xbf16>
    tpu.vector_store %arg17[%c0_257, %c0_258, %c16_259], %157 {strides = array<i32>} : memref<8x16x128xbf16, #tpu.memory_space<vmem>>, vector<8x16x8xbf16>,
    %c9_260 = arith.constant 9 : index
    %c0_261 = arith.constant 0 : index
    %c0_262 = arith.constant 0 : index
    %159 = vector.load %arg16[%c9_260, %c0_261, %c0_262] : memref<18x32x128xbf16, #tpu.memory_space<vmem>>, vector<8x16x8xbf16>
    %c0_263 = arith.constant 0 : index
    %c0_264 = arith.constant 0 : index
    %c24_265 = arith.constant 24 : index
    %160 = vector.load %arg17[%c0_263, %c0_264, %c24_265] : memref<8x16x128xbf16, #tpu.memory_space<vmem>>, vector<8x16x8xbf16>
    tpu.vector_store %arg17[%c0_263, %c0_264, %c24_265], %159 {strides = array<i32>} : memref<8x16x128xbf16, #tpu.memory_space<vmem>>, vector<8x16x8xbf16>,
    %c9_266 = arith.constant 9 : index
    %c1_267 = arith.constant 1 : index
    %c0_268 = arith.constant 0 : index
    %161 = vector.load %arg16[%c9_266, %c1_267, %c0_268] : memref<18x32x128xbf16, #tpu.memory_space<vmem>>, vector<8x16x8xbf16>
    %c0_269 = arith.constant 0 : index
    %c0_270 = arith.constant 0 : index
    %c32_271 = arith.constant 32 : index
    %162 = vector.load %arg17[%c0_269, %c0_270, %c32_271] : memref<8x16x128xbf16, #tpu.memory_space<vmem>>, vector<8x16x8xbf16>
    tpu.vector_store %arg17[%c0_269, %c0_270, %c32_271], %161 {strides = array<i32>} : memref<8x16x128xbf16, #tpu.memory_space<vmem>>, vector<8x16x8xbf16>,
    %c9_272 = arith.constant 9 : index
    %c2_273 = arith.constant 2 : index
    %c0_274 = arith.constant 0 : index
    %163 = vector.load %arg16[%c9_272, %c2_273, %c0_274] : memref<18x32x128xbf16, #tpu.memory_space<vmem>>, vector<8x16x8xbf16>
    %c0_275 = arith.constant 0 : index
    %c0_276 = arith.constant 0 : index
    %c40_277 = arith.constant 40 : index
    %164 = vector.load %arg17[%c0_275, %c0_276, %c40_277] : memref<8x16x128xbf16, #tpu.memory_space<vmem>>, vector<8x16x8xbf16>
    tpu.vector_store %arg17[%c0_275, %c0_276, %c40_277], %163 {strides = array<i32>} : memref<8x16x128xbf16, #tpu.memory_space<vmem>>, vector<8x16x8xbf16>,
    %c10_278 = arith.constant 10 : index
    %c0_279 = arith.constant 0 : index
    %c0_280 = arith.constant 0 : index
    %165 = vector.load %arg16[%c10_278, %c0_279, %c0_280] : memref<18x32x128xbf16, #tpu.memory_space<vmem>>, vector<8x16x8xbf16>
    %c0_281 = arith.constant 0 : index
    %c0_282 = arith.constant 0 : index
    %c48_283 = arith.constant 48 : index
    %166 = vector.load %arg17[%c0_281, %c0_282, %c48_283] : memref<8x16x128xbf16, #tpu.memory_space<vmem>>, vector<8x16x8xbf16>
    tpu.vector_store %arg17[%c0_281, %c0_282, %c48_283], %165 {strides = array<i32>} : memref<8x16x128xbf16, #tpu.memory_space<vmem>>, vector<8x16x8xbf16>,
    %c10_284 = arith.constant 10 : index
    %c1_285 = arith.constant 1 : index
    %c0_286 = arith.constant 0 : index
    %167 = vector.load %arg16[%c10_284, %c1_285, %c0_286] : memref<18x32x128xbf16, #tpu.memory_space<vmem>>, vector<8x16x8xbf16>
    %c0_287 = arith.constant 0 : index
    %c0_288 = arith.constant 0 : index
    %c56_289 = arith.constant 56 : index
    %168 = vector.load %arg17[%c0_287, %c0_288, %c56_289] : memref<8x16x128xbf16, #tpu.memory_space<vmem>>, vector<8x16x8xbf16>
    tpu.vector_store %arg17[%c0_287, %c0_288, %c56_289], %167 {strides = array<i32>} : memref<8x16x128xbf16, #tpu.memory_space<vmem>>, vector<8x16x8xbf16>,
    %c10_290 = arith.constant 10 : index
    %c2_291 = arith.constant 2 : index
    %c0_292 = arith.constant 0 : index
    %169 = vector.load %arg16[%c10_290, %c2_291, %c0_292] : memref<18x32x128xbf16, #tpu.memory_space<vmem>>, vector<8x16x8xbf16>
    %c0_293 = arith.constant 0 : index
    %c0_294 = arith.constant 0 : index
    %c64_295 = arith.constant 64 : index
    %170 = vector.load %arg17[%c0_293, %c0_294, %c64_295] : memref<8x16x128xbf16, #tpu.memory_space<vmem>>, vector<8x16x8xbf16>
    tpu.vector_store %arg17[%c0_293, %c0_294, %c64_295], %169 {strides = array<i32>} : memref<8x16x128xbf16, #tpu.memory_space<vmem>>, vector<8x16x8xbf16>,
    %c0_296 = arith.constant 0 : index
    %c0_297 = arith.constant 0 : index
    %c0_298 = arith.constant 0 : index
    %171 = vector.load %arg17[%c0_296, %c0_297, %c0_298] : memref<8x16x128xbf16, #tpu.memory_space<vmem>>, vector<8x16x128xbf16>
    %172 = vector.shape_cast %171 : vector<8x16x128xbf16> to vector<128x128xbf16>
    %c0_299 = arith.constant 0 : index
    %c0_300 = arith.constant 0 : index
    %173 = vector.load %arg11[%c0_299, %c0_300] : memref<128x128xbf16, #tpu.memory_space<vmem>>, vector<128x128xbf16>
    %cst_301 = arith.constant dense<0.000000e+00> : vector<128x128xf32>
    %174 = tpu.matmul %172, %173, %cst_301 {dimension_numbers = #tpu.dot_dimension_numbers<[1], [0], [0], [1], [0, 0, 1, 1], [], []>} : vector<128x128xbf16>, vector<128x128xbf16>, vector<128x128xf32> -> vector<128x128xf32>
    %c0_302 = arith.constant 0 : index
    %c0_303 = arith.constant 0 : index
    %175 = vector.load %arg12[%c0_302, %c0_303] : memref<1x128xf32, #tpu.memory_space<vmem>>, vector<1x128xf32>
    %176 = vector.broadcast %175 : vector<1x128xf32> to vector<128x128xf32>
    %177 = arith.addf %174, %176 : vector<128x128xf32>
    %cst_304 = arith.constant 0.000000e+00 : f32
    %178 = vector.broadcast %cst_304 : f32 to vector<128x128xf32>
    %179 = arith.maximumf %177, %178 : vector<128x128xf32>
    %180 = arith.truncf %179 : vector<128x128xf32> to vector<128x128xbf16>
    %c0_305 = arith.constant 0 : index
    %c0_306 = arith.constant 0 : index
    %181 = vector.load %arg13[%c0_305, %c0_306] : memref<128x128xbf16, #tpu.memory_space<vmem>>, vector<128x128xbf16>
    %cst_307 = arith.constant dense<0.000000e+00> : vector<128x128xf32>
    %182 = tpu.matmul %180, %181, %cst_307 {dimension_numbers = #tpu.dot_dimension_numbers<[1], [0], [0], [1], [0, 0, 1, 1], [], []>} : vector<128x128xbf16>, vector<128x128xbf16>, vector<128x128xf32> -> vector<128x128xf32>
    %c0_308 = arith.constant 0 : index
    %c0_309 = arith.constant 0 : index
    %183 = vector.load %arg14[%c0_308, %c0_309] : memref<1x128xf32, #tpu.memory_space<vmem>>, vector<1x128xf32>
    %184 = vector.broadcast %183 : vector<1x128xf32> to vector<128x128xf32>
    %185 = arith.addf %182, %184 : vector<128x128xf32>
    %186 = vector.extract_strided_slice %102 {offsets = [128, 0], sizes = [128, 128], strides = [1, 1]} : vector<256x128xf32> to vector<128x128xf32>
    %187 = arith.addf %186, %185 : vector<128x128xf32>
    %cst_310 = arith.constant 0.000000e+00 : f32
    %188 = vector.broadcast %cst_310 : f32 to vector<128x128xf32>
    %189 = arith.maximumf %187, %188 : vector<128x128xf32>
    %190 = vector.shape_cast %189 : vector<128x128xf32> to vector<1x8x16x128xf32>
    %c0_311 = arith.constant 0 : index
    %c8_312 = arith.constant 8 : index
    %c0_313 = arith.constant 0 : index
    %c0_314 = arith.constant 0 : index
    %191 = vector.load %arg15[%c0_311, %c8_312, %c0_313, %c0_314] : memref<1x16x16x128xf32, #tpu.memory_space<vmem>>, vector<1x8x16x128xf32>
    tpu.vector_store %arg15[%c0_311, %c8_312, %c0_313, %c0_314], %190 {strides = array<i32>} : memref<1x16x16x128xf32, #tpu.memory_space<vmem>>, vector<1x8x16x128xf32>,
    return
  }
  func.func @transform_0(%arg0: i32) -> (i32, i32, i32, i32) {
    %c0_i32 = arith.constant 0 : i32
    %c0_i32_0 = arith.constant 0 : i32
    %c0_i32_1 = arith.constant 0 : i32
    %c0_i32_2 = arith.constant 0 : i32
    return %arg0, %c0_i32, %c0_i32_0, %c0_i32_1 : i32, i32, i32, i32
  }
  func.func @transform_1(%arg0: i32) -> (i32, i32) {
    %c0_i32 = arith.constant 0 : i32
    %c0_i32_0 = arith.constant 0 : i32
    %c0_i32_1 = arith.constant 0 : i32
    return %c0_i32, %c0_i32_0 : i32, i32
  }
  func.func @transform_2(%arg0: i32) -> (i32, i32) {
    %c0_i32 = arith.constant 0 : i32
    %c0_i32_0 = arith.constant 0 : i32
    %c0_i32_1 = arith.constant 0 : i32
    return %c0_i32, %c0_i32_0 : i32, i32
  }
  func.func @transform_3(%arg0: i32) -> (i32, i32) {
    %c0_i32 = arith.constant 0 : i32
    %c0_i32_0 = arith.constant 0 : i32
    %c0_i32_1 = arith.constant 0 : i32
    return %c0_i32, %c0_i32_0 : i32, i32
  }
  func.func @transform_4(%arg0: i32) -> (i32, i32) {
    %c0_i32 = arith.constant 0 : i32
    %c0_i32_0 = arith.constant 0 : i32
    %c0_i32_1 = arith.constant 0 : i32
    return %c0_i32, %c0_i32_0 : i32, i32
  }
  func.func @transform_5(%arg0: i32) -> (i32, i32) {
    %c0_i32 = arith.constant 0 : i32
    %c0_i32_0 = arith.constant 0 : i32
    %c0_i32_1 = arith.constant 0 : i32
    return %c0_i32, %c0_i32_0 : i32, i32
  }
  func.func @transform_6(%arg0: i32) -> (i32, i32) {
    %c0_i32 = arith.constant 0 : i32
    %c0_i32_0 = arith.constant 0 : i32
    %c0_i32_1 = arith.constant 0 : i32
    return %c0_i32, %c0_i32_0 : i32, i32
  }
  func.func @transform_7(%arg0: i32) -> (i32, i32) {
    %c0_i32 = arith.constant 0 : i32
    %c0_i32_0 = arith.constant 0 : i32
    %c0_i32_1 = arith.constant 0 : i32
    return %c0_i32, %c0_i32_0 : i32, i32
  }
  func.func @transform_8(%arg0: i32) -> (i32, i32) {
    %c0_i32 = arith.constant 0 : i32
    %c0_i32_0 = arith.constant 0 : i32
    %c0_i32_1 = arith.constant 0 : i32
    return %c0_i32, %c0_i32_0 : i32, i32
  }
  func.func @transform_9(%arg0: i32) -> (i32, i32) {
    %c0_i32 = arith.constant 0 : i32
    %c0_i32_0 = arith.constant 0 : i32
    %c0_i32_1 = arith.constant 0 : i32
    return %c0_i32, %c0_i32_0 : i32, i32
  }
  func.func @transform_10(%arg0: i32) -> (i32, i32) {
    %c0_i32 = arith.constant 0 : i32
    %c0_i32_0 = arith.constant 0 : i32
    %c0_i32_1 = arith.constant 0 : i32
    return %c0_i32, %c0_i32_0 : i32, i32
  }
  func.func @transform_11(%arg0: i32) -> (i32, i32) {
    %c0_i32 = arith.constant 0 : i32
    %c0_i32_0 = arith.constant 0 : i32
    %c0_i32_1 = arith.constant 0 : i32
    return %c0_i32, %c0_i32_0 : i32, i32
  }
  func.func @transform_12(%arg0: i32) -> (i32, i32) {
    %c0_i32 = arith.constant 0 : i32
    %c0_i32_0 = arith.constant 0 : i32
    %c0_i32_1 = arith.constant 0 : i32
    return %c0_i32, %c0_i32_0 : i32, i32
  }
  func.func @transform_13(%arg0: i32) -> (i32, i32) {
    %c0_i32 = arith.constant 0 : i32
    %c0_i32_0 = arith.constant 0 : i32
    %c0_i32_1 = arith.constant 0 : i32
    return %c0_i32, %c0_i32_0 : i32, i32
  }
  func.func @transform_14(%arg0: i32) -> (i32, i32, i32, i32) {
    %c0_i32 = arith.constant 0 : i32
    %c0_i32_0 = arith.constant 0 : i32
    %c0_i32_1 = arith.constant 0 : i32
    %c0_i32_2 = arith.constant 0 : i32
    return %arg0, %c0_i32, %c0_i32_0, %c0_i32_1 : i32, i32, i32, i32
  }
}

</mosaic_0001>

<bundles_post_ra>
// kernel: tpu_custom_call.1
= control target key start
LH: loop header
LB: loop body
LE: loop exit
PB: predicated region body
PF: predicated region fallthrough
CT: control target
= control target key end

     0   :  { %s10503_s0 = inlined_call_operand.hbm [shape: f32[2,16,16,128], index: 0, kind: input, shape index: {}]   ;;  %s10504_s1 = inlined_call_operand.hbm [shape: bf16[128,256], index: 1, kind: input, shape index: {}]   ;;  %s10505_s2 = inlined_call_operand.vmem [shape: f32[1,128], index: 2, kind: input, shape index: {}]   ;;  %s10506_s3 = inlined_call_operand.vmem [shape: f32[1,128], index: 3, kind: input, shape index: {}]   ;;  %s10507_s4 = inlined_call_operand.hbm [shape: bf16[128,128], index: 4, kind: input, shape index: {}]   ;;  %s10508_s5 = inlined_call_operand.vmem [shape: f32[1,128], index: 5, kind: input, shape index: {}]   ;;  %s10509_s6 = inlined_call_operand.hbm [shape: bf16[128,128], index: 6, kind: input, shape index: {}]   ;;  %s10510_s7 = inlined_call_operand.vmem [shape: f32[1,128], index: 7, kind: input, shape index: {}]   ;;  %s10511_s8 = inlined_call_operand.hbm [shape: bf16[128,128], index: 8, kind: input, shape index: {}]   ;;  %s10512_s9 = inlined_call_operand.vmem [shape: f32[1,128], index: 9, kind: input, shape index: {}]   ;;  %s10513_s10 = inlined_call_operand.hbm [shape: bf16[128,128], index: 10, kind: input, shape index: {}]   ;;  %s10514_s11 = inlined_call_operand.vmem [shape: f32[1,128], index: 11, kind: input, shape index: {}]   ;;  %s10515_s12 = inlined_call_operand.hbm [shape: bf16[128,128], index: 12, kind: input, shape index: {}]   ;;  %s10516_s13 = inlined_call_operand.vmem [shape: f32[1,128], index: 13, kind: input, shape index: {}]   ;;  %s10517_s14 = inlined_call_operand.hbm [shape: f32[2,16,16,128], index: 14, kind: output, shape index: {}]  }
   0x1   :  { %10571 = sst [smem:[#allocation28_spill]] %s10503_s0 }
   0x2   :  { %10572 = sst [smem:[#allocation29_spill]] %s10504_s1 }
   0x3   :  { %10573 = sst [smem:[#allocation30_spill]] %s10505_s2 }
   0x4   :  { %10574 = sst [smem:[#allocation31_spill]] %s10506_s3 }
   0x5   :  { %10575 = sst [smem:[#allocation32_spill]] %s10510_s7 }
   0x6   :  { %10576 = sst [smem:[#allocation33_spill]] %s10512_s9 }
   0x7   :  { %10577 = sst [smem:[#allocation34_spill]] %s10514_s11 }
   0x8   :  { %10578 = sst [smem:[#allocation35_spill]] %s10516_s13 }
   0x9   :  { %10579 = sst [smem:[#allocation36_spill]] %s10517_s14 }
   0xa   :  { %19 = vsyncpa [#allocation6], 0 }
   0xb   :  { %21 = vsyncpa [#allocation6 + $0x1], 0 }
   0xc   :  { %22 = vsyncpa [#allocation9], 0 }
   0xd   :  { %23 = vsyncpa [#allocation12], 0 }
   0xe   :  { %24 = vsyncpa [#allocation15], 0 }
   0xf   :  { %25 = vsyncpa [#allocation7], 0 }
  0x10   :  { %27 = vsyncpa [#allocation7 + $0x1], 0  ;;  %s8216_s29 = smov 0   ;;  %s8218_s30 = smov 0  }
  0x11   :  { %s8220_s15 = smov 0   ;;  %s8222_s16 = smov 0  }
  0x12 LB: > { %s8119_s17 = smov [#allocation8]   ;;  %s8237_s19 = sadd.s32 4294967295, %s8117_s16   ;;  %s8117_s16 = sphi %s8222_s16, %s10673_s16   ;;  %s8113_s15 = sphi %s8220_s15, %s10672_s15   ;;  %s8109_s30 = sphi %s8218_s30, %s10671_s30   ;;  %s8105_s29 = sphi %s8216_s29, %s10670_s29  }
  0x13   : > { %s375_s18 = sshll.u32 %s8119_s17, 4  ;;  %p7020_p0 = scmp.ge.s32.totalorder %s8117_s16, 1  ;;  %s8242_s18 = int_to_ptr.vmem [resolvable:$true] %s375_s18 }
  0x14   : > { %p10524_p1 = scmp.eq.s32.totalorder %s8237_s19, 0  ;;  %p363_p2 = scmp.lt.s32.totalorder %s8117_s16, 3 }
  0x15   : > { %s8120_s22 = smov [#allocation11]   ;;  %s8121_s24 = smov [#allocation14]  }
  0x16   : > { %p8244_p3 = pnand %p7020_p0, %p363_p2  ;;  %s410_s23 = sshll.u32 %s8120_s22, 4  ;;  %s8257_s23 = int_to_ptr.vmem [resolvable:$true] %s410_s23 }
  0x17   : > { %s8259_s25 = sshll.u32 %s8121_s24, 4  ;;  %s10582_s1 = sld [smem:[#allocation29_spill]]  ;;  %s443_s25 = int_to_ptr.vmem [resolvable:$true] %s8259_s25 }
  0x18   : > { %s10580_s20 = scalar_select %p8244_p3, 1, 0 }
  0x19   : > { %p7646_p5 = pneg %p8244_p3 }
  0x1b   : > { %p8253_p6 = pnand %p7646_p5, %p10524_p1 }
  0x1d   : > { %s7841_s28 = scalar_lea.hbm %s10582_s1, 2048  ;;  %p8269_p8 = pneg %p8253_p6 }
  0x1e   : > { %p7842_p7 = scmp.ne.s32.totalorder %s10582_s1, %s7841_s28  ;;  %p7848_p11 = scmp.lt.u32.totalorder %s7841_s28, %s10582_s1 }
  0x20   : > { %p7844_p9 = pnand %p8269_p8, %p7842_p7 }
  0x22   : > { %p7845_p10 = pneg %p7844_p9 }
  0x24   : > { %p7850_p12 = pnand %p7848_p11, %p7845_p10 }
  0x26   : > { %7853 = shalt.err (!%p7850_p12)
}
  0x27   : > { %s7854_s14 = scalar_lea.vmem %s8242_s18, 2048  ;;  %p7862_p5 = scmp.lt.s32.totalorder %s8242_s18, %s8242_s18 }
  0x28   : > { %p7855_p13 = scmp.ne.s32.totalorder %s8242_s18, %s7854_s14  ;;  %p7863_p4 = scmp.lt.s32.totalorder %s7854_s14, %s7854_s14 }
  0x2a   : > { %p7857_p0 = pnand %p7855_p13, %p8269_p8  ;;  %p7864_p7 = por %p7863_p4, %p7862_p5 }
  0x2c   : > { %p7858_p2 = pneg %p7857_p0 }
  0x2e   : > { %p7865_p9 = pnand %p7864_p7, %p7858_p2 }
  0x30   : > { %7868 = shalt.err (!%p7865_p9)
}
  0x31   : > { %s10523_s26 = smov 128   ;;  %s10526_s27 = smov 8  }
  0x32   : > { %7649 = dma.hbm_to_vmem [thread:$0]  (!%p8253_p6), %s10582_s1, 2048, %s8242_s18, [#allocation9], %s10523_s26, %s10523_s26, %s10526_s27  }
  0x33   : > { %s7869_s14 = scalar_lea.hbm %s10509_s6, 1024 }
  0x34   : > { %p7870_p4 = scmp.ne.s32.totalorder %s10509_s6, %s7869_s14  ;;  %p7876_p12 = scmp.lt.u32.totalorder %s7869_s14, %s10509_s6 }
  0x36   : > { %p7872_p10 = pnand %p7870_p4, %p8269_p8 }
  0x38   : > { %p7873_p11 = pneg %p7872_p10 }
  0x3a   : > { %p7878_p13 = pnand %p7876_p12, %p7873_p11 }
  0x3c   : > { %7881 = shalt.err (!%p7878_p13)
}
  0x3d   : > { %s7882_s18 = scalar_lea.vmem %s8257_s23, 1024  ;;  %p7890_p7 = scmp.lt.s32.totalorder %s8257_s23, %s8257_s23 }
  0x3e   : > { %p7883_p0 = scmp.ne.s32.totalorder %s8257_s23, %s7882_s18  ;;  %p7891_p9 = scmp.lt.s32.totalorder %s7882_s18, %s7882_s18 }
  0x40   : > { %p7885_p2 = pnand %p7883_p0, %p8269_p8  ;;  %p7892_p4 = por %p7891_p9, %p7890_p7 }
  0x42   : > { %p7886_p5 = pneg %p7885_p2 }
  0x44   : > { %p7893_p10 = pnand %p7892_p4, %p7886_p5 }
  0x46   : > { %7896 = shalt.err (!%p7893_p10)
}
  0x47   : > { %s8124_s9 = smov 64   ;;  %s8125_s3 = smov 4  }
  0x48   : > { %7655 = dma.hbm_to_vmem [thread:$0]  (!%p8253_p6), %s10509_s6, 1024, %s8257_s23, [#allocation12], %s8124_s9, %s8124_s9, %s8125_s3  }
  0x49   : > { %s7897_s22 = scalar_lea.hbm %s10513_s10, 1024 }
  0x4a   : > { %p7898_p11 = scmp.ne.s32.totalorder %s10513_s10, %s7897_s22  ;;  %p7904_p0 = scmp.lt.u32.totalorder %s7897_s22, %s10513_s10 }
  0x4c   : > { %p7900_p12 = pnand %p7898_p11, %p8269_p8 }
  0x4e   : > { %p7901_p13 = pneg %p7900_p12 }
  0x50   : > { %p7906_p2 = pnand %p7904_p0, %p7901_p13 }
  0x52   : > { %7909 = shalt.err (!%p7906_p2)
}
  0x53   : > { %s7910_s7 = scalar_lea.vmem %s443_s25, 1024  ;;  %p7918_p4 = scmp.lt.s32.totalorder %s443_s25, %s443_s25 }
  0x54   : > { %p7911_p5 = scmp.ne.s32.totalorder %s443_s25, %s7910_s7  ;;  %p7919_p10 = scmp.lt.s32.totalorder %s7910_s7, %s7910_s7 }
  0x56   : > { %p7913_p7 = pnand %p7911_p5, %p8269_p8  ;;  %p7920_p1 = por %p7919_p10, %p7918_p4 }
  0x58   : > { %p7914_p9 = pneg %p7913_p7 }
  0x5a   : > { %p7921_p3 = pnand %p7920_p1, %p7914_p9 }
  0x5c   : > { %7924 = shalt.err (!%p7921_p3)
}
  0x5d   : > { %7661 = dma.hbm_to_vmem [thread:$0]  (!%p8253_p6), %s10513_s10, 1024, %s443_s25, [#allocation15], %s8124_s9, %s8124_s9, %s8125_s3  }
  0x5e   : > { %s8126_s11 = smov [#allocation10]   ;;  %s8127_s17 = smov [#allocation13]  }
  0x5f   : > { %s394_s28 = sshll.u32 %s8126_s11, 4  ;;  %s426_s22 = sshll.u32 %s8127_s17, 4  ;;  %s395_s28 = int_to_ptr.vmem [resolvable:$true] %s394_s28  ;;  %s427_s22 = int_to_ptr.vmem [resolvable:$true] %s426_s22 }
  0x60   : > { %s7925_s18 = scalar_lea.hbm %s10507_s4, 1024 }
  0x61   : > { %p7926_p1 = scmp.ne.s32.totalorder %s10507_s4, %s7925_s18  ;;  %p7932_p12 = scmp.lt.u32.totalorder %s7925_s18, %s10507_s4 }
  0x63   : > { %p7928_p3 = pnand %p7926_p1, %p8269_p8 }
  0x65   : > { %p7929_p11 = pneg %p7928_p3 }
  0x67   : > { %p7934_p13 = pnand %p7932_p12, %p7929_p11 }
  0x69   : > { %7937 = shalt.err (!%p7934_p13)
}
  0x6a   : > { %s7938_s25 = scalar_lea.vmem %s395_s28, 1024  ;;  %p7946_p7 = scmp.lt.s32.totalorder %s395_s28, %s395_s28 }
  0x6b   : > { %p7939_p0 = scmp.ne.s32.totalorder %s395_s28, %s7938_s25  ;;  %p7947_p9 = scmp.lt.s32.totalorder %s7938_s25, %s7938_s25 }
  0x6d   : > { %p7941_p2 = pnand %p7939_p0, %p8269_p8  ;;  %p7948_p4 = por %p7947_p9, %p7946_p7 }
  0x6f   : > { %p7942_p5 = pneg %p7941_p2 }
  0x71   : > { %p7949_p10 = pnand %p7948_p4, %p7942_p5 }
  0x73   : > { %7952 = shalt.err (!%p7949_p10)
}
  0x74   : > { %7652 = dma.hbm_to_vmem [thread:$0]  (!%p8253_p6), %s10507_s4, 1024, %s395_s28, [#allocation9], %s8124_s9, %s8124_s9, %s8125_s3  }
  0x75   : > { %s7953_s17 = scalar_lea.hbm %s10511_s8, 1024 }
  0x76   : > { %p7954_p1 = scmp.ne.s32.totalorder %s10511_s8, %s7953_s17  ;;  %p7960_p12 = scmp.lt.u32.totalorder %s7953_s17, %s10511_s8 }
  0x78   : > { %p7956_p3 = pnand %p7954_p1, %p8269_p8 }
  0x7a   : > { %p7957_p11 = pneg %p7956_p3 }
  0x7c   : > { %p7962_p13 = pnand %p7960_p12, %p7957_p11 }
  0x7e   : > { %7965 = shalt.err (!%p7962_p13)
}
  0x7f   : > { %s7966_s23 = scalar_lea.vmem %s427_s22, 1024  ;;  %p7974_p7 = scmp.lt.s32.totalorder %s427_s22, %s427_s22 }
  0x80   : > { %p7967_p0 = scmp.ne.s32.totalorder %s427_s22, %s7966_s23  ;;  %p7975_p9 = scmp.lt.s32.totalorder %s7966_s23, %s7966_s23 }
  0x82   : > { %p7969_p2 = pnand %p7967_p0, %p8269_p8  ;;  %p7976_p4 = por %p7975_p9, %p7974_p7 }
  0x84   : > { %p7970_p5 = pneg %p7969_p2 }
  0x86   : > { %p7977_p10 = pnand %p7976_p4, %p7970_p5 }
  0x88   : > { %7980 = shalt.err (!%p7977_p10)
}
  0x89   : > { %7658 = dma.hbm_to_vmem [thread:$0]  (!%p8253_p6), %s10511_s8, 1024, %s427_s22, [#allocation12], %s8124_s9, %s8124_s9, %s8125_s3  }
  0x8a   : > { %s8128_s1 = smov [#allocation16]   ;;  %s7981_s17 = scalar_lea.hbm %s10515_s12, 1024 }
  0x8b   : > { %s458_s27 = sshll.u32 %s8128_s1, 4  ;;  %p7982_p1 = scmp.ne.s32.totalorder %s10515_s12, %s7981_s17  ;;  %s459_s27 = int_to_ptr.vmem [resolvable:$true] %s458_s27 }
  0x8c   : > { %p7988_p12 = scmp.lt.u32.totalorder %s7981_s17, %s10515_s12 }
  0x8d   : > { %p7984_p3 = pnand %p7982_p1, %p8269_p8 }
  0x8f   : > { %p7985_p11 = pneg %p7984_p3 }
  0x91   : > { %p7990_p13 = pnand %p7988_p12, %p7985_p11 }
  0x93   : > { %7993 = shalt.err (!%p7990_p13)
}
  0x94   : > { %s7994_s22 = scalar_lea.vmem %s459_s27, 1024  ;;  %p8002_p7 = scmp.lt.s32.totalorder %s459_s27, %s459_s27 }
  0x95   : > { %p7995_p0 = scmp.ne.s32.totalorder %s459_s27, %s7994_s22  ;;  %p8003_p9 = scmp.lt.s32.totalorder %s7994_s22, %s7994_s22 }
  0x97   : > { %p7997_p2 = pnand %p7995_p0, %p8269_p8  ;;  %p8004_p4 = por %p8003_p9, %p8002_p7 }
  0x99   : > { %p7998_p5 = pneg %p7997_p2 }
  0x9b   : > { %p8005_p10 = pnand %p8004_p4, %p7998_p5 }
  0x9d   : > { %8008 = shalt.err (!%p8005_p10)
}
  0x9e   : > { %7664 = dma.hbm_to_vmem [thread:$0]  (!%p8253_p6), %s10515_s12, 1024, %s459_s27, [#allocation15], %s8124_s9, %s8124_s9, %s8125_s3  }
  0x9f   : > { %s7019_s13 = sadd.s32 4294967294, %s8117_s16   ;;  %s8406_s21 = sadd.s32 1, %s8117_s16  }
  0xa0   : > { %s37_s25 = ssub.s32 %s8117_s16, %s8406_s21  ;;  %s40_s1 = sadd.s32 1, %s8113_s15 }
  0xa1   : > { %p38_p8 = scmp.eq.s32.totalorder %s37_s25, 0  ;;  %p47_p1 = scmp.ne.s32.totalorder %s8113_s15, %s8109_s30 }
  0xa2   : > { %p48_p3 = scmp.eq.s32.totalorder %s8117_s16, 0  ;;  %p53_p11 = scmp.ne.s32.totalorder %s8109_s30, %s8105_s29 }
  0xa3   : > { %s8417_s26 = scalar_select %p38_p8, %s8113_s15, %s40_s1  }
  0xa4   : > { %p8419_p12 = por %p48_p3, %p47_p1  ;;  %p10585_p13 = scmp.eq.s32.totalorder %s8237_s19, 0 }
  0xa5   : > { %p350_p0 = scmp.eq.s32.totalorder %s8237_s19, 1  ;;  %p356_p2 = scmp.eq.s32.totalorder %s7019_s13, 1 }
  0xa6   : > { %p8425_p6 = por %p10585_p13, %p53_p11  ;;  %p7679_p5 = scmp.lt.s32.totalorder %s8117_s16, 2 }
  0xa7   : > { %s475_s3 = sand.u32 1, %s8113_s15   ;;  %p8432_p7 = por %p350_p0, %p47_p1 }
  0xa8   : > { %p8436_p9 = por %p356_p2, %p53_p11  ;;  %s7028_s24 = sshll.u32 %s475_s3, 8 }
  0xa9   : > { %s10587_s27 = scalar_select %p8432_p7, 1, 0 }
  0xaa   : > { %s10588_s17 = scalar_select %p8436_p9, 1, 0 }
  0xab   : > { %s7160_s14 = sshll.u32 %s8117_s16, 12  ;;  %s10589_s0 = sld [smem:[#allocation28_spill]] }
  0xac   : > { %s479_s23 = scalar_lea.vmem [#allocation5], %s7028_s24  ;;  %p8450_p4 = pnand %p7679_p5, %p8419_p12 }
  0xad   : > { %s486_s28 = sshll.u32 %s479_s23, 4  ;;  %s8454_s25 = scalar_lea.sflag [#allocation6], %s475_s3  ;;  %s8446_s28 = int_to_ptr.vmem [resolvable:$true] %s486_s28 }
  0xae   : > { %p8011_p8 = pneg %p8450_p4 }
  0xb1   : > { %s8444_s22 = scalar_lea.hbm %s10589_s0, %s7160_s14  ;;  %s8014_s11 = scalar_lea.hbm %s10589_s0, 8192 }
  0xb2   : > { %s8009_s1 = scalar_lea.hbm %s8444_s22, 4096  ;;  %p8015_p11 = scmp.lt.u32.totalorder %s8444_s22, %s10589_s0 }
  0xb3   : > { %p8010_p10 = scmp.ne.s32.totalorder %s8444_s22, %s8009_s1  ;;  %p8016_p12 = scmp.lt.u32.totalorder %s8014_s11, %s8009_s1 }
  0xb4   : > { %p8018_p0 = scmp.lt.u32.totalorder %s8009_s1, %s8444_s22 }
  0xb5   : > { %p8012_p1 = pnand %p8011_p8, %p8010_p10  ;;  %p8017_p13 = por %p8016_p12, %p8015_p11 }
  0xb7   : > { %p8013_p3 = pneg %p8012_p1  ;;  %p8019_p2 = por %p8018_p0, %p8017_p13 }
  0xb9   : > { %p8020_p5 = pnand %p8019_p2, %p8013_p3 }
  0xbb   : > { %8023 = shalt.err (!%p8020_p5)
}
  0xbc   : > { %s8024_s3 = scalar_lea.vmem %s8446_s28, 4096  ;;  %s8129_s23 = smov [#allocation5]  }
  0xbd   : > { %p8025_p10 = scmp.ne.s32.totalorder %s8446_s28, %s8024_s3  ;;  %s8029_s24 = sshll.u32 %s8129_s23, 4  ;;  %s8030_s24 = int_to_ptr.vmem [resolvable:$false] %s8029_s24 }
  0xbe   : > { %s8031_s14 = scalar_lea.vmem %s8030_s24, 8192  ;;  %p8032_p7 = scmp.lt.s32.totalorder %s8446_s28, %s8030_s24 }
  0xbf   : > { %p8027_p1 = pnand %p8025_p10, %p8011_p8  ;;  %p8033_p11 = scmp.lt.s32.totalorder %s8031_s14, %s8024_s3 }
  0xc1   : > { %p8028_p9 = pneg %p8027_p1  ;;  %p8034_p12 = por %p8033_p11, %p8032_p7 }
  0xc3   : > { %p8035_p13 = pnand %p8034_p12, %p8028_p9 }
  0xc5   : > { %8038 = shalt.err (!%p8035_p13)
}
  0xc6   : > { %s10591_s1 = smov 8   ;;  %s10592_s11 = smov 128  }
  0xc7   : > { %7668 = dma.hbm_to_vmem [thread:$0]  (!%p8450_p4), %s8444_s22, 4096, %s8446_s28, %s8454_s25, %s10592_s11, %s10592_s11, %s10591_s1  }
  0xc8   : > { %p10593_p8 = scmp.ne.s32.totalorder %s10580_s20, 0 }
  0xca   : > { %498 = sbr.rel (%p10593_p8) target bundleno = 2363 (0x93b), region = 76 }
  0xd1   : > { %s8488_s18 = sand.u32 1, %s8109_s30  }
  0xd2   : > { %s10528_s7 = sshll.u32 %s8488_s18, 8  ;;  %s501_s3 = scalar_lea.sflag [#allocation6], %s8488_s18 }
  0xd3   : > { %s8494_s13 = scalar_lea.vmem [#allocation5], %s10528_s7 }
  0xd4   : > { %8084 = dma.done.wait (%p8425_p6), %s501_s3, 4096  }
  0xd5   : > { %8086 = vsyncadd (%p8425_p6), %s501_s3, 4294963200  ;;  %p10594_p7 = scmp.eq.s32.totalorder %s8237_s19, 0 }
  0xd7   : > { %8088 = dma.done.wait (%p10594_p7), [#allocation9], 3072   ;;  %p10595_p9 = pmov %p10594_p7 }
  0xd8   : > { %p10596_p4 = pmov %p10594_p7 }
  0xd9   : > { %8090 = vsyncadd (%p10595_p9), [#allocation9], 4294964224 }
  0xda   : > { %8092 = dma.done.wait (%p10596_p4), [#allocation12], 2048   ;;  %p10597_p3 = pmov %p10596_p4 }
  0xdc   : > { %8094 = vsyncadd (%p10597_p3), [#allocation12], 4294965248  ;;  %p10598_p0 = pmov %p10597_p3 }
  0xde   : > { %8096 = dma.done.wait (%p10598_p0), [#allocation15], 2048   ;;  %p10599_p2 = pmov %p10598_p0 }
  0xdf   : > { %v8130_v0 = vmov 0   ;;  %v7739_v1 = vld [vmem:[#allocation8 + $0x4] ss:$8 sps:$4 sm:$0xff]   ;;  %v7741_v2 = vld [vmem:[#allocation8] ss:$8 sps:$4 sm:$0xff]   ;;  %v576_v20 = vld [vmem:[%s8494_s13 + $0x10] sm:$0xff] }
  0xe0   : > { %8098 = vsyncadd (%p10599_p2), [#allocation15], 4294965248  ;;  %866 = vmatprep.mubr.bf16.mxu0 %v8130_v0  ;;  %606 = vst [vmem:[#allocation2] sm:$0xff] %v8130_v0  ;;  %834 = vmatprep.subr.bf16.mxu0 %v7739_v1  ;;  %v7742_v3 = vld [vmem:[#allocation8 + $0x14] ss:$8 sps:$4 sm:$0xff]   ;;  %v574_v17 = vld [vmem:[%s8494_s13] sm:$0xff] }
  0xe1   : > { %607 = vst [vmem:[#allocation2 + $0x8] sm:$0xff] %v8130_v0  ;;  %609 = vst [vmem:[#allocation2 + $0x110] sm:$0xff] %v8130_v0  ;;  %835 = vmatpush1.bf16.msra.mxu0 %v7741_v2  ;;  %v7744_v4 = vld [vmem:[#allocation8 + $0x10] ss:$8 sps:$4 sm:$0xff]   ;;  %v7745_v5 = vld [vmem:[#allocation8 + $0x24] ss:$8 sps:$4 sm:$0xff]  }
  0xe2   : > { %610 = vst [vmem:[#allocation2 + $0x118] sm:$0xff] %v8130_v0  ;;  %836 = vmatprep.subr.bf16.mxu0 %v7742_v3  ;;  %v7747_v6 = vld [vmem:[#allocation8 + $0x20] ss:$8 sps:$4 sm:$0xff]   ;;  %v7748_v7 = vld [vmem:[#allocation8 + $0x34] ss:$8 sps:$4 sm:$0xff]   ;;  %vm612_vm0 = vcmask 1040384  }
  0xe3   : > { %v7750_v8 = vld [vmem:[#allocation8 + $0x30] ss:$8 sps:$4 sm:$0xff]   ;;  %v7751_v9 = vld [vmem:[#allocation8 + $0x44] ss:$8 sps:$4 sm:$0xff]   ;;  %v7753_v10 = vld [vmem:[#allocation8 + $0x40] ss:$8 sps:$4 sm:$0xff]  }
  0xe4   : > { %v7754_v11 = vld [vmem:[#allocation8 + $0x54] ss:$8 sps:$4 sm:$0xff]   ;;  %v7756_v12 = vld [vmem:[#allocation8 + $0x50] ss:$8 sps:$4 sm:$0xff]   ;;  %v7757_v13 = vld [vmem:[#allocation8 + $0x64] ss:$8 sps:$4 sm:$0xff]  }
  0xe5   : > { %837 = vmatpush1.bf16.msra.mxu0 %v7744_v4  ;;  %v7759_v14 = vld [vmem:[#allocation8 + $0x60] ss:$8 sps:$4 sm:$0xff]   ;;  %v7760_v15 = vld [vmem:[#allocation8 + $0x74] ss:$8 sps:$4 sm:$0xff]   ;;  %v7762_v16 = vld [vmem:[#allocation8 + $0x70] ss:$8 sps:$4 sm:$0xff]  }
  0xe6   : > { %838 = vmatprep.subr.bf16.mxu0 %v7745_v5  ;;  %v575_v18 = vld [vmem:[%s8494_s13 + $0x8] sm:$0xff]  ;;  %v577_v21 = vld [vmem:[%s8494_s13 + $0x18] sm:$0xff]  ;;  %v578_v23 = vld [vmem:[%s8494_s13 + $0x20] sm:$0xff]  ;;  %vm663_vm1 = vsmask.f32 7938  ;;  %v1434_v54 = vrot.slane %v8130_v0, 1 }
  0xe7   : > { %v722_v19 = vpack.c.bf16 %v575_v18, %v574_v17  ;;  %v723_v22 = vpack.c.bf16 %v577_v21, %v576_v20  ;;  %v579_v24 = vld [vmem:[%s8494_s13 + $0x28] sm:$0xff]  ;;  %v580_v26 = vld [vmem:[%s8494_s13 + $0x30] sm:$0xff]  ;;  %v581_v27 = vld [vmem:[%s8494_s13 + $0x38] sm:$0xff]  ;;  %vm613_vm2 = vsmask.f32 256  ;;  %s10570_s20 = smov 8  }
  0xe8   : > { %v724_v25 = vpack.c.bf16 %v579_v24, %v578_v23  ;;  %v725_v28 = vpack.c.bf16 %v581_v27, %v580_v26  ;;  %v582_v29 = vld [vmem:[%s8494_s13 + $0x40] sm:$0xff]  ;;  %v583_v30 = vld [vmem:[%s8494_s13 + $0x48] sm:$0xff]  ;;  %v584_v32 = vld [vmem:[%s8494_s13 + $0x50] sm:$0xff]  ;;  %vm1428_vm5 = vsmask.f32 7424  ;;  %vm1590_vm6 = vcmask 1046528  }
  0xe9   : > { %839 = vmatpush1.bf16.msra.mxu0 %v7747_v6  ;;  %v726_v31 = vpack.c.bf16 %v583_v30, %v582_v29  ;;  %v585_v33 = vld [vmem:[%s8494_s13 + $0x58] sm:$0xff]  ;;  %v586_v35 = vld [vmem:[%s8494_s13 + $0x60] sm:$0xff]  ;;  %v587_v36 = vld [vmem:[%s8494_s13 + $0x68] sm:$0xff]  ;;  %s8132_s9 = smov 16   ;;  %vm713_vm7 = vcmask 1048128   ;;  %vm1403_vm8 = vcmask 64512  }
  0xea   : > { %840 = vmatprep.subr.bf16.mxu0 %v7748_v7  ;;  %v727_v34 = vpack.c.bf16 %v585_v33, %v584_v32  ;;  %v728_v37 = vpack.c.bf16 %v587_v36, %v586_v35  ;;  %v588_v38 = vld [vmem:[%s8494_s13 + $0x70] sm:$0xff]  ;;  %v589_v39 = vld [vmem:[%s8494_s13 + $0x78] sm:$0xff]  ;;  %v590_v41 = vld [vmem:[%s8494_s13 + $0x80] sm:$0xff]  ;;  %714 = vst.msk [vmem:[#allocation3] sm:$0xff] %vm713_vm7, %v8130_v0  ;;  %s10604_s2 = sld [smem:[#allocation30_spill]]  ;;  %vm1549_vm9 = vcmask 130112  }
  0xeb   : > { %v729_v40 = vpack.c.bf16 %v589_v39, %v588_v38  ;;  %v591_v42 = vld [vmem:[%s8494_s13 + $0x88] sm:$0xff]  ;;  %v592_v44 = vld [vmem:[%s8494_s13 + $0x90] sm:$0xff]  ;;  %v593_v45 = vld [vmem:[%s8494_s13 + $0x98] sm:$0xff]  ;;  %715 = vst.msk [vmem:[#allocation3 + $0x8] sm:$0xff] %vm713_vm7, %v8130_v0  ;;  %vm1639_vm10 = vcmask 195712   ;;  %vm1297_vm11 = vcmask 1047552  }
  0xec   : > { %v730_v43 = vpack.c.bf16 %v591_v42, %v590_v41  ;;  %v731_v46 = vpack.c.bf16 %v593_v45, %v592_v44  ;;  %v615_v47 = vld [vmem:[#allocation2 + $0x10] sm:$0x1]  ;;  %vm8548_vm3 = vmand %vm612_vm0, %vm663_vm1  ;;  %v665_v49 = vld [vmem:[#allocation2 + $0x18] sm:$0x1]  ;;  %716 = vst.msk [vmem:[#allocation3 + $0x10] sm:$0xff] %vm713_vm7, %v8130_v0  ;;  %s8133_s25 = smov 24  }
  0xed   : > { %841 = vmatpush1.bf16.msra.mxu0 %v7750_v8  ;;  %vm8552_vm4 = vmand %vm612_vm0, %vm613_vm2  ;;  %v666_v51 = vsel %vm8548_vm3, 0, %v665_v49  ;;  %v1413_v53 = vld [vmem:[#allocation2 + $0x8] sm:$0x1]  ;;  %v1558_v59 = vld [vmem:[#allocation2] sm:$0xfe]  ;;  %717 = vst.msk [vmem:[#allocation3 + $0x18] sm:$0xff] %vm713_vm7, %v8130_v0 }
  0xee   : > { %842 = vmatprep.subr.bf16.mxu0 %v7751_v9  ;;  %v616_v52 = vsel %vm8552_vm4, 0, %v615_v47  ;;  %667 = vst [vmem:[#allocation2 + $0x18] sm:$0x1] %v666_v51  ;;  %v1437_v55 = vshll.u32 %v1413_v53, 16  ;;  %v668_v57 = vld [vmem:[#allocation2 + $0x28] sm:$0x1]  ;;  %vm8644_vm12 = vmand %vm1297_vm11, %vm663_vm1 }
  0xef   : > { %617 = vst [vmem:[#allocation2 + $0x10] sm:$0x1] %v616_v52  ;;  %v669_v60 = vsel %vm8548_vm3, 0, %v668_v57  ;;  %v1559_v61 = vld [vmem:[#allocation2 + $0x8] sm:$0x1]  ;;  %v1591_v62 = vrot.slane %v1558_v59, 1 }
  0xf0   : > { %v1439_v56 = vrot.slane %v1437_v55, 1  ;;  %v618_v63 = vld [vmem:[#allocation2 + $0x20] sm:$0x1]  ;;  %670 = vst [vmem:[#allocation2 + $0x28] sm:$0x1] %v669_v60  ;;  %v595_v3 = vld [vmem:[%s8494_s13 + $0xa8] sm:$0xff] }
  0xf1   : > { %843 = vmatpush1.bf16.msra.mxu0 %v7753_v10  ;;  %v594_v1 = vld [vmem:[%s8494_s13 + $0xa0] sm:$0xff]  ;;  %v619_v2 = vsel %vm8552_vm4, 0, %v618_v63  ;;  %v1592_v4 = vrot.slane %v1559_v61, 1  ;;  %v671_v7 = vld [vmem:[#allocation2 + $0x38] sm:$0x1]  ;;  %718 = vst.msk [vmem:[#allocation3 + $0x20] sm:$0xff] %vm713_vm7, %v8130_v0 }
  0xf2   : > { %844 = vmatprep.subr.bf16.mxu0 %v7754_v11  ;;  %v1440_v58 = vsel %vm1428_vm5, %v1434_v54, %v1439_v56  ;;  %620 = vst [vmem:[#allocation2 + $0x20] sm:$0x1] %v619_v2  ;;  %v732_v5 = vpack.c.bf16 %v595_v3, %v594_v1  ;;  %v672_v8 = vsel %vm8548_vm3, 0, %v671_v7  ;;  %v621_v9 = vld [vmem:[#allocation2 + $0x30] sm:$0x1]  ;;  %719 = vst.msk [vmem:[#allocation3 + $0x28] sm:$0xff] %vm713_vm7, %v8130_v0 }
  0xf3   : > { %1525 = vrot.lane.b32.xlu0 %v1440_v58, %s10570_s20  ;;  %v1593_v6 = vsel %vm1590_vm6, %v1591_v62, %v1592_v4  ;;  %673 = vst [vmem:[#allocation2 + $0x38] sm:$0x1] %v672_v8  ;;  %v622_v10 = vsel %vm8552_vm4, 0, %v621_v9  ;;  %v596_v11 = vld [vmem:[%s8494_s13 + $0xb0] sm:$0xff]  ;;  %720 = vst.msk [vmem:[#allocation3 + $0x30] sm:$0xff] %vm713_vm7, %v8130_v0  ;;  %v598_v18 = vld [vmem:[%s8494_s13 + $0xc0] sm:$0xff] }
  0xf4   : > { %1615 = vrot.lane.b32.xlu1 %v1593_v6, %s8132_s9  ;;  %623 = vst [vmem:[#allocation2 + $0x30] sm:$0x1] %v622_v10  ;;  %721 = vst.msk [vmem:[#allocation3 + $0x38] sm:$0xff] %vm713_vm7, %v8130_v0  ;;  %v627_v21 = vld [vmem:[#allocation2 + $0x50] sm:$0x1]  ;;  %v601_v26 = vld [vmem:[%s8494_s13 + $0xd8] sm:$0xff] }
  0xf5   : > { %845 = vmatpush1.bf16.msra.mxu0 %v7756_v12  ;;  %v597_v12 = vld [vmem:[%s8494_s13 + $0xb8] sm:$0xff]  ;;  %1404 = vst.msk [vmem:[#allocation3] sm:$0xff] %vm1403_vm8, %v8130_v0  ;;  %v628_v23 = vsel %vm8552_vm4, 0, %v627_v21  ;;  %v680_v29 = vld [vmem:[#allocation2 + $0x68] sm:$0x1]  ;;  %v602_v32 = vld [vmem:[%s8494_s13 + $0xe0] sm:$0xff] }
  0xf6   : > { %846 = vmatprep.subr.bf16.mxu0 %v7757_v13  ;;  %v733_v13 = vpack.c.bf16 %v597_v12, %v596_v11  ;;  %629 = vst [vmem:[#allocation2 + $0x50] sm:$0x1] %v628_v23  ;;  %v603_v33 = vld [vmem:[%s8494_s13 + $0xe8] sm:$0xff]  ;;  %v633_v35 = vld [vmem:[#allocation2 + $0x70] sm:$0x1]  ;;  %s8134_s23 = smov 40  }
  0xf7   : > { %v683_v36 = vld [vmem:[#allocation2 + $0x78] sm:$0x1]  ;;  %v604_v39 = vld [vmem:[%s8494_s13 + $0xf0] sm:$0xff]  ;;  %v636_v42 = vld [vmem:[#allocation2 + $0x80] sm:$0x1]  ;;  %s10568_s24 = smov 32  }
  0xf8   : > { %v684_v38 = vsel %vm8548_vm3, 0, %v683_v36  ;;  %v637_v44 = vsel %vm8552_vm4, 0, %v636_v42  ;;  %v639_v45 = vld [vmem:[#allocation2 + $0x90] sm:$0x1]  ;;  %v8627_v51 = vld [vmem:[%s10604_s2] ss:$0 sm:$0xff] }
  0xf9   : > { %847 = vmatpush1.bf16.msra.mxu0 %v7759_v14  ;;  %v624_v14 = vld [vmem:[#allocation2 + $0x40] sm:$0x1]  ;;  %685 = vst [vmem:[#allocation2 + $0x78] sm:$0x1] %v684_v38  ;;  %638 = vst [vmem:[#allocation2 + $0x80] sm:$0x1] %v637_v44 }
  0xfa   : > { %848 = vmatprep.subr.bf16.mxu0 %v7760_v15  ;;  %v674_v15 = vld [vmem:[#allocation2 + $0x48] sm:$0x1]  ;;  %v640_v47 = vsel %vm8552_vm4, 0, %v639_v45  ;;  %v1302_v4 = vld [vmem:[#allocation2 + $0x18] sm:$0x1]  ;;  %v1299_v11 = vld [vmem:[#allocation2 + $0x10] sm:$0xff] }
  0xfb   : > { %v675_v17 = vsel %vm8548_vm3, 0, %v674_v15  ;;  %641 = vst [vmem:[#allocation2 + $0x90] sm:$0x1] %v640_v47  ;;  %s8136_s14 = smov 48   ;;  %s8137_s1 = smov 64   ;;  %vm1688_vm13 = vcmask 261312  }
  0xfc   : > { %676 = vst [vmem:[#allocation2 + $0x48] sm:$0x1] %v675_v17  ;;  %s10529_s11 = smov 56   ;;  %vm1833_vm14 = vcmask 326912   ;;  %vm1922_vm15 = vcmask 392512   ;;  %vm1972_vm0 = vcmask 458112  }
  0xfd   : > { %849 = vmatpush1.bf16.msra.mxu0 %v7762_v16  ;;  %v625_v16 = vsel %vm8552_vm4, 0, %v624_v14  ;;  %vm2117_vm1 = vcmask 523712   ;;  %vm2206_vm2 = vcmask 589312   ;;  %s10610_s22 = sld [smem:[#allocation32_spill]]  ;;  %s10613_s28 = smov 56  }
  0xfe   : > { %626 = vst [vmem:[#allocation2 + $0x40] sm:$0x1] %v625_v16  ;;  %s10624_s7 = smov 32   ;;  %p10665_p5 = scmp.ne.s32.totalorder %s10587_s27, 0 }
 0x100   : > { %867 = vmatmul.mubr.bf16.vlgmr.msra.gmra.mrb[0].mxu0 %v722_v19  ;;  %v599_v19 = vld [vmem:[%s8494_s13 + $0xc8] sm:$0xff] }
 0x101   : > { %876 = vmatprep.mubr.bf16.mxu0 %v8130_v0  ;;  %v734_v20 = vpack.c.bf16 %v599_v19, %v598_v18 }
 0x108   : > { %877 = vmatmul.mubr.bf16.gmra.mrb[4].mxu0 %v723_v22  ;;  %v677_v22 = vld [vmem:[#allocation2 + $0x58] sm:$0x1] }
 0x109   : > { %886 = vmatprep.mubr.bf16.mxu0 %v8130_v0  ;;  %v678_v24 = vsel %vm8548_vm3, 0, %v677_v22  ;;  %v1308_v22 = vld [vmem:[#allocation2 + $0x28] sm:$0x1] }
 0x10a   : > { %679 = vst [vmem:[#allocation2 + $0x58] sm:$0x1] %v678_v24 }
 0x110   : > { %887 = vmatmul.mubr.bf16.gmra.mrb[8].mxu0 %v724_v25  ;;  %v600_v25 = vld [vmem:[%s8494_s13 + $0xd0] sm:$0xff] }
 0x111   : > { %896 = vmatprep.mubr.bf16.mxu0 %v8130_v0  ;;  %v735_v27 = vpack.c.bf16 %v601_v26, %v600_v25 }
 0x118   : > { %897 = vmatmul.mubr.bf16.gmra.mrb[12].mxu0 %v725_v28  ;;  %v630_v28 = vld [vmem:[#allocation2 + $0x60] sm:$0x1] }
 0x119   : > { %906 = vmatprep.mubr.bf16.mxu0 %v8130_v0  ;;  %v631_v30 = vsel %vm8552_vm4, 0, %v630_v28 }
 0x11a   : > { %632 = vst [vmem:[#allocation2 + $0x60] sm:$0x1] %v631_v30  ;;  %v1305_v30 = vld [vmem:[#allocation2 + $0x20] sm:$0xff] }
 0x120   : > { %907 = vmatmul.mubr.bf16.gmra.mrb[16].mxu0 %v726_v31  ;;  %v681_v31 = vsel %vm8548_vm3, 0, %v680_v29 }
 0x121   : > { %916 = vmatprep.mubr.bf16.mxu0 %v8130_v0  ;;  %682 = vst [vmem:[#allocation2 + $0x68] sm:$0x1] %v681_v31 }
 0x128   : > { %917 = vmatmul.mubr.bf16.gmra.mrb[20].mxu0 %v727_v34  ;;  %v736_v34 = vpack.c.bf16 %v603_v33, %v602_v32 }
 0x129   : > { %926 = vmatprep.mubr.bf16.mxu0 %v8130_v0 }
 0x130   : > { %927 = vmatmul.mubr.bf16.gmra.mrb[24].mxu0 %v728_v37  ;;  %v634_v37 = vsel %vm8552_vm4, 0, %v633_v35 }
 0x131   : > { %936 = vmatprep.mubr.bf16.mxu0 %v8130_v0  ;;  %635 = vst [vmem:[#allocation2 + $0x70] sm:$0x1] %v634_v37 }
 0x138   : > { %937 = vmatmul.mubr.bf16.gmra.mrb[28].mxu0 %v729_v40  ;;  %v605_v40 = vld [vmem:[%s8494_s13 + $0xf8] sm:$0xff]  ;;  %s10612_s13 = sld [smem:[#allocation33_spill]] }
 0x139   : > { %946 = vmatprep.mubr.bf16.mxu0 %v8130_v0  ;;  %v737_v41 = vpack.c.bf16 %v605_v40, %v604_v39 }
 0x140   : > { %947 = vmatmul.mubr.bf16.gmra.mrb[32].mxu0 %v730_v43  ;;  %v686_v43 = vld [vmem:[#allocation2 + $0x88] sm:$0x1] }
 0x141   : > { %956 = vmatprep.mubr.bf16.mxu0 %v8130_v0 }
 0x148   : > { %957 = vmatmul.mubr.bf16.gmra.mrb[36].mxu0 %v731_v46  ;;  %v689_v46 = vld [vmem:[#allocation2 + $0x98] sm:$0x1] }
 0x149   : > { %966 = vmatprep.mubr.bf16.mxu0 %v8130_v0  ;;  %v690_v49 = vsel %vm8548_vm3, 0, %v689_v46 }
 0x14a   : > { %691 = vst [vmem:[#allocation2 + $0x98] sm:$0x1] %v690_v49 }
 0x150   : > { %967 = vmatmul.mubr.bf16.gmra.mrb[40].mxu0 %v732_v5 }
 0x151   : > { %976 = vmatprep.mubr.bf16.mxu0 %v8130_v0 }
 0x158   : > { %977 = vmatmul.mubr.bf16.gmra.mrb[44].mxu0 %v733_v13 }
 0x159   : > { %986 = vmatprep.mubr.bf16.mxu0 %v8130_v0 }
 0x160   : > { %987 = vmatmul.mubr.bf16.gmra.mrb[48].mxu0 %v734_v20 }
 0x161   : > { %996 = vmatprep.mubr.bf16.mxu0 %v8130_v0 }
 0x165   : > { %v1526_v58 = vpop.permute.xlu0 %1525 }
 0x166   : > { %1550 = vst.msk [vmem:[#allocation3] sm:$0xff] %vm1549_vm9, %v1526_v58  ;;  %v1616_v62 = vpop.permute.xlu1 %1615 }
 0x167   : > { %1640 = vst.msk [vmem:[#allocation3] sm:$0xff] %vm1639_vm10, %v1616_v62 }
 0x168   : > { %997 = vmatmul.mubr.bf16.gmra.mrb[52].mxu0 %v735_v27 }
 0x169   : > { %1006 = vmatprep.mubr.bf16.mxu0 %v8130_v0 }
 0x170   : > { %1007 = vmatmul.mubr.bf16.gmra.mrb[56].mxu0 %v736_v34 }
 0x171   : > { %1016 = vmatprep.mubr.bf16.mxu0 %v8130_v0  ;;  %v687_v0 = vsel %vm8548_vm3, 0, %v686_v43 }
 0x172   : > { %688 = vst [vmem:[#allocation2 + $0x88] sm:$0x1] %v687_v0 }
 0x178   : > { %1017 = vmatmul.mubr.bf16.gmra.mrb[60].mxu0 %v737_v41 }
 0x1d3   : > { %v868_v52 = vpop.f32.mrb[0].mxu0 }
 0x1d4   : > { %v1034_v53 = vadd.f32 %v8627_v51, %v868_v52  ;;  %v8630_v54 = vpop.f32.mrb[1].mxu0 }
 0x1d5   : > { %v872_v55 = vpop.f32.mrb[2].mxu0 }
 0x1d6   : > { %v1035_v56 = vadd.f32 %v8627_v51, %v872_v55  ;;  %v8633_v57 = vpop.f32.mrb[3].mxu0  ;;  %v1066_v59 = vmax.f32 %v1034_v53, 0.0 }
 0x1d8   : > { %v1067_v60 = vmax.f32 %v1035_v56, 0.0 }
 0x1da   : > { %v1137_v61 = vpack.c.bf16 %v1067_v60, %v1066_v59  ;;  %v7763_v59 = vld [vmem:[#allocation10] sm:$0xff]   ;;  %v1314_v60 = vld [vmem:[#allocation2 + $0x38] sm:$0x1] }
 0x1db   : > { %v878_v63 = vpop.f32.mrb[4].mxu0  ;;  %7314 = vmatprep.subr.bf16.mxu1 %v7763_v59 }
 0x1dc   : > { %v1154_v1 = vshrl.u32 %v1137_v61, 16  ;;  %v1036_v2 = vadd.f32 %v8627_v51, %v878_v63  ;;  %v8638_v3 = vpop.f32.mrb[5].mxu0  ;;  %v1157_v7 = vshll.u32 %v1137_v61, 16  ;;  %7315 = vmatpush3.bf16.msra.mxu1 %v7763_v59 }
 0x1dd   : > { %v882_v5 = vpop.f32.mrb[6].mxu0 }
 0x1de   : > { %v1156_v6 = vrot.slane %v1154_v1, 7  ;;  %v1037_v8 = vadd.f32 %v8627_v51, %v882_v5  ;;  %v8641_v9 = vpop.f32.mrb[7].mxu0  ;;  %v1068_v14 = vmax.f32 %v1036_v2, 0.0 }
 0x1e0   : > { %v1159_v12 = vor.u32 %v1157_v7, %v1156_v6  ;;  %v1303_v13 = vsel %vm8552_vm4, %v1156_v6, %v1302_v4  ;;  %v1069_v15 = vmax.f32 %v1037_v8, 0.0  ;;  %v7764_v8 = vld [vmem:[#allocation10 + $0x8] sm:$0xff]  }
 0x1e1   : > { %1304 = vst [vmem:[#allocation2 + $0x18] sm:$0x1] %v1303_v13  ;;  %7316 = vmatprep.subr.bf16.mxu1 %v7764_v8 }
 0x1e2   : > { %v1300_v16 = vsel %vm8644_vm12, %v1159_v12, %v1299_v11  ;;  %v1138_v17 = vpack.c.bf16 %v1069_v15, %v1068_v14  ;;  %v1311_v11 = vld [vmem:[#allocation2 + $0x30] sm:$0xff]  ;;  %7317 = vmatpush3.bf16.msra.mxu1 %v7764_v8 }
 0x1e3   : > { %1301 = vst [vmem:[#allocation2 + $0x10] sm:$0xff] %v1300_v16  ;;  %v888_v18 = vpop.f32.mrb[8].mxu0  ;;  %1664 = vrot.lane.b32.xlu0 %v1300_v16, %s8133_s25  ;;  %v1444_v24 = vshll.u32 %v1300_v16, 16  ;;  %v1442_v55 = vshrl.u32 %v1300_v16, 16 }
 0x1e4   : > { %v1161_v19 = vshrl.u32 %v1138_v17, 16  ;;  %v1038_v20 = vadd.f32 %v8627_v51, %v888_v18  ;;  %v8654_v21 = vpop.f32.mrb[9].mxu0  ;;  %v1164_v26 = vshll.u32 %v1138_v17, 16 }
 0x1e5   : > { %v892_v23 = vpop.f32.mrb[10].mxu0  ;;  %v1446_v42 = vrot.slane %v1444_v24, 1 }
 0x1e6   : > { %v1163_v25 = vrot.slane %v1161_v19, 7  ;;  %v1070_v27 = vmax.f32 %v1038_v20, 0.0  ;;  %v1039_v28 = vadd.f32 %v8627_v51, %v892_v23  ;;  %v8657_v29 = vpop.f32.mrb[11].mxu0 }
 0x1e7   : > { %v1447_v12 = vor.u32 %v1446_v42, %v1442_v55 }
 0x1e8   : > { %v1166_v31 = vor.u32 %v1164_v26, %v1163_v25  ;;  %v1309_v32 = vsel %vm8552_vm4, %v1163_v25, %v1308_v22  ;;  %v1071_v33 = vmax.f32 %v1039_v28, 0.0  ;;  %v1561_v34 = vld [vmem:[#allocation2 + $0x18] sm:$0x1] }
 0x1e9   : > { %v1843_v35 = vld [vmem:[#allocation2 + $0x18] sm:$0x1]  ;;  %1310 = vst [vmem:[#allocation2 + $0x28] sm:$0x1] %v1309_v32  ;;  %v1595_v0 = vrot.slane %v1561_v34, 1 }
 0x1ea   : > { %v1415_v36 = vld [vmem:[#allocation2 + $0x18] sm:$0x1]  ;;  %v8663_v38 = vsel %vm8644_vm12, %v1166_v31, %v1305_v30  ;;  %v1139_v39 = vpack.c.bf16 %v1071_v33, %v1070_v27  ;;  %v1560_v40 = vld [vmem:[#allocation2 + $0x10] sm:$0xfe]  ;;  %v1875_v46 = vrot.slane %v1843_v35, 1 }
 0x1eb   : > { %v1698_v37 = vld [vmem:[#allocation2 + $0x18] sm:$0x1]  ;;  %v1842_v41 = vld [vmem:[#allocation2 + $0x10] sm:$0xfe]  ;;  %v1449_v43 = vshll.u32 %v1415_v36, 16  ;;  %1307 = vst [vmem:[#allocation2 + $0x20] sm:$0xff] %v8663_v38 }
 0x1ec   : > { %v1594_v44 = vrot.slane %v1560_v40, 1  ;;  %v1874_v45 = vrot.slane %v1842_v41, 1  ;;  %v898_v47 = vpop.f32.mrb[12].mxu0  ;;  %v1396_v49 = vld [vmem:[#allocation2 + $0x10] sm:$0xff]  ;;  %v1168_v52 = vshrl.u32 %v1139_v39, 16  ;;  %v1171_v53 = vshll.u32 %v1139_v39, 16 }
 0x1ed   : > { %v1040_v56 = vadd.f32 %v8627_v51, %v898_v47  ;;  %v8667_v58 = vpop.f32.mrb[13].mxu0  ;;  %1405 = vst.msk [vmem:[#allocation3 + $0x8] sm:$0xff] %vm1403_vm8, %v1396_v49  ;;  %v1451_v63 = vrot.slane %v1449_v43, 1  ;;  %v1721_v1 = vshll.u32 %v1698_v37, 16  ;;  %v1728_v13 = vshll.u32 %v8663_v38, 16  ;;  %v7766_v47 = vld [vmem:[#allocation10 + $0x18] sm:$0xff]  }
 0x1ee   : > { %v1596_v61 = vsel %vm1590_vm6, %v1594_v44, %v1595_v0  ;;  %v1876_v62 = vsel %vm1590_vm6, %v1874_v45, %v1875_v46  ;;  %v902_v2 = vpop.f32.mrb[14].mxu0  ;;  %v1170_v4 = vrot.slane %v1168_v52, 7  ;;  %v1320_v30 = vld [vmem:[#allocation2 + $0x48] sm:$0x1]  ;;  %v1726_v35 = vshrl.u32 %v8663_v38, 16  ;;  %v7765_v44 = vld [vmem:[#allocation10 + $0x10] sm:$0xff]  }
 0x1ef   : > { %1617 = vrot.lane.b32.xlu1 %v1596_v61, %s8132_s9  ;;  %1898 = vrot.lane.b32.xlu0 %v1876_v62, %s8134_s23  ;;  %v1072_v5 = vmax.f32 %v1040_v56, 0.0  ;;  %v1041_v6 = vadd.f32 %v8627_v51, %v902_v2  ;;  %v8675_v7 = vpop.f32.mrb[15].mxu0  ;;  %v1452_v19 = vsel %vm1428_vm5, %v1447_v12, %v1451_v63  ;;  %v1723_v20 = vrot.slane %v1721_v1, 1  ;;  %v1317_v49 = vld [vmem:[#allocation2 + $0x40] sm:$0xff] }
 0x1f0   : > { %v1173_v14 = vor.u32 %v1171_v53, %v1170_v4  ;;  %v1315_v15 = vsel %vm8552_vm4, %v1170_v4, %v1314_v60  ;;  %v1845_v16 = vld [vmem:[#allocation2 + $0x28] sm:$0x1]  ;;  %v1730_v31 = vrot.slane %v1728_v13, 1  ;;  %7318 = vmatprep.subr.bf16.mxu1 %v7765_v44 }
 0x1f1   : > { %v1073_v17 = vmax.f32 %v1041_v6, 0.0  ;;  %v1700_v18 = vld [vmem:[#allocation2 + $0x28] sm:$0x1]  ;;  %1316 = vst [vmem:[#allocation2 + $0x38] sm:$0x1] %v1315_v15  ;;  %v1878_v28 = vrot.slane %v1845_v16, 1  ;;  %v1724_v37 = vsel %vm1428_vm5, %v1447_v12, %v1723_v20  ;;  %7319 = vmatpush3.bf16.msra.mxu1 %v7765_v44 }
 0x1f2   : > { %v1733_v22 = vshll.u32 %v1700_v18, 16  ;;  %v8683_v23 = vsel %vm8644_vm12, %v1173_v14, %v1311_v11  ;;  %v1844_v24 = vld [vmem:[#allocation2 + $0x20] sm:$0xfe]  ;;  %v1417_v26 = vld [vmem:[#allocation2 + $0x28] sm:$0x1]  ;;  %v8698_v52 = vor.u32 %v1730_v31, %v1726_v35  ;;  %7320 = vmatprep.subr.bf16.mxu1 %v7766_v47 }
 0x1f3   : > { %1527 = vrot.lane.b32.xlu0 %v1452_v19, %s10570_s20  ;;  %1666 = vrot.lane.b32.xlu1 %v8663_v38, %s8133_s25  ;;  %v1140_v25 = vpack.c.bf16 %v1073_v17, %v1072_v5  ;;  %1313 = vst [vmem:[#allocation2 + $0x30] sm:$0xff] %v8683_v23  ;;  %v1877_v27 = vrot.slane %v1844_v24, 1  ;;  %v908_v32 = vpop.f32.mrb[16].mxu0  ;;  %v2126_v36 = vld [vmem:[#allocation2 + $0x20] sm:$0xfe]  ;;  %v1461_v41 = vshll.u32 %v1417_v26, 16 }
 0x1f4   : > { %v1735_v40 = vrot.slane %v1733_v22, 1  ;;  %v8692_v42 = vpop.f32.mrb[17].mxu0  ;;  %v1397_v43 = vld [vmem:[#allocation2 + $0x20] sm:$0xff]  ;;  %v1042_v45 = vadd.f32 %v8627_v51, %v908_v32  ;;  %v2127_v53 = vld [vmem:[#allocation2 + $0x28] sm:$0x1]  ;;  %v2158_v61 = vrot.slane %v2126_v36, 1 }
 0x1f5   : > { %v1175_v33 = vshrl.u32 %v1140_v25, 16  ;;  %v1178_v34 = vshll.u32 %v1140_v25, 16  ;;  %v1879_v39 = vsel %vm1590_vm6, %v1877_v27, %v1878_v28  ;;  %v912_v46 = vpop.f32.mrb[18].mxu0  ;;  %1406 = vst.msk [vmem:[#allocation3 + $0x10] sm:$0xff] %vm1403_vm8, %v1397_v43  ;;  %v1562_v62 = vld [vmem:[#allocation2 + $0x20] sm:$0xfe]  ;;  %7321 = vmatpush3.bf16.msra.mxu1 %v7766_v47 }
 0x1f6   : > { %v1043_v55 = vadd.f32 %v8627_v51, %v912_v46  ;;  %v8701_v56 = vpop.f32.mrb[19].mxu0  ;;  %v1074_v63 = vmax.f32 %v1042_v45, 0.0  ;;  %v1736_v1 = vsel %vm1428_vm5, %v8698_v52, %v1735_v40  ;;  %v1463_v2 = vrot.slane %v1461_v41, 1  ;;  %v1982_v4 = vld [vmem:[#allocation2 + $0x28] sm:$0x1]  ;;  %v1323_v40 = vld [vmem:[#allocation2 + $0x50] sm:$0xff] }
 0x1f7   : > { %1809 = vrot.lane.b32.xlu0 %v1724_v37, %s10568_s24  ;;  %1900 = vrot.lane.b32.xlu1 %v1879_v39, %s8134_s23  ;;  %v1177_v0 = vrot.slane %v1175_v33, 7  ;;  %v2159_v8 = vrot.slane %v2127_v53, 1  ;;  %v1563_v11 = vld [vmem:[#allocation2 + $0x28] sm:$0x1]  ;;  %v1597_v12 = vrot.slane %v1562_v62, 1  ;;  %v2005_v15 = vshll.u32 %v1982_v4, 16 }
 0x1f8   : > { %v1075_v5 = vmax.f32 %v1043_v55, 0.0  ;;  %v1565_v16 = vld [vmem:[#allocation2 + $0x38] sm:$0x1]  ;;  %v1464_v19 = vsel %vm1428_vm5, %v8698_v52, %v1463_v2  ;;  %v1598_v20 = vrot.slane %v1563_v11, 1  ;;  %v7768_v36 = vld [vmem:[#allocation10 + $0x28] sm:$0xff]   ;;  %v2010_v55 = vshrl.u32 %v8683_v23, 16 }
 0x1f9   : > { %v1180_v59 = vor.u32 %v1178_v34, %v1177_v0  ;;  %v1321_v60 = vsel %vm8552_vm4, %v1177_v0, %v1320_v30  ;;  %v2160_v14 = vsel %vm1590_vm6, %v2158_v61, %v2159_v8  ;;  %v1326_v17 = vld [vmem:[#allocation2 + $0x58] sm:$0x1]  ;;  %v7767_v30 = vld [vmem:[#allocation10 + $0x20] sm:$0xff]   ;;  %v2012_v34 = vshll.u32 %v8683_v23, 16 }
 0x1fa   : > { %1322 = vst [vmem:[#allocation2 + $0x48] sm:$0x1] %v1321_v60  ;;  %v1141_v13 = vpack.c.bf16 %v1075_v5, %v1074_v63  ;;  %v1984_v24 = vld [vmem:[#allocation2 + $0x38] sm:$0x1]  ;;  %v1564_v26 = vld [vmem:[#allocation2 + $0x30] sm:$0xfe]  ;;  %v1599_v32 = vsel %vm1590_vm6, %v1597_v12, %v1598_v20  ;;  %7322 = vmatprep.subr.bf16.mxu1 %v7767_v30 }
 0x1fb   : > { %v8709_v6 = vsel %vm8644_vm12, %v1180_v59, %v1317_v49  ;;  %1948 = vrot.lane.b32.xlu0 %v8663_v38, %s8136_s14  ;;  %1811 = vrot.lane.b32.xlu1 %v1736_v1, %s10568_s24  ;;  %v918_v18 = vpop.f32.mrb[20].mxu0  ;;  %v1398_v31 = vld [vmem:[#allocation2 + $0x30] sm:$0xff]  ;;  %v2007_v37 = vrot.slane %v2005_v15, 1  ;;  %v1601_v39 = vrot.slane %v1565_v16, 1  ;;  %v1600_v44 = vrot.slane %v1564_v26, 1  ;;  %v7770_v20 = vld [vmem:[#allocation10 + $0x38] sm:$0xff]  }
 0x1fc   : > { %1319 = vst [vmem:[#allocation2 + $0x40] sm:$0xff] %v8709_v6  ;;  %v1182_v38 = vshrl.u32 %v1141_v13, 16  ;;  %v1185_v22 = vshll.u32 %v1141_v13, 16  ;;  %v8718_v25 = vpop.f32.mrb[21].mxu0  ;;  %v1044_v27 = vadd.f32 %v8627_v51, %v918_v18  ;;  %1407 = vst.msk [vmem:[#allocation3 + $0x18] sm:$0xff] %vm1403_vm8, %v1398_v31  ;;  %v2017_v46 = vshll.u32 %v1984_v24, 16  ;;  %7323 = vmatpush3.bf16.msra.mxu1 %v7767_v30 }
 0x1fd   : > { %v922_v28 = vpop.f32.mrb[22].mxu0  ;;  %v1419_v47 = vld [vmem:[#allocation2 + $0x38] sm:$0x1]  ;;  %v2014_v59 = vrot.slane %v2012_v34, 1  ;;  %7324 = vmatprep.subr.bf16.mxu1 %v7768_v36  ;;  %v7769_v60 = vld [vmem:[#allocation10 + $0x30] sm:$0xff]   ;;  %v2008_v63 = vsel %vm1428_vm5, %v8698_v52, %v2007_v37  ;;  %v1602_v1 = vsel %vm1590_vm6, %v1600_v44, %v1601_v39 }
 0x1fe   : > { %v1184_v33 = vrot.slane %v1182_v38, 7  ;;  %v8725_v35 = vpop.f32.mrb[23].mxu0  ;;  %v1076_v41 = vmax.f32 %v1044_v27, 0.0  ;;  %v1045_v43 = vadd.f32 %v8627_v51, %v922_v28  ;;  %v2019_v2 = vrot.slane %v2017_v46, 1  ;;  %v2129_v4 = vld [vmem:[#allocation2 + $0x38] sm:$0x1] }
 0x1ff   : > { %2182 = vrot.lane.b32.xlu0 %v2160_v14, %s8137_s1  ;;  %1529 = vrot.lane.b32.xlu1 %v1464_v19, %s10570_s20  ;;  %v1473_v5 = vshll.u32 %v1419_v47, 16  ;;  %v2128_v11 = vld [vmem:[#allocation2 + $0x30] sm:$0xfe]  ;;  %v8747_v16 = vor.u32 %v2014_v59, %v2010_v55  ;;  %v2162_v38 = vrot.slane %v2129_v4, 1  ;;  %v1702_v24 = vld [vmem:[#allocation2 + $0x38] sm:$0x1] }
 0x200   : > { %v1187_v0 = vor.u32 %v1185_v22, %v1184_v33  ;;  %v1327_v45 = vsel %vm8552_vm4, %v1184_v33, %v1326_v17  ;;  %v1077_v49 = vmax.f32 %v1045_v43, 0.0  ;;  %7325 = vmatpush3.bf16.msra.mxu1 %v7768_v36  ;;  %v1846_v52 = vld [vmem:[#allocation2 + $0x30] sm:$0xfe]  ;;  %v1332_v17 = vld [vmem:[#allocation2 + $0x68] sm:$0x1]  ;;  %v2161_v30 = vrot.slane %v2128_v11, 1 }
 0x201   : > { %1328 = vst [vmem:[#allocation2 + $0x58] sm:$0x1] %v1327_v45  ;;  %7326 = vmatprep.subr.bf16.mxu1 %v7769_v60  ;;  %v1847_v22 = vld [vmem:[#allocation2 + $0x38] sm:$0x1]  ;;  %v2020_v28 = vsel %vm1428_vm5, %v8747_v16, %v2019_v2  ;;  %v1475_v31 = vrot.slane %v1473_v5, 1  ;;  %v1880_v37 = vrot.slane %v1846_v52, 1 }
 0x202   : > { %v8736_v53 = vsel %vm8644_vm12, %v1187_v0, %v1323_v40  ;;  %v1142_v61 = vpack.c.bf16 %v1077_v49, %v1076_v41  ;;  %v1881_v39 = vrot.slane %v1847_v22, 1  ;;  %v1745_v40 = vshll.u32 %v1702_v24, 16  ;;  %v1849_v43 = vld [vmem:[#allocation2 + $0x48] sm:$0x1] }
 0x203   : > { %1619 = vrot.lane.b32.xlu0 %v1599_v32, %s8132_s9  ;;  %1950 = vrot.lane.b32.xlu1 %v8683_v23, %s8136_s14  ;;  %1325 = vst [vmem:[#allocation2 + $0x50] sm:$0xff] %v8736_v53  ;;  %v928_v62 = vpop.f32.mrb[24].mxu0  ;;  %v1399_v15 = vld [vmem:[#allocation2 + $0x40] sm:$0xff]  ;;  %v2163_v0 = vsel %vm1590_vm6, %v2161_v30, %v2162_v38  ;;  %v1704_v46 = vld [vmem:[#allocation2 + $0x48] sm:$0x1]  ;;  %v1752_v47 = vshll.u32 %v8709_v6, 16 }
 0x204   : > { %v8743_v8 = vpop.f32.mrb[25].mxu0  ;;  %v1189_v12 = vshrl.u32 %v1142_v61, 16  ;;  %v1192_v13 = vshll.u32 %v1142_v61, 16  ;;  %v1046_v18 = vadd.f32 %v8627_v51, %v928_v62  ;;  %1408 = vst.msk [vmem:[#allocation3 + $0x20] sm:$0xff] %vm1403_vm8, %v1399_v15  ;;  %v1329_v32 = vld [vmem:[#allocation2 + $0x60] sm:$0xff]  ;;  %7327 = vmatpush3.bf16.msra.mxu1 %v7769_v60  ;;  %v1882_v60 = vsel %vm1590_vm6, %v1880_v37, %v1881_v39  ;;  %v1335_v38 = vld [vmem:[#allocation2 + $0x70] sm:$0xff] }
 0x205   : > { %v932_v14 = vpop.f32.mrb[26].mxu0  ;;  %7328 = vmatprep.subr.bf16.mxu1 %v7770_v20  ;;  %v1848_v45 = vld [vmem:[#allocation2 + $0x40] sm:$0xfe]  ;;  %v1747_v61 = vrot.slane %v1745_v40, 1  ;;  %v1884_v5 = vrot.slane %v1849_v43, 1  ;;  %v1757_v11 = vshll.u32 %v1704_v46, 16 }
 0x206   : > { %v8750_v19 = vpop.f32.mrb[27].mxu0  ;;  %v1191_v26 = vrot.slane %v1189_v12, 7  ;;  %v1047_v27 = vadd.f32 %v8627_v51, %v932_v14  ;;  %v1078_v33 = vmax.f32 %v1046_v18, 0.0  ;;  %v1883_v4 = vrot.slane %v1848_v45, 1  ;;  %v1338_v12 = vld [vmem:[#allocation2 + $0x78] sm:$0x1] }
 0x207   : > { %2093 = vrot.lane.b32.xlu0 %v2008_v63, %s10529_s11  ;;  %1621 = vrot.lane.b32.xlu1 %v1602_v1, %s8132_s9  ;;  %v1750_v15 = vshrl.u32 %v8709_v6, 16  ;;  %v1754_v52 = vrot.slane %v1752_v47, 1  ;;  %v1748_v30 = vsel %vm1428_vm5, %v8747_v16, %v1747_v61  ;;  %v2130_v37 = vld [vmem:[#allocation2 + $0x40] sm:$0xfe]  ;;  %v2131_v39 = vld [vmem:[#allocation2 + $0x48] sm:$0x1] }
 0x208   : > { %v1194_v34 = vor.u32 %v1192_v13, %v1191_v26  ;;  %v1333_v36 = vsel %vm8552_vm4, %v1191_v26, %v1332_v17  ;;  %v1079_v41 = vmax.f32 %v1047_v27, 0.0  ;;  %7329 = vmatpush3.bf16.msra.mxu1 %v7770_v20  ;;  %v1421_v17 = vld [vmem:[#allocation2 + $0x48] sm:$0x1]  ;;  %v2164_v47 = vrot.slane %v2130_v37, 1 }
 0x209   : > { %1334 = vst [vmem:[#allocation2 + $0x68] sm:$0x1] %v1333_v36  ;;  %v8791_v36 = vor.u32 %v1754_v52, %v1750_v15  ;;  %v1344_v45 = vld [vmem:[#allocation2 + $0x88] sm:$0x1] }
 0x20a   : > { %v8763_v44 = vsel %vm8644_vm12, %v1194_v34, %v1329_v32  ;;  %v1143_v49 = vpack.c.bf16 %v1079_v41, %v1078_v33  ;;  %v1400_v2 = vld [vmem:[#allocation2 + $0x50] sm:$0xff]  ;;  %v1759_v32 = vrot.slane %v1757_v11, 1  ;;  %v1485_v33 = vshll.u32 %v1421_v17, 16  ;;  %v1341_v11 = vld [vmem:[#allocation2 + $0x80] sm:$0xff] }
 0x20b   : > { %1668 = vrot.lane.b32.xlu0 %v8683_v23, %s8133_s25  ;;  %2095 = vrot.lane.b32.xlu1 %v2020_v28, %s10529_s11  ;;  %v1476_v23 = vsel %vm1428_vm5, %v8747_v16, %v1475_v31  ;;  %1331 = vst [vmem:[#allocation2 + $0x60] sm:$0xff] %v8763_v44  ;;  %v938_v55 = vpop.f32.mrb[28].mxu0  ;;  %1409 = vst.msk [vmem:[#allocation3 + $0x28] sm:$0xff] %vm1403_vm8, %v1400_v2  ;;  %v1885_v31 = vsel %vm1590_vm6, %v1883_v4, %v1884_v5 }
 0x20c   : > { %v8772_v59 = vpop.f32.mrb[29].mxu0  ;;  %v1196_v62 = vshrl.u32 %v1143_v49, 16  ;;  %v1199_v63 = vshll.u32 %v1143_v49, 16  ;;  %v1048_v13 = vadd.f32 %v8627_v51, %v938_v55  ;;  %v2165_v49 = vrot.slane %v2131_v39, 1 }
 0x20d   : > { %v942_v1 = vpop.f32.mrb[30].mxu0  ;;  %v1487_v55 = vrot.slane %v1485_v33, 1 }
 0x20e   : > { %v8776_v14 = vpop.f32.mrb[31].mxu0  ;;  %v1198_v18 = vrot.slane %v1196_v62, 7  ;;  %v1049_v20 = vadd.f32 %v8627_v51, %v942_v1  ;;  %v1080_v22 = vmax.f32 %v1048_v13, 0.0  ;;  %v1760_v62 = vsel %vm1428_vm5, %v8791_v36, %v1759_v32  ;;  %v1986_v1 = vld [vmem:[#allocation2 + $0x48] sm:$0x1] }
 0x20f   : > { %2184 = vrot.lane.b32.xlu0 %v2163_v0, %s8137_s1  ;;  %1531 = vrot.lane.b32.xlu1 %v1476_v23, %s10570_s20  ;;  %v2166_v52 = vsel %vm1590_vm6, %v2164_v47, %v2165_v49  ;;  %v1347_v49 = vld [vmem:[#allocation2 + $0x90] sm:$0xff] }
 0x210   : > { %v1201_v24 = vor.u32 %v1199_v63, %v1198_v18  ;;  %v1339_v26 = vsel %vm8552_vm4, %v1198_v18, %v1338_v12  ;;  %v1081_v27 = vmax.f32 %v1049_v20, 0.0  ;;  %v1567_v63 = vld [vmem:[#allocation2 + $0x48] sm:$0x1]  ;;  %v2029_v20 = vshll.u32 %v1986_v1, 16 }
 0x211   : > { %1340 = vst [vmem:[#allocation2 + $0x78] sm:$0x1] %v1339_v26  ;;  %v1604_v18 = vrot.slane %v1567_v63, 1 }
 0x212   : > { %v8795_v40 = vsel %vm8644_vm12, %v1201_v24, %v1335_v38  ;;  %v1144_v41 = vpack.c.bf16 %v1081_v27, %v1080_v22  ;;  %v1401_v61 = vld [vmem:[#allocation2 + $0x60] sm:$0xff]  ;;  %v1488_v38 = vsel %vm1428_vm5, %v8791_v36, %v1487_v55  ;;  %v1569_v22 = vld [vmem:[#allocation2 + $0x58] sm:$0x1]  ;;  %v1568_v27 = vld [vmem:[#allocation2 + $0x50] sm:$0xfe]  ;;  %v2031_v37 = vrot.slane %v2029_v20, 1 }
 0x213   : > { %1902 = vrot.lane.b32.xlu0 %v1882_v60, %s8134_s23  ;;  %1670 = vrot.lane.b32.xlu1 %v8709_v6, %s8133_s25  ;;  %v948_v28 = vpop.f32.mrb[32].mxu0  ;;  %1337 = vst [vmem:[#allocation2 + $0x70] sm:$0xff] %v8795_v40  ;;  %v1566_v60 = vld [vmem:[#allocation2 + $0x40] sm:$0xfe]  ;;  %1410 = vst.msk [vmem:[#allocation3 + $0x30] sm:$0xff] %vm1403_vm8, %v1401_v61  ;;  %v1607_v39 = vrot.slane %v1569_v22, 1 }
 0x214   : > { %v8789_v34 = vpop.f32.mrb[33].mxu0  ;;  %v1050_v43 = vadd.f32 %v8627_v51, %v948_v28  ;;  %v1203_v16 = vshrl.u32 %v1144_v41, 16  ;;  %v1206_v23 = vshll.u32 %v1144_v41, 16  ;;  %v1603_v17 = vrot.slane %v1566_v60, 1  ;;  %v1988_v28 = vld [vmem:[#allocation2 + $0x58] sm:$0x1] }
 0x215   : > { %v952_v0 = vpop.f32.mrb[34].mxu0  ;;  %v2034_v41 = vshrl.u32 %v8736_v53, 16  ;;  %v2032_v61 = vsel %vm1428_vm5, %v8791_v36, %v2031_v37  ;;  %v1706_v20 = vld [vmem:[#allocation2 + $0x58] sm:$0x1]  ;;  %v1853_v37 = vld [vmem:[#allocation2 + $0x68] sm:$0x1] }
 0x216   : > { %v8801_v46 = vpop.f32.mrb[35].mxu0  ;;  %v1205_v2 = vrot.slane %v1203_v16, 7  ;;  %v1082_v4 = vmax.f32 %v1050_v43, 0.0  ;;  %v1051_v5 = vadd.f32 %v8627_v51, %v952_v0  ;;  %v1605_v33 = vsel %vm1590_vm6, %v1603_v17, %v1604_v18  ;;  %v1350_v43 = vld [vmem:[#allocation2 + $0x98] sm:$0x1] }
 0x217   : > { %1813 = vrot.lane.b32.xlu0 %v1748_v30, %s10568_s24  ;;  %1904 = vrot.lane.b32.xlu1 %v1885_v31, %s8134_s23  ;;  %v1606_v0 = vrot.slane %v1568_v27, 1  ;;  %v1851_v18 = vld [vmem:[#allocation2 + $0x58] sm:$0x1]  ;;  %v1769_v27 = vshll.u32 %v1706_v20, 16 }
 0x218   : > { %v1208_v12 = vor.u32 %v1206_v23, %v1205_v2  ;;  %v1345_v13 = vsel %vm8552_vm4, %v1205_v2, %v1344_v45  ;;  %v1083_v15 = vmax.f32 %v1051_v5, 0.0  ;;  %v2041_v23 = vshll.u32 %v1988_v28, 16  ;;  %v1423_v45 = vld [vmem:[#allocation2 + $0x58] sm:$0x1] }
 0x219   : > { %1346 = vst [vmem:[#allocation2 + $0x88] sm:$0x1] %v1345_v13  ;;  %v1608_v63 = vsel %vm1590_vm6, %v1606_v0, %v1607_v39  ;;  %v2133_v5 = vld [vmem:[#allocation2 + $0x58] sm:$0x1]  ;;  %v1850_v13 = vld [vmem:[#allocation2 + $0x50] sm:$0xfe] }
 0x21a   : > { %v8818_v24 = vsel %vm8644_vm12, %v1208_v12, %v1341_v11  ;;  %v1145_v26 = vpack.c.bf16 %v1083_v15, %v1082_v4  ;;  %v1402_v30 = vld [vmem:[#allocation2 + $0x70] sm:$0xff]  ;;  %v2043_v2 = vrot.slane %v2041_v23, 1  ;;  %v2168_v36 = vrot.slane %v2133_v5, 1  ;;  %v642_v39 = vld [vmem:[#allocation2 + $0xa0] sm:$0x1] }
 0x21b   : > { %1952 = vrot.lane.b32.xlu0 %v8709_v6, %s8136_s14  ;;  %1815 = vrot.lane.b32.xlu1 %v1760_v62, %s10568_s24  ;;  %v2036_v6 = vshll.u32 %v8736_v53, 16  ;;  %1343 = vst [vmem:[#allocation2 + $0x80] sm:$0xff] %v8818_v24  ;;  %1411 = vst.msk [vmem:[#allocation3 + $0x38] sm:$0xff] %vm1403_vm8, %v1402_v30  ;;  %v1497_v62 = vshll.u32 %v1423_v45, 16  ;;  %v2132_v4 = vld [vmem:[#allocation2 + $0x50] sm:$0xfe] }
 0x21c   : > { %v1210_v31 = vshrl.u32 %v1145_v26, 16  ;;  %v1213_v32 = vshll.u32 %v1145_v26, 16  ;;  %v2167_v12 = vrot.slane %v2132_v4, 1  ;;  %v958_v15 = vpop.f32.mrb[36].mxu0  ;;  %v1887_v26 = vrot.slane %v1851_v18, 1 }
 0x21d   : > { %v2038_v16 = vrot.slane %v2036_v6, 1  ;;  %v1499_v17 = vrot.slane %v1497_v62, 1  ;;  %v1886_v6 = vrot.slane %v1850_v13, 1  ;;  %v643_v62 = vsel %vm8552_vm4, 0, %v642_v39  ;;  %v645_v18 = vld [vmem:[#allocation2 + $0xb0] sm:$0x1] }
 0x21e   : > { %v1212_v47 = vrot.slane %v1210_v31, 7  ;;  %v2169_v28 = vsel %vm1590_vm6, %v2167_v12, %v2168_v36  ;;  %v1708_v31 = vld [vmem:[#allocation2 + $0x68] sm:$0x1]  ;;  %644 = vst [vmem:[#allocation2 + $0xa0] sm:$0x1] %v643_v62 }
 0x21f   : > { %2186 = vrot.lane.b32.xlu0 %v2166_v52, %s8137_s1  ;;  %1533 = vrot.lane.b32.xlu1 %v1488_v38, %s10570_s20  ;;  %v2039_v1 = vor.u32 %v2038_v16, %v2034_v41  ;;  %v8842_v38 = vpop.f32.mrb[37].mxu0  ;;  %v692_v41 = vld [vmem:[#allocation2 + $0xa8] sm:$0x1]  ;;  %v1888_v0 = vsel %vm1590_vm6, %v1886_v6, %v1887_v26  ;;  %v1771_v16 = vrot.slane %v1769_v27, 1  ;;  %v1781_v23 = vshll.u32 %v1708_v31, 16 }
 0x220   : > { %v1215_v55 = vor.u32 %v1213_v32, %v1212_v47  ;;  %v1351_v60 = vsel %vm8552_vm4, %v1212_v47, %v1350_v43  ;;  %v962_v22 = vpop.f32.mrb[38].mxu0  ;;  %v1776_v32 = vshll.u32 %v8763_v44, 16  ;;  %v1890_v47 = vrot.slane %v1853_v37, 1  ;;  %v2134_v12 = vld [vmem:[#allocation2 + $0x60] sm:$0xfe] }
 0x221   : > { %1352 = vst [vmem:[#allocation2 + $0x98] sm:$0x1] %v1351_v60  ;;  %v2044_v52 = vsel %vm1428_vm5, %v2039_v1, %v2043_v2  ;;  %v1500_v30 = vsel %vm1428_vm5, %v2039_v1, %v1499_v17  ;;  %v1053_v43 = vadd.f32 %v8627_v51, %v962_v22  ;;  %v1425_v60 = vld [vmem:[#allocation2 + $0x68] sm:$0x1]  ;;  %v1772_v4 = vsel %vm1428_vm5, %v2039_v1, %v1771_v16  ;;  %v8867_v17 = vpop.f32.mrb[39].mxu0 }
 0x222   : > { %v8836_v11 = vsel %vm8644_vm12, %v1215_v55, %v1347_v49  ;;  %v1774_v49 = vshrl.u32 %v8763_v44, 16  ;;  %v1778_v55 = vrot.slane %v1776_v32, 1  ;;  %v1783_v5 = vrot.slane %v1781_v23, 1  ;;  %v695_v20 = vld [vmem:[#allocation2 + $0xb8] sm:$0x1] }
 0x223   : > { %1623 = vrot.lane.b32.xlu0 %v1605_v33, %s8132_s9  ;;  %1954 = vrot.lane.b32.xlu1 %v8736_v53, %s8136_s14  ;;  %1349 = vst [vmem:[#allocation2 + $0x90] sm:$0xff] %v8836_v11  ;;  %v1852_v33 = vld [vmem:[#allocation2 + $0x60] sm:$0xfe]  ;;  %v1085_v2 = vmax.f32 %v1053_v43, 0.0  ;;  %v2135_v22 = vld [vmem:[#allocation2 + $0x68] sm:$0x1] }
 0x224   : > { %v1889_v45 = vrot.slane %v1852_v33, 1  ;;  %v8865_v13 = vor.u32 %v1778_v55, %v1774_v49  ;;  %v646_v1 = vsel %vm8552_vm4, 0, %v645_v18  ;;  %v696_v6 = vsel %vm8548_vm3, 0, %v695_v20  ;;  %v1570_v31 = vld [vmem:[#allocation2 + $0x60] sm:$0xfe] }
 0x225   : > { %647 = vst [vmem:[#allocation2 + $0xb0] sm:$0x1] %v646_v1  ;;  %697 = vst [vmem:[#allocation2 + $0xb8] sm:$0x1] %v696_v6  ;;  %v1571_v32 = vld [vmem:[#allocation2 + $0x68] sm:$0x1] }
 0x226   : > { %v1891_v36 = vsel %vm1590_vm6, %v1889_v45, %v1890_v47  ;;  %v2171_v39 = vrot.slane %v2135_v22, 1  ;;  %v1990_v43 = vld [vmem:[#allocation2 + $0x68] sm:$0x1]  ;;  %v1353_v23 = vld [vmem:[#allocation2 + $0xa0] sm:$0xff]  ;;  %v1609_v55 = vrot.slane %v1570_v31, 1 }
 0x227   : > { %2097 = vrot.lane.b32.xlu0 %v2032_v61, %s10529_s11  ;;  %1625 = vrot.lane.b32.xlu1 %v1608_v63, %s8132_s9  ;;  %v693_v63 = vsel %vm8548_vm3, 0, %v692_v41 }
 0x228   : > { %694 = vst [vmem:[#allocation2 + $0xa8] sm:$0x1] %v693_v63  ;;  %v2053_v63 = vshll.u32 %v1990_v43, 16 }
 0x22a   : > { %v2055_v20 = vrot.slane %v2053_v63, 1 }
 0x22b   : > { %1672 = vrot.lane.b32.xlu0 %v8736_v53, %s8133_s25  ;;  %2099 = vrot.lane.b32.xlu1 %v2044_v52, %s10529_s11  ;;  %v1052_v53 = vadd.f32 %v8627_v51, %v958_v15  ;;  %v1509_v15 = vshll.u32 %v1425_v60, 16  ;;  %v1610_v60 = vrot.slane %v1571_v32, 1  ;;  %v1427_v32 = vld [vmem:[#allocation2 + $0x78] sm:$0x1] }
 0x22c   : > { %v1362_v31 = vld [vmem:[#allocation2 + $0xb8] sm:$0x1] }
 0x22d   : > { %v1084_v61 = vmax.f32 %v1052_v53, 0.0  ;;  %v1784_v53 = vsel %vm1428_vm5, %v8865_v13, %v1783_v5  ;;  %v1511_v41 = vrot.slane %v1509_v15, 1  ;;  %v1573_v5 = vld [vmem:[#allocation2 + $0x78] sm:$0x1]  ;;  %v1611_v18 = vsel %vm1590_vm6, %v1609_v55, %v1610_v60 }
 0x22e   : > { %v1992_v15 = vld [vmem:[#allocation2 + $0x78] sm:$0x1]  ;;  %v1613_v22 = vrot.slane %v1573_v5, 1 }
 0x22f   : > { %2188 = vrot.lane.b32.xlu0 %v2169_v28, %s8137_s1  ;;  %1535 = vrot.lane.b32.xlu1 %v1500_v30, %s10570_s20  ;;  %v1146_v52 = vpack.c.bf16 %v1085_v2, %v1084_v61  ;;  %v968_v28 = vpop.f32.mrb[40].mxu0  ;;  %v2170_v30 = vrot.slane %v2134_v12, 1  ;;  %v1356_v45 = vld [vmem:[#allocation2 + $0xa8] sm:$0x1]  ;;  %v2060_v12 = vshll.u32 %v8795_v40, 16 }
 0x230   : > { %v1054_v33 = vadd.f32 %v8627_v51, %v968_v28  ;;  %v8876_v37 = vpop.f32.mrb[41].mxu0 }
 0x231   : > { %v1217_v26 = vshrl.u32 %v1146_v52, 16  ;;  %v1220_v27 = vshll.u32 %v1146_v52, 16  ;;  %v972_v16 = vpop.f32.mrb[42].mxu0  ;;  %v2062_v28 = vrot.slane %v2060_v12, 1 }
 0x232   : > { %v1086_v47 = vmax.f32 %v1054_v33, 0.0  ;;  %v1055_v49 = vadd.f32 %v8627_v51, %v972_v16  ;;  %v8909_v55 = vpop.f32.mrb[43].mxu0 }
 0x233   : > { %1906 = vrot.lane.b32.xlu0 %v1888_v0, %s8134_s23  ;;  %1674 = vrot.lane.b32.xlu1 %v8763_v44, %s8133_s25  ;;  %v1219_v0 = vrot.slane %v1217_v26, 7  ;;  %v978_v60 = vpop.f32.mrb[44].mxu0 }
 0x234   : > { %v1087_v2 = vmax.f32 %v1055_v49, 0.0  ;;  %v1521_v49 = vshll.u32 %v1427_v32, 16 }
 0x235   : > { %v1222_v61 = vor.u32 %v1220_v27, %v1219_v0  ;;  %v1357_v62 = vsel %vm8552_vm4, %v1219_v0, %v1356_v45  ;;  %v2058_v27 = vshrl.u32 %v8795_v40, 16 }
 0x236   : > { %1358 = vst [vmem:[#allocation2 + $0xa8] sm:$0x1] %v1357_v62  ;;  %v1147_v52 = vpack.c.bf16 %v1087_v2, %v1086_v47  ;;  %v2136_v47 = vld [vmem:[#allocation2 + $0x70] sm:$0xfe]  ;;  %v8921_v62 = vld [vmem:[%s10604_s2] ss:$0 sm:$0xff] }
 0x237   : > { %1817 = vrot.lane.b32.xlu0 %v1772_v4, %s10568_s24  ;;  %1908 = vrot.lane.b32.xlu1 %v1891_v36, %s8134_s23  ;;  %v2172_v4 = vsel %vm1590_vm6, %v2170_v30, %v2171_v39  ;;  %v8892_v51 = vsel %vm8644_vm12, %v1222_v61, %v1353_v23  ;;  %v1572_v36 = vld [vmem:[#allocation2 + $0x70] sm:$0xfe]  ;;  %v2065_v30 = vshll.u32 %v1992_v15, 16  ;;  %v2056_v39 = vsel %vm1428_vm5, %v8865_v13, %v2055_v20  ;;  %v648_v61 = vld [vmem:[#allocation2 + $0xc0] sm:$0x1]  ;;  %v8924_v2 = vpop.f32.mrb[45].mxu0 }
 0x238   : > { %1355 = vst [vmem:[#allocation2 + $0xa0] sm:$0xff] %v8892_v51  ;;  %v1224_v1 = vshrl.u32 %v1147_v52, 16  ;;  %v1227_v6 = vshll.u32 %v1147_v52, 16  ;;  %v1612_v26 = vrot.slane %v1572_v36, 1  ;;  %v8907_v23 = vor.u32 %v2062_v28, %v2058_v27  ;;  %v982_v15 = vpop.f32.mrb[46].mxu0 }
 0x239   : > { %v2067_v45 = vrot.slane %v2065_v30, 1  ;;  %v1056_v63 = vadd.f32 %v8921_v62, %v978_v60  ;;  %v2173_v5 = vrot.slane %v2136_v47, 1  ;;  %v1854_v20 = vld [vmem:[#allocation2 + $0x70] sm:$0xfe]  ;;  %v1798_v47 = vshrl.u32 %v8818_v24, 16 }
 0x23a   : > { %v1226_v33 = vrot.slane %v1224_v1, 7  ;;  %v1614_v16 = vsel %vm1590_vm6, %v1612_v26, %v1613_v22  ;;  %v1855_v22 = vld [vmem:[#allocation2 + $0x78] sm:$0x1]  ;;  %v1892_v28 = vrot.slane %v1854_v20, 1 }
 0x23b   : > { %1956 = vrot.lane.b32.xlu0 %v8763_v44, %s8136_s14  ;;  %1819 = vrot.lane.b32.xlu1 %v1784_v53, %s10568_s24  ;;  %v1512_v44 = vsel %vm1428_vm5, %v8865_v13, %v1511_v41  ;;  %v1359_v53 = vld [vmem:[#allocation2 + $0xb0] sm:$0xff]  ;;  %v2137_v41 = vld [vmem:[#allocation2 + $0x78] sm:$0x1]  ;;  %v2068_v52 = vsel %vm1428_vm5, %v8907_v23, %v2067_v45  ;;  %v1088_v1 = vmax.f32 %v1056_v63, 0.0  ;;  %v1893_v30 = vrot.slane %v1855_v22, 1 }
 0x23c   : > { %v1229_v43 = vor.u32 %v1227_v6, %v1226_v33  ;;  %v1363_v0 = vsel %vm8552_vm4, %v1226_v33, %v1362_v31  ;;  %v2174_v12 = vrot.slane %v2137_v41, 1  ;;  %v1057_v6 = vadd.f32 %v8921_v62, %v982_v15  ;;  %v1710_v26 = vld [vmem:[#allocation2 + $0x78] sm:$0x1] }
 0x23d   : > { %1364 = vst [vmem:[#allocation2 + $0xb8] sm:$0x1] %v1363_v0  ;;  %v1800_v31 = vshll.u32 %v8818_v24, 16  ;;  %v1894_v45 = vsel %vm1590_vm6, %v1892_v28, %v1893_v30  ;;  %v8959_v30 = vpop.f32.mrb[47].mxu0 }
 0x23e   : > { %v8915_v13 = vsel %vm8644_vm12, %v1229_v43, %v1359_v53  ;;  %v1089_v27 = vmax.f32 %v1057_v6, 0.0  ;;  %v2175_v32 = vsel %vm1590_vm6, %v2173_v5, %v2174_v12  ;;  %v1793_v53 = vshll.u32 %v1710_v26, 16  ;;  %v1857_v43 = vld [vmem:[#allocation2 + $0x88] sm:$0x1] }
 0x23f   : > { %2190 = vrot.lane.b32.xlu0 %v2172_v4, %s8137_s1  ;;  %1537 = vrot.lane.b32.xlu1 %v1512_v44, %s10570_s20  ;;  %1361 = vst [vmem:[#allocation2 + $0xb0] sm:$0xff] %v8915_v13  ;;  %v649_v4 = vsel %vm8552_vm4, 0, %v648_v61  ;;  %v698_v44 = vld [vmem:[#allocation2 + $0xc8] sm:$0x1] }
 0x240   : > { %650 = vst [vmem:[#allocation2 + $0xc0] sm:$0x1] %v649_v4  ;;  %v699_v36 = vsel %vm8548_vm3, 0, %v698_v44  ;;  %v1148_v41 = vpack.c.bf16 %v1089_v27, %v1088_v1  ;;  %v1795_v63 = vrot.slane %v1793_v53, 1  ;;  %v1896_v44 = vrot.slane %v1857_v43, 1 }
 0x241   : > { %700 = vst [vmem:[#allocation2 + $0xc8] sm:$0x1] %v699_v36  ;;  %v1994_v5 = vld [vmem:[#allocation2 + $0x88] sm:$0x1]  ;;  %v2084_v27 = vshll.u32 %v8836_v11, 16 }
 0x242   : > { %v1231_v0 = vshrl.u32 %v1148_v41, 16  ;;  %v2077_v22 = vshll.u32 %v1994_v5, 16  ;;  %v1796_v1 = vsel %vm1428_vm5, %v8907_v23, %v1795_v63  ;;  %v701_v53 = vld [vmem:[#allocation2 + $0xd8] sm:$0x1]  ;;  %v2649_v63 = vld [vmem:[#allocation2 + $0x88] sm:$0x1] }
 0x243   : > { %1627 = vrot.lane.b32.xlu0 %v1611_v18, %s8132_s9  ;;  %1958 = vrot.lane.b32.xlu1 %v8795_v40, %s8136_s14  ;;  %v1523_v18 = vrot.slane %v1521_v49, 1  ;;  %v1802_v49 = vrot.slane %v1800_v31, 1  ;;  %v651_v31 = vld [vmem:[#allocation2 + $0xd0] sm:$0x1]  ;;  %v702_v43 = vsel %vm8548_vm3, 0, %v701_v53 }
 0x244   : > { %v1233_v12 = vrot.slane %v1231_v0, 7  ;;  %703 = vst [vmem:[#allocation2 + $0xd8] sm:$0x1] %v702_v43 }
 0x245   : > { %v1524_v33 = vsel %vm1428_vm5, %v8907_v23, %v1523_v18  ;;  %v8949_v18 = vor.u32 %v1802_v49, %v1798_v47  ;;  %v988_v23 = vpop.f32.mrb[48].mxu0  ;;  %v2082_v47 = vshrl.u32 %v8836_v11, 16 }
 0x247   : > { %2101 = vrot.lane.b32.xlu0 %v2056_v39, %s10529_s11  ;;  %1629 = vrot.lane.b32.xlu1 %v1614_v16, %s8132_s9  ;;  %v1712_v39 = vld [vmem:[#allocation2 + $0x88] sm:$0x1]  ;;  %v1234_v16 = vshll.u32 %v1148_v41, 16  ;;  %v1365_v36 = vld [vmem:[#allocation2 + $0xc0] sm:$0xff]  ;;  %v1058_v41 = vadd.f32 %v8921_v62, %v988_v23 }
 0x248   : > { %v1805_v60 = vshll.u32 %v1712_v39, 16  ;;  %v1368_v61 = vld [vmem:[#allocation2 + $0xc8] sm:$0x1] }
 0x249   : > { %v1236_v15 = vor.u32 %v1234_v16, %v1233_v12  ;;  %v2139_v39 = vld [vmem:[#allocation2 + $0x88] sm:$0x1]  ;;  %v2079_v16 = vrot.slane %v2077_v22, 1 }
 0x24a   : > { %v1807_v20 = vrot.slane %v1805_v60, 1  ;;  %v2086_v60 = vrot.slane %v2084_v27, 1  ;;  %v2792_v27 = vld [vmem:[#allocation2 + $0x80] sm:$0xfe] }
 0x24b   : > { %1676 = vrot.lane.b32.xlu0 %v8795_v40, %s8133_s25  ;;  %2103 = vrot.lane.b32.xlu1 %v2068_v52, %s10529_s11  ;;  %v1856_v40 = vld [vmem:[#allocation2 + $0x80] sm:$0xfe]  ;;  %v1369_v52 = vsel %vm8552_vm4, %v1233_v12, %v1368_v61  ;;  %v8957_v28 = vsel %vm8644_vm12, %v1236_v15, %v1365_v36  ;;  %v2177_v36 = vrot.slane %v2139_v39, 1  ;;  %v2672_v15 = vshll.u32 %v2649_v63, 16  ;;  %v1374_v43 = vld [vmem:[#allocation2 + $0xd8] sm:$0x1] }
 0x24c   : > { %v1895_v4 = vrot.slane %v1856_v40, 1  ;;  %1370 = vst [vmem:[#allocation2 + $0xc8] sm:$0x1] %v1369_v52  ;;  %1367 = vst [vmem:[#allocation2 + $0xc0] sm:$0xff] %v8957_v28  ;;  %v8968_v40 = vpop.f32.mrb[49].mxu0  ;;  %v1808_v0 = vsel %vm1428_vm5, %v8949_v18, %v1807_v20  ;;  %v2080_v52 = vsel %vm1428_vm5, %v8949_v18, %v2079_v16  ;;  %v8981_v20 = vor.u32 %v2086_v60, %v2082_v47 }
 0x24d   : > { %v992_v49 = vpop.f32.mrb[50].mxu0  ;;  %v2674_v39 = vrot.slane %v2672_v15, 1  ;;  %v2795_v47 = vld [vmem:[#allocation2 + $0x98] sm:$0x1]  ;;  %v2794_v60 = vld [vmem:[#allocation2 + $0x90] sm:$0xfe] }
 0x24e   : > { %v1897_v6 = vsel %vm1590_vm6, %v1895_v4, %v1896_v44  ;;  %v1090_v4 = vmax.f32 %v1058_v41, 0.0  ;;  %v1059_v44 = vadd.f32 %v8921_v62, %v992_v49  ;;  %v2793_v41 = vld [vmem:[#allocation2 + $0x88] sm:$0x1]  ;;  %v3225_v63 = vld [vmem:[#allocation2 + $0x118] sm:$0x1] }
 0x24f   : > { %2192 = vrot.lane.b32.xlu0 %v2175_v32, %s8137_s1  ;;  %1539 = vrot.lane.b32.xlu1 %v1524_v33, %s10570_s20  ;;  %v1996_v32 = vld [vmem:[#allocation2 + $0x98] sm:$0x1]  ;;  %v652_v33 = vsel %vm8552_vm4, 0, %v651_v31 }
 0x250   : > { %653 = vst [vmem:[#allocation2 + $0xd0] sm:$0x1] %v652_v33  ;;  %v2089_v61 = vshll.u32 %v1996_v32, 16  ;;  %v1091_v5 = vmax.f32 %v1059_v44, 0.0 }
 0x252   : > { %v2091_v22 = vrot.slane %v2089_v61, 1 }
 0x253   : > { %1910 = vrot.lane.b32.xlu0 %v1894_v45, %s8134_s23  ;;  %1678 = vrot.lane.b32.xlu1 %v8818_v24, %s8133_s25  ;;  %v2138_v45 = vld [vmem:[#allocation2 + $0x80] sm:$0xfe] }
 0x254   : > { %v2176_v12 = vrot.slane %v2138_v45, 1 }
 0x255   : > { %v1665_v26 = vpop.permute.xlu0 %1664 }
 0x256   : > { %1689 = vst.msk [vmem:[#allocation3] sm:$0xff] %vm1688_vm13, %v1665_v26  ;;  %v2141_v26 = vld [vmem:[#allocation2 + $0x98] sm:$0x1]  ;;  %v2178_v53 = vsel %vm1590_vm6, %v2176_v12, %v2177_v36 }
 0x257   : > { %1821 = vrot.lane.b32.xlu0 %v1796_v1, %s10568_s24  ;;  %1912 = vrot.lane.b32.xlu1 %v1897_v6, %s8134_s23  ;;  %v1149_v1 = vpack.c.bf16 %v1091_v5, %v1090_v4  ;;  %v2140_v6 = vld [vmem:[#allocation2 + $0x90] sm:$0xfe]  ;;  %v2180_v45 = vrot.slane %v2141_v26, 1  ;;  %v8991_v4 = vld [vmem:[#allocation2] sm:$0xff] }
 0x258   : > { %v2179_v16 = vrot.slane %v2140_v6, 1  ;;  %v1371_v61 = vld [vmem:[#allocation2 + $0xd0] sm:$0xff]  ;;  %v3313_v44 = vshll.u32 %v8991_v4, 16  ;;  %v2828_v6 = vrot.slane %v2795_v47, 1  ;;  %v654_v26 = vld [vmem:[#allocation2 + $0xe0] sm:$0x1] }
 0x259   : > { %v1238_v31 = vshrl.u32 %v1149_v1, 16  ;;  %v1241_v32 = vshll.u32 %v1149_v1, 16  ;;  %v2825_v1 = vrot.slane %v2793_v41, 1  ;;  %v3311_v41 = vshrl.u32 %v8991_v4, 16 }
 0x25b   : > { %1960 = vrot.lane.b32.xlu0 %v8818_v24, %s8136_s14  ;;  %1823 = vrot.lane.b32.xlu1 %v1808_v0, %s10568_s24  ;;  %v2092_v0 = vsel %vm1428_vm5, %v8981_v20, %v2091_v22  ;;  %v1240_v49 = vrot.slane %v1238_v31, 7  ;;  %v2824_v22 = vrot.slane %v2792_v27, 1  ;;  %v2181_v31 = vsel %vm1590_vm6, %v2179_v16, %v2180_v45 }
 0x25c   : > { %v3315_v16 = vrot.slane %v3313_v44, 1  ;;  %v3318_v45 = vshll.u32 %v3225_v63, 16  ;;  %v2651_v63 = vld [vmem:[#allocation2 + $0x98] sm:$0x1] }
 0x25d   : > { %v1243_v5 = vor.u32 %v1241_v32, %v1240_v49  ;;  %v1375_v12 = vsel %vm8552_vm4, %v1240_v49, %v1374_v43  ;;  %v9004_v43 = vpop.f32.mrb[51].mxu0 }
 0x25e   : > { %1376 = vst [vmem:[#allocation2 + $0xd8] sm:$0x1] %v1375_v12  ;;  %v998_v27 = vpop.f32.mrb[52].mxu0 }
 0x25f   : > { %2105 = vrot.lane.b32.xlu0 %v2080_v52, %s10529_s11  ;;  %1962 = vrot.lane.b32.xlu1 %v8836_v11, %s8136_s14  ;;  %v2675_v52 = vsel %vm1428_vm5, %v8949_v18, %v2674_v39  ;;  %v9002_v32 = vsel %vm8644_vm12, %v1243_v5, %v1371_v61  ;;  %v704_v18 = vld [vmem:[#allocation2 + $0xe8] sm:$0x1]  ;;  %v9017_v47 = vpop.f32.mrb[53].mxu0  ;;  %v3074_v61 = vld [vmem:[#allocation2 + $0x98] sm:$0x1]  ;;  %v2826_v5 = vsel %vm1590_vm6, %v2824_v22, %v2825_v1  ;;  %v3320_v1 = vrot.slane %v3318_v45, 1 }
 0x260   : > { %1373 = vst [vmem:[#allocation2 + $0xd0] sm:$0xff] %v9002_v32  ;;  %v705_v39 = vsel %vm8548_vm3, 0, %v704_v18  ;;  %v3316_v22 = vor.u32 %v3315_v16, %v3311_v41 }
 0x261   : > { %v1618_v23 = vpop.permute.xlu1 %1617  ;;  %v1899_v33 = vpop.permute.xlu0 %1898  ;;  %706 = vst [vmem:[#allocation2 + $0xe8] sm:$0x1] %v705_v39 }
 0x262   : > { %v3321_v45 = vsel %vm1428_vm5, %v3316_v22, %v3320_v1  ;;  %v660_v22 = vld [vmem:[#allocation2 + $0x100] sm:$0x1]  ;;  %v2932_v1 = vld [vmem:[#allocation2 + $0xa8] sm:$0x1] }
 0x263   : > { %2194 = vrot.lane.b32.xlu0 %v2178_v53, %s8137_s1  ;;  %2107 = vrot.lane.b32.xlu1 %v2092_v0, %s10529_s11  ;;  %v2827_v53 = vrot.slane %v2794_v60, 1  ;;  %v655_v0 = vsel %vm8552_vm4, 0, %v654_v26 }
 0x264   : > { %656 = vst [vmem:[#allocation2 + $0xe0] sm:$0x1] %v655_v0  ;;  %v657_v0 = vld [vmem:[#allocation2 + $0xf0] sm:$0x1] }
 0x265   : > { %v1528_v36 = vpop.permute.xlu0 %1527  ;;  %v1667_v15 = vpop.permute.xlu1 %1666  ;;  %v2829_v12 = vsel %vm1590_vm6, %v2827_v53, %v2828_v6  ;;  %v658_v6 = vsel %vm8552_vm4, 0, %v657_v0 }
 0x266   : > { %1551 = vst.msk [vmem:[#allocation3 + $0x8] sm:$0xff] %vm1549_vm9, %v1528_v36  ;;  %v3073_v36 = vld [vmem:[#allocation2 + $0x90] sm:$0xfe]  ;;  %659 = vst [vmem:[#allocation2 + $0xf0] sm:$0x1] %v658_v6 }
 0x267   : > { %1641 = vst.msk [vmem:[#allocation3 + $0x8] sm:$0xff] %vm1639_vm10, %v1618_v23  ;;  %2760 = vrot.lane.b32.xlu0 %v2675_v52, %s10570_s20  ;;  %2196 = vrot.lane.b32.xlu1 %v2181_v31, %s8137_s1  ;;  %v1060_v23 = vadd.f32 %v8921_v62, %v998_v27  ;;  %v1002_v52 = vpop.f32.mrb[54].mxu0  ;;  %v3106_v27 = vrot.slane %v3074_v61, 1 }
 0x268   : > { %1690 = vst.msk [vmem:[#allocation3 + $0x8] sm:$0xff] %vm1688_vm13, %v1667_v15  ;;  %v2930_v15 = vld [vmem:[#allocation2 + $0x98] sm:$0x1]  ;;  %v1061_v26 = vadd.f32 %v8921_v62, %v1002_v52  ;;  %v9026_v31 = vpop.f32.mrb[55].mxu0  ;;  %v1380_v0 = vld [vmem:[#allocation2 + $0xe8] sm:$0x1] }
 0x269   : > { %v1810_v49 = vpop.permute.xlu0 %1809  ;;  %v1901_v60 = vpop.permute.xlu1 %1900  ;;  %v1092_v44 = vmax.f32 %v1060_v23, 0.0  ;;  %v2953_v23 = vshll.u32 %v2930_v15, 16 }
 0x26a   : > { %1834 = vst.msk [vmem:[#allocation3] sm:$0xff] %vm1833_vm14, %v1810_v49  ;;  %v1093_v39 = vmax.f32 %v1061_v26, 0.0  ;;  %v707_v49 = vld [vmem:[#allocation2 + $0xf8] sm:$0x1]  ;;  %v3076_v26 = vld [vmem:[#allocation2 + $0xa8] sm:$0x1] }
 0x26b   : > { %2848 = vrot.lane.b32.xlu0 %v2826_v5, %s8132_s9  ;;  %2850 = vrot.lane.b32.xlu1 %v2829_v12, %s8132_s9  ;;  %1923 = vst.msk [vmem:[#allocation3] sm:$0xff] %vm1922_vm15, %v1899_v33  ;;  %v3105_v33 = vrot.slane %v3073_v36, 1  ;;  %v2684_v5 = vshll.u32 %v2651_v63, 16  ;;  %v708_v41 = vsel %vm8548_vm3, 0, %v707_v49  ;;  %v2955_v63 = vrot.slane %v2953_v23, 1  ;;  %v1377_v6 = vld [vmem:[#allocation2 + $0xe0] sm:$0xff] }
 0x26c   : > { %v1150_v16 = vpack.c.bf16 %v1093_v39, %v1092_v44  ;;  %709 = vst [vmem:[#allocation2 + $0xf8] sm:$0x1] %v708_v41  ;;  %v3354_v23 = vld [vmem:[#allocation2 + $0xa0] sm:$0xfe] }
 0x26d   : > { %v1949_v53 = vpop.permute.xlu0 %1948  ;;  %v1812_v18 = vpop.permute.xlu1 %1811  ;;  %v3107_v52 = vsel %vm1590_vm6, %v3105_v33, %v3106_v27 }
 0x26e   : > { %1973 = vst.msk [vmem:[#allocation3] sm:$0xff] %vm1972_vm0, %v1949_v53  ;;  %v1245_v36 = vshrl.u32 %v1150_v16, 16  ;;  %v1248_v15 = vshll.u32 %v1150_v16, 16  ;;  %v661_v53 = vsel %vm8552_vm4, 0, %v660_v22  ;;  %v2956_v16 = vsel %vm1428_vm5, %v8981_v20, %v2955_v63 }
 0x26f   : > { %1835 = vst.msk [vmem:[#allocation3 + $0x8] sm:$0xff] %vm1833_vm14, %v1812_v18  ;;  %2897 = vrot.lane.b32.xlu0 %v8836_v11, %s8133_s25  ;;  %3192 = vrot.lane.b32.xlu1 %v8991_v4, %s8136_s14  ;;  %v3075_v11 = vld [vmem:[#allocation2 + $0xa0] sm:$0xfe]  ;;  %v2960_v4 = vshll.u32 %v8892_v51, 16  ;;  %v710_v18 = vld [vmem:[#allocation2 + $0x108] sm:$0x1] }
 0x270   : > { %1924 = vst.msk [vmem:[#allocation3 + $0x8] sm:$0xff] %vm1922_vm15, %v1901_v60  ;;  %v2686_v60 = vrot.slane %v2684_v5, 1  ;;  %v1247_v44 = vrot.slane %v1245_v36, 7  ;;  %v3355_v5 = vld [vmem:[#allocation2 + $0xa8] sm:$0x1]  ;;  %v711_v41 = vsel %vm8548_vm3, 0, %v710_v18 }
 0x271   : > { %v2183_v61 = vpop.permute.xlu0 %2182  ;;  %v1530_v12 = vpop.permute.xlu1 %1529  ;;  %662 = vst [vmem:[#allocation2 + $0x100] sm:$0x1] %v661_v53  ;;  %712 = vst [vmem:[#allocation2 + $0x108] sm:$0x1] %v711_v41  ;;  %v3108_v48 = vrot.slane %v3075_v11, 1  ;;  %v3387_v22 = vrot.slane %v3355_v5, 1 }
 0x272   : > { %1552 = vst.msk [vmem:[#allocation3 + $0x10] sm:$0xff] %vm1549_vm9, %v1530_v12  ;;  %v1250_v49 = vor.u32 %v1248_v15, %v1247_v44  ;;  %v1381_v33 = vsel %vm8552_vm4, %v1247_v44, %v1380_v0  ;;  %v3109_v12 = vrot.slane %v3076_v26, 1  ;;  %v1008_v36 = vpop.f32.mrb[56].mxu0  ;;  %v2958_v15 = vshrl.u32 %v8892_v51, 16  ;;  %v2653_v11 = vld [vmem:[#allocation2 + $0xa8] sm:$0x1] }
 0x273   : > { %3129 = vrot.lane.b32.xlu0 %v3107_v52, %s8134_s23  ;;  %3336 = vrot.lane.b32.xlu1 %v3321_v45, %s10529_s11  ;;  %v2687_v45 = vsel %vm1428_vm5, %v8981_v20, %v2686_v60  ;;  %1382 = vst [vmem:[#allocation2 + $0xe8] sm:$0x1] %v1381_v33  ;;  %v1062_v63 = vadd.f32 %v8921_v62, %v1008_v36  ;;  %v9065_v0 = vpop.f32.mrb[57].mxu0  ;;  %v2962_v20 = vrot.slane %v2960_v4, 1  ;;  %v2965_v60 = vshll.u32 %v2932_v1, 16 }
 0x274   : > { %v9062_v52 = vsel %vm8644_vm12, %v1250_v49, %v1377_v6  ;;  %10607 = vst [vmem:[#allocation23_spill] sm:$0xff] %v9065_v0  ;;  %v1012_v26 = vpop.f32.mrb[58].mxu0  ;;  %v3386_v44 = vrot.slane %v3354_v23, 1  ;;  %v2796_v33 = vld [vmem:[#allocation2 + $0xa0] sm:$0xfe]  ;;  %v3110_v4 = vsel %vm1590_vm6, %v3108_v48, %v3109_v12 }
 0x275   : > { %v1620_v27 = vpop.permute.xlu0 %1619  ;;  %v1951_v39 = vpop.permute.xlu1 %1950  ;;  %1379 = vst [vmem:[#allocation2 + $0xe0] sm:$0xff] %v9062_v52  ;;  %v2797_v6 = vld [vmem:[#allocation2 + $0xa8] sm:$0x1]  ;;  %v2963_v23 = vor.u32 %v2962_v20, %v2958_v15  ;;  %v2967_v5 = vrot.slane %v2965_v60, 1  ;;  %v1386_v20 = vld [vmem:[#allocation2 + $0xf8] sm:$0x1] }
 0x276   : > { %1642 = vst.msk [vmem:[#allocation3 + $0x10] sm:$0xff] %vm1639_vm10, %v1620_v27  ;;  %v1094_v27 = vmax.f32 %v1062_v63, 0.0  ;;  %v9070_v49 = vpop.f32.mrb[59].mxu0  ;;  %v3211_v41 = vld [vmem:[#allocation2 + $0xa8] sm:$0x1] }
 0x277   : > { %1974 = vst.msk [vmem:[#allocation3 + $0x8] sm:$0xff] %vm1972_vm0, %v1951_v39  ;;  %3041 = vrot.lane.b32.xlu0 %v2956_v16, %s10568_s24  ;;  %2762 = vrot.lane.b32.xlu1 %v2687_v45, %s10570_s20  ;;  %v1063_v39 = vadd.f32 %v8921_v62, %v1012_v26  ;;  %10608 = vst [vmem:[#allocation24_spill] sm:$0xff] %v9070_v49  ;;  %v2696_v16 = vshll.u32 %v2653_v11, 16  ;;  %v3388_v45 = vsel %vm1590_vm6, %v3386_v44, %v3387_v22 }
 0x278   : > { %v2831_v49 = vrot.slane %v2797_v6, 1  ;;  %v7771_v6 = vld [vmem:[#allocation11] sm:$0xff]  }
 0x279   : > { %v2094_v53 = vpop.permute.xlu0 %2093  ;;  %v1622_v18 = vpop.permute.xlu1 %1621  ;;  %v1095_v1 = vmax.f32 %v1063_v39, 0.0  ;;  %v2698_v15 = vrot.slane %v2696_v16, 1  ;;  %v3241_v16 = vshll.u32 %v8915_v13, 16  ;;  %7346 = vmatprep.subr.bf16.mxu1 %v7771_v6 }
 0x27a   : > { %2118 = vst.msk [vmem:[#allocation3] sm:$0xff] %vm2117_vm1, %v2094_v53  ;;  %v2830_v53 = vrot.slane %v2796_v33, 1  ;;  %v1383_v33 = vld [vmem:[#allocation2 + $0xf0] sm:$0xff] }
 0x27b   : > { %2207 = vst.msk [vmem:[#allocation3] sm:$0xff] %vm2206_vm2, %v2183_v61  ;;  %2899 = vrot.lane.b32.xlu1 %v8892_v51, %s8133_s25  ;;  %3178 = vrot.lane.b32.xlu0 %v8892_v51, %s8136_s14  ;;  %v1151_v26 = vpack.c.bf16 %v1095_v1, %v1094_v27  ;;  %v3234_v61 = vshll.u32 %v3211_v41, 16  ;;  %v2968_v51 = vsel %vm1428_vm5, %v2963_v23, %v2967_v5  ;;  %v2798_v1 = vld [vmem:[#allocation2 + $0xb0] sm:$0xfe]  ;;  %v2799_v5 = vld [vmem:[#allocation2 + $0xb8] sm:$0x1] }
 0x27c   : > { %v2832_v11 = vsel %vm1590_vm6, %v2830_v53, %v2831_v49  ;;  %v3357_v53 = vld [vmem:[#allocation2 + $0xb8] sm:$0x1] }
 0x27d   : > { %v1669_v36 = vpop.permute.xlu0 %1668  ;;  %v2096_v63 = vpop.permute.xlu1 %2095  ;;  %v1252_v12 = vshrl.u32 %v1151_v26, 16  ;;  %v1255_v48 = vshll.u32 %v1151_v26, 16  ;;  %v3236_v27 = vrot.slane %v3234_v61, 1  ;;  %v3356_v26 = vld [vmem:[#allocation2 + $0xb0] sm:$0xfe] }
 0x27e   : > { %1691 = vst.msk [vmem:[#allocation3 + $0x10] sm:$0xff] %vm1688_vm13, %v1669_v36  ;;  %v3213_v36 = vld [vmem:[#allocation2 + $0xb8] sm:$0x1]  ;;  %v1018_v61 = vpop.f32.mrb[60].mxu0 }
 0x27f   : > { %2119 = vst.msk [vmem:[#allocation3 + $0x8] sm:$0xff] %vm2117_vm1, %v2096_v63  ;;  %3131 = vrot.lane.b32.xlu1 %v3110_v4, %s8134_s23  ;;  %3410 = vrot.lane.b32.xlu0 %v3388_v45, %s8137_s1  ;;  %v1254_v22 = vrot.slane %v1252_v12, 7  ;;  %v2699_v4 = vsel %vm1428_vm5, %v2963_v23, %v2698_v15  ;;  %v3237_v63 = vsel %vm1428_vm5, %v2963_v23, %v3236_v27  ;;  %v2833_v12 = vrot.slane %v2798_v1, 1  ;;  %v7772_v27 = vld [vmem:[#allocation11 + $0x8] sm:$0xff]  }
 0x280   : > { %v1064_v15 = vadd.f32 %v8921_v62, %v1018_v61 }
 0x281   : > { %v2185_v60 = vpop.permute.xlu0 %2184  ;;  %v1532_v44 = vpop.permute.xlu1 %1531  ;;  %v1257_v41 = vor.u32 %v1255_v48, %v1254_v22  ;;  %v1387_v49 = vsel %vm8552_vm4, %v1254_v22, %v1386_v20  ;;  %v2834_v48 = vrot.slane %v2799_v5, 1  ;;  %v3389_v22 = vrot.slane %v3356_v26, 1 }
 0x282   : > { %2208 = vst.msk [vmem:[#allocation3 + $0x8] sm:$0xff] %vm2206_vm2, %v2185_v60  ;;  %v2215_v39 = vld [vmem:[#allocation3] sm:$0xff]  ;;  %1388 = vst [vmem:[#allocation2 + $0xf8] sm:$0x1] %v1387_v49  ;;  %v9106_v20 = vpop.f32.mrb[61].mxu0  ;;  %v3243_v60 = vrot.slane %v3241_v16, 1 }
 0x283   : > { %1553 = vst.msk [vmem:[#allocation3 + $0x18] sm:$0xff] %vm1549_vm9, %v1532_v44  ;;  %7330 = vmatprep.mubr.bf16.mxu1 %v2215_v39  ;;  %3043 = vrot.lane.b32.xlu1 %v2968_v51, %s10568_s24  ;;  %v3239_v51 = vshrl.u32 %v8915_v13, 16  ;;  %10609 = vst [vmem:[#allocation25_spill] sm:$0xff] %v9106_v20  ;;  %v3246_v44 = vshll.u32 %v3213_v36, 16  ;;  %v1022_v23 = vpop.f32.mrb[62].mxu0  ;;  %v1096_v1 = vmax.f32 %v1064_v15, 0.0 }
 0x284   : > { %1643 = vst.msk [vmem:[#allocation3 + $0x18] sm:$0xff] %vm1639_vm10, %v1622_v18  ;;  %2852 = vrot.lane.b32.xlu0 %v2832_v11, %s8132_s9  ;;  %v3390_v11 = vrot.slane %v3357_v53, 1  ;;  %v2655_v49 = vld [vmem:[#allocation2 + $0xb8] sm:$0x1]  ;;  %v1065_v5 = vadd.f32 %v8921_v62, %v1022_v23  ;;  %v3077_v16 = vld [vmem:[#allocation2 + $0xb0] sm:$0xfe] }
 0x285   : > { %2640 = vst.msk [vmem:[#allocation3] sm:$0xff] %vm1403_vm8, %v8818_v24  ;;  %v1903_v18 = vpop.permute.xlu0 %1902  ;;  %v1671_v45 = vpop.permute.xlu1 %1670  ;;  %v9098_v24 = vsel %vm8644_vm12, %v1257_v41, %v1383_v33  ;;  %v2934_v36 = vld [vmem:[#allocation2 + $0xb8] sm:$0x1]  ;;  %v3244_v53 = vor.u32 %v3243_v60, %v3239_v51  ;;  %v3248_v61 = vrot.slane %v3246_v44, 1  ;;  %v2708_v62 = vshll.u32 %v2655_v49, 16  ;;  %v7773_v23 = vld [vmem:[#allocation11 + $0x10] sm:$0xff]  }
 0x286   : > { %1692 = vst.msk [vmem:[#allocation3 + $0x18] sm:$0xff] %vm1688_vm13, %v1671_v45  ;;  %1385 = vst [vmem:[#allocation2 + $0xf0] sm:$0xff] %v9098_v24  ;;  %v3078_v45 = vld [vmem:[#allocation2 + $0xb8] sm:$0x1]  ;;  %v1097_v26 = vmax.f32 %v1065_v5, 0.0  ;;  %v3391_v15 = vsel %vm1590_vm6, %v3389_v22, %v3390_v11  ;;  %v2977_v0 = vshll.u32 %v2934_v36, 16 }
 0x287   : > { %2764 = vrot.lane.b32.xlu1 %v2699_v4, %s10570_s20  ;;  %v2633_v4 = vld [vmem:[#allocation2 + $0x90] sm:$0xff]  ;;  %v3112_v20 = vrot.slane %v3078_v45, 1  ;;  %v1392_v51 = vld [vmem:[#allocation2 + $0x108] sm:$0x1]  ;;  %v7774_v60 = vld [vmem:[#allocation11 + $0x18] sm:$0xff]   ;;  %v2984_v36 = vshll.u32 %v8957_v28, 16 }
 0x288   : > { %3322 = vrot.lane.b32.xlu0 %v3237_v63, %s10529_s11  ;;  %v2835_v63 = vsel %vm1590_vm6, %v2833_v12, %v2834_v48  ;;  %v3249_v12 = vsel %vm1428_vm5, %v3244_v53, %v3248_v61  ;;  %v2710_v48 = vrot.slane %v2708_v62, 1  ;;  %v3079_v45 = vld [vmem:[#allocation2 + $0xc0] sm:$0xfe]  ;;  %v2936_v61 = vld [vmem:[#allocation2 + $0xc8] sm:$0x1] }
 0x289   : > { %v1814_v39 = vpop.permute.xlu0 %1813  ;;  %v1905_v33 = vpop.permute.xlu1 %1904  ;;  %v2216_v41 = vld [vmem:[#allocation3 + $0x8] sm:$0xff] }
 0x28a   : > { %1836 = vst.msk [vmem:[#allocation3 + $0x10] sm:$0xff] %vm1833_vm14, %v1814_v39  ;;  %7331 = vmatmul.mubr.bf16.vlgmr.msra.gmra.mrb[0].mxu1 %v2216_v41 }
 0x28b   : > { %2641 = vst.msk [vmem:[#allocation3 + $0x8] sm:$0xff] %vm1403_vm8, %v2633_v4  ;;  %3180 = vrot.lane.b32.xlu1 %v8915_v13, %s8136_s14  ;;  %7347 = vmatpush3.bf16.msra.mxu1 %v7771_v6  ;;  %v3111_v4 = vrot.slane %v3077_v16, 1  ;;  %v2711_v16 = vsel %vm1428_vm5, %v3244_v53, %v2710_v48 }
 0x28c   : > { %1925 = vst.msk [vmem:[#allocation3 + $0x10] sm:$0xff] %vm1922_vm15, %v1903_v18  ;;  %2901 = vrot.lane.b32.xlu0 %v8915_v13, %s8133_s25  ;;  %7348 = vmatprep.subr.bf16.mxu1 %v7772_v27  ;;  %v1152_v18 = vpack.c.bf16 %v1097_v26, %v1096_v1  ;;  %v2979_v1 = vrot.slane %v2977_v0, 1  ;;  %v7775_v0 = vld [vmem:[#allocation11 + $0x20] sm:$0xff]   ;;  %v3080_v26 = vld [vmem:[#allocation2 + $0xc8] sm:$0x1] }
 0x28d   : > { %v1953_v39 = vpop.permute.xlu0 %1952  ;;  %v1816_v41 = vpop.permute.xlu1 %1815  ;;  %v3113_v49 = vsel %vm1590_vm6, %v3111_v4, %v3112_v20  ;;  %v2982_v4 = vshrl.u32 %v8957_v28, 16 }
 0x28e   : > { %1975 = vst.msk [vmem:[#allocation3 + $0x10] sm:$0xff] %vm1972_vm0, %v1953_v39  ;;  %v1259_v6 = vshrl.u32 %v1152_v18, 16  ;;  %v1262_v13 = vshll.u32 %v1152_v18, 16  ;;  %v3359_v39 = vld [vmem:[#allocation2 + $0xc8] sm:$0x1]  ;;  %v3115_v18 = vrot.slane %v3080_v26, 1 }
 0x28f   : > { %1837 = vst.msk [vmem:[#allocation3 + $0x18] sm:$0xff] %vm1833_vm14, %v1816_v41  ;;  %2854 = vrot.lane.b32.xlu1 %v2835_v63, %s8132_s9  ;;  %7349 = vmatpush3.bf16.msra.mxu1 %v7772_v27  ;;  %v3114_v41 = vrot.slane %v3079_v45, 1 }
 0x290   : > { %1926 = vst.msk [vmem:[#allocation3 + $0x18] sm:$0xff] %vm1922_vm15, %v1905_v33  ;;  %3412 = vrot.lane.b32.xlu0 %v3391_v15, %s8137_s1  ;;  %7350 = vmatprep.subr.bf16.mxu1 %v7773_v23  ;;  %v1261_v11 = vrot.slane %v1259_v6, 7  ;;  %v1389_v33 = vld [vmem:[#allocation2 + $0x100] sm:$0xff]  ;;  %v2980_v15 = vsel %vm1428_vm5, %v3244_v53, %v2979_v1  ;;  %v2986_v6 = vrot.slane %v2984_v36, 1  ;;  %v7776_v53 = vld [vmem:[#allocation11 + $0x28] sm:$0xff]  }
 0x291   : > { %v2187_v44 = vpop.permute.xlu0 %2186  ;;  %v1534_v22 = vpop.permute.xlu1 %1533  ;;  %v2801_v1 = vld [vmem:[#allocation2 + $0xc8] sm:$0x1] }
 0x292   : > { %1554 = vst.msk [vmem:[#allocation3 + $0x20] sm:$0xff] %vm1549_vm9, %v1534_v22  ;;  %v1264_v27 = vor.u32 %v1262_v13, %v1261_v11  ;;  %v1393_v5 = vsel %vm8552_vm4, %v1261_v11, %v1392_v51  ;;  %v2989_v13 = vshll.u32 %v2936_v61, 16  ;;  %v2657_v51 = vld [vmem:[#allocation2 + $0xc8] sm:$0x1]  ;;  %v3393_v11 = vrot.slane %v3359_v39, 1 }
 0x293   : > { %3324 = vrot.lane.b32.xlu1 %v3249_v12, %s10529_s11  ;;  %7351 = vmatpush3.bf16.msra.mxu1 %v7773_v23  ;;  %1394 = vst [vmem:[#allocation2 + $0x108] sm:$0x1] %v1393_v5  ;;  %v3358_v23 = vld [vmem:[#allocation2 + $0xc0] sm:$0xfe]  ;;  %v2837_v26 = vrot.slane %v2801_v1, 1  ;;  %v3263_v1 = vshrl.u32 %v9002_v32, 16 }
 0x294   : > { %3133 = vrot.lane.b32.xlu0 %v3113_v49, %s8134_s23  ;;  %7352 = vmatprep.subr.bf16.mxu1 %v7774_v60  ;;  %v9135_v62 = vsel %vm8644_vm12, %v1264_v27, %v1389_v33  ;;  %v3392_v22 = vrot.slane %v3358_v23, 1  ;;  %v2800_v49 = vld [vmem:[#allocation2 + $0xc0] sm:$0xfe]  ;;  %v3215_v33 = vld [vmem:[#allocation2 + $0xc8] sm:$0x1]  ;;  %v2987_v27 = vor.u32 %v2986_v6, %v2982_v4  ;;  %v2991_v5 = vrot.slane %v2989_v13, 1 }
 0x295   : > { %v1624_v20 = vpop.permute.xlu0 %1623  ;;  %v1955_v63 = vpop.permute.xlu1 %1954  ;;  %1391 = vst [vmem:[#allocation2 + $0x100] sm:$0xff] %v9135_v62  ;;  %v3265_v6 = vshll.u32 %v9002_v32, 16 }
 0x296   : > { %1644 = vst.msk [vmem:[#allocation3 + $0x20] sm:$0xff] %vm1639_vm10, %v1624_v20  ;;  %v3394_v20 = vsel %vm1590_vm6, %v3392_v22, %v3393_v11  ;;  %v3217_v22 = vld [vmem:[#allocation2 + $0xd8] sm:$0x1] }
 0x297   : > { %1976 = vst.msk [vmem:[#allocation3 + $0x18] sm:$0xff] %vm1972_vm0, %v1955_v63  ;;  %2766 = vrot.lane.b32.xlu1 %v2711_v16, %s10570_s20  ;;  %7353 = vmatpush3.bf16.msra.mxu1 %v7774_v60  ;;  %v3116_v60 = vsel %vm1590_vm6, %v3114_v41, %v3115_v18  ;;  %v2720_v16 = vshll.u32 %v2657_v51, 16  ;;  %v2836_v63 = vrot.slane %v2800_v49, 1  ;;  %v2803_v51 = vld [vmem:[#allocation2 + $0xd8] sm:$0x1] }
 0x298   : > { %3045 = vrot.lane.b32.xlu0 %v2980_v15, %s10568_s24  ;;  %7354 = vmatprep.subr.bf16.mxu1 %v7775_v0  ;;  %v3361_v49 = vld [vmem:[#allocation2 + $0xd8] sm:$0x1] }
 0x299   : > { %v2098_v12 = vpop.permute.xlu0 %2097  ;;  %v1626_v48 = vpop.permute.xlu1 %1625  ;;  %v2722_v61 = vrot.slane %v2720_v16, 1  ;;  %v2838_v39 = vsel %vm1590_vm6, %v2836_v63, %v2837_v26  ;;  %v3267_v16 = vrot.slane %v3265_v6, 1  ;;  %v2659_v26 = vld [vmem:[#allocation2 + $0xd8] sm:$0x1] }
 0x29a   : > { %2120 = vst.msk [vmem:[#allocation3 + $0x10] sm:$0xff] %vm2117_vm1, %v2098_v12  ;;  %v2802_v12 = vld [vmem:[#allocation2 + $0xd0] sm:$0xfe] }
 0x29b   : > { %2209 = vst.msk [vmem:[#allocation3 + $0x10] sm:$0xff] %vm2206_vm2, %v2187_v44  ;;  %2903 = vrot.lane.b32.xlu1 %v8957_v28, %s8133_s25  ;;  %7355 = vmatpush3.bf16.msra.mxu1 %v7775_v0  ;;  %v3258_v44 = vshll.u32 %v3215_v33, 16  ;;  %v2992_v0 = vsel %vm1428_vm5, %v2987_v27, %v2991_v5  ;;  %v2723_v4 = vsel %vm1428_vm5, %v2987_v27, %v2722_v61  ;;  %v2635_v33 = vld [vmem:[#allocation2 + $0xb0] sm:$0xff]  ;;  %v2840_v5 = vrot.slane %v2803_v51, 1  ;;  %v3082_v61 = vld [vmem:[#allocation2 + $0xd8] sm:$0x1] }
 0x29c   : > { %3182 = vrot.lane.b32.xlu0 %v8957_v28, %s8136_s14  ;;  %7356 = vmatprep.subr.bf16.mxu1 %v7776_v53  ;;  %v2634_v28 = vld [vmem:[#allocation2 + $0xa0] sm:$0xff] }
 0x29d   : > { %v1673_v45 = vpop.permute.xlu0 %1672  ;;  %v2100_v36 = vpop.permute.xlu1 %2099  ;;  %v3260_v41 = vrot.slane %v3258_v44, 1  ;;  %v3396_v44 = vrot.slane %v3361_v49, 1 }
 0x29e   : > { %1693 = vst.msk [vmem:[#allocation3 + $0x20] sm:$0xff] %vm1688_vm13, %v1673_v45  ;;  %v3270_v45 = vshll.u32 %v3217_v22, 16 }
 0x29f   : > { %2121 = vst.msk [vmem:[#allocation3 + $0x18] sm:$0xff] %vm2117_vm1, %v2100_v36  ;;  %3135 = vrot.lane.b32.xlu1 %v3116_v60, %s8134_s23  ;;  %7357 = vmatpush3.bf16.msra.mxu1 %v7776_v53  ;;  %v3261_v11 = vsel %vm1428_vm5, %v2987_v27, %v3260_v41  ;;  %v2839_v60 = vrot.slane %v2802_v12, 1  ;;  %v2732_v41 = vshll.u32 %v2659_v26, 16  ;;  %v3118_v12 = vrot.slane %v3082_v61, 1  ;;  %v3362_v26 = vld [vmem:[#allocation2 + $0xe0] sm:$0xfe] }
 0x2a0   : > { %3414 = vrot.lane.b32.xlu0 %v3394_v20, %s8137_s1 }
 0x2a1   : > { %v2189_v15 = vpop.permute.xlu0 %2188  ;;  %v1536_v23 = vpop.permute.xlu1 %1535  ;;  %v2734_v22 = vrot.slane %v2732_v41, 1 }
 0x2a2   : > { %2210 = vst.msk [vmem:[#allocation3 + $0x18] sm:$0xff] %vm2206_vm2, %v2189_v15  ;;  %v2217_v18 = vld [vmem:[#allocation3 + $0x10] sm:$0xff]  ;;  %v2841_v15 = vsel %vm1590_vm6, %v2839_v60, %v2840_v5  ;;  %v3008_v60 = vshll.u32 %v9062_v52, 16 }
 0x2a3   : > { %1555 = vst.msk [vmem:[#allocation3 + $0x28] sm:$0xff] %vm1549_vm9, %v1536_v23  ;;  %7334 = vmatprep.mubr.bf16.mxu1 %v2217_v18  ;;  %3047 = vrot.lane.b32.xlu1 %v2992_v0, %s10568_s24  ;;  %v3081_v0 = vld [vmem:[#allocation2 + $0xd0] sm:$0xfe]  ;;  %v3268_v23 = vor.u32 %v3267_v16, %v3263_v1 }
 0x2a4   : > { %1645 = vst.msk [vmem:[#allocation3 + $0x28] sm:$0xff] %vm1639_vm10, %v1626_v48  ;;  %2856 = vrot.lane.b32.xlu0 %v2838_v39, %s8132_s9  ;;  %v3360_v48 = vld [vmem:[#allocation2 + $0xd0] sm:$0xfe]  ;;  %v3272_v39 = vrot.slane %v3270_v45, 1  ;;  %v3083_v45 = vld [vmem:[#allocation2 + $0xe0] sm:$0xfe] }
 0x2a5   : > { %2642 = vst.msk [vmem:[#allocation3 + $0x10] sm:$0xff] %vm1403_vm8, %v2634_v28  ;;  %v1907_v13 = vpop.permute.xlu0 %1906  ;;  %v1675_v53 = vpop.permute.xlu1 %1674  ;;  %v3395_v27 = vrot.slane %v3360_v48, 1  ;;  %v2938_v28 = vld [vmem:[#allocation2 + $0xd8] sm:$0x1] }
 0x2a6   : > { %1694 = vst.msk [vmem:[#allocation3 + $0x28] sm:$0xff] %vm1688_vm13, %v1675_v53  ;;  %v3117_v53 = vrot.slane %v3081_v0, 1  ;;  %v3001_v51 = vshll.u32 %v2938_v28, 16  ;;  %v3120_v0 = vrot.slane %v3083_v45, 1  ;;  %v3010_v28 = vrot.slane %v3008_v60, 1 }
 0x2a7   : > { %2768 = vrot.lane.b32.xlu1 %v2723_v4, %s10570_s20  ;;  %v3397_v6 = vsel %vm1590_vm6, %v3395_v27, %v3396_v44  ;;  %v3363_v27 = vld [vmem:[#allocation2 + $0xe8] sm:$0x1]  ;;  %v3006_v44 = vshrl.u32 %v9062_v52, 16 }
 0x2a8   : > { %3326 = vrot.lane.b32.xlu0 %v3261_v11, %s10529_s11  ;;  %v3119_v49 = vsel %vm1590_vm6, %v3117_v53, %v3118_v12  ;;  %v3003_v1 = vrot.slane %v3001_v51, 1  ;;  %v2805_v53 = vld [vmem:[#allocation2 + $0xe8] sm:$0x1] }
 0x2a9   : > { %v1818_v36 = vpop.permute.xlu0 %1817  ;;  %v1909_v20 = vpop.permute.xlu1 %1908  ;;  %v2218_v63 = vld [vmem:[#allocation3 + $0x18] sm:$0xff]  ;;  %v3219_v12 = vld [vmem:[#allocation2 + $0xe8] sm:$0x1] }
 0x2aa   : > { %1838 = vst.msk [vmem:[#allocation3 + $0x20] sm:$0xff] %vm1833_vm14, %v1818_v36  ;;  %7335 = vmatmul.mubr.bf16.gmra.mrb[4].mxu1 %v2218_v63  ;;  %v3084_v36 = vld [vmem:[#allocation2 + $0xe8] sm:$0x1]  ;;  %v3004_v63 = vsel %vm1428_vm5, %v3268_v23, %v3003_v1 }
 0x2ab   : > { %2643 = vst.msk [vmem:[#allocation3 + $0x18] sm:$0xff] %vm1403_vm8, %v2635_v33  ;;  %3184 = vrot.lane.b32.xlu1 %v9002_v32, %s8136_s14  ;;  %v2735_v33 = vsel %vm1428_vm5, %v3268_v23, %v2734_v22  ;;  %v3121_v61 = vrot.slane %v3084_v36, 1  ;;  %v2636_v36 = vld [vmem:[#allocation2 + $0xc0] sm:$0xff] }
 0x2ac   : > { %1927 = vst.msk [vmem:[#allocation3 + $0x20] sm:$0xff] %vm1922_vm15, %v1907_v13  ;;  %2905 = vrot.lane.b32.xlu0 %v9002_v32, %s8133_s25  ;;  %v3273_v13 = vsel %vm1428_vm5, %v3268_v23, %v3272_v39  ;;  %v3398_v23 = vrot.slane %v3362_v26, 1 }
 0x2ad   : > { %v1957_v18 = vpop.permute.xlu0 %1956  ;;  %v1820_v4 = vpop.permute.xlu1 %1819  ;;  %v3122_v51 = vsel %vm1590_vm6, %v3120_v0, %v3121_v61  ;;  %v3289_v61 = vshll.u32 %v9098_v24, 16 }
 0x2ae   : > { %1977 = vst.msk [vmem:[#allocation3 + $0x20] sm:$0xff] %vm1972_vm0, %v1957_v18  ;;  %v2661_v18 = vld [vmem:[#allocation2 + $0xe8] sm:$0x1] }
 0x2af   : > { %1839 = vst.msk [vmem:[#allocation3 + $0x28] sm:$0xff] %vm1833_vm14, %v1820_v4  ;;  %2858 = vrot.lane.b32.xlu1 %v2841_v15, %s8132_s9  ;;  %v3399_v4 = vrot.slane %v3363_v27, 1 }
 0x2b0   : > { %1928 = vst.msk [vmem:[#allocation3 + $0x28] sm:$0xff] %vm1922_vm15, %v1909_v20  ;;  %3416 = vrot.lane.b32.xlu0 %v3397_v6, %s8137_s1  ;;  %v2940_v20 = vld [vmem:[#allocation2 + $0xe8] sm:$0x1]  ;;  %v2804_v6 = vld [vmem:[#allocation2 + $0xe0] sm:$0xfe] }
 0x2b1   : > { %v2191_v11 = vpop.permute.xlu0 %2190  ;;  %v1538_v48 = vpop.permute.xlu1 %1537  ;;  %v3013_v15 = vshll.u32 %v2940_v20, 16  ;;  %v2842_v60 = vrot.slane %v2804_v6, 1  ;;  %v3365_v6 = vld [vmem:[#allocation2 + $0xf8] sm:$0x1] }
 0x2b2   : > { %1556 = vst.msk [vmem:[#allocation3 + $0x30] sm:$0xff] %vm1549_vm9, %v1538_v48  ;;  %v2744_v48 = vshll.u32 %v2661_v18, 16  ;;  %v2807_v18 = vld [vmem:[#allocation2 + $0xf8] sm:$0x1] }
 0x2b3   : > { %3328 = vrot.lane.b32.xlu1 %v3273_v13, %s10529_s11  ;;  %v3011_v13 = vor.u32 %v3010_v28, %v3006_v44  ;;  %v3015_v22 = vrot.slane %v3013_v15, 1 }
 0x2b4   : > { %3137 = vrot.lane.b32.xlu0 %v3119_v49, %s8134_s23  ;;  %v2746_v45 = vrot.slane %v2744_v48, 1 }
 0x2b5   : > { %v1628_v5 = vpop.permute.xlu0 %1627  ;;  %v1959_v16 = vpop.permute.xlu1 %1958 }
 0x2b6   : > { %1646 = vst.msk [vmem:[#allocation3 + $0x30] sm:$0xff] %vm1639_vm10, %v1628_v5  ;;  %v2843_v5 = vrot.slane %v2805_v53, 1  ;;  %v2747_v0 = vsel %vm1428_vm5, %v3011_v13, %v2746_v45  ;;  %v3287_v53 = vshrl.u32 %v9098_v24, 16  ;;  %v2942_v45 = vld [vmem:[#allocation2 + $0xf8] sm:$0x1] }
 0x2b7   : > { %1978 = vst.msk [vmem:[#allocation3 + $0x28] sm:$0xff] %vm1972_vm0, %v1959_v16  ;;  %2770 = vrot.lane.b32.xlu1 %v2735_v33, %s10570_s20  ;;  %v3400_v33 = vsel %vm1590_vm6, %v3398_v23, %v3399_v4  ;;  %v3282_v16 = vshll.u32 %v3219_v12, 16  ;;  %v3221_v23 = vld [vmem:[#allocation2 + $0xf8] sm:$0x1] }
 0x2b8   : > { %3049 = vrot.lane.b32.xlu0 %v3004_v63, %s10568_s24  ;;  %v2844_v26 = vsel %vm1590_vm6, %v2842_v60, %v2843_v5  ;;  %v3294_v48 = vshll.u32 %v3221_v23, 16  ;;  %v2663_v60 = vld [vmem:[#allocation2 + $0xf8] sm:$0x1] }
 0x2b9   : > { %v2102_v39 = vpop.permute.xlu0 %2101  ;;  %v1630_v41 = vpop.permute.xlu1 %1629  ;;  %v3284_v27 = vrot.slane %v3282_v16, 1  ;;  %v3085_v16 = vld [vmem:[#allocation2 + $0xf0] sm:$0xfe] }
 0x2ba   : > { %2122 = vst.msk [vmem:[#allocation3 + $0x20] sm:$0xff] %vm2117_vm1, %v2102_v39  ;;  %v2806_v39 = vld [vmem:[#allocation2 + $0xf0] sm:$0xfe] }
 0x2bb   : > { %2211 = vst.msk [vmem:[#allocation3 + $0x20] sm:$0xff] %vm2206_vm2, %v2191_v11  ;;  %2907 = vrot.lane.b32.xlu1 %v9062_v52, %s8133_s25  ;;  %v3016_v11 = vsel %vm1428_vm5, %v3011_v13, %v3015_v22  ;;  %v3285_v4 = vsel %vm1428_vm5, %v3011_v13, %v3284_v27  ;;  %v2845_v12 = vrot.slane %v2806_v39, 1  ;;  %v3291_v22 = vrot.slane %v3289_v61, 1 }
 0x2bc   : > { %3186 = vrot.lane.b32.xlu0 %v9062_v52, %s8136_s14  ;;  %v3402_v13 = vrot.slane %v3365_v6, 1  ;;  %v3123_v61 = vrot.slane %v3085_v16, 1 }
 0x2bd   : > { %v1677_v49 = vpop.permute.xlu0 %1676  ;;  %v2104_v1 = vpop.permute.xlu1 %2103 }
 0x2be   : > { %1695 = vst.msk [vmem:[#allocation3 + $0x30] sm:$0xff] %vm1688_vm13, %v1677_v49 }
 0x2bf   : > { %2123 = vst.msk [vmem:[#allocation3 + $0x28] sm:$0xff] %vm2117_vm1, %v2104_v1  ;;  %3139 = vrot.lane.b32.xlu1 %v3122_v51, %s8134_s23  ;;  %v2846_v51 = vrot.slane %v2807_v18, 1 }
 0x2c0   : > { %3418 = vrot.lane.b32.xlu0 %v3400_v33, %s8137_s1 }
 0x2c1   : > { %v2193_v20 = vpop.permute.xlu0 %2192  ;;  %v1540_v63 = vpop.permute.xlu1 %1539 }
 0x2c2   : > { %2212 = vst.msk [vmem:[#allocation3 + $0x28] sm:$0xff] %vm2206_vm2, %v2193_v20  ;;  %v2219_v44 = vld [vmem:[#allocation3 + $0x20] sm:$0xff]  ;;  %v3292_v20 = vor.u32 %v3291_v22, %v3287_v53  ;;  %v3032_v53 = vshll.u32 %v9135_v62, 16 }
 0x2c3   : > { %1557 = vst.msk [vmem:[#allocation3 + $0x38] sm:$0xff] %vm1549_vm9, %v1540_v63  ;;  %7338 = vmatprep.mubr.bf16.mxu1 %v2219_v44  ;;  %3051 = vrot.lane.b32.xlu1 %v3016_v11, %s10568_s24  ;;  %v3086_v11 = vld [vmem:[#allocation2 + $0xf8] sm:$0x1]  ;;  %v3296_v63 = vrot.slane %v3294_v48, 1  ;;  %v3087_v22 = vld [vmem:[#allocation2 + $0x100] sm:$0xfe] }
 0x2c4   : > { %1647 = vst.msk [vmem:[#allocation3 + $0x38] sm:$0xff] %vm1639_vm10, %v1630_v41  ;;  %2860 = vrot.lane.b32.xlu0 %v2844_v26, %s8132_s9  ;;  %v3364_v41 = vld [vmem:[#allocation2 + $0xf0] sm:$0xfe]  ;;  %v2756_v26 = vshll.u32 %v2663_v60, 16  ;;  %v3088_v48 = vld [vmem:[#allocation2 + $0x108] sm:$0x1] }
 0x2c5   : > { %2644 = vst.msk [vmem:[#allocation3 + $0x20] sm:$0xff] %vm1403_vm8, %v2636_v36  ;;  %v1911_v28 = vpop.permute.xlu0 %1910  ;;  %v1679_v15 = vpop.permute.xlu1 %1678  ;;  %v3401_v5 = vrot.slane %v3364_v41, 1  ;;  %v2847_v36 = vsel %vm1590_vm6, %v2845_v12, %v2846_v51  ;;  %v3126_v60 = vrot.slane %v3087_v22, 1  ;;  %v3368_v22 = vld [vmem:[#allocation2 + $0x110] sm:$0xfe] }
 0x2c6   : > { %1696 = vst.msk [vmem:[#allocation3 + $0x38] sm:$0xff] %vm1688_vm13, %v1679_v15  ;;  %v3124_v15 = vrot.slane %v3086_v11, 1  ;;  %v2758_v39 = vrot.slane %v2756_v26, 1 }
 0x2c7   : > { %2772 = vrot.lane.b32.xlu1 %v2747_v0, %s10570_s20  ;;  %v3403_v0 = vsel %vm1590_vm6, %v3401_v5, %v3402_v13  ;;  %v3127_v5 = vrot.slane %v3088_v48, 1  ;;  %v3034_v13 = vrot.slane %v3032_v53, 1  ;;  %v3367_v53 = vld [vmem:[#allocation2 + $0x108] sm:$0x1]  ;;  %v3369_v48 = vld [vmem:[#allocation2 + $0x118] sm:$0x1] }
 0x2c8   : > { %3330 = vrot.lane.b32.xlu0 %v3285_v4, %s10529_s11  ;;  %v3125_v4 = vsel %vm1590_vm6, %v3123_v61, %v3124_v15  ;;  %v2759_v6 = vsel %vm1428_vm5, %v3292_v20, %v2758_v39  ;;  %v3223_v61 = vld [vmem:[#allocation2 + $0x108] sm:$0x1] }
 0x2c9   : > { %v1822_v49 = vpop.permute.xlu0 %1821  ;;  %v1913_v1 = vpop.permute.xlu1 %1912  ;;  %v2220_v33 = vld [vmem:[#allocation3 + $0x28] sm:$0xff]  ;;  %v3306_v39 = vshll.u32 %v3223_v61, 16 }
 0x2ca   : > { %1840 = vst.msk [vmem:[#allocation3 + $0x30] sm:$0xff] %vm1833_vm14, %v1822_v49  ;;  %7339 = vmatmul.mubr.bf16.gmra.mrb[8].mxu1 %v2220_v33  ;;  %v2944_v49 = vld [vmem:[#allocation2 + $0x108] sm:$0x1]  ;;  %v3030_v33 = vshrl.u32 %v9135_v62, 16 }
 0x2cb   : > { %2645 = vst.msk [vmem:[#allocation3 + $0x28] sm:$0xff] %vm1403_vm8, %v9002_v32  ;;  %3188 = vrot.lane.b32.xlu1 %v9098_v24, %s8136_s14  ;;  %v3025_v32 = vshll.u32 %v2942_v45, 16  ;;  %v3037_v16 = vshll.u32 %v2944_v49, 16  ;;  %v3408_v49 = vrot.slane %v3369_v48, 1 }
 0x2cc   : > { %1929 = vst.msk [vmem:[#allocation3 + $0x30] sm:$0xff] %vm1922_vm15, %v1911_v28  ;;  %2909 = vrot.lane.b32.xlu0 %v9098_v24, %s8133_s25  ;;  %v3297_v28 = vsel %vm1428_vm5, %v3292_v20, %v3296_v63 }
 0x2cd   : > { %v1961_v27 = vpop.permute.xlu0 %1960  ;;  %v1824_v44 = vpop.permute.xlu1 %1823  ;;  %v3027_v41 = vrot.slane %v3025_v32, 1  ;;  %v3039_v63 = vrot.slane %v3037_v16, 1 }
 0x2ce   : > { %1979 = vst.msk [vmem:[#allocation3 + $0x30] sm:$0xff] %vm1972_vm0, %v1961_v27 }
 0x2cf   : > { %1841 = vst.msk [vmem:[#allocation3 + $0x38] sm:$0xff] %vm1833_vm14, %v1824_v44  ;;  %2862 = vrot.lane.b32.xlu1 %v2847_v36, %s8132_s9  ;;  %v3128_v36 = vsel %vm1590_vm6, %v3126_v60, %v3127_v5 }
 0x2d0   : > { %1930 = vst.msk [vmem:[#allocation3 + $0x38] sm:$0xff] %vm1922_vm15, %v1913_v1  ;;  %3420 = vrot.lane.b32.xlu0 %v3403_v0, %s8137_s1  ;;  %v3028_v1 = vsel %vm1428_vm5, %v3292_v20, %v3027_v41  ;;  %v3035_v20 = vor.u32 %v3034_v13, %v3030_v33  ;;  %v7778_v41 = vld [vmem:[#allocation11 + $0x38] sm:$0xff]  }
 0x2d1   : > { %v2106_v18 = vpop.permute.xlu0 %2105  ;;  %v1963_v23 = vpop.permute.xlu1 %1962 }
 0x2d2   : > { %2124 = vst.msk [vmem:[#allocation3 + $0x30] sm:$0xff] %vm2117_vm1, %v2106_v18  ;;  %v3040_v0 = vsel %vm1428_vm5, %v3035_v20, %v3039_v63 }
 0x2d3   : > { %1980 = vst.msk [vmem:[#allocation3 + $0x38] sm:$0xff] %vm1972_vm0, %v1963_v23  ;;  %3332 = vrot.lane.b32.xlu1 %v3297_v28, %s10529_s11 }
 0x2d4   : > { %3141 = vrot.lane.b32.xlu0 %v3125_v4, %s8134_s23 }
 0x2d5   : > { %v2195_v12 = vpop.permute.xlu0 %2194  ;;  %v2108_v51 = vpop.permute.xlu1 %2107 }
 0x2d6   : > { %2213 = vst.msk [vmem:[#allocation3 + $0x30] sm:$0xff] %vm2206_vm2, %v2195_v12 }
 0x2d7   : > { %2125 = vst.msk [vmem:[#allocation3 + $0x38] sm:$0xff] %vm2117_vm1, %v2108_v51  ;;  %2774 = vrot.lane.b32.xlu1 %v2759_v6, %s10570_s20  ;;  %v3366_v6 = vld [vmem:[#allocation2 + $0x100] sm:$0xfe]  ;;  %v3405_v51 = vrot.slane %v3367_v53, 1 }
 0x2d8   : > { %3053 = vrot.lane.b32.xlu0 %v3028_v1, %s10568_s24  ;;  %v3404_v12 = vrot.slane %v3366_v6, 1 }
 0x2d9   : > { %v2761_v11 = vpop.permute.xlu0 %2760  ;;  %v2197_v45 = vpop.permute.xlu1 %2196 }
 0x2da   : > { %2784 = vst.msk [vmem:[#allocation3] sm:$0xff] %vm1549_vm9, %v2761_v11  ;;  %v3406_v1 = vsel %vm1590_vm6, %v3404_v12, %v3405_v51  ;;  %v9286_v11 = vld [vmem:[#allocation2] sm:$0xff] }
 0x2db   : > { %2214 = vst.msk [vmem:[#allocation3 + $0x38] sm:$0xff] %vm2206_vm2, %v2197_v45  ;;  %2911 = vrot.lane.b32.xlu1 %v9135_v62, %s8133_s25 }
 0x2dc   : > { %3190 = vrot.lane.b32.xlu0 %v9135_v62, %s8136_s14  ;;  %v3308_v62 = vrot.slane %v3306_v39, 1  ;;  %v9300_v39 = vpop.f32.mrb[63].mxu0 }
 0x2dd   : > { %v2849_v26 = vpop.permute.xlu0 %2848  ;;  %v2851_v27 = vpop.permute.xlu1 %2850  ;;  %v2221_v44 = vld [vmem:[#allocation3 + $0x30] sm:$0xff] }
 0x2de   : > { %2872 = vst.msk [vmem:[#allocation3] sm:$0xff] %vm1639_vm10, %v2849_v26  ;;  %7342 = vmatprep.mubr.bf16.mxu1 %v2221_v44  ;;  %v3309_v4 = vsel %vm1428_vm5, %v3035_v20, %v3308_v62 }
 0x2df   : > { %2646 = vst.msk [vmem:[#allocation3 + $0x30] sm:$0xff] %vm1403_vm8, %v9062_v52  ;;  %3143 = vrot.lane.b32.xlu1 %v3128_v36, %s8134_s23  ;;  %v7777_v52 = vld [vmem:[#allocation11 + $0x30] sm:$0xff]  }
 0x2e0   : > { %7358 = vmatprep.subr.bf16.mxu1 %v7777_v52  ;;  %3334 = vrot.lane.b32.xlu0 %v3309_v4, %s10529_s11  ;;  %s10611_s11 = sld [smem:[#allocation31_spill]] }
 0x2e1   : > { %v2898_v15 = vpop.permute.xlu0 %2897  ;;  %v9266_v32 = vpop.permute.xlu1 %3192  ;;  %7359 = vmatpush3.bf16.msra.mxu1 %v7777_v52 }
 0x2e2   : > { %v2222_v28 = vld [vmem:[#allocation3 + $0x38] sm:$0xff]  ;;  %2921 = vst.msk [vmem:[#allocation3] sm:$0xff] %vm1688_vm13, %v2898_v15  ;;  %7360 = vmatprep.subr.bf16.mxu1 %v7778_v41 }
 0x2e3   : > { %7343 = vmatmul.mubr.bf16.gmra.mrb[12].mxu1 %v2222_v28  ;;  %2647 = vst.msk [vmem:[#allocation3 + $0x38] sm:$0xff] %vm1403_vm8, %v9098_v24  ;;  %3055 = vrot.lane.b32.xlu1 %v3040_v0, %s10568_s24  ;;  %v3407_v24 = vrot.slane %v3368_v22, 1 }
 0x2e4   : > { %3422 = vrot.lane.b32.xlu0 %v3406_v1, %s8137_s1 }
 0x2e5   : > { %v3130_v18 = vpop.permute.xlu0 %3129  ;;  %v9272_v23 = vpop.permute.xlu1 %3336  ;;  %v3409_v5 = vsel %vm1590_vm6, %v3407_v24, %v3408_v49  ;;  %7361 = vmatpush3.bf16.msra.mxu1 %v7778_v41 }
 0x2e7   : > { %3424 = vrot.lane.b32.xlu1 %v3409_v5, %s8137_s1  ;;  %v9318_v5 = vld [vmem:[#allocation10] sm:$0xff]  }
 0x2e8   : > { %7378 = vmatprep.subr.bf16.mxu1 %v9318_v5 }
 0x2e9   : > { %v3042_v33 = vpop.permute.xlu0 %3041  ;;  %v2763_v60 = vpop.permute.xlu1 %2762 }
 0x2ea   : > { %3065 = vst.msk [vmem:[#allocation3] sm:$0xff] %vm1833_vm14, %v3042_v33 }
 0x2eb   : > { %2785 = vst.msk [vmem:[#allocation3 + $0x8] sm:$0xff] %vm1549_vm9, %v2763_v60  ;;  %6208 = vrot.lane.b32.xlu1 %v9286_v11, %s8136_s14 }
 0x2ec   : > { %3153 = vst.msk [vmem:[#allocation3] sm:$0xff] %vm1922_vm15, %v3130_v18 }
 0x2ed   : > { %2873 = vst.msk [vmem:[#allocation3 + $0x8] sm:$0xff] %vm1639_vm10, %v2851_v27  ;;  %v2900_v13 = vpop.permute.xlu1 %2899  ;;  %v3179_v16 = vpop.permute.xlu0 %3178 }
 0x2ee   : > { %2922 = vst.msk [vmem:[#allocation3 + $0x8] sm:$0xff] %vm1688_vm13, %v2900_v13 }
 0x2ef   : > { %3202 = vst.msk [vmem:[#allocation3] sm:$0xff] %vm1972_vm0, %v3179_v16 }
 0x2f1   : > { %v3132_v45 = vpop.permute.xlu1 %3131  ;;  %v3411_v36 = vpop.permute.xlu0 %3410 }
 0x2f5   : > { %v3044_v20 = vpop.permute.xlu1 %3043 }
 0x2f6   : > { %3066 = vst.msk [vmem:[#allocation3 + $0x8] sm:$0xff] %vm1833_vm14, %v3044_v20  ;;  %v2853_v63 = vpop.permute.xlu0 %2852 }
 0x2f7   : > { %3154 = vst.msk [vmem:[#allocation3 + $0x8] sm:$0xff] %vm1922_vm15, %v3132_v45 }
 0x2f9   : > { %v2765_v26 = vpop.permute.xlu1 %2764 }
 0x2fa   : > { %2786 = vst.msk [vmem:[#allocation3 + $0x10] sm:$0xff] %vm1549_vm9, %v2765_v26  ;;  %v3323_v27 = vpop.permute.xlu0 %3322 }
 0x2fb   : > { %2874 = vst.msk [vmem:[#allocation3 + $0x10] sm:$0xff] %vm1639_vm10, %v2853_v63 }
 0x2fc   : > { %3346 = vst.msk [vmem:[#allocation3] sm:$0xff] %vm2117_vm1, %v3323_v27 }
 0x2fd   : > { %3434 = vst.msk [vmem:[#allocation3] sm:$0xff] %vm2206_vm2, %v3411_v36  ;;  %v3181_v44 = vpop.permute.xlu1 %3180 }
 0x2fe   : > { %3203 = vst.msk [vmem:[#allocation3 + $0x8] sm:$0xff] %vm1972_vm0, %v3181_v44  ;;  %v2902_v61 = vpop.permute.xlu0 %2901 }
 0x2ff   : > { %2923 = vst.msk [vmem:[#allocation3 + $0x10] sm:$0xff] %vm1688_vm13, %v2902_v61 }
 0x301   : > { %v2855_v0 = vpop.permute.xlu1 %2854 }
 0x302   : > { %v3413_v28 = vpop.permute.xlu0 %3412 }
 0x304   : > { %v9327_v26 = vld [vmem:[#allocation3] sm:$0xff] }
 0x305   : > { %v3325_v15 = vpop.permute.xlu1 %3324  ;;  %4434 = vst.msk [vmem:[#allocation3] sm:$0xff] %vm1403_vm8, %v9286_v11 }
 0x306   : > { %3347 = vst.msk [vmem:[#allocation3 + $0x8] sm:$0xff] %vm2117_vm1, %v3325_v15  ;;  %v3134_v52 = vpop.permute.xlu0 %3133 }
 0x307   : > { %3435 = vst.msk [vmem:[#allocation3 + $0x8] sm:$0xff] %vm2206_vm2, %v3413_v28 }
 0x309   : > { %v2767_v62 = vpop.permute.xlu1 %2766 }
 0x30a   : > { %2787 = vst.msk [vmem:[#allocation3 + $0x18] sm:$0xff] %vm1549_vm9, %v2767_v62  ;;  %v3046_v4 = vpop.permute.xlu0 %3045 }
 0x30b   : > { %2875 = vst.msk [vmem:[#allocation3 + $0x18] sm:$0xff] %vm1639_vm10, %v2855_v0 }
 0x30c   : > { %3067 = vst.msk [vmem:[#allocation3 + $0x10] sm:$0xff] %vm1833_vm14, %v3046_v4 }
 0x30d   : > { %v2904_v18 = vpop.permute.xlu1 %2903  ;;  %3155 = vst.msk [vmem:[#allocation3 + $0x10] sm:$0xff] %vm1922_vm15, %v3134_v52 }
 0x30e   : > { %2924 = vst.msk [vmem:[#allocation3 + $0x18] sm:$0xff] %vm1688_vm13, %v2904_v18  ;;  %v3183_v6 = vpop.permute.xlu0 %3182 }
 0x30f   : > { %3204 = vst.msk [vmem:[#allocation3 + $0x10] sm:$0xff] %vm1972_vm0, %v3183_v6 }
 0x311   : > { %v3136_v41 = vpop.permute.xlu1 %3135 }
 0x312   : > { %v3415_v12 = vpop.permute.xlu0 %3414 }
 0x315   : > { %v3048_v53 = vpop.permute.xlu1 %3047 }
 0x316   : > { %3068 = vst.msk [vmem:[#allocation3 + $0x18] sm:$0xff] %vm1833_vm14, %v3048_v53  ;;  %v2857_v22 = vpop.permute.xlu0 %2856 }
 0x317   : > { %3156 = vst.msk [vmem:[#allocation3 + $0x18] sm:$0xff] %vm1922_vm15, %v3136_v41 }
 0x319   : > { %v2769_v51 = vpop.permute.xlu1 %2768 }
 0x31a   : > { %2788 = vst.msk [vmem:[#allocation3 + $0x20] sm:$0xff] %vm1549_vm9, %v2769_v51  ;;  %v3327_v24 = vpop.permute.xlu0 %3326 }
 0x31b   : > { %2876 = vst.msk [vmem:[#allocation3 + $0x20] sm:$0xff] %vm1639_vm10, %v2857_v22 }
 0x31c   : > { %3348 = vst.msk [vmem:[#allocation3 + $0x10] sm:$0xff] %vm2117_vm1, %v3327_v24 }
 0x31d   : > { %v3185_v48 = vpop.permute.xlu1 %3184  ;;  %3436 = vst.msk [vmem:[#allocation3 + $0x10] sm:$0xff] %vm2206_vm2, %v3415_v12 }
 0x31e   : > { %3205 = vst.msk [vmem:[#allocation3 + $0x18] sm:$0xff] %vm1972_vm0, %v3185_v48  ;;  %v2906_v1 = vpop.permute.xlu0 %2905 }
 0x31f   : > { %2925 = vst.msk [vmem:[#allocation3 + $0x20] sm:$0xff] %vm1688_vm13, %v2906_v1 }
 0x321   : > { %v2859_v49 = vpop.permute.xlu1 %2858 }
 0x322   : > { %v3417_v60 = vpop.permute.xlu0 %3416 }
 0x325   : > { %v3329_v33 = vpop.permute.xlu1 %3328 }
 0x326   : > { %3349 = vst.msk [vmem:[#allocation3 + $0x18] sm:$0xff] %vm2117_vm1, %v3329_v33  ;;  %v3138_v16 = vpop.permute.xlu0 %3137 }
 0x327   : > { %3437 = vst.msk [vmem:[#allocation3 + $0x18] sm:$0xff] %vm2206_vm2, %v3417_v60 }
 0x329   : > { %v2771_v13 = vpop.permute.xlu1 %2770 }
 0x32a   : > { %2789 = vst.msk [vmem:[#allocation3 + $0x28] sm:$0xff] %vm1549_vm9, %v2771_v13  ;;  %v3050_v36 = vpop.permute.xlu0 %3049 }
 0x32b   : > { %2877 = vst.msk [vmem:[#allocation3 + $0x28] sm:$0xff] %vm1639_vm10, %v2859_v49  ;;  %v9357_v49 = vld [vmem:[%s10508_s5] ss:$0 sm:$0xff] }
 0x32c   : > { %3069 = vst.msk [vmem:[#allocation3 + $0x20] sm:$0xff] %vm1833_vm14, %v3050_v36 }
 0x32d   : > { %v2908_v45 = vpop.permute.xlu1 %2907  ;;  %3157 = vst.msk [vmem:[#allocation3 + $0x20] sm:$0xff] %vm1922_vm15, %v3138_v16 }
 0x32e   : > { %2926 = vst.msk [vmem:[#allocation3 + $0x28] sm:$0xff] %vm1688_vm13, %v2908_v45  ;;  %v3187_v63 = vpop.permute.xlu0 %3186 }
 0x32f   : > { %3206 = vst.msk [vmem:[#allocation3 + $0x20] sm:$0xff] %vm1972_vm0, %v3187_v63  ;;  %v7788_v63 = vld [vmem:[#allocation13 + $0x8] sm:$0xff]  }
 0x331   : > { %v3140_v20 = vpop.permute.xlu1 %3139 }
 0x332   : > { %v3419_v44 = vpop.permute.xlu0 %3418 }
 0x335   : > { %v3052_v27 = vpop.permute.xlu1 %3051 }
 0x336   : > { %3070 = vst.msk [vmem:[#allocation3 + $0x28] sm:$0xff] %vm1833_vm14, %v3052_v27  ;;  %v2861_v61 = vpop.permute.xlu0 %2860 }
 0x337   : > { %3158 = vst.msk [vmem:[#allocation3 + $0x28] sm:$0xff] %vm1922_vm15, %v3140_v20  ;;  %v7787_v20 = vld [vmem:[#allocation13] sm:$0xff]  }
 0x338   : > { %7442 = vmatprep.subr.bf16.mxu0 %v7787_v20 }
 0x339   : > { %v2773_v0 = vpop.permute.xlu1 %2772  ;;  %7443 = vmatpush3.bf16.msra.mxu0 %v7787_v20 }
 0x33a   : > { %2790 = vst.msk [vmem:[#allocation3 + $0x30] sm:$0xff] %vm1549_vm9, %v2773_v0  ;;  %v3331_v28 = vpop.permute.xlu0 %3330  ;;  %7444 = vmatprep.subr.bf16.mxu0 %v7788_v63 }
 0x33b   : > { %2878 = vst.msk [vmem:[#allocation3 + $0x30] sm:$0xff] %vm1639_vm10, %v2861_v61 }
 0x33c   : > { %3350 = vst.msk [vmem:[#allocation3 + $0x20] sm:$0xff] %vm2117_vm1, %v3331_v28 }
 0x33d   : > { %v3189_v15 = vpop.permute.xlu1 %3188  ;;  %3438 = vst.msk [vmem:[#allocation3 + $0x20] sm:$0xff] %vm2206_vm2, %v3419_v44  ;;  %7445 = vmatpush3.bf16.msra.mxu0 %v7788_v63 }
 0x33e   : > { %3207 = vst.msk [vmem:[#allocation3 + $0x28] sm:$0xff] %vm1972_vm0, %v3189_v15  ;;  %v2910_v52 = vpop.permute.xlu0 %2909 }
 0x33f   : > { %2927 = vst.msk [vmem:[#allocation3 + $0x30] sm:$0xff] %vm1688_vm13, %v2910_v52 }
 0x341   : > { %v2863_v62 = vpop.permute.xlu1 %2862 }
 0x342   : > { %v3421_v4 = vpop.permute.xlu0 %3420 }
 0x345   : > { %v3333_v18 = vpop.permute.xlu1 %3332 }
 0x346   : > { %3351 = vst.msk [vmem:[#allocation3 + $0x28] sm:$0xff] %vm2117_vm1, %v3333_v18  ;;  %v3142_v6 = vpop.permute.xlu0 %3141  ;;  %v7780_v18 = vld [vmem:[#allocation10 + $0x8] sm:$0xff]  }
 0x347   : > { %3439 = vst.msk [vmem:[#allocation3 + $0x28] sm:$0xff] %vm2206_vm2, %v3421_v4  ;;  %v7790_v4 = vld [vmem:[#allocation13 + $0x18] sm:$0xff]  }
 0x349   : > { %v2775_v41 = vpop.permute.xlu1 %2774 }
 0x34a   : > { %2791 = vst.msk [vmem:[#allocation3 + $0x38] sm:$0xff] %vm1549_vm9, %v2775_v41  ;;  %v3054_v12 = vpop.permute.xlu0 %3053  ;;  %v7781_v41 = vld [vmem:[#allocation10 + $0x10] sm:$0xff]  }
 0x34b   : > { %2879 = vst.msk [vmem:[#allocation3 + $0x38] sm:$0xff] %vm1639_vm10, %v2863_v62  ;;  %v7789_v62 = vld [vmem:[#allocation13 + $0x10] sm:$0xff]  }
 0x34c   : > { %3071 = vst.msk [vmem:[#allocation3 + $0x30] sm:$0xff] %vm1833_vm14, %v3054_v12  ;;  %7446 = vmatprep.subr.bf16.mxu0 %v7789_v62  ;;  %v7783_v12 = vld [vmem:[#allocation10 + $0x20] sm:$0xff]  }
 0x34d   : > { %v2912_v53 = vpop.permute.xlu1 %2911  ;;  %3159 = vst.msk [vmem:[#allocation3 + $0x30] sm:$0xff] %vm1922_vm15, %v3142_v6  ;;  %7447 = vmatpush3.bf16.msra.mxu0 %v7789_v62  ;;  %v7791_v6 = vld [vmem:[#allocation13 + $0x20] sm:$0xff]  }
 0x34e   : > { %2928 = vst.msk [vmem:[#allocation3 + $0x38] sm:$0xff] %vm1688_vm13, %v2912_v53  ;;  %v3191_v22 = vpop.permute.xlu0 %3190  ;;  %7448 = vmatprep.subr.bf16.mxu0 %v7790_v4  ;;  %v7782_v53 = vld [vmem:[#allocation10 + $0x18] sm:$0xff]  }
 0x34f   : > { %3208 = vst.msk [vmem:[#allocation3 + $0x30] sm:$0xff] %vm1972_vm0, %v3191_v22 }
 0x351   : > { %v3144_v51 = vpop.permute.xlu1 %3143  ;;  %7449 = vmatpush3.bf16.msra.mxu0 %v7790_v4 }
 0x352   : > { %v3335_v24 = vpop.permute.xlu0 %3334  ;;  %7450 = vmatprep.subr.bf16.mxu0 %v7791_v6 }
 0x353   : > { %3352 = vst.msk [vmem:[#allocation3 + $0x30] sm:$0xff] %vm2117_vm1, %v3335_v24 }
 0x355   : > { %v3056_v48 = vpop.permute.xlu1 %3055  ;;  %7451 = vmatpush3.bf16.msra.mxu0 %v7791_v6 }
 0x356   : > { %3072 = vst.msk [vmem:[#allocation3 + $0x38] sm:$0xff] %vm1833_vm14, %v3056_v48  ;;  %v3423_v1 = vpop.permute.xlu0 %3422 }
 0x357   : > { %3160 = vst.msk [vmem:[#allocation3 + $0x38] sm:$0xff] %vm1922_vm15, %v3144_v51  ;;  %v7784_v51 = vld [vmem:[#allocation10 + $0x28] sm:$0xff]  }
 0x358   : > { %3209 = vst.msk [vmem:[#allocation3 + $0x38] sm:$0xff] %vm1972_vm0, %v9266_v32 }
 0x359   : > { %3353 = vst.msk [vmem:[#allocation3 + $0x38] sm:$0xff] %vm2117_vm1, %v9272_v23  ;;  %v3425_v33 = vpop.permute.xlu1 %3424 }
 0x35a   : > { %3440 = vst.msk [vmem:[#allocation3 + $0x30] sm:$0xff] %vm2206_vm2, %v3423_v1  ;;  %3441 = vst.msk [vmem:[#allocation3 + $0x38] sm:$0xff] %vm2206_vm2, %v3425_v33  ;;  %v7786_v1 = vld [vmem:[#allocation10 + $0x38] sm:$0xff]  }
 0x35d   : > { %v7332_v60 = vpop.f32.mrb[0].mxu1 }
 0x35e   : > { %v2337_v32 = vadd.f32 %v7332_v60, %v9357_v49  ;;  %v2328_v13 = vpop.f32.mrb[1].mxu1 }
 0x35f   : > { %v2329_v16 = vadd.f32 %v9357_v49, %v2328_v13  ;;  %v7333_v23 = vpop.f32.mrb[2].mxu1 }
 0x360   : > { %v2340_v45 = vadd.f32 %v7333_v23, %v9357_v49  ;;  %v2331_v36 = vpop.f32.mrb[3].mxu1  ;;  %v2393_v44 = vmax.f32 %v2337_v32, 0.0 }
 0x361   : > { %v2332_v27 = vadd.f32 %v9357_v49, %v2331_v36  ;;  %v2391_v61 = vmax.f32 %v2329_v16, 0.0 }
 0x362   : > { %v2394_v0 = vmax.f32 %v2340_v45, 0.0 }
 0x363   : > { %v2392_v15 = vmax.f32 %v2332_v27, 0.0 }
 0x364   : > { %v2408_v28 = vpack.c.bf16 %v2394_v0, %v2393_v44 }
 0x365   : > { %v2407_v52 = vpack.c.bf16 %v2392_v15, %v2391_v61 }
 0x367   : > { %7362 = vmatprep.mubr.bf16.mxu1 %v2407_v52 }
 0x368   : > { %7363 = vmatmul.mubr.bf16.vlgmr.msra.gmra.mrb[16].mxu1 %v2408_v28 }
 0x369   : > { %7379 = vmatpush3.bf16.msra.mxu1 %v9318_v5  ;;  %v7785_v5 = vld [vmem:[#allocation10 + $0x30] sm:$0xff]  }
 0x36a   : > { %7380 = vmatprep.subr.bf16.mxu1 %v7780_v18 }
 0x36d   : > { %7381 = vmatpush3.bf16.msra.mxu1 %v7780_v18 }
 0x36e   : > { %7382 = vmatprep.subr.bf16.mxu1 %v7781_v41 }
 0x371   : > { %7383 = vmatpush3.bf16.msra.mxu1 %v7781_v41 }
 0x372   : > { %7384 = vmatprep.subr.bf16.mxu1 %v7782_v53 }
 0x375   : > { %7385 = vmatpush3.bf16.msra.mxu1 %v7782_v53 }
 0x376   : > { %7386 = vmatprep.subr.bf16.mxu1 %v7783_v12 }
 0x379   : > { %7387 = vmatpush3.bf16.msra.mxu1 %v7783_v12 }
 0x37a   : > { %7388 = vmatprep.subr.bf16.mxu1 %v7784_v51 }
 0x37d   : > { %v7336_v22 = vpop.f32.mrb[4].mxu1  ;;  %7389 = vmatpush3.bf16.msra.mxu1 %v7784_v51 }
 0x37e   : > { %v2353_v48 = vadd.f32 %v7336_v22, %v9357_v49  ;;  %v2344_v24 = vpop.f32.mrb[5].mxu1  ;;  %7390 = vmatprep.subr.bf16.mxu1 %v7785_v5 }
 0x37f   : > { %v2345_v33 = vadd.f32 %v9357_v49, %v2344_v24  ;;  %v7337_v60 = vpop.f32.mrb[6].mxu1 }
 0x380   : > { %v2356_v32 = vadd.f32 %v7337_v60, %v9357_v49  ;;  %v2347_v13 = vpop.f32.mrb[7].mxu1  ;;  %v2397_v23 = vmax.f32 %v2353_v48, 0.0 }
 0x381   : > { %v2348_v16 = vadd.f32 %v9357_v49, %v2347_v13  ;;  %7391 = vmatpush3.bf16.msra.mxu1 %v7785_v5  ;;  %v2395_v36 = vmax.f32 %v2345_v33, 0.0 }
 0x382   : > { %v2398_v45 = vmax.f32 %v2356_v32, 0.0  ;;  %7392 = vmatprep.subr.bf16.mxu1 %v7786_v1 }
 0x383   : > { %v2396_v20 = vmax.f32 %v2348_v16, 0.0 }
 0x384   : > { %v2410_v63 = vpack.c.bf16 %v2398_v45, %v2397_v23 }
 0x385   : > { %v2409_v27 = vpack.c.bf16 %v2396_v20, %v2395_v36  ;;  %7393 = vmatpush3.bf16.msra.mxu1 %v7786_v1 }
 0x387   : > { %7366 = vmatprep.mubr.bf16.mxu1 %v2409_v27  ;;  %v7793_v27 = vld [vmem:[#allocation13 + $0x30] sm:$0xff]  }
 0x388   : > { %7367 = vmatmul.mubr.bf16.gmra.mrb[20].mxu1 %v2410_v63  ;;  %v7792_v63 = vld [vmem:[#allocation13 + $0x28] sm:$0xff]  }
 0x389   : > { %7452 = vmatprep.subr.bf16.mxu0 %v7792_v63 }
 0x38a   : > { %7453 = vmatpush3.bf16.msra.mxu0 %v7792_v63 }
 0x38b   : > { %7454 = vmatprep.subr.bf16.mxu0 %v7793_v27 }
 0x38e   : > { %7455 = vmatpush3.bf16.msra.mxu0 %v7793_v27 }
 0x39d   : > { %v7340_v44 = vpop.f32.mrb[8].mxu1 }
 0x39e   : > { %v2369_v0 = vadd.f32 %v7340_v44, %v9357_v49  ;;  %v2360_v61 = vpop.f32.mrb[9].mxu1  ;;  %v7794_v44 = vld [vmem:[#allocation13 + $0x38] sm:$0xff]  }
 0x39f   : > { %v2361_v15 = vadd.f32 %v9357_v49, %v2360_v61  ;;  %v7341_v28 = vpop.f32.mrb[10].mxu1  ;;  %v3443_v61 = vld [vmem:[#allocation3 + $0x8] sm:$0xff]  ;;  %7456 = vmatprep.subr.bf16.mxu0 %v7794_v44 }
 0x3a0   : > { %v2372_v62 = vadd.f32 %v7341_v28, %v9357_v49  ;;  %v2363_v52 = vpop.f32.mrb[11].mxu1  ;;  %v2401_v4 = vmax.f32 %v2369_v0, 0.0  ;;  %v3444_v0 = vld [vmem:[#allocation3 + $0x10] sm:$0xff]  ;;  %7457 = vmatpush3.bf16.msra.mxu0 %v7794_v44  ;;  %v3446_v28 = vld [vmem:[#allocation3 + $0x20] sm:$0xff] }
 0x3a1   : > { %v2364_v18 = vadd.f32 %v9357_v49, %v2363_v52  ;;  %v2399_v6 = vmax.f32 %v2361_v15, 0.0  ;;  %v3445_v15 = vld [vmem:[#allocation3 + $0x18] sm:$0xff]  ;;  %v3448_v52 = vld [vmem:[#allocation3 + $0x30] sm:$0xff] }
 0x3a2   : > { %v2402_v41 = vmax.f32 %v2372_v62, 0.0  ;;  %v3447_v62 = vld [vmem:[#allocation3 + $0x28] sm:$0xff] }
 0x3a3   : > { %v2400_v53 = vmax.f32 %v2364_v18, 0.0  ;;  %v7795_v18 = vld [vmem:[#allocation11] sm:$0xff]  }
 0x3a4   : > { %v2412_v12 = vpack.c.bf16 %v2402_v41, %v2401_v4  ;;  %7410 = vmatprep.subr.bf16.mxu1 %v7795_v18  ;;  %v7796_v4 = vld [vmem:[#allocation11 + $0x8] sm:$0xff]   ;;  %v7797_v41 = vld [vmem:[#allocation11 + $0x10] sm:$0xff]  }
 0x3a5   : > { %v2411_v51 = vpack.c.bf16 %v2400_v53, %v2399_v6  ;;  %v7798_v6 = vld [vmem:[#allocation11 + $0x18] sm:$0xff]   ;;  %v7799_v53 = vld [vmem:[#allocation11 + $0x20] sm:$0xff]  }
 0x3a7   : > { %7370 = vmatprep.mubr.bf16.mxu1 %v2411_v51  ;;  %v7801_v51 = vld [vmem:[#allocation11 + $0x30] sm:$0xff]  }
 0x3a8   : > { %7371 = vmatmul.mubr.bf16.gmra.mrb[24].mxu1 %v2412_v12  ;;  %v7800_v12 = vld [vmem:[#allocation11 + $0x28] sm:$0xff]  }
 0x3b6   : > { %v7344_v5 = vpop.f32.mrb[12].mxu1 }
 0x3b7   : > { %v2385_v22 = vadd.f32 %v7344_v5, %v9357_v49  ;;  %v2376_v48 = vpop.f32.mrb[13].mxu1  ;;  %v7802_v5 = vld [vmem:[#allocation11 + $0x38] sm:$0xff]  }
 0x3b8   : > { %v2377_v24 = vadd.f32 %v9357_v49, %v2376_v48  ;;  %v7345_v1 = vpop.f32.mrb[14].mxu1  ;;  %v9387_v48 = vld [vmem:[%s10611_s11] ss:$0 sm:$0xff] }
 0x3b9   : > { %v2388_v33 = vadd.f32 %v7345_v1, %v9357_v49  ;;  %v2379_v60 = vpop.f32.mrb[15].mxu1  ;;  %v2405_v13 = vmax.f32 %v2385_v22, 0.0  ;;  %v9382_v22 = vld [vmem:[%s10610_s22] ss:$0 sm:$0xff]  ;;  %v1107_v1 = vadd.f32 %v9387_v48, %v8638_v3  ;;  %v1106_v3 = vadd.f32 %v9387_v48, %v8633_v57 }
 0x3ba   : > { %v2380_v32 = vadd.f32 %v9357_v49, %v2379_v60  ;;  %v2403_v23 = vmax.f32 %v2377_v24, 0.0 }
 0x3bb   : > { %v2406_v16 = vmax.f32 %v2388_v33, 0.0 }
 0x3bc   : > { %v2404_v45 = vmax.f32 %v2380_v32, 0.0  ;;  %v1105_v32 = vadd.f32 %v9387_v48, %v8630_v54 }
 0x3bd   : > { %v2414_v36 = vpack.c.bf16 %v2406_v16, %v2405_v13 }
 0x3be   : > { %v2413_v20 = vpack.c.bf16 %v2404_v45, %v2403_v23  ;;  %v1108_v23 = vadd.f32 %v9387_v48, %v8641_v9 }
 0x3c0   : > { %7374 = vmatprep.mubr.bf16.mxu1 %v2413_v20 }
 0x3c1   : > { %7375 = vmatmul.mubr.bf16.gmra.mrb[28].mxu1 %v2414_v36 }
 0x3c2   : > { %7394 = vmatprep.mubr.bf16.mxu1 %v9327_v26  ;;  %v3449_v26 = vld [vmem:[#allocation3 + $0x38] sm:$0xff] }
 0x3c9   : > { %7395 = vmatmul.mubr.bf16.vlgmr.msra.gmra.mrb[32].mxu1 %v3443_v61 }
 0x3ca   : > { %7398 = vmatprep.mubr.bf16.mxu1 %v3444_v0  ;;  %7411 = vmatpush3.bf16.msra.mxu1 %v7795_v18 }
 0x3cb   : > { %7412 = vmatprep.subr.bf16.mxu1 %v7796_v4 }
 0x3ce   : > { %7413 = vmatpush3.bf16.msra.mxu1 %v7796_v4  ;;  %v1109_v4 = vadd.f32 %v9387_v48, %v8654_v21 }
 0x3cf   : > { %7414 = vmatprep.subr.bf16.mxu1 %v7797_v41 }
 0x3d1   : > { %7399 = vmatmul.mubr.bf16.gmra.mrb[36].mxu1 %v3445_v15 }
 0x3d2   : > { %7402 = vmatprep.mubr.bf16.mxu1 %v3446_v28  ;;  %7415 = vmatpush3.bf16.msra.mxu1 %v7797_v41 }
 0x3d3   : > { %7416 = vmatprep.subr.bf16.mxu1 %v7798_v6 }
 0x3d6   : > { %7417 = vmatpush3.bf16.msra.mxu1 %v7798_v6 }
 0x3d7   : > { %7418 = vmatprep.subr.bf16.mxu1 %v7799_v53 }
 0x3d9   : > { %7403 = vmatmul.mubr.bf16.gmra.mrb[40].mxu1 %v3447_v62 }
 0x3da   : > { %7406 = vmatprep.mubr.bf16.mxu1 %v3448_v52  ;;  %7419 = vmatpush3.bf16.msra.mxu1 %v7799_v53  ;;  %v1111_v52 = vadd.f32 %v9387_v48, %v8667_v58  ;;  %v1112_v53 = vadd.f32 %v9387_v48, %v8675_v7  ;;  %v1110_v58 = vadd.f32 %v9387_v48, %v8657_v29 }
 0x3db   : > { %7420 = vmatprep.subr.bf16.mxu1 %v7800_v12 }
 0x3de   : > { %7421 = vmatpush3.bf16.msra.mxu1 %v7800_v12 }
 0x3df   : > { %7422 = vmatprep.subr.bf16.mxu1 %v7801_v51 }
 0x3e1   : > { %7407 = vmatmul.mubr.bf16.gmra.mrb[44].mxu1 %v3449_v26 }
 0x3e2   : > { %7423 = vmatpush3.bf16.msra.mxu1 %v7801_v51 }
 0x3e3   : > { %7424 = vmatprep.subr.bf16.mxu1 %v7802_v5 }
 0x3e6   : > { %7425 = vmatpush3.bf16.msra.mxu1 %v7802_v5 }
 0x43b   : > { %v7364_v24 = vpop.f32.mrb[16].mxu1 }
 0x43c   : > { %v2529_v33 = vadd.f32 %v7364_v24, %v9382_v22  ;;  %v2520_v60 = vpop.f32.mrb[17].mxu1 }
 0x43d   : > { %v2521_v13 = vadd.f32 %v9382_v22, %v2520_v60  ;;  %v7365_v16 = vpop.f32.mrb[18].mxu1 }
 0x43e   : > { %v9397_v45 = vadd.f32 %v2529_v33, %v1107_v1  ;;  %v2532_v36 = vadd.f32 %v7365_v16, %v9382_v22  ;;  %v2523_v20 = vpop.f32.mrb[19].mxu1 }
 0x43f   : > { %v9402_v63 = vadd.f32 %v2521_v13, %v1105_v32  ;;  %v2524_v27 = vadd.f32 %v9382_v22, %v2523_v20 }
 0x440   : > { %v9405_v44 = vadd.f32 %v2532_v36, %v1108_v23  ;;  %v10546_v15 = vmax.f32 %v9397_v45, 0.0  ;;  %v1115_v36 = vadd.f32 %v9387_v48, %v8718_v25  ;;  %v1114_v25 = vadd.f32 %v9387_v48, %v8701_v56 }
 0x441   : > { %v9407_v54 = vadd.f32 %v2524_v27, %v1106_v3  ;;  %v10545_v9 = vmax.f32 %v9402_v63, 0.0  ;;  %v1113_v27 = vadd.f32 %v9387_v48, %v8692_v42 }
 0x442   : > { %v10544_v0 = vmax.f32 %v9405_v44, 0.0 }
 0x443   : > { %v10543_v61 = vmax.f32 %v9407_v54, 0.0 }
 0x444   : > { %v3891_v28 = vpack.c.bf16 %v10544_v0, %v10546_v15  ;;  %v7810_v0 = vld [vmem:[#allocation14 + $0x38] sm:$0xff]  }
 0x445   : > { %v3890_v57 = vpack.c.bf16 %v10543_v61, %v10545_v9 }
 0x447   : > { %7458 = vmatprep.mubr.bf16.mxu0 %v3890_v57 }
 0x448   : > { %7459 = vmatmul.mubr.bf16.vlgmr.msra.gmra.mrb[64].mxu0 %v3891_v28 }
 0x45b   : > { %v7368_v62 = vpop.f32.mrb[20].mxu1 }
 0x45c   : > { %v2545_v26 = vadd.f32 %v7368_v62, %v9382_v22  ;;  %v2536_v18 = vpop.f32.mrb[21].mxu1  ;;  %v1116_v62 = vadd.f32 %v9387_v48, %v8725_v35 }
 0x45d   : > { %v2537_v41 = vadd.f32 %v9382_v22, %v2536_v18  ;;  %v7369_v6 = vpop.f32.mrb[22].mxu1 }
 0x45e   : > { %v9429_v12 = vadd.f32 %v2545_v26, %v1111_v52  ;;  %v2548_v51 = vadd.f32 %v7369_v6, %v9382_v22  ;;  %v2539_v5 = vpop.f32.mrb[23].mxu1 }
 0x45f   : > { %v9434_v24 = vadd.f32 %v2537_v41, %v1109_v4  ;;  %v2540_v1 = vadd.f32 %v9382_v22, %v2539_v5 }
 0x460   : > { %v9437_v33 = vadd.f32 %v2548_v51, %v1112_v53  ;;  %v10542_v13 = vmax.f32 %v9429_v12, 0.0 }
 0x461   : > { %v9439_v21 = vadd.f32 %v2540_v1, %v1110_v58  ;;  %v10541_v7 = vmax.f32 %v9434_v24, 0.0 }
 0x462   : > { %v10540_v60 = vmax.f32 %v9437_v33, 0.0 }
 0x463   : > { %v10539_v32 = vmax.f32 %v9439_v21, 0.0 }
 0x464   : > { %v3893_v16 = vpack.c.bf16 %v10540_v60, %v10542_v13 }
 0x465   : > { %v3892_v29 = vpack.c.bf16 %v10539_v32, %v10541_v7 }
 0x467   : > { %7462 = vmatprep.mubr.bf16.mxu0 %v3892_v29  ;;  %v1119_v29 = vadd.f32 %v9387_v48, %v8772_v59  ;;  %v1118_v59 = vadd.f32 %v9387_v48, %v8750_v19 }
 0x468   : > { %7463 = vmatmul.mubr.bf16.gmra.mrb[68].mxu0 %v3893_v16 }
 0x47b   : > { %v7372_v23 = vpop.f32.mrb[24].mxu1 }
 0x47c   : > { %v2561_v20 = vadd.f32 %v7372_v23, %v9382_v22  ;;  %v2552_v3 = vpop.f32.mrb[25].mxu1 }
 0x47d   : > { %v2553_v57 = vadd.f32 %v9382_v22, %v2552_v3  ;;  %v7373_v28 = vpop.f32.mrb[26].mxu1 }
 0x47e   : > { %v9461_v52 = vadd.f32 %v2561_v20, %v1115_v36  ;;  %v2564_v26 = vadd.f32 %v7373_v28, %v9382_v22  ;;  %v2555_v18 = vpop.f32.mrb[27].mxu1  ;;  %v1117_v36 = vadd.f32 %v9387_v48, %v8743_v8 }
 0x47f   : > { %v9466_v4 = vadd.f32 %v2553_v57, %v1113_v27  ;;  %v2556_v41 = vadd.f32 %v9382_v22, %v2555_v18  ;;  %v1120_v27 = vadd.f32 %v9387_v48, %v8776_v14 }
 0x480   : > { %v9469_v6 = vadd.f32 %v2564_v26, %v1116_v62  ;;  %v10538_v5 = vmax.f32 %v9461_v52, 0.0 }
 0x481   : > { %v9471_v42 = vadd.f32 %v2556_v41, %v1114_v25  ;;  %v10535_v35 = vmax.f32 %v9466_v4, 0.0 }
 0x482   : > { %v10534_v53 = vmax.f32 %v9469_v6, 0.0 }
 0x483   : > { %v10531_v51 = vmax.f32 %v9471_v42, 0.0 }
 0x484   : > { %v3895_v58 = vpack.c.bf16 %v10534_v53, %v10538_v5  ;;  %v4443_v53 = vld [vmem:[#allocation2 + $0x8] sm:$0x1] }
 0x485   : > { %v3894_v56 = vpack.c.bf16 %v10531_v51, %v10535_v35 }
 0x487   : > { %7466 = vmatprep.mubr.bf16.mxu0 %v3894_v56 }
 0x488   : > { %7467 = vmatmul.mubr.bf16.gmra.mrb[72].mxu0 %v3895_v58 }
 0x494   : > { %v7376_v1 = vpop.f32.mrb[28].mxu1 }
 0x495   : > { %v2577_v16 = vadd.f32 %v7376_v1, %v9382_v22  ;;  %v2568_v23 = vpop.f32.mrb[29].mxu1 }
 0x496   : > { %v2569_v20 = vadd.f32 %v9382_v22, %v2568_v23  ;;  %v7377_v3 = vpop.f32.mrb[30].mxu1 }
 0x497   : > { %v9493_v57 = vadd.f32 %v2577_v16, %v1119_v29  ;;  %v2580_v28 = vadd.f32 %v7377_v3, %v9382_v22  ;;  %v2571_v62 = vpop.f32.mrb[31].mxu1 }
 0x498   : > { %v9498_v26 = vadd.f32 %v2569_v20, %v1117_v36  ;;  %v2572_v18 = vadd.f32 %v9382_v22, %v2571_v62 }
 0x499   : > { %v9501_v25 = vadd.f32 %v2580_v28, %v1120_v27  ;;  %v10537_v1 = vmax.f32 %v9493_v57, 0.0 }
 0x49a   : > { %v9503_v8 = vadd.f32 %v2572_v18, %v1118_v59  ;;  %v10533_v14 = vmax.f32 %v9498_v26, 0.0 }
 0x49b   : > { %v10536_v41 = vmax.f32 %v9501_v25, 0.0 }
 0x49c   : > { %v10532_v56 = vmax.f32 %v9503_v8, 0.0  ;;  %v7396_v58 = vpop.f32.mrb[32].mxu1 }
 0x49d   : > { %v3564_v29 = vadd.f32 %v7396_v58, %v9357_v49  ;;  %v3555_v19 = vpop.f32.mrb[33].mxu1  ;;  %v3897_v3 = vpack.c.bf16 %v10536_v41, %v10537_v1 }
 0x49e   : > { %v3556_v16 = vadd.f32 %v9357_v49, %v3555_v19  ;;  %v7397_v23 = vpop.f32.mrb[34].mxu1  ;;  %v3896_v22 = vpack.c.bf16 %v10532_v56, %v10533_v14  ;;  %v4461_v56 = vshll.u32 %v9286_v11, 16 }
 0x49f   : > { %v3567_v36 = vadd.f32 %v7397_v23, %v9357_v49  ;;  %v3558_v20 = vpop.f32.mrb[35].mxu1  ;;  %v3620_v28 = vmax.f32 %v3564_v29, 0.0 }
 0x4a0   : > { %v3559_v27 = vadd.f32 %v9357_v49, %v3558_v20  ;;  %7470 = vmatprep.mubr.bf16.mxu0 %v3896_v22  ;;  %v3618_v59 = vmax.f32 %v3556_v16, 0.0  ;;  %v4459_v22 = vshrl.u32 %v9286_v11, 16  ;;  %v4463_v29 = vrot.slane %v4461_v56, 1  ;;  %v4586_v11 = vld [vmem:[#allocation2] sm:$0xfe] }
 0x4a1   : > { %v3621_v62 = vmax.f32 %v3567_v36, 0.0  ;;  %7471 = vmatmul.mubr.bf16.gmra.mrb[76].mxu0 %v3897_v3  ;;  %v4466_v36 = vshll.u32 %v4443_v53, 16  ;;  %v4587_v56 = vld [vmem:[#allocation2 + $0x8] sm:$0x1] }
 0x4a2   : > { %v3619_v18 = vmax.f32 %v3559_v27, 0.0 }
 0x4a3   : > { %v3635_v58 = vpack.c.bf16 %v3621_v62, %v3620_v28  ;;  %v4464_v62 = vor.u32 %v4463_v29, %v4459_v22 }
 0x4a4   : > { %v3634_v19 = vpack.c.bf16 %v3619_v18, %v3618_v59  ;;  %v7400_v51 = vpop.f32.mrb[36].mxu1 }
 0x4a5   : > { %v3580_v23 = vadd.f32 %v7400_v51, %v9357_v49  ;;  %v3571_v14 = vpop.f32.mrb[37].mxu1  ;;  %v4468_v51 = vrot.slane %v4466_v36, 1 }
 0x4a6   : > { %v3572_v35 = vadd.f32 %v9357_v49, %v3571_v14  ;;  %v7401_v41 = vpop.f32.mrb[38].mxu1  ;;  %7426 = vmatprep.mubr.bf16.mxu1 %v3634_v19 }
 0x4a7   : > { %v3624_v20 = vmax.f32 %v3580_v23, 0.0  ;;  %v3583_v16 = vadd.f32 %v7401_v41, %v9357_v49  ;;  %v3574_v3 = vpop.f32.mrb[39].mxu1  ;;  %7427 = vmatmul.mubr.bf16.vlgmr.msra.gmra.mrb[48].mxu1 %v3635_v58  ;;  %v4469_v14 = vsel %vm1428_vm5, %v4464_v62, %v4468_v51  ;;  %v4618_v23 = vrot.slane %v4586_v11, 1 }
 0x4a8   : > { %v3622_v27 = vmax.f32 %v3572_v35, 0.0  ;;  %v3575_v28 = vadd.f32 %v9357_v49, %v3574_v3  ;;  %4554 = vrot.lane.b32.xlu0 %v4469_v14, %s10570_s20  ;;  %v4619_v41 = vrot.slane %v4587_v56, 1 }
 0x4a9   : > { %v3625_v59 = vmax.f32 %v3583_v16, 0.0 }
 0x4aa   : > { %v3623_v18 = vmax.f32 %v3575_v28, 0.0  ;;  %v4620_v29 = vsel %vm1590_vm6, %v4618_v23, %v4619_v41 }
 0x4ab   : > { %v3637_v1 = vpack.c.bf16 %v3625_v59, %v3624_v20 }
 0x4ac   : > { %v3636_v53 = vpack.c.bf16 %v3623_v18, %v3622_v27  ;;  %v7404_v19 = vpop.f32.mrb[40].mxu1  ;;  %4642 = vrot.lane.b32.xlu0 %v4620_v29, %s8132_s9 }
 0x4ad   : > { %v3596_v58 = vadd.f32 %v7404_v19, %v9357_v49  ;;  %v3587_v35 = vpop.f32.mrb[41].mxu1 }
 0x4ae   : > { %v3588_v3 = vadd.f32 %v9357_v49, %v3587_v35  ;;  %v7405_v22 = vpop.f32.mrb[42].mxu1  ;;  %7430 = vmatprep.mubr.bf16.mxu1 %v3636_v53 }
 0x4af   : > { %v3628_v36 = vmax.f32 %v3596_v58, 0.0  ;;  %v3599_v20 = vadd.f32 %v7405_v22, %v9357_v49  ;;  %v3590_v16 = vpop.f32.mrb[43].mxu1  ;;  %7431 = vmatmul.mubr.bf16.gmra.mrb[52].mxu1 %v3637_v1 }
 0x4b0   : > { %v3626_v27 = vmax.f32 %v3588_v3, 0.0  ;;  %v3591_v28 = vadd.f32 %v9357_v49, %v3590_v16 }
 0x4b1   : > { %v3629_v62 = vmax.f32 %v3599_v20, 0.0  ;;  %v9542_v20 = vld [vmem:[%s10612_s13] ss:$0 sm:$0xff] }
 0x4b2   : > { %v3627_v51 = vmax.f32 %v3591_v28, 0.0 }
 0x4b3   : > { %v3639_v59 = vpack.c.bf16 %v3629_v62, %v3628_v36 }
 0x4b4   : > { %v3638_v18 = vpack.c.bf16 %v3627_v51, %v3626_v27  ;;  %v7408_v14 = vpop.f32.mrb[44].mxu1 }
 0x4b5   : > { %v3612_v11 = vadd.f32 %v7408_v14, %v9357_v49  ;;  %v3603_v56 = vpop.f32.mrb[45].mxu1 }
 0x4b6   : > { %v3604_v53 = vadd.f32 %v9357_v49, %v3603_v56  ;;  %v7409_v19 = vpop.f32.mrb[46].mxu1  ;;  %7434 = vmatprep.mubr.bf16.mxu1 %v3638_v18 }
 0x4b7   : > { %v3632_v23 = vmax.f32 %v3612_v11, 0.0  ;;  %v3615_v1 = vadd.f32 %v7409_v19, %v9357_v49  ;;  %v3606_v41 = vpop.f32.mrb[47].mxu1  ;;  %7435 = vmatmul.mubr.bf16.gmra.mrb[56].mxu1 %v3639_v59 }
 0x4b8   : > { %v3630_v58 = vmax.f32 %v3604_v53, 0.0  ;;  %v3607_v35 = vadd.f32 %v9357_v49, %v3606_v41 }
 0x4b9   : > { %v3633_v3 = vmax.f32 %v3615_v1, 0.0 }
 0x4ba   : > { %v3631_v22 = vmax.f32 %v3607_v35, 0.0 }
 0x4bb   : > { %v3641_v29 = vpack.c.bf16 %v3633_v3, %v3632_v23 }
 0x4bc   : > { %v3640_v36 = vpack.c.bf16 %v3631_v22, %v3630_v58 }
 0x4be   : > { %7438 = vmatprep.mubr.bf16.mxu1 %v3640_v36 }
 0x4bf   : > { %7439 = vmatmul.mubr.bf16.gmra.mrb[60].mxu1 %v3641_v29  ;;  %v4339_v29 = vld [vmem:[#allocation2 + $0x28] sm:$0x1] }
 0x51a   : > { %v4555_v62 = vpop.permute.xlu0 %4554 }
 0x51b   : > { %v7460_v16 = vpop.f32.mrb[64].mxu0  ;;  %4578 = vst.msk [vmem:[#allocation3] sm:$0xff] %vm1549_vm9, %v4555_v62 }
 0x51c   : > { %v4020_v27 = vadd.f32 %v7460_v16, %v9542_v20  ;;  %v4011_v28 = vpop.f32.mrb[65].mxu0 }
 0x51d   : > { %v4012_v51 = vadd.f32 %v9542_v20, %v4011_v28  ;;  %v7461_v59 = vpop.f32.mrb[66].mxu0 }
 0x51e   : > { %v4023_v49 = vadd.f32 %v7461_v59, %v9542_v20  ;;  %v4014_v18 = vpop.f32.mrb[67].mxu0  ;;  %v4140_v11 = vmax.f32 %v4020_v27, 0.0  ;;  %v4643_v53 = vpop.permute.xlu0 %4642  ;;  %v4333_v27 = vld [vmem:[#allocation2 + $0x18] sm:$0x1]  ;;  %v4336_v59 = vld [vmem:[#allocation2 + $0x20] sm:$0xff] }
 0x51f   : > { %v4015_v14 = vadd.f32 %v9542_v20, %v4014_v18  ;;  %v4138_v19 = vmax.f32 %v4012_v51, 0.0  ;;  %4666 = vst.msk [vmem:[#allocation3] sm:$0xff] %vm1639_vm10, %v4643_v53 }
 0x520   : > { %v4141_v56 = vmax.f32 %v4023_v49, 0.0 }
 0x521   : > { %v4139_v23 = vmax.f32 %v4015_v14, 0.0  ;;  %v4330_v14 = vld [vmem:[#allocation2 + $0x10] sm:$0xff] }
 0x522   : > { %v4171_v1 = vpack.c.bf16 %v4141_v56, %v4140_v11 }
 0x523   : > { %v4170_v41 = vpack.c.bf16 %v4139_v23, %v4138_v19 }
 0x524   : > { %v4194_v58 = vshrl.u32 %v4171_v1, 16  ;;  %v4197_v22 = vshll.u32 %v4171_v1, 16 }
 0x525   : > { %v4187_v35 = vshrl.u32 %v4170_v41, 16  ;;  %v4190_v16 = vshll.u32 %v4170_v41, 16 }
 0x526   : > { %v4196_v3 = vrot.slane %v4194_v58, 7 }
 0x527   : > { %v4189_v36 = vrot.slane %v4187_v35, 7 }
 0x528   : > { %v4199_v28 = vor.u32 %v4197_v22, %v4196_v3  ;;  %v4340_v62 = vsel %vm8552_vm4, %v4196_v3, %v4339_v29 }
 0x529   : > { %4341 = vst [vmem:[#allocation2 + $0x28] sm:$0x1] %v4340_v62  ;;  %v4192_v51 = vor.u32 %v4190_v16, %v4189_v36  ;;  %v4334_v49 = vsel %vm8552_vm4, %v4189_v36, %v4333_v27 }
 0x52a   : > { %v4337_v18 = vsel %vm8644_vm12, %v4199_v28, %v4336_v59  ;;  %4335 = vst [vmem:[#allocation2 + $0x18] sm:$0x1] %v4334_v49 }
 0x52b   : > { %4338 = vst [vmem:[#allocation2 + $0x20] sm:$0xff] %v4337_v18  ;;  %v9558_v11 = vsel %vm8644_vm12, %v4192_v51, %v4330_v14  ;;  %4970 = vrot.lane.b32.xlu0 %v4337_v18, %s8136_s14  ;;  %4692 = vrot.lane.b32.xlu1 %v4337_v18, %s8133_s25  ;;  %v4753_v23 = vshll.u32 %v4337_v18, 16 }
 0x52c   : > { %4332 = vst [vmem:[#allocation2 + $0x10] sm:$0xff] %v9558_v11 }
 0x52d   : > { %v4755_v32 = vrot.slane %v4753_v23, 1 }
 0x52f   : > { %4690 = vrot.lane.b32.xlu0 %v9558_v11, %s8133_s25 }
 0x530   : > { %v4869_v56 = vld [vmem:[#allocation2 + $0x28] sm:$0x1] }
 0x531   : > { %v5147_v53 = vld [vmem:[#allocation2 + $0x28] sm:$0x1]  ;;  %v4902_v19 = vrot.slane %v4869_v56, 1  ;;  %v4589_v28 = vld [vmem:[#allocation2 + $0x18] sm:$0x1] }
 0x532   : > { %v4868_v1 = vld [vmem:[#allocation2 + $0x20] sm:$0xfe]  ;;  %v5179_v58 = vrot.slane %v5147_v53, 1  ;;  %v4591_v35 = vld [vmem:[#allocation2 + $0x28] sm:$0x1] }
 0x533   : > { %v5146_v41 = vld [vmem:[#allocation2 + $0x20] sm:$0xfe]  ;;  %v4901_v22 = vrot.slane %v4868_v1, 1  ;;  %v4588_v36 = vld [vmem:[#allocation2 + $0x10] sm:$0xfe]  ;;  %v4622_v1 = vrot.slane %v4589_v28, 1 }
 0x534   : > { %v4428_v3 = vld [vmem:[#allocation2 + $0x20] sm:$0xff]  ;;  %v5178_v29 = vrot.slane %v5146_v41, 1  ;;  %v4621_v62 = vrot.slane %v4588_v36, 1  ;;  %v4725_v27 = vld [vmem:[#allocation2 + $0x28] sm:$0x1]  ;;  %v4625_v41 = vrot.slane %v4591_v35, 1 }
 0x535   : > { %v4590_v16 = vld [vmem:[#allocation2 + $0x20] sm:$0xfe]  ;;  %4436 = vst.msk [vmem:[#allocation3 + $0x10] sm:$0xff] %vm1403_vm8, %v4428_v3  ;;  %v4903_v59 = vsel %vm1590_vm6, %v4901_v22, %v4902_v19  ;;  %v4758_v14 = vshll.u32 %v4725_v27, 16  ;;  %v4866_v56 = vld [vmem:[#allocation2 + $0x10] sm:$0xfe] }
 0x536   : > { %v5180_v51 = vsel %vm1590_vm6, %v5178_v29, %v5179_v58  ;;  %v4624_v49 = vrot.slane %v4590_v16, 1  ;;  %v4447_v5 = vld [vmem:[#allocation2 + $0x28] sm:$0x1]  ;;  %4924 = vrot.lane.b32.xlu1 %v4903_v59, %s8134_s23  ;;  %v4867_v3 = vld [vmem:[#allocation2 + $0x18] sm:$0x1]  ;;  %v4427_v60 = vld [vmem:[#allocation2 + $0x10] sm:$0xff]  ;;  %v4623_v19 = vsel %vm1590_vm6, %v4621_v62, %v4622_v1 }
 0x537   : > { %5202 = vrot.lane.b32.xlu0 %v5180_v51, %s8137_s1  ;;  %v5003_v53 = vld [vmem:[#allocation2 + $0x28] sm:$0x1]  ;;  %v4751_v36 = vshrl.u32 %v4337_v18, 16  ;;  %v4898_v7 = vrot.slane %v4866_v56, 1  ;;  %v4490_v13 = vshll.u32 %v4447_v5, 16  ;;  %4435 = vst.msk [vmem:[#allocation3 + $0x8] sm:$0xff] %vm1403_vm8, %v4427_v60 }
 0x538   : > { %v4626_v58 = vsel %vm1590_vm6, %v4624_v49, %v4625_v41  ;;  %v4760_v22 = vrot.slane %v4758_v14, 1  ;;  %v5026_v29 = vshll.u32 %v5003_v53, 16  ;;  %v4445_v16 = vld [vmem:[#allocation2 + $0x18] sm:$0x1]  ;;  %v4899_v35 = vrot.slane %v4867_v3, 1  ;;  %v7803_v41 = vld [vmem:[#allocation14] sm:$0xff]  }
 0x539   : > { %v4723_v23 = vld [vmem:[#allocation2 + $0x18] sm:$0x1]  ;;  %v4756_v27 = vor.u32 %v4755_v32, %v4751_v36  ;;  %v4473_v18 = vshll.u32 %v9558_v11, 16  ;;  %v4492_v59 = vrot.slane %v4490_v13, 1  ;;  %v4478_v51 = vshll.u32 %v4445_v16, 16  ;;  %7490 = vmatprep.subr.bf16.mxu1 %v7803_v41 }
 0x53a   : > { %4644 = vrot.lane.b32.xlu1 %v4623_v19, %s8132_s9  ;;  %v4900_v62 = vsel %vm1590_vm6, %v4898_v7, %v4899_v35  ;;  %v5028_v53 = vrot.slane %v5026_v29, 1  ;;  %v4746_v1 = vshll.u32 %v4723_v23, 16  ;;  %v4471_v7 = vshrl.u32 %v9558_v11, 16  ;;  %7491 = vmatpush3.bf16.msra.mxu1 %v7803_v41 }
 0x53b   : > { %4646 = vrot.lane.b32.xlu0 %v4626_v58, %s8132_s9  ;;  %v7464_v28 = vpop.f32.mrb[68].mxu0  ;;  %v4761_v56 = vsel %vm1428_vm5, %v4756_v27, %v4760_v22  ;;  %v4475_v13 = vrot.slane %v4473_v18, 1  ;;  %v4493_v22 = vsel %vm1428_vm5, %v4756_v27, %v4492_v59  ;;  %v4480_v29 = vrot.slane %v4478_v51, 1  ;;  %v7804_v51 = vld [vmem:[#allocation14 + $0x8] sm:$0xff]  }
 0x53c   : > { %v4036_v5 = vadd.f32 %v7464_v28, %v9542_v20  ;;  %v4027_v60 = vpop.f32.mrb[69].mxu0  ;;  %v5029_v23 = vsel %vm1428_vm5, %v4756_v27, %v5028_v53  ;;  %v4748_v28 = vrot.slane %v4746_v1, 1  ;;  %v4351_v27 = vld [vmem:[#allocation2 + $0x48] sm:$0x1]  ;;  %7492 = vmatprep.subr.bf16.mxu1 %v7804_v51 }
 0x53d   : > { %v4028_v49 = vadd.f32 %v9542_v20, %v4027_v60  ;;  %v7465_v14 = vpop.f32.mrb[70].mxu0  ;;  %v4476_v11 = vor.u32 %v4475_v13, %v4471_v7  ;;  %v4348_v7 = vld [vmem:[#allocation2 + $0x40] sm:$0xff] }
 0x53e   : > { %v4039_v3 = vadd.f32 %v7465_v14, %v9542_v20  ;;  %v4030_v32 = vpop.f32.mrb[71].mxu0  ;;  %4836 = vrot.lane.b32.xlu1 %v4761_v56, %s10568_s24  ;;  %v4144_v19 = vmax.f32 %v4036_v5, 0.0  ;;  %7493 = vmatpush3.bf16.msra.mxu1 %v7804_v51 }
 0x53f   : > { %4922 = vrot.lane.b32.xlu0 %v4900_v62, %s8134_s23  ;;  %v4031_v36 = vadd.f32 %v9542_v20, %v4030_v32  ;;  %v4142_v16 = vmax.f32 %v4028_v49, 0.0  ;;  %v4481_v5 = vsel %vm1428_vm5, %v4476_v11, %v4480_v29  ;;  %v4749_v59 = vsel %vm1428_vm5, %v4476_v11, %v4748_v28  ;;  %v4345_v32 = vld [vmem:[#allocation2 + $0x38] sm:$0x1] }
 0x540   : > { %v4145_v58 = vmax.f32 %v4039_v3, 0.0 }
 0x541   : > { %v4143_v35 = vmax.f32 %v4031_v36, 0.0  ;;  %v7805_v36 = vld [vmem:[#allocation14 + $0x10] sm:$0xff]  }
 0x542   : > { %v4173_v60 = vpack.c.bf16 %v4145_v58, %v4144_v19  ;;  %4558 = vrot.lane.b32.xlu1 %v4493_v22, %s10570_s20  ;;  %v4342_v22 = vld [vmem:[#allocation2 + $0x30] sm:$0xff]  ;;  %7494 = vmatprep.subr.bf16.mxu1 %v7805_v36 }
 0x543   : > { %5114 = vrot.lane.b32.xlu0 %v5029_v23, %s10613_s28  ;;  %v4172_v62 = vpack.c.bf16 %v4143_v35, %v4142_v16  ;;  %7495 = vmatpush3.bf16.msra.mxu1 %v7805_v36  ;;  %v7806_v16 = vld [vmem:[#allocation14 + $0x18] sm:$0xff]  }
 0x544   : > { %v4208_v18 = vshrl.u32 %v4173_v60, 16  ;;  %v4211_v49 = vshll.u32 %v4173_v60, 16  ;;  %7496 = vmatprep.subr.bf16.mxu1 %v7806_v16  ;;  %v7807_v60 = vld [vmem:[#allocation14 + $0x20] sm:$0xff]  }
 0x545   : > { %v4201_v14 = vshrl.u32 %v4172_v62, 16  ;;  %v4204_v1 = vshll.u32 %v4172_v62, 16 }
 0x546   : > { %v4210_v56 = vrot.slane %v4208_v18, 7  ;;  %4556 = vrot.lane.b32.xlu1 %v4481_v5, %s10570_s20 }
 0x547   : > { %4834 = vrot.lane.b32.xlu0 %v4749_v59, %s10568_s24  ;;  %v4203_v53 = vrot.slane %v4201_v14, 7  ;;  %7497 = vmatpush3.bf16.msra.mxu1 %v7806_v16  ;;  %v7808_v16 = vld [vmem:[#allocation14 + $0x28] sm:$0xff]  }
 0x548   : > { %v4213_v41 = vor.u32 %v4211_v49, %v4210_v56  ;;  %v4352_v3 = vsel %vm8552_vm4, %v4210_v56, %v4351_v27  ;;  %7498 = vmatprep.subr.bf16.mxu1 %v7807_v60 }
 0x549   : > { %4353 = vst [vmem:[#allocation2 + $0x48] sm:$0x1] %v4352_v3  ;;  %v4206_v13 = vor.u32 %v4204_v1, %v4203_v53  ;;  %v4346_v19 = vsel %vm8552_vm4, %v4203_v53, %v4345_v32 }
 0x54a   : > { %v9599_v58 = vsel %vm8644_vm12, %v4213_v41, %v4348_v7  ;;  %4347 = vst [vmem:[#allocation2 + $0x38] sm:$0x1] %v4346_v19 }
 0x54b   : > { %4350 = vst [vmem:[#allocation2 + $0x40] sm:$0xff] %v9599_v58  ;;  %v9604_v29 = vsel %vm8644_vm12, %v4206_v13, %v4342_v22  ;;  %4974 = vrot.lane.b32.xlu0 %v9599_v58, %s8136_s14  ;;  %4696 = vrot.lane.b32.xlu1 %v9599_v58, %s8133_s25  ;;  %v4777_v28 = vshll.u32 %v9599_v58, 16 }
 0x54c   : > { %4344 = vst [vmem:[#allocation2 + $0x30] sm:$0xff] %v9604_v29  ;;  %7499 = vmatpush3.bf16.msra.mxu1 %v7807_v60 }
 0x54d   : > { %v4779_v19 = vrot.slane %v4777_v28, 1  ;;  %7500 = vmatprep.subr.bf16.mxu1 %v7808_v16 }
 0x54f   : > { %4694 = vrot.lane.b32.xlu0 %v9604_v29, %s8133_s25  ;;  %4972 = vrot.lane.b32.xlu1 %v9604_v29, %s8136_s14 }
 0x550   : > { %v5151_v35 = vld [vmem:[#allocation2 + $0x48] sm:$0x1]  ;;  %7501 = vmatpush3.bf16.msra.mxu1 %v7808_v16 }
 0x551   : > { %v4873_v23 = vld [vmem:[#allocation2 + $0x48] sm:$0x1]  ;;  %v5185_v5 = vrot.slane %v5151_v35, 1  ;;  %v4593_v53 = vld [vmem:[#allocation2 + $0x38] sm:$0x1] }
 0x552   : > { %v5150_v62 = vld [vmem:[#allocation2 + $0x40] sm:$0xfe]  ;;  %v4908_v51 = vrot.slane %v4873_v23, 1  ;;  %v4595_v49 = vld [vmem:[#allocation2 + $0x48] sm:$0x1]  ;;  %v4628_v23 = vrot.slane %v4593_v53, 1 }
 0x553   : > { %v4872_v11 = vld [vmem:[#allocation2 + $0x40] sm:$0xfe]  ;;  %v5184_v14 = vrot.slane %v5150_v62, 1  ;;  %v4592_v56 = vld [vmem:[#allocation2 + $0x30] sm:$0xfe]  ;;  %v4631_v35 = vrot.slane %v4595_v49, 1 }
 0x554   : > { %v4594_v18 = vld [vmem:[#allocation2 + $0x40] sm:$0xfe]  ;;  %v4907_v59 = vrot.slane %v4872_v11, 1  ;;  %v4627_v32 = vrot.slane %v4592_v56, 1  ;;  %v5148_v36 = vld [vmem:[#allocation2 + $0x30] sm:$0xfe] }
 0x555   : > { %v4630_v27 = vrot.slane %v4594_v18, 1  ;;  %v4430_v1 = vld [vmem:[#allocation2 + $0x40] sm:$0xff]  ;;  %v5186_v41 = vsel %vm1590_vm6, %v5184_v14, %v5185_v5  ;;  %v4729_v7 = vld [vmem:[#allocation2 + $0x48] sm:$0x1]  ;;  %v4429_v13 = vld [vmem:[#allocation2 + $0x30] sm:$0xff]  ;;  %v5181_v11 = vrot.slane %v5148_v36, 1 }
 0x556   : > { %v4909_v3 = vsel %vm1590_vm6, %v4907_v59, %v4908_v51  ;;  %4438 = vst.msk [vmem:[#allocation3 + $0x20] sm:$0xff] %vm1403_vm8, %v4430_v1  ;;  %5206 = vrot.lane.b32.xlu0 %v5186_v41, %s8137_s1  ;;  %v4782_v22 = vshll.u32 %v4729_v7, 16  ;;  %4437 = vst.msk [vmem:[#allocation3 + $0x18] sm:$0xff] %vm1403_vm8, %v4429_v13  ;;  %v5149_v60 = vld [vmem:[#allocation2 + $0x38] sm:$0x1]  ;;  %v4775_v18 = vshrl.u32 %v9599_v58, 16  ;;  %v4629_v51 = vsel %vm1590_vm6, %v4627_v32, %v4628_v23 }
 0x557   : > { %4928 = vrot.lane.b32.xlu1 %v4909_v3, %s8134_s23  ;;  %v4451_v62 = vld [vmem:[#allocation2 + $0x48] sm:$0x1]  ;;  %v4870_v14 = vld [vmem:[#allocation2 + $0x30] sm:$0xfe]  ;;  %v4632_v59 = vsel %vm1590_vm6, %v4630_v27, %v4631_v35  ;;  %v4871_v28 = vld [vmem:[#allocation2 + $0x38] sm:$0x1] }
 0x558   : > { %v5007_v5 = vld [vmem:[#allocation2 + $0x48] sm:$0x1]  ;;  %v4784_v56 = vrot.slane %v4782_v22, 1  ;;  %v4514_v1 = vshll.u32 %v4451_v62, 16  ;;  %v5005_v41 = vld [vmem:[#allocation2 + $0x38] sm:$0x1]  ;;  %v4780_v36 = vor.u32 %v4779_v19, %v4775_v18 }
 0x559   : > { %v5033_v49 = vshll.u32 %v9604_v29, 16  ;;  %v7809_v53 = vld [vmem:[#allocation14 + $0x30] sm:$0xff]   ;;  %v5182_v3 = vrot.slane %v5149_v60, 1  ;;  %v4904_v7 = vrot.slane %v4870_v14, 1  ;;  %v5050_v13 = vshll.u32 %v5007_v5, 16 }
 0x55a   : > { %4650 = vrot.lane.b32.xlu0 %v4632_v59, %s8132_s9  ;;  %v4905_v22 = vrot.slane %v4871_v28, 1  ;;  %v5038_v35 = vshll.u32 %v5005_v41, 16  ;;  %7502 = vmatprep.subr.bf16.mxu1 %v7809_v53  ;;  %v4785_v59 = vsel %vm1428_vm5, %v4780_v36, %v4784_v56  ;;  %v4727_v61 = vld [vmem:[#allocation2 + $0x38] sm:$0x1]  ;;  %v5031_v18 = vshrl.u32 %v9604_v29, 16 }
 0x55b   : > { %4648 = vrot.lane.b32.xlu1 %v4629_v51, %s8132_s9  ;;  %v7468_v58 = vpop.f32.mrb[72].mxu0  ;;  %v5183_v62 = vsel %vm1590_vm6, %v5181_v11, %v5182_v3  ;;  %v4516_v51 = vrot.slane %v4514_v1, 1  ;;  %7503 = vmatpush3.bf16.msra.mxu1 %v7809_v53  ;;  %v4449_v14 = vld [vmem:[#allocation2 + $0x38] sm:$0x1]  ;;  %v5052_v11 = vrot.slane %v5050_v13, 1  ;;  %v5035_v41 = vrot.slane %v5033_v49, 1 }
 0x55c   : > { %v4052_v27 = vadd.f32 %v7468_v58, %v9542_v20  ;;  %v4043_v32 = vpop.f32.mrb[73].mxu0  ;;  %v4906_v28 = vsel %vm1590_vm6, %v4904_v7, %v4905_v22  ;;  %v5040_v58 = vrot.slane %v5038_v35, 1  ;;  %v4770_v53 = vshll.u32 %v4727_v61, 16  ;;  %7504 = vmatprep.subr.bf16.mxu1 %v7810_v0 }
 0x55d   : > { %v4044_v16 = vadd.f32 %v9542_v20, %v4043_v32  ;;  %v7469_v23 = vpop.f32.mrb[74].mxu0  ;;  %v5053_v49 = vsel %vm1428_vm5, %v4780_v36, %v5052_v11 }
 0x55e   : > { %v4055_v19 = vadd.f32 %v7469_v23, %v9542_v20  ;;  %v4046_v60 = vpop.f32.mrb[75].mxu0  ;;  %5204 = vrot.lane.b32.xlu0 %v5183_v62, %s8137_s1  ;;  %v4148_v56 = vmax.f32 %v4052_v27, 0.0  ;;  %v4517_v23 = vsel %vm1428_vm5, %v4780_v36, %v4516_v51  ;;  %v4502_v62 = vshll.u32 %v4449_v14, 16  ;;  %v4363_v51 = vld [vmem:[#allocation2 + $0x68] sm:$0x1] }
 0x55f   : > { %4840 = vrot.lane.b32.xlu1 %v4785_v59, %s10568_s24  ;;  %v4047_v5 = vadd.f32 %v9542_v20, %v4046_v60  ;;  %v4146_v3 = vmax.f32 %v4044_v16, 0.0  ;;  %v5036_v60 = vor.u32 %v5035_v41, %v5031_v18  ;;  %7505 = vmatpush3.bf16.msra.mxu1 %v7810_v0  ;;  %v4772_v27 = vrot.slane %v4770_v53, 1  ;;  %v4357_v36 = vld [vmem:[#allocation2 + $0x58] sm:$0x1]  ;;  %v4360_v0 = vld [vmem:[#allocation2 + $0x60] sm:$0xff] }
 0x560   : > { %v4149_v1 = vmax.f32 %v4055_v19, 0.0  ;;  %v4504_v22 = vrot.slane %v4502_v62, 1 }
 0x561   : > { %v4147_v32 = vmax.f32 %v4047_v5, 0.0  ;;  %v5041_v61 = vsel %vm1428_vm5, %v5036_v60, %v5040_v58  ;;  %v4773_v41 = vsel %vm1428_vm5, %v5036_v60, %v4772_v27  ;;  %v4354_v58 = vld [vmem:[#allocation2 + $0x50] sm:$0xff]  ;;  %v9673_v27 = vadd.f32 %v9387_v48, %v8867_v17 }
 0x562   : > { %v4175_v59 = vpack.c.bf16 %v4149_v1, %v4148_v56  ;;  %4926 = vrot.lane.b32.xlu0 %v4906_v28, %s8134_s23  ;;  %v4505_v56 = vsel %vm1428_vm5, %v5036_v60, %v4504_v22 }
 0x563   : > { %4562 = vrot.lane.b32.xlu1 %v4517_v23, %s10570_s20  ;;  %v4174_v29 = vpack.c.bf16 %v4147_v32, %v4146_v3 }
 0x564   : > { %v4222_v7 = vshrl.u32 %v4175_v59, 16  ;;  %v4225_v16 = vshll.u32 %v4175_v59, 16  ;;  %v9661_v59 = vadd.f32 %v9387_v48, %v8789_v34 }
 0x565   : > { %v4215_v13 = vshrl.u32 %v4174_v29, 16  ;;  %v4218_v14 = vshll.u32 %v4174_v29, 16  ;;  %v9665_v29 = vadd.f32 %v9387_v48, %v8801_v46  ;;  %v9677_v46 = vadd.f32 %v9387_v48, %v8876_v37 }
 0x566   : > { %v4224_v35 = vrot.slane %v4222_v7, 7  ;;  %5118 = vrot.lane.b32.xlu0 %v5053_v49, %s10613_s28 }
 0x567   : > { %5116 = vrot.lane.b32.xlu1 %v5041_v61, %s10613_s28  ;;  %v4217_v19 = vrot.slane %v4215_v13, 7  ;;  %v9669_v61 = vadd.f32 %v9387_v48, %v8842_v38  ;;  %v9685_v38 = vadd.f32 %v9387_v48, %v8924_v2 }
 0x568   : > { %v4227_v18 = vor.u32 %v4225_v16, %v4224_v35  ;;  %v4364_v5 = vsel %vm8552_vm4, %v4224_v35, %v4363_v51  ;;  %v9681_v51 = vadd.f32 %v9387_v48, %v8909_v55 }
 0x569   : > { %4365 = vst [vmem:[#allocation2 + $0x68] sm:$0x1] %v4364_v5  ;;  %v4220_v28 = vor.u32 %v4218_v14, %v4217_v19  ;;  %v4358_v11 = vsel %vm8552_vm4, %v4217_v19, %v4357_v36 }
 0x56a   : > { %v4361_v1 = vsel %vm8644_vm12, %v4227_v18, %v4360_v0  ;;  %4359 = vst [vmem:[#allocation2 + $0x58] sm:$0x1] %v4358_v11  ;;  %4838 = vrot.lane.b32.xlu0 %v4773_v41, %s10568_s24  ;;  %v9691_v18 = vadd.f32 %v9387_v48, %v8959_v30  ;;  %v9700_v30 = vld [vmem:[%s10610_s22] ss:$0 sm:$0xff] }
 0x56b   : > { %4560 = vrot.lane.b32.xlu1 %v4505_v56, %s10570_s20  ;;  %4362 = vst [vmem:[#allocation2 + $0x60] sm:$0xff] %v4361_v1  ;;  %v4355_v53 = vsel %vm8644_vm12, %v4220_v28, %v4354_v58  ;;  %v4801_v3 = vshll.u32 %v4361_v1, 16  ;;  %v4799_v23 = vshrl.u32 %v4361_v1, 16 }
 0x56c   : > { %4356 = vst [vmem:[#allocation2 + $0x50] sm:$0xff] %v4355_v53  ;;  %v5057_v32 = vshll.u32 %v4355_v53, 16  ;;  %v5055_v62 = vshrl.u32 %v4355_v53, 16 }
 0x56d   : > { %v4803_v49 = vrot.slane %v4801_v3, 1 }
 0x56e   : > { %4978 = vrot.lane.b32.xlu0 %v4361_v1, %s8136_s14  ;;  %v5059_v13 = vrot.slane %v5057_v32, 1 }
 0x56f   : > { %4700 = vrot.lane.b32.xlu1 %v4361_v1, %s8133_s25  ;;  %v9694_v1 = vor.u32 %v4803_v49, %v4799_v23 }
 0x570   : > { %v5155_v60 = vld [vmem:[#allocation2 + $0x68] sm:$0x1] }
 0x571   : > { %v4877_v7 = vld [vmem:[#allocation2 + $0x68] sm:$0x1]  ;;  %v5191_v22 = vrot.slane %v5155_v60, 1  ;;  %v4597_v16 = vld [vmem:[#allocation2 + $0x58] sm:$0x1] }
 0x572   : > { %v4914_v35 = vrot.slane %v4877_v7, 1  ;;  %v4599_v34 = vld [vmem:[#allocation2 + $0x68] sm:$0x1]  ;;  %4698 = vrot.lane.b32.xlu0 %v4355_v53, %s8133_s25  ;;  %v5154_v17 = vld [vmem:[#allocation2 + $0x60] sm:$0xfe] }
 0x573   : > { %4976 = vrot.lane.b32.xlu1 %v4355_v53, %s8136_s14  ;;  %v4876_v19 = vld [vmem:[#allocation2 + $0x60] sm:$0xfe]  ;;  %v5190_v5 = vrot.slane %v5154_v17, 1  ;;  %v4596_v0 = vld [vmem:[#allocation2 + $0x50] sm:$0xfe]  ;;  %v4637_v11 = vrot.slane %v4599_v34, 1  ;;  %v9704_v34 = vor.u32 %v5059_v13, %v5055_v62 }
 0x574   : > { %v4598_v14 = vld [vmem:[#allocation2 + $0x60] sm:$0xfe]  ;;  %v7472_v37 = vpop.f32.mrb[76].mxu0  ;;  %v4913_v36 = vrot.slane %v4876_v19, 1  ;;  %v4633_v41 = vrot.slane %v4596_v0, 1  ;;  %v4431_v23 = vld [vmem:[#allocation2 + $0x50] sm:$0xff] }
 0x575   : > { %v4636_v55 = vrot.slane %v4598_v14, 1  ;;  %v4068_v28 = vadd.f32 %v7472_v37, %v9542_v20  ;;  %v4059_v2 = vpop.f32.mrb[77].mxu0  ;;  %v5152_v56 = vld [vmem:[#allocation2 + $0x50] sm:$0xfe]  ;;  %v4432_v58 = vld [vmem:[#allocation2 + $0x60] sm:$0xff]  ;;  %v5192_v48 = vsel %vm1590_vm6, %v5190_v5, %v5191_v22  ;;  %v4634_v14 = vrot.slane %v4597_v16, 1 }
 0x576   : > { %v4060_v53 = vadd.f32 %v9542_v20, %v4059_v2  ;;  %v7473_v3 = vpop.f32.mrb[78].mxu0  ;;  %v4915_v32 = vsel %vm1590_vm6, %v4913_v36, %v4914_v35  ;;  %v5153_v60 = vld [vmem:[#allocation2 + $0x58] sm:$0x1]  ;;  %v4733_v7 = vld [vmem:[#allocation2 + $0x68] sm:$0x1]  ;;  %4440 = vst.msk [vmem:[#allocation3 + $0x30] sm:$0xff] %vm1403_vm8, %v4432_v58  ;;  %5210 = vrot.lane.b32.xlu0 %v5192_v48, %s8137_s1 }
 0x577   : > { %v4071_v49 = vadd.f32 %v7473_v3, %v9542_v20  ;;  %v4062_v17 = vpop.f32.mrb[79].mxu0  ;;  %4932 = vrot.lane.b32.xlu1 %v4915_v32, %s8134_s23  ;;  %v4638_v19 = vsel %vm1590_vm6, %v4636_v55, %v4637_v11  ;;  %v5187_v22 = vrot.slane %v5152_v56, 1  ;;  %v4874_v37 = vld [vmem:[#allocation2 + $0x50] sm:$0xfe]  ;;  %4439 = vst.msk [vmem:[#allocation3 + $0x28] sm:$0xff] %vm1403_vm8, %v4431_v23  ;;  %v4152_v35 = vmax.f32 %v4068_v28, 0.0 }
 0x578   : > { %v4150_v62 = vmax.f32 %v4060_v53, 0.0  ;;  %v4063_v13 = vadd.f32 %v9542_v20, %v4062_v17  ;;  %v4806_v5 = vshll.u32 %v4733_v7, 16  ;;  %v4875_v36 = vld [vmem:[#allocation2 + $0x58] sm:$0x1]  ;;  %v5188_v2 = vrot.slane %v5153_v60, 1 }
 0x579   : > { %v4153_v0 = vmax.f32 %v4071_v49, 0.0  ;;  %v4910_v58 = vrot.slane %v4874_v37, 1  ;;  %v4911_v3 = vrot.slane %v4875_v36, 1  ;;  %v4455_v48 = vld [vmem:[#allocation2 + $0x68] sm:$0x1]  ;;  %v4635_v55 = vsel %vm1590_vm6, %v4633_v41, %v4634_v14 }
 0x57a   : > { %v4151_v9 = vmax.f32 %v4063_v13, 0.0  ;;  %v7428_v32 = vpop.f32.mrb[48].mxu1  ;;  %v4808_v16 = vrot.slane %v4806_v5, 1  ;;  %v4538_v11 = vshll.u32 %v4455_v48, 16  ;;  %v5011_v56 = vld [vmem:[#allocation2 + $0x68] sm:$0x1]  ;;  %4654 = vrot.lane.b32.xlu0 %v4638_v19, %s8132_s9  ;;  %v5189_v20 = vsel %vm1590_vm6, %v5187_v22, %v5188_v2 }
 0x57b   : > { %v4177_v15 = vpack.c.bf16 %v4153_v0, %v4152_v35  ;;  %v3756_v28 = vadd.f32 %v7428_v32, %v9700_v30  ;;  %v3747_v53 = vpop.f32.mrb[49].mxu1  ;;  %4652 = vrot.lane.b32.xlu1 %v4635_v55, %s8132_s9  ;;  %v4912_v49 = vsel %vm1590_vm6, %v4910_v58, %v4911_v3  ;;  %v5074_v13 = vshll.u32 %v5011_v56, 16  ;;  %v4375_v58 = vld [vmem:[#allocation2 + $0x88] sm:$0x1]  ;;  %v4731_v56 = vld [vmem:[#allocation2 + $0x58] sm:$0x1] }
 0x57c   : > { %v4176_v60 = vpack.c.bf16 %v4151_v9, %v4150_v62  ;;  %v3748_v7 = vadd.f32 %v9700_v30, %v3747_v53  ;;  %v7429_v23 = vpop.f32.mrb[50].mxu1  ;;  %v4540_v41 = vrot.slane %v4538_v11, 1  ;;  %v4809_v22 = vsel %vm1428_vm5, %v9694_v1, %v4808_v16  ;;  %v5009_v62 = vld [vmem:[#allocation2 + $0x58] sm:$0x1] }
 0x57d   : > { %v4236_v17 = vshrl.u32 %v4177_v15, 16  ;;  %v9721_v14 = vadd.f32 %v3756_v28, %v9669_v61  ;;  %v3759_v37 = vadd.f32 %v7429_v23, %v9700_v30  ;;  %v3750_v35 = vpop.f32.mrb[51].mxu1  ;;  %v4239_v0 = vshll.u32 %v4177_v15, 16  ;;  %v4372_v28 = vld [vmem:[#allocation2 + $0x80] sm:$0xff]  ;;  %v4453_v23 = vld [vmem:[#allocation2 + $0x58] sm:$0x1] }
 0x57e   : > { %v4229_v19 = vshrl.u32 %v4176_v60, 16  ;;  %v9725_v5 = vadd.f32 %v3748_v7, %v9661_v59  ;;  %v3751_v9 = vadd.f32 %v9700_v30, %v3750_v35  ;;  %v4232_v2 = vshll.u32 %v4176_v60, 16  ;;  %5208 = vrot.lane.b32.xlu0 %v5189_v20, %s8137_s1 }
 0x57f   : > { %v4238_v36 = vrot.slane %v4236_v17, 7  ;;  %v9731_v61 = vadd.f32 %v3759_v37, %v9673_v27  ;;  %4844 = vrot.lane.b32.xlu1 %v4809_v22, %s10568_s24  ;;  %v4541_v32 = vsel %vm1428_vm5, %v9694_v1, %v4540_v41  ;;  %v4369_v27 = vld [vmem:[#allocation2 + $0x78] sm:$0x1]  ;;  %v5062_v11 = vshll.u32 %v5009_v62, 16  ;;  %v4366_v17 = vld [vmem:[#allocation2 + $0x70] sm:$0xff] }
 0x580   : > { %v4231_v3 = vrot.slane %v4229_v19, 7  ;;  %v10561_v59 = vmax.f32 %v9725_v5, 0.0  ;;  %v9737_v48 = vadd.f32 %v3751_v9, %v9665_v29  ;;  %v5076_v7 = vrot.slane %v5074_v13, 1 }
 0x581   : > { %v4241_v55 = vor.u32 %v4239_v0, %v4238_v36  ;;  %v4376_v15 = vsel %vm8552_vm4, %v4238_v36, %v4375_v58  ;;  %v10554_v16 = vmax.f32 %v9731_v61, 0.0  ;;  %v10562_v37 = vmax.f32 %v9721_v14, 0.0 }
 0x582   : > { %4377 = vst [vmem:[#allocation2 + $0x88] sm:$0x1] %v4376_v15  ;;  %v4234_v53 = vor.u32 %v4232_v2, %v4231_v3  ;;  %v4370_v20 = vsel %vm8552_vm4, %v4231_v3, %v4369_v27  ;;  %v10551_v29 = vmax.f32 %v9737_v48, 0.0  ;;  %v7432_v60 = vpop.f32.mrb[52].mxu1  ;;  %4930 = vrot.lane.b32.xlu0 %v4912_v49, %s8134_s23  ;;  %v5064_v9 = vrot.slane %v5062_v11, 1 }
 0x583   : > { %v9749_v41 = vsel %vm8644_vm12, %v4241_v55, %v4372_v28  ;;  %4371 = vst [vmem:[#allocation2 + $0x78] sm:$0x1] %v4370_v20  ;;  %v3772_v35 = vadd.f32 %v7432_v60, %v9700_v30  ;;  %v3763_v19 = vpop.f32.mrb[53].mxu1  ;;  %4566 = vrot.lane.b32.xlu1 %v4541_v32, %s10570_s20  ;;  %v4794_v0 = vshll.u32 %v4731_v56, 16  ;;  %v3899_v3 = vpack.c.bf16 %v10554_v16, %v10562_v37 }
 0x584   : > { %4374 = vst [vmem:[#allocation2 + $0x80] sm:$0xff] %v9749_v41  ;;  %v9758_v13 = vsel %vm8644_vm12, %v4234_v53, %v4366_v17  ;;  %v3764_v22 = vadd.f32 %v9700_v30, %v3763_v19  ;;  %v7433_v62 = vpop.f32.mrb[54].mxu1  ;;  %v3898_v36 = vpack.c.bf16 %v10551_v29, %v10561_v59  ;;  %v4526_v32 = vshll.u32 %v4453_v23, 16 }
 0x585   : > { %4368 = vst [vmem:[#allocation2 + $0x70] sm:$0xff] %v9758_v13  ;;  %v9767_v49 = vadd.f32 %v3772_v35, %v9685_v38  ;;  %v3775_v2 = vadd.f32 %v7433_v62, %v9700_v30  ;;  %v3766_v58 = vpop.f32.mrb[55].mxu1  ;;  %4441 = vst.msk [vmem:[#allocation3 + $0x38] sm:$0xff] %vm1403_vm8, %v9758_v13  ;;  %v5077_v38 = vsel %vm1428_vm5, %v9694_v1, %v5076_v7  ;;  %v4796_v27 = vrot.slane %v4794_v0, 1  ;;  %v7838_v7 = vld [vmem:[%s10611_s11] ss:$0 sm:$0xff] }
 0x586   : > { %v9777_v55 = vadd.f32 %v3764_v22, %v9677_v46  ;;  %v3767_v15 = vadd.f32 %v9700_v30, %v3766_v58  ;;  %7474 = vmatprep.mubr.bf16.mxu0 %v3898_v36  ;;  %5122 = vrot.lane.b32.xlu0 %v5077_v38, %s10613_s28  ;;  %v5065_v56 = vsel %vm1428_vm5, %v9704_v34, %v5064_v9  ;;  %v4528_v28 = vrot.slane %v4526_v32, 1 }
 0x587   : > { %v9783_v11 = vadd.f32 %v3775_v2, %v9691_v18  ;;  %7475 = vmatmul.mubr.bf16.gmra.mrb[80].mxu0 %v3899_v3  ;;  %5120 = vrot.lane.b32.xlu1 %v5065_v56, %s10613_s28  ;;  %v4797_v60 = vsel %vm1428_vm5, %v9704_v34, %v4796_v27  ;;  %v1131_v23 = vadd.f32 %v7838_v7, %v9017_v47  ;;  %v10615_v56 = vld [vmem:[#allocation23_spill] sm:$0xff] }
 0x588   : > { %v9789_v46 = vadd.f32 %v3767_v15, %v9681_v51  ;;  %v10549_v1 = vmax.f32 %v9777_v55, 0.0  ;;  %v10550_v51 = vmax.f32 %v9767_v49, 0.0  ;;  %v4529_v19 = vsel %vm1428_vm5, %v9704_v34, %v4528_v28  ;;  %v10616_v28 = vld [vmem:[#allocation24_spill] sm:$0xff] }
 0x589   : > { %v10548_v53 = vmax.f32 %v9783_v11, 0.0  ;;  %v1129_v9 = vadd.f32 %v7838_v7, %v8968_v40  ;;  %v1132_v36 = vadd.f32 %v7838_v7, %v9026_v31  ;;  %v1130_v34 = vadd.f32 %v7838_v7, %v9004_v43 }
 0x58a   : > { %v10547_v20 = vmax.f32 %v9789_v46, 0.0  ;;  %v7436_v18 = vpop.f32.mrb[56].mxu1  ;;  %4842 = vrot.lane.b32.xlu0 %v4797_v60, %s10568_s24  ;;  %v1133_v43 = vadd.f32 %v7838_v7, %v10615_v56  ;;  %v1136_v56 = vadd.f32 %v7838_v7, %v9300_v39 }
 0x58b   : > { %v3788_v17 = vadd.f32 %v7436_v18, %v9700_v30  ;;  %v3779_v35 = vpop.f32.mrb[57].mxu1  ;;  %4564 = vrot.lane.b32.xlu1 %v4529_v19, %s10570_s20  ;;  %v3901_v40 = vpack.c.bf16 %v10548_v53, %v10550_v51  ;;  %v5158_v31 = vld [vmem:[#allocation2 + $0x80] sm:$0xfe]  ;;  %v1134_v18 = vadd.f32 %v7838_v7, %v10616_v28  ;;  %v4737_v53 = vld [vmem:[#allocation2 + $0x88] sm:$0x1] }
 0x58c   : > { %v3780_v22 = vadd.f32 %v9700_v30, %v3779_v35  ;;  %v7437_v62 = vpop.f32.mrb[58].mxu1  ;;  %v3900_v47 = vpack.c.bf16 %v10547_v20, %v10549_v1  ;;  %v4880_v27 = vld [vmem:[#allocation2 + $0x80] sm:$0xfe]  ;;  %v4600_v20 = vld [vmem:[#allocation2 + $0x70] sm:$0xfe] }
 0x58d   : > { %v9814_v0 = vadd.f32 %v3788_v17, %v1131_v23  ;;  %v3791_v2 = vadd.f32 %v7437_v62, %v9700_v30  ;;  %v3782_v58 = vpop.f32.mrb[59].mxu1  ;;  %v5159_v23 = vld [vmem:[#allocation2 + $0x88] sm:$0x1]  ;;  %v10617_v17 = vld [vmem:[#allocation25_spill] sm:$0xff]  ;;  %v5196_v62 = vrot.slane %v5158_v31, 1  ;;  %v4639_v16 = vrot.slane %v4600_v20, 1 }
 0x58e   : > { %v9822_v3 = vadd.f32 %v3780_v22, %v1129_v9  ;;  %v3783_v32 = vadd.f32 %v9700_v30, %v3782_v58  ;;  %7478 = vmatprep.mubr.bf16.mxu0 %v3900_v47  ;;  %4982 = vrot.lane.b32.xlu0 %v9749_v41, %s8136_s14  ;;  %v1135_v35 = vadd.f32 %v7838_v7, %v10617_v17  ;;  %v4881_v47 = vld [vmem:[#allocation2 + $0x88] sm:$0x1] }
 0x58f   : > { %v9825_v15 = vadd.f32 %v3791_v2, %v1132_v36  ;;  %7479 = vmatmul.mubr.bf16.gmra.mrb[84].mxu0 %v3901_v40  ;;  %4704 = vrot.lane.b32.xlu1 %v9749_v41, %s8133_s25  ;;  %v10556_v36 = vmax.f32 %v9814_v0, 0.0  ;;  %v4919_v40 = vrot.slane %v4880_v27, 1  ;;  %v4920_v7 = vrot.slane %v4881_v47, 1 }
 0x590   : > { %v9829_v38 = vadd.f32 %v3783_v32, %v1130_v34  ;;  %v10553_v19 = vmax.f32 %v9822_v3, 0.0  ;;  %v5810_v34 = vld [vmem:[#allocation2 + $0x80] sm:$0xfe]  ;;  %v4825_v32 = vshll.u32 %v9749_v41, 16  ;;  %v4830_v47 = vshll.u32 %v4737_v53, 16 }
 0x591   : > { %v10555_v60 = vmax.f32 %v9825_v15, 0.0 }
 0x592   : > { %10614 = vst [vmem:[#allocation26_spill] sm:$0xff] %v9829_v38  ;;  %v10552_v9 = vmax.f32 %v9829_v38, 0.0  ;;  %v7440_v22 = vpop.f32.mrb[60].mxu1  ;;  %4702 = vrot.lane.b32.xlu0 %v9758_v13, %s8133_s25 }
 0x593   : > { %v3804_v2 = vadd.f32 %v7440_v22, %v9700_v30  ;;  %v3795_v58 = vpop.f32.mrb[61].mxu1  ;;  %4980 = vrot.lane.b32.xlu1 %v9758_v13, %s8136_s14  ;;  %v5197_v22 = vrot.slane %v5159_v23, 1  ;;  %v3903_v39 = vpack.c.bf16 %v10555_v60, %v10556_v36  ;;  %v5156_v60 = vld [vmem:[#allocation2 + $0x70] sm:$0xfe] }
 0x594   : > { %v3796_v28 = vadd.f32 %v9700_v30, %v3795_v58  ;;  %v7441_v17 = vpop.f32.mrb[62].mxu1  ;;  %v3902_v31 = vpack.c.bf16 %v10552_v9, %v10553_v19  ;;  %v5811_v58 = vld [vmem:[#allocation2 + $0x88] sm:$0x1]  ;;  %v5842_v19 = vrot.slane %v5810_v34, 1  ;;  %v5157_v34 = vld [vmem:[#allocation2 + $0x78] sm:$0x1] }
 0x595   : > { %v9852_v27 = vadd.f32 %v3804_v2, %v1135_v35  ;;  %v3807_v1 = vadd.f32 %v7441_v17, %v9700_v30  ;;  %v3798_v51 = vpop.f32.mrb[63].mxu1  ;;  %v5198_v23 = vsel %vm1590_vm6, %v5196_v62, %v5197_v22  ;;  %v4601_v35 = vld [vmem:[#allocation2 + $0x78] sm:$0x1]  ;;  %v4921_v17 = vsel %vm1590_vm6, %v4919_v40, %v4920_v7 }
 0x596   : > { %v9859_v29 = vadd.f32 %v3796_v28, %v1133_v43  ;;  %v3799_v9 = vadd.f32 %v9700_v30, %v3798_v51  ;;  %7482 = vmatprep.mubr.bf16.mxu0 %v3902_v31  ;;  %5214 = vrot.lane.b32.xlu0 %v5198_v23, %s8137_s1  ;;  %v5843_v30 = vrot.slane %v5811_v58, 1  ;;  %v4823_v51 = vshrl.u32 %v9749_v41, 16  ;;  %v5013_v43 = vld [vmem:[#allocation2 + $0x78] sm:$0x1]  ;;  %v5015_v58 = vld [vmem:[#allocation2 + $0x88] sm:$0x1] }
 0x597   : > { %10618 = vst [vmem:[#allocation23_spill] sm:$0xff] %v9852_v27  ;;  %v9863_v2 = vadd.f32 %v3807_v1, %v1136_v56  ;;  %7483 = vmatmul.mubr.bf16.gmra.mrb[88].mxu0 %v3903_v39  ;;  %4936 = vrot.lane.b32.xlu1 %v4921_v17, %s8134_s23  ;;  %v4640_v1 = vrot.slane %v4601_v35, 1  ;;  %v4827_v56 = vrot.slane %v4825_v32, 1  ;;  %v5081_v28 = vshll.u32 %v9758_v13, 16  ;;  %v4879_v17 = vld [vmem:[#allocation2 + $0x78] sm:$0x1] }
 0x598   : > { %10619 = vst [vmem:[#allocation24_spill] sm:$0xff] %v9859_v29  ;;  %v9867_v36 = vadd.f32 %v3799_v9, %v1134_v18  ;;  %v10559_v40 = vmax.f32 %v9859_v29, 0.0  ;;  %v5844_v53 = vsel %vm1590_vm6, %v5842_v19, %v5843_v30  ;;  %v5193_v18 = vrot.slane %v5156_v60, 1  ;;  %v4878_v9 = vld [vmem:[#allocation2 + $0x70] sm:$0xfe] }
 0x599   : > { %10620 = vst [vmem:[#allocation25_spill] sm:$0xff] %v9863_v2  ;;  %v10558_v62 = vmax.f32 %v9863_v2, 0.0  ;;  %v10560_v31 = vmax.f32 %v9852_v27, 0.0  ;;  %v4641_v22 = vsel %vm1590_vm6, %v4639_v16, %v4640_v1  ;;  %v4832_v39 = vrot.slane %v4830_v47, 1  ;;  %v4457_v19 = vld [vmem:[#allocation2 + $0x78] sm:$0x1] }
 0x59a   : > { %10621 = vst [vmem:[#allocation27_spill] sm:$0xff] %v9867_v36  ;;  %v10557_v20 = vmax.f32 %v9867_v36, 0.0  ;;  %5866 = vrot.lane.b32.xlu0 %v5844_v53, %s8132_s9  ;;  %v5086_v7 = vshll.u32 %v5013_v43, 16  ;;  %v5194_v23 = vrot.slane %v5157_v34, 1  ;;  %v4828_v35 = vor.u32 %v4827_v56, %v4823_v51  ;;  %v9889_v53 = vpop.permute.xlu1 %6208  ;;  %v5667_v51 = vld [vmem:[#allocation2 + $0x88] sm:$0x1] }
 0x59b   : > { %4656 = vrot.lane.b32.xlu1 %v4641_v22, %s8132_s9  ;;  %v3905_v60 = vpack.c.bf16 %v10558_v62, %v10560_v31  ;;  %v5083_v16 = vrot.slane %v5081_v28, 1  ;;  %v4916_v43 = vrot.slane %v4878_v9, 1  ;;  %v5098_v1 = vshll.u32 %v5015_v58, 16 }
 0x59c   : > { %v3904_v32 = vpack.c.bf16 %v10557_v20, %v10559_v40  ;;  %v5195_v47 = vsel %vm1590_vm6, %v5193_v18, %v5194_v23  ;;  %v4833_v34 = vsel %vm1428_vm5, %v4828_v35, %v4832_v39  ;;  %v5079_v22 = vshrl.u32 %v9758_v13, 16  ;;  %v4735_v13 = vld [vmem:[#allocation2 + $0x78] sm:$0x1] }
 0x59d   : > { %v4971_v30 = vpop.permute.xlu0 %4970  ;;  %v5088_v20 = vrot.slane %v5086_v7, 1  ;;  %v4550_v62 = vshll.u32 %v4457_v19, 16  ;;  %v4917_v56 = vrot.slane %v4879_v17, 1  ;;  %v5100_v58 = vrot.slane %v5098_v1, 1 }
 0x59e   : > { %7486 = vmatprep.mubr.bf16.mxu0 %v3904_v32  ;;  %5212 = vrot.lane.b32.xlu0 %v5195_v47, %s8137_s1  ;;  %v5084_v28 = vor.u32 %v5083_v16, %v5079_v22  ;;  %v5690_v32 = vshll.u32 %v5667_v51, 16  ;;  %v4693_v7 = vpop.permute.xlu1 %4692  ;;  %v4818_v17 = vshll.u32 %v4735_v13, 16 }
 0x59f   : > { %7487 = vmatmul.mubr.bf16.gmra.mrb[92].mxu0 %v3905_v60  ;;  %4848 = vrot.lane.b32.xlu1 %v4833_v34, %s10568_s24  ;;  %v4918_v18 = vsel %vm1590_vm6, %v4916_v43, %v4917_v56  ;;  %v4552_v39 = vrot.slane %v4550_v62, 1  ;;  %v5101_v19 = vsel %vm1428_vm5, %v4828_v35, %v5100_v58 }
 0x5a0   : > { %v5089_v23 = vsel %vm1428_vm5, %v5084_v28, %v5088_v20  ;;  %v5692_v60 = vrot.slane %v5690_v32, 1  ;;  %v4820_v1 = vrot.slane %v4818_v17, 1 }
 0x5a1   : > { %v4691_v9 = vpop.permute.xlu0 %4690  ;;  %v4553_v16 = vsel %vm1428_vm5, %v5084_v28, %v4552_v39 }
 0x5a2   : > { %4934 = vrot.lane.b32.xlu0 %v4918_v18, %s8134_s23  ;;  %4714 = vst.msk [vmem:[#allocation3] sm:$0xff] %vm1688_vm13, %v4691_v9  ;;  %v5693_v20 = vsel %vm1428_vm5, %v4828_v35, %v5692_v60  ;;  %v4821_v22 = vsel %vm1428_vm5, %v5084_v28, %v4820_v1 }
 0x5a3   : > { %5124 = vrot.lane.b32.xlu1 %v5089_v23, %s10613_s28 }
 0x5a6   : > { %5126 = vrot.lane.b32.xlu0 %v5101_v19, %s10613_s28 }
 0x5a7   : > { %4568 = vrot.lane.b32.xlu1 %v4553_v16, %s10570_s20 }
 0x5a8   : > { %v4925_v47 = vpop.permute.xlu1 %4924 }
 0x5a9   : > { %v5203_v43 = vpop.permute.xlu0 %5202 }
 0x5aa   : > { %5778 = vrot.lane.b32.xlu0 %v5693_v20, %s10570_s20 }
 0x5ac   : > { %v4645_v62 = vpop.permute.xlu1 %4644 }
 0x5ad   : > { %v4647_v34 = vpop.permute.xlu0 %4646 }
 0x5ae   : > { %4846 = vrot.lane.b32.xlu0 %v4821_v22, %s10568_s24 }
 0x5b0   : > { %v4837_v51 = vpop.permute.xlu1 %4836 }
 0x5b1   : > { %v4923_v56 = vpop.permute.xlu0 %4922 }
 0x5b4   : > { %v4559_v18 = vpop.permute.xlu1 %4558 }
 0x5b5   : > { %v5115_v9 = vpop.permute.xlu0 %5114  ;;  %4580 = vst.msk [vmem:[#allocation3 + $0x10] sm:$0xff] %vm1549_vm9, %v4559_v18 }
 0x5b6   : > { %4668 = vst.msk [vmem:[#allocation3 + $0x10] sm:$0xff] %vm1639_vm10, %v4647_v34 }
 0x5b8   : > { %v4557_v58 = vpop.permute.xlu1 %4556 }
 0x5b9   : > { %v4835_v32 = vpop.permute.xlu0 %4834  ;;  %4579 = vst.msk [vmem:[#allocation3 + $0x8] sm:$0xff] %vm1549_vm9, %v4557_v58 }
 0x5ba   : > { %4858 = vst.msk [vmem:[#allocation3] sm:$0xff] %vm1833_vm14, %v4835_v32 }
 0x5bb   : > { %4667 = vst.msk [vmem:[#allocation3 + $0x8] sm:$0xff] %vm1639_vm10, %v4645_v62 }
 0x5bc   : > { %4946 = vst.msk [vmem:[#allocation3] sm:$0xff] %vm1922_vm15, %v4923_v56 }
 0x5bd   : > { %4715 = vst.msk [vmem:[#allocation3 + $0x8] sm:$0xff] %vm1688_vm13, %v4693_v7  ;;  %v4975_v35 = vpop.permute.xlu0 %4974  ;;  %v4697_v28 = vpop.permute.xlu1 %4696 }
 0x5be   : > { %4994 = vst.msk [vmem:[#allocation3] sm:$0xff] %vm1972_vm0, %v4971_v30 }
 0x5bf   : > { %4859 = vst.msk [vmem:[#allocation3 + $0x8] sm:$0xff] %vm1833_vm14, %v4837_v51 }
 0x5c0   : > { %5138 = vst.msk [vmem:[#allocation3] sm:$0xff] %vm2117_vm1, %v5115_v9 }
 0x5c1   : > { %5226 = vst.msk [vmem:[#allocation3] sm:$0xff] %vm2206_vm2, %v5203_v43  ;;  %v4695_v23 = vpop.permute.xlu0 %4694  ;;  %v4973_v39 = vpop.permute.xlu1 %4972 }
 0x5c2   : > { %4947 = vst.msk [vmem:[#allocation3 + $0x8] sm:$0xff] %vm1922_vm15, %v4925_v47 }
 0x5c3   : > { %4716 = vst.msk [vmem:[#allocation3 + $0x10] sm:$0xff] %vm1688_vm13, %v4695_v23 }
 0x5c4   : > { %4995 = vst.msk [vmem:[#allocation3 + $0x8] sm:$0xff] %vm1972_vm0, %v4973_v39 }
 0x5c8   : > { %v5234_v13 = vld [vmem:[#allocation3] sm:$0xff]  ;;  %v5207_v30 = vpop.permute.xlu0 %5206 }
 0x5c9   : > { %7506 = vmatprep.mubr.bf16.mxu1 %v5234_v13  ;;  %5658 = vst.msk [vmem:[#allocation3] sm:$0xff] %vm1403_vm8, %v9749_v41  ;;  %v4929_v7 = vpop.permute.xlu1 %4928 }
 0x5cc   : > { %v4651_v19 = vpop.permute.xlu0 %4650 }
 0x5cd   : > { %v4649_v60 = vpop.permute.xlu1 %4648 }
 0x5d0   : > { %v5205_v17 = vpop.permute.xlu0 %5204 }
 0x5d1   : > { %v4841_v16 = vpop.permute.xlu1 %4840 }
 0x5d4   : > { %v4927_v47 = vpop.permute.xlu0 %4926 }
 0x5d5   : > { %v4563_v43 = vpop.permute.xlu1 %4562 }
 0x5d6   : > { %4582 = vst.msk [vmem:[#allocation3 + $0x20] sm:$0xff] %vm1549_vm9, %v4563_v43 }
 0x5d7   : > { %4670 = vst.msk [vmem:[#allocation3 + $0x20] sm:$0xff] %vm1639_vm10, %v4651_v19 }
 0x5d8   : > { %v5119_v20 = vpop.permute.xlu0 %5118 }
 0x5d9   : > { %v5117_v1 = vpop.permute.xlu1 %5116 }
 0x5da   : > { %5139 = vst.msk [vmem:[#allocation3 + $0x8] sm:$0xff] %vm2117_vm1, %v5117_v1 }
 0x5db   : > { %5227 = vst.msk [vmem:[#allocation3 + $0x8] sm:$0xff] %vm2206_vm2, %v5205_v17 }
 0x5dc   : > { %v4839_v62 = vpop.permute.xlu0 %4838 }
 0x5dd   : > { %v4561_v41 = vpop.permute.xlu1 %4560  ;;  %4860 = vst.msk [vmem:[#allocation3 + $0x10] sm:$0xff] %vm1833_vm14, %v4839_v62 }
 0x5de   : > { %4581 = vst.msk [vmem:[#allocation3 + $0x18] sm:$0xff] %vm1549_vm9, %v4561_v41 }
 0x5df   : > { %4948 = vst.msk [vmem:[#allocation3 + $0x10] sm:$0xff] %vm1922_vm15, %v4927_v47 }
 0x5e0   : > { %4669 = vst.msk [vmem:[#allocation3 + $0x18] sm:$0xff] %vm1639_vm10, %v4649_v60  ;;  %v4979_v34 = vpop.permute.xlu0 %4978 }
 0x5e1   : > { %4996 = vst.msk [vmem:[#allocation3 + $0x10] sm:$0xff] %vm1972_vm0, %v4975_v35  ;;  %v4701_v22 = vpop.permute.xlu1 %4700 }
 0x5e2   : > { %4717 = vst.msk [vmem:[#allocation3 + $0x18] sm:$0xff] %vm1688_vm13, %v4697_v28  ;;  %v5235_v51 = vld [vmem:[#allocation3 + $0x8] sm:$0xff] }
 0x5e3   : > { %5140 = vst.msk [vmem:[#allocation3 + $0x10] sm:$0xff] %vm2117_vm1, %v5119_v20  ;;  %7507 = vmatmul.mubr.bf16.vlgmr.msra.gmra.mrb[64].mxu1 %v5235_v51 }
 0x5e4   : > { %4861 = vst.msk [vmem:[#allocation3 + $0x18] sm:$0xff] %vm1833_vm14, %v4841_v16  ;;  %v4699_v56 = vpop.permute.xlu0 %4698 }
 0x5e5   : > { %5228 = vst.msk [vmem:[#allocation3 + $0x10] sm:$0xff] %vm2206_vm2, %v5207_v30  ;;  %v4977_v18 = vpop.permute.xlu1 %4976 }
 0x5e6   : > { %4949 = vst.msk [vmem:[#allocation3 + $0x18] sm:$0xff] %vm1922_vm15, %v4929_v7 }
 0x5e7   : > { %4718 = vst.msk [vmem:[#allocation3 + $0x20] sm:$0xff] %vm1688_vm13, %v4699_v56 }
 0x5e8   : > { %4997 = vst.msk [vmem:[#allocation3 + $0x18] sm:$0xff] %vm1972_vm0, %v4977_v18  ;;  %v5211_v9 = vpop.permute.xlu0 %5210 }
 0x5e9   : > { %v4933_v58 = vpop.permute.xlu1 %4932 }
 0x5ec   : > { %v5236_v32 = vld [vmem:[#allocation3 + $0x10] sm:$0xff]  ;;  %v4655_v35 = vpop.permute.xlu0 %4654 }
 0x5ed   : > { %7510 = vmatprep.mubr.bf16.mxu1 %v5236_v32  ;;  %v4653_v28 = vpop.permute.xlu1 %4652 }
 0x5f0   : > { %v5209_v23 = vpop.permute.xlu0 %5208 }
 0x5f1   : > { %v4845_v39 = vpop.permute.xlu1 %4844 }
 0x5f4   : > { %v4931_v13 = vpop.permute.xlu0 %4930 }
 0x5f5   : > { %v4567_v30 = vpop.permute.xlu1 %4566 }
 0x5f6   : > { %4584 = vst.msk [vmem:[#allocation3 + $0x30] sm:$0xff] %vm1549_vm9, %v4567_v30 }
 0x5f7   : > { %4672 = vst.msk [vmem:[#allocation3 + $0x30] sm:$0xff] %vm1639_vm10, %v4655_v35 }
 0x5f8   : > { %v5123_v7 = vpop.permute.xlu0 %5122 }
 0x5f9   : > { %v5121_v19 = vpop.permute.xlu1 %5120 }
 0x5fa   : > { %5141 = vst.msk [vmem:[#allocation3 + $0x18] sm:$0xff] %vm2117_vm1, %v5121_v19 }
 0x5fb   : > { %5229 = vst.msk [vmem:[#allocation3 + $0x18] sm:$0xff] %vm2206_vm2, %v5209_v23 }
 0x5fc   : > { %v4843_v60 = vpop.permute.xlu0 %4842 }
 0x5fd   : > { %4862 = vst.msk [vmem:[#allocation3 + $0x20] sm:$0xff] %vm1833_vm14, %v4843_v60  ;;  %v4565_v17 = vpop.permute.xlu1 %4564 }
 0x5fe   : > { %4950 = vst.msk [vmem:[#allocation3 + $0x20] sm:$0xff] %vm1922_vm15, %v4931_v13 }
 0x5ff   : > { %4583 = vst.msk [vmem:[#allocation3 + $0x28] sm:$0xff] %vm1549_vm9, %v4565_v17 }
 0x600   : > { %4998 = vst.msk [vmem:[#allocation3 + $0x20] sm:$0xff] %vm1972_vm0, %v4979_v34  ;;  %v4983_v16 = vpop.permute.xlu0 %4982 }
 0x601   : > { %4671 = vst.msk [vmem:[#allocation3 + $0x28] sm:$0xff] %vm1639_vm10, %v4653_v28  ;;  %v4705_v47 = vpop.permute.xlu1 %4704 }
 0x602   : > { %5142 = vst.msk [vmem:[#allocation3 + $0x20] sm:$0xff] %vm2117_vm1, %v5123_v7  ;;  %v5237_v43 = vld [vmem:[#allocation3 + $0x18] sm:$0xff]  ;;  %v9973_v7 = vld [vmem:[%s10612_s13] ss:$0 sm:$0xff] }
 0x603   : > { %4719 = vst.msk [vmem:[#allocation3 + $0x28] sm:$0xff] %vm1688_vm13, %v4701_v22  ;;  %7511 = vmatmul.mubr.bf16.gmra.mrb[68].mxu1 %v5237_v43 }
 0x604   : > { %5230 = vst.msk [vmem:[#allocation3 + $0x20] sm:$0xff] %vm2206_vm2, %v5211_v9  ;;  %v4703_v20 = vpop.permute.xlu0 %4702 }
 0x605   : > { %4863 = vst.msk [vmem:[#allocation3 + $0x28] sm:$0xff] %vm1833_vm14, %v4845_v39  ;;  %v4981_v1 = vpop.permute.xlu1 %4980 }
 0x606   : > { %4951 = vst.msk [vmem:[#allocation3 + $0x28] sm:$0xff] %vm1922_vm15, %v4933_v58 }
 0x607   : > { %4720 = vst.msk [vmem:[#allocation3 + $0x30] sm:$0xff] %vm1688_vm13, %v4703_v20 }
 0x608   : > { %4999 = vst.msk [vmem:[#allocation3 + $0x28] sm:$0xff] %vm1972_vm0, %v4981_v1  ;;  %v5215_v62 = vpop.permute.xlu0 %5214 }
 0x609   : > { %v4937_v34 = vpop.permute.xlu1 %4936 }
 0x60b   : > { %v5238_v41 = vld [vmem:[#allocation3 + $0x20] sm:$0xff] }
 0x60c   : > { %7514 = vmatprep.mubr.bf16.mxu1 %v5238_v41  ;;  %v5867_v22 = vpop.permute.xlu0 %5866 }
 0x60d   : > { %v4657_v51 = vpop.permute.xlu1 %4656 }
 0x610   : > { %v5213_v56 = vpop.permute.xlu0 %5212 }
 0x611   : > { %v4849_v18 = vpop.permute.xlu1 %4848 }
 0x614   : > { %v4935_v9 = vpop.permute.xlu0 %4934 }
 0x615   : > { %v5125_v32 = vpop.permute.xlu1 %5124 }
 0x616   : > { %5143 = vst.msk [vmem:[#allocation3 + $0x28] sm:$0xff] %vm2117_vm1, %v5125_v32 }
 0x617   : > { %5231 = vst.msk [vmem:[#allocation3 + $0x28] sm:$0xff] %vm2206_vm2, %v5213_v56 }
 0x618   : > { %v5127_v58 = vpop.permute.xlu0 %5126 }
 0x619   : > { %v4569_v35 = vpop.permute.xlu1 %4568 }
 0x61a   : > { %4585 = vst.msk [vmem:[#allocation3 + $0x38] sm:$0xff] %vm1549_vm9, %v4569_v35 }
 0x61b   : > { %4673 = vst.msk [vmem:[#allocation3 + $0x38] sm:$0xff] %vm1639_vm10, %v4657_v51 }
 0x61c   : > { %4721 = vst.msk [vmem:[#allocation3 + $0x38] sm:$0xff] %vm1688_vm13, %v4705_v47  ;;  %v5779_v28 = vpop.permute.xlu0 %5778 }
 0x61d   : > { %4865 = vst.msk [vmem:[#allocation3 + $0x38] sm:$0xff] %vm1833_vm14, %v4849_v18 }
 0x61e   : > { %5802 = vst.msk [vmem:[#allocation3] sm:$0xff] %vm1549_vm9, %v5779_v28  ;;  %v5239_v23 = vld [vmem:[#allocation3 + $0x28] sm:$0xff] }
 0x61f   : > { %4953 = vst.msk [vmem:[#allocation3 + $0x38] sm:$0xff] %vm1922_vm15, %v4937_v34  ;;  %7515 = vmatmul.mubr.bf16.gmra.mrb[72].mxu1 %v5239_v23 }
 0x620   : > { %5890 = vst.msk [vmem:[#allocation3] sm:$0xff] %vm1639_vm10, %v5867_v22  ;;  %v4847_v39 = vpop.permute.xlu0 %4846 }
 0x621   : > { %4864 = vst.msk [vmem:[#allocation3 + $0x30] sm:$0xff] %vm1833_vm14, %v4847_v39 }
 0x622   : > { %4952 = vst.msk [vmem:[#allocation3 + $0x30] sm:$0xff] %vm1922_vm15, %v4935_v9 }
 0x623   : > { %5000 = vst.msk [vmem:[#allocation3 + $0x30] sm:$0xff] %vm1972_vm0, %v4983_v16 }
 0x624   : > { %5144 = vst.msk [vmem:[#allocation3 + $0x30] sm:$0xff] %vm2117_vm1, %v5127_v58 }
 0x625   : > { %5232 = vst.msk [vmem:[#allocation3 + $0x30] sm:$0xff] %vm2206_vm2, %v5215_v62 }
 0x62c   : > { %v5240_v13 = vld [vmem:[#allocation3 + $0x30] sm:$0xff] }
 0x62d   : > { %7518 = vmatprep.mubr.bf16.mxu1 %v5240_v13 }
 0x65a   : > { %v7476_v30 = vpop.f32.mrb[80].mxu0 }
 0x65b   : > { %v4084_v19 = vadd.f32 %v9973_v7, %v7476_v30  ;;  %v4075_v60 = vpop.f32.mrb[81].mxu0 }
 0x65c   : > { %v4076_v17 = vadd.f32 %v9973_v7, %v4075_v60  ;;  %v7477_v47 = vpop.f32.mrb[82].mxu0 }
 0x65d   : > { %v4087_v16 = vadd.f32 %v9973_v7, %v7477_v47  ;;  %v4078_v43 = vpop.f32.mrb[83].mxu0  ;;  %v4156_v1 = vmax.f32 %v4084_v19, 0.0  ;;  %v4387_v19 = vld [vmem:[#allocation2 + $0xa8] sm:$0x1] }
 0x65e   : > { %v4079_v20 = vadd.f32 %v9973_v7, %v4078_v43  ;;  %v4154_v41 = vmax.f32 %v4076_v17, 0.0 }
 0x65f   : > { %v4157_v62 = vmax.f32 %v4087_v16, 0.0 }
 0x660   : > { %v4155_v34 = vmax.f32 %v4079_v20, 0.0  ;;  %v4381_v20 = vld [vmem:[#allocation2 + $0x98] sm:$0x1] }
 0x661   : > { %v4179_v22 = vpack.c.bf16 %v4157_v62, %v4156_v1 }
 0x662   : > { %v4178_v51 = vpack.c.bf16 %v4155_v34, %v4154_v41  ;;  %v7480_v56 = vpop.f32.mrb[84].mxu0  ;;  %v4384_v41 = vld [vmem:[#allocation2 + $0xa0] sm:$0xff] }
 0x663   : > { %v4250_v18 = vshrl.u32 %v4179_v22, 16  ;;  %v4100_v9 = vadd.f32 %v9973_v7, %v7480_v56  ;;  %v4091_v32 = vpop.f32.mrb[85].mxu0  ;;  %v4253_v39 = vshll.u32 %v4179_v22, 16 }
 0x664   : > { %v4243_v58 = vshrl.u32 %v4178_v51, 16  ;;  %v4092_v35 = vadd.f32 %v9973_v7, %v4091_v32  ;;  %v7481_v28 = vpop.f32.mrb[86].mxu0  ;;  %v4246_v17 = vshll.u32 %v4178_v51, 16  ;;  %v4378_v32 = vld [vmem:[#allocation2 + $0x90] sm:$0xff] }
 0x665   : > { %v4252_v23 = vrot.slane %v4250_v18, 7  ;;  %v4103_v13 = vadd.f32 %v9973_v7, %v7481_v28  ;;  %v4094_v30 = vpop.f32.mrb[87].mxu0  ;;  %v4160_v1 = vmax.f32 %v4100_v9, 0.0 }
 0x666   : > { %v4245_v60 = vrot.slane %v4243_v58, 7  ;;  %v4095_v47 = vadd.f32 %v9973_v7, %v4094_v30  ;;  %v4158_v56 = vmax.f32 %v4092_v35, 0.0 }
 0x667   : > { %v4255_v16 = vor.u32 %v4253_v39, %v4252_v23  ;;  %v4388_v43 = vsel %vm8552_vm4, %v4252_v23, %v4387_v19  ;;  %v4161_v62 = vmax.f32 %v4103_v13, 0.0 }
 0x668   : > { %4389 = vst [vmem:[#allocation2 + $0xa8] sm:$0x1] %v4388_v43  ;;  %v4248_v34 = vor.u32 %v4246_v17, %v4245_v60  ;;  %v4382_v22 = vsel %vm8552_vm4, %v4245_v60, %v4381_v20  ;;  %v4159_v18 = vmax.f32 %v4095_v47, 0.0 }
 0x669   : > { %v9989_v51 = vsel %vm8644_vm12, %v4255_v16, %v4384_v41  ;;  %4383 = vst [vmem:[#allocation2 + $0x98] sm:$0x1] %v4382_v22  ;;  %v4181_v58 = vpack.c.bf16 %v4161_v62, %v4160_v1  ;;  %v4393_v1 = vld [vmem:[#allocation2 + $0xb8] sm:$0x1] }
 0x66a   : > { %4386 = vst [vmem:[#allocation2 + $0xa0] sm:$0xff] %v9989_v51  ;;  %v9994_v9 = vsel %vm8644_vm12, %v4248_v34, %v4378_v32  ;;  %v4180_v28 = vpack.c.bf16 %v4159_v18, %v4158_v56  ;;  %v7484_v23 = vpop.f32.mrb[88].mxu0  ;;  %6194 = vrot.lane.b32.xlu0 %v9989_v51, %s8136_s14  ;;  %5916 = vrot.lane.b32.xlu1 %v9989_v51, %s8133_s25  ;;  %v6245_v35 = vshll.u32 %v9989_v51, 16  ;;  %v7811_v56 = vld [vmem:[#allocation16] sm:$0xff]   ;;  %v4399_v18 = vld [vmem:[#allocation2 + $0xc8] sm:$0x1] }
 0x66b   : > { %4380 = vst [vmem:[#allocation2 + $0x90] sm:$0xff] %v9994_v9  ;;  %v4264_v39 = vshrl.u32 %v4181_v58, 16  ;;  %v4116_v13 = vadd.f32 %v9973_v7, %v7484_v23  ;;  %v4107_v30 = vpop.f32.mrb[89].mxu0  ;;  %v4267_v60 = vshll.u32 %v4181_v58, 16  ;;  %v5965_v22 = vshll.u32 %v9994_v9, 16  ;;  %7522 = vmatprep.subr.bf16.mxu1 %v7811_v56 }
 0x66c   : > { %v4257_v17 = vshrl.u32 %v4180_v28, 16  ;;  %v4260_v47 = vshll.u32 %v4180_v28, 16  ;;  %v4108_v16 = vadd.f32 %v9973_v7, %v4107_v30  ;;  %v7485_v43 = vpop.f32.mrb[90].mxu0  ;;  %v10006_v34 = vrot.slane %v6245_v35, 1  ;;  %7523 = vmatpush3.bf16.msra.mxu1 %v7811_v56 }
 0x66d   : > { %v4266_v20 = vrot.slane %v4264_v39, 7  ;;  %v4119_v62 = vadd.f32 %v9973_v7, %v7485_v43  ;;  %v4110_v41 = vpop.f32.mrb[91].mxu0  ;;  %v4164_v23 = vmax.f32 %v4116_v13, 0.0  ;;  %v10016_v31 = vrot.slane %v5965_v22, 1  ;;  %v4396_v13 = vld [vmem:[#allocation2 + $0xc0] sm:$0xff] }
 0x66e   : > { %v4259_v32 = vrot.slane %v4257_v17, 7  ;;  %v4162_v40 = vmax.f32 %v4108_v16, 0.0  ;;  %v4111_v58 = vadd.f32 %v9973_v7, %v4110_v41  ;;  %5914 = vrot.lane.b32.xlu0 %v9994_v9, %s8133_s25  ;;  %4984 = vrot.lane.b32.xlu1 %v9994_v9, %s8136_s14  ;;  %v4390_v16 = vld [vmem:[#allocation2 + $0xb0] sm:$0xff] }
 0x66f   : > { %v4269_v28 = vor.u32 %v4267_v60, %v4266_v20  ;;  %v4400_v35 = vsel %vm8552_vm4, %v4266_v20, %v4399_v18  ;;  %v4165_v39 = vmax.f32 %v4119_v62, 0.0  ;;  %v6371_v30 = vld [vmem:[#allocation2 + $0xa8] sm:$0x1] }
 0x670   : > { %v6093_v43 = vld [vmem:[#allocation2 + $0xa8] sm:$0x1]  ;;  %4401 = vst [vmem:[#allocation2 + $0xc8] sm:$0x1] %v4400_v35  ;;  %v4262_v17 = vor.u32 %v4260_v47, %v4259_v32  ;;  %v4394_v41 = vsel %vm8552_vm4, %v4259_v32, %v4393_v1  ;;  %v4163_v59 = vmax.f32 %v4111_v58, 0.0  ;;  %v6403_v37 = vrot.slane %v6371_v30, 1 }
 0x671   : > { %v5815_v19 = vld [vmem:[#allocation2 + $0xa8] sm:$0x1]  ;;  %v10022_v60 = vsel %vm8644_vm12, %v4269_v28, %v4396_v13  ;;  %4395 = vst [vmem:[#allocation2 + $0xb8] sm:$0x1] %v4394_v41  ;;  %v4183_v20 = vpack.c.bf16 %v4165_v39, %v4164_v23  ;;  %v6370_v62 = vld [vmem:[#allocation2 + $0xa0] sm:$0xfe] }
 0x672   : > { %v6092_v22 = vld [vmem:[#allocation2 + $0xa0] sm:$0xfe]  ;;  %v6126_v18 = vrot.slane %v6093_v43, 1  ;;  %v5849_v36 = vrot.slane %v5815_v19, 1  ;;  %4398 = vst [vmem:[#allocation2 + $0xc0] sm:$0xff] %v10022_v60  ;;  %v10027_v47 = vsel %vm8644_vm12, %v4262_v17, %v4390_v16  ;;  %v4182_v1 = vpack.c.bf16 %v4163_v59, %v4162_v40  ;;  %v7488_v32 = vpop.f32.mrb[92].mxu0 }
 0x673   : > { %v6402_v58 = vrot.slane %v6370_v62, 1  ;;  %v6125_v56 = vrot.slane %v6092_v22, 1  ;;  %v5814_v35 = vld [vmem:[#allocation2 + $0xa0] sm:$0xfe]  ;;  %v7812_v30 = vld [vmem:[#allocation16 + $0x8] sm:$0xff]   ;;  %4392 = vst [vmem:[#allocation2 + $0xb0] sm:$0xff] %v10027_v47  ;;  %v4132_v39 = vadd.f32 %v9973_v7, %v7488_v32 }
 0x674   : > { %v4278_v28 = vshrl.u32 %v4183_v20, 16  ;;  %v4281_v23 = vshll.u32 %v4183_v20, 16  ;;  %v4123_v43 = vpop.f32.mrb[93].mxu0  ;;  %v5848_v19 = vrot.slane %v5814_v35, 1  ;;  %v4411_v13 = vld [vmem:[#allocation2 + $0xe8] sm:$0x1]  ;;  %7524 = vmatprep.subr.bf16.mxu1 %v7812_v30 }
 0x675   : > { %v4271_v41 = vshrl.u32 %v4182_v1, 16  ;;  %v4274_v2 = vshll.u32 %v4182_v1, 16  ;;  %v4124_v17 = vadd.f32 %v9973_v7, %v4123_v43  ;;  %v7489_v16 = vpop.f32.mrb[94].mxu0  ;;  %v6404_v59 = vsel %vm1590_vm6, %v6402_v58, %v6403_v37  ;;  %v5160_v40 = vld [vmem:[#allocation2 + $0x90] sm:$0xfe]  ;;  %v5652_v62 = vld [vmem:[#allocation2 + $0xa0] sm:$0xff]  ;;  %7525 = vmatpush3.bf16.msra.mxu1 %v7812_v30 }
 0x676   : > { %v4280_v22 = vrot.slane %v4278_v28, 7  ;;  %v4168_v29 = vmax.f32 %v4132_v39, 0.0  ;;  %v4135_v27 = vadd.f32 %v9973_v7, %v7489_v16  ;;  %v4126_v20 = vpop.f32.mrb[95].mxu0  ;;  %6426 = vrot.lane.b32.xlu0 %v6404_v59, %s8137_s1  ;;  %v6127_v32 = vsel %vm1590_vm6, %v6125_v56, %v6126_v18  ;;  %v5161_v35 = vld [vmem:[#allocation2 + $0x98] sm:$0x1]  ;;  %5660 = vst.msk [vmem:[#allocation3 + $0x10] sm:$0xff] %vm1403_vm8, %v5652_v62 }
 0x677   : > { %v5651_v1 = vld [vmem:[#allocation2 + $0x90] sm:$0xff]  ;;  %v4273_v43 = vrot.slane %v4271_v41, 7  ;;  %v4166_v38 = vmax.f32 %v4124_v17, 0.0  ;;  %v4127_v37 = vadd.f32 %v9973_v7, %v4126_v20  ;;  %6148 = vrot.lane.b32.xlu1 %v6127_v32, %s8134_s23  ;;  %v5850_v58 = vsel %vm1590_vm6, %v5848_v19, %v5849_v36  ;;  %v6091_v39 = vld [vmem:[#allocation2 + $0x98] sm:$0x1]  ;;  %v4408_v41 = vld [vmem:[#allocation2 + $0xe0] sm:$0xff] }
 0x678   : > { %v6090_v28 = vld [vmem:[#allocation2 + $0x90] sm:$0xfe]  ;;  %5659 = vst.msk [vmem:[#allocation3 + $0x8] sm:$0xff] %vm1403_vm8, %v5651_v1  ;;  %v4283_v16 = vor.u32 %v4281_v23, %v4280_v22  ;;  %v4412_v18 = vsel %vm8552_vm4, %v4280_v22, %v4411_v13  ;;  %v4405_v56 = vld [vmem:[#allocation2 + $0xd8] sm:$0x1]  ;;  %v4169_v30 = vmax.f32 %v4135_v27, 0.0 }
 0x679   : > { %v5199_v59 = vrot.slane %v5160_v40, 1  ;;  %v5812_v62 = vld [vmem:[#allocation2 + $0x90] sm:$0xfe]  ;;  %4413 = vst [vmem:[#allocation2 + $0xe8] sm:$0x1] %v4412_v18  ;;  %v4276_v17 = vor.u32 %v4274_v2, %v4273_v43  ;;  %v4406_v20 = vsel %vm8552_vm4, %v4273_v43, %v4405_v56  ;;  %v4167_v36 = vmax.f32 %v4127_v37, 0.0 }
 0x67a   : > { %v4402_v7 = vld [vmem:[#allocation2 + $0xd0] sm:$0xff]  ;;  %v5200_v19 = vrot.slane %v5161_v35, 1  ;;  %v5813_v32 = vld [vmem:[#allocation2 + $0x98] sm:$0x1]  ;;  %v10047_v23 = vsel %vm8644_vm12, %v4283_v16, %v4408_v41  ;;  %4407 = vst [vmem:[#allocation2 + $0xd8] sm:$0x1] %v4406_v20  ;;  %v4185_v13 = vpack.c.bf16 %v4169_v30, %v4168_v29  ;;  %5870 = vrot.lane.b32.xlu0 %v5850_v58, %s8132_s9 }
 0x67b   : > { %v6122_v27 = vrot.slane %v6090_v28, 1  ;;  %v6123_v40 = vrot.slane %v6091_v39, 1  ;;  %v6227_v22 = vld [vmem:[#allocation2 + $0xa8] sm:$0x1]  ;;  %4410 = vst [vmem:[#allocation2 + $0xe0] sm:$0xff] %v10047_v23  ;;  %v10053_v2 = vsel %vm8644_vm12, %v4276_v17, %v4402_v7  ;;  %v4184_v35 = vpack.c.bf16 %v4167_v36, %v4166_v38  ;;  %v5654_v18 = vld [vmem:[#allocation2 + $0xc0] sm:$0xff] }
 0x67c   : > { %v5949_v1 = vld [vmem:[#allocation2 + $0xa8] sm:$0x1]  ;;  %v5201_v43 = vsel %vm1590_vm6, %v5199_v59, %v5200_v19  ;;  %v5845_v37 = vrot.slane %v5812_v62, 1  ;;  %v5947_v16 = vld [vmem:[#allocation2 + $0x98] sm:$0x1]  ;;  %4404 = vst [vmem:[#allocation2 + $0xd0] sm:$0xff] %v10053_v2 }
 0x67d   : > { %v4292_v29 = vshrl.u32 %v4185_v13, 16  ;;  %v4295_v58 = vshll.u32 %v4185_v13, 16  ;;  %5216 = vrot.lane.b32.xlu1 %v5201_v43, %s8137_s1  ;;  %v5846_v28 = vrot.slane %v5813_v32, 1  ;;  %v10622_v39 = vshrl.u32 %v9989_v51, 16  ;;  %v5671_v30 = vld [vmem:[#allocation2 + $0xa8] sm:$0x1] }
 0x67e   : > { %v7813_v41 = vld [vmem:[#allocation16 + $0x10] sm:$0xff]   ;;  %5662 = vst.msk [vmem:[#allocation3 + $0x20] sm:$0xff] %vm1403_vm8, %v5654_v18  ;;  %v4285_v38 = vshrl.u32 %v4184_v35, 16  ;;  %v6124_v59 = vsel %vm1590_vm6, %v6122_v27, %v6123_v40  ;;  %v6250_v62 = vshll.u32 %v6227_v22, 16  ;;  %v5982_v17 = vshll.u32 %v5949_v1, 16 }
 0x67f   : > { %v6248_v56 = vor.u32 %v10006_v34, %v10622_v39  ;;  %v4294_v7 = vrot.slane %v4292_v29, 7  ;;  %v4288_v20 = vshll.u32 %v4184_v35, 16  ;;  %6146 = vrot.lane.b32.xlu0 %v6124_v59, %s8134_s23  ;;  %v5847_v36 = vsel %vm1590_vm6, %v5845_v37, %v5846_v28  ;;  %7526 = vmatprep.subr.bf16.mxu1 %v7813_v41  ;;  %v4423_v51 = vld [vmem:[#allocation2 + $0x108] sm:$0x1]  ;;  %v4417_v40 = vld [vmem:[#allocation2 + $0xf8] sm:$0x1] }
 0x680   : > { %v5970_v19 = vshll.u32 %v5947_v16, 16  ;;  %v4287_v32 = vrot.slane %v4285_v38, 7  ;;  %v6252_v34 = vrot.slane %v6250_v62, 1  ;;  %v5984_v13 = vrot.slane %v5982_v17, 1  ;;  %7527 = vmatpush3.bf16.msra.mxu1 %v7813_v41  ;;  %v5017_v1 = vld [vmem:[#allocation2 + $0x98] sm:$0x1] }
 0x681   : > { %v5714_v43 = vshll.u32 %v5671_v30, 16  ;;  %v4297_v18 = vor.u32 %v4295_v58, %v4294_v7  ;;  %v4424_v27 = vsel %vm8552_vm4, %v4294_v7, %v4423_v51  ;;  %5868 = vrot.lane.b32.xlu1 %v5847_v36, %s8132_s9  ;;  %v5963_v22 = vshrl.u32 %v9994_v9, 16  ;;  %v4420_v35 = vld [vmem:[#allocation2 + $0x100] sm:$0xff]  ;;  %v4414_v39 = vld [vmem:[#allocation2 + $0xf0] sm:$0xff]  ;;  %v7814_v59 = vld [vmem:[#allocation16 + $0x18] sm:$0xff]  }
 0x682   : > { %4425 = vst [vmem:[#allocation2 + $0x108] sm:$0x1] %v4424_v27  ;;  %v4290_v37 = vor.u32 %v4288_v20, %v4287_v32  ;;  %v4418_v16 = vsel %vm8552_vm4, %v4287_v32, %v4417_v40  ;;  %v6253_v29 = vsel %vm1428_vm5, %v6248_v56, %v6252_v34  ;;  %v5972_v28 = vrot.slane %v5970_v19, 1  ;;  %v5669_v62 = vld [vmem:[#allocation2 + $0x98] sm:$0x1]  ;;  %7528 = vmatprep.subr.bf16.mxu1 %v7814_v59  ;;  %v7816_v36 = vld [vmem:[#allocation16 + $0x28] sm:$0xff]  }
 0x683   : > { %v10074_v58 = vsel %vm8644_vm12, %v4297_v18, %v4420_v35  ;;  %4419 = vst [vmem:[#allocation2 + $0xf8] sm:$0x1] %v4418_v16  ;;  %6338 = vrot.lane.b32.xlu0 %v6253_v29, %s10613_s28  ;;  %v5968_v9 = vor.u32 %v10016_v31, %v5963_v22  ;;  %v5985_v50 = vsel %vm1428_vm5, %v6248_v56, %v5984_v13  ;;  %v5716_v41 = vrot.slane %v5714_v43, 1  ;;  %v7815_v31 = vld [vmem:[#allocation16 + $0x20] sm:$0xff]   ;;  %v5653_v32 = vld [vmem:[#allocation2 + $0xb0] sm:$0xff]  ;;  %v7820_v40 = vld [vmem:[#allocation14 + $0x8] sm:$0xff]  }
 0x684   : > { %4422 = vst [vmem:[#allocation2 + $0x100] sm:$0xff] %v10074_v58  ;;  %v10081_v30 = vsel %vm8644_vm12, %v4290_v37, %v4414_v39  ;;  %v5110_v38 = vshll.u32 %v5017_v1, 16  ;;  %7529 = vmatpush3.bf16.msra.mxu1 %v7814_v59  ;;  %v5702_v20 = vshll.u32 %v5669_v62, 16  ;;  %v7818_v19 = vld [vmem:[#allocation14] sm:$0xff]   ;;  %v7817_v43 = vld [vmem:[#allocation16 + $0x30] sm:$0xff]   ;;  %5661 = vst.msk [vmem:[#allocation3 + $0x18] sm:$0xff] %vm1403_vm8, %v5653_v32 }
 0x685   : > { %4416 = vst [vmem:[#allocation2 + $0xf0] sm:$0xff] %v10081_v30  ;;  %6060 = vrot.lane.b32.xlu1 %v5985_v50, %s10568_s24  ;;  %v5973_v17 = vsel %vm1428_vm5, %v5968_v9, %v5972_v28  ;;  %v5717_v10 = vsel %vm1428_vm5, %v6248_v56, %v5716_v41  ;;  %7530 = vmatprep.subr.bf16.mxu1 %v7815_v31  ;;  %v6374_v51 = vld [vmem:[#allocation2 + $0xc0] sm:$0xfe]  ;;  %v6375_v56 = vld [vmem:[#allocation2 + $0xc8] sm:$0x1]  ;;  %v7819_v35 = vld [vmem:[#allocation16 + $0x38] sm:$0xff]  }
 0x686   : > { %v5112_v7 = vrot.slane %v5110_v38, 1  ;;  %v5704_v13 = vrot.slane %v5702_v20, 1  ;;  %7554 = vmatprep.subr.bf16.mxu0 %v7818_v19  ;;  %v6408_v18 = vrot.slane %v6374_v51, 1  ;;  %v5818_v27 = vld [vmem:[#allocation2 + $0xc0] sm:$0xfe]  ;;  %v6409_v1 = vrot.slane %v6375_v56, 1 }
 0x687   : > { %6058 = vrot.lane.b32.xlu0 %v5973_v17, %s10568_s24  ;;  %7555 = vmatpush3.bf16.msra.mxu0 %v7818_v19  ;;  %v5819_v37 = vld [vmem:[#allocation2 + $0xc8] sm:$0x1]  ;;  %v7821_v16 = vld [vmem:[#allocation14 + $0x10] sm:$0xff]   ;;  %v5854_v28 = vrot.slane %v5818_v27, 1  ;;  %v5656_v39 = vld [vmem:[#allocation2 + $0xe0] sm:$0xff]  ;;  %v6269_v51 = vshll.u32 %v10022_v60, 16 }
 0x688   : > { %7531 = vmatpush3.bf16.msra.mxu1 %v7815_v31  ;;  %v5113_v34 = vsel %vm1428_vm5, %v5968_v9, %v5112_v7  ;;  %v5705_v22 = vsel %vm1428_vm5, %v5968_v9, %v5704_v13  ;;  %7556 = vmatprep.subr.bf16.mxu0 %v7820_v40  ;;  %v6410_v29 = vsel %vm1590_vm6, %v6408_v18, %v6409_v1  ;;  %v6372_v50 = vld [vmem:[#allocation2 + $0xb0] sm:$0xfe]  ;;  %v5855_v9 = vrot.slane %v5819_v37, 1  ;;  %v6373_v41 = vld [vmem:[#allocation2 + $0xb8] sm:$0x1] }
 0x689   : > { %5782 = vrot.lane.b32.xlu1 %v5717_v10, %s10570_s20  ;;  %7532 = vmatprep.subr.bf16.mxu1 %v7816_v36  ;;  %5664 = vst.msk [vmem:[#allocation3 + $0x30] sm:$0xff] %vm1403_vm8, %v5656_v39  ;;  %v6096_v38 = vld [vmem:[#allocation2 + $0xc0] sm:$0xfe]  ;;  %v6405_v62 = vrot.slane %v6372_v50, 1  ;;  %v6097_v17 = vld [vmem:[#allocation2 + $0xc8] sm:$0x1] }
 0x68a   : > { %v5856_v59 = vsel %vm1590_vm6, %v5854_v28, %v5855_v9  ;;  %v6094_v31 = vld [vmem:[#allocation2 + $0xb0] sm:$0xfe]  ;;  %v6095_v10 = vld [vmem:[#allocation2 + $0xb8] sm:$0x1]  ;;  %v6231_v7 = vld [vmem:[#allocation2 + $0xc8] sm:$0x1] }
 0x68b   : > { %6198 = vrot.lane.b32.xlu0 %v10022_v60, %s8136_s14  ;;  %7557 = vmatpush3.bf16.msra.mxu0 %v7820_v40  ;;  %v6406_v20 = vrot.slane %v6373_v41, 1  ;;  %v5816_v19 = vld [vmem:[#allocation2 + $0xb0] sm:$0xfe]  ;;  %v7822_v32 = vld [vmem:[#allocation14 + $0x18] sm:$0xff]   ;;  %v6128_v56 = vrot.slane %v6094_v31, 1  ;;  %v6274_v27 = vshll.u32 %v6231_v7, 16 }
 0x68c   : > { %7533 = vmatpush3.bf16.msra.mxu1 %v7816_v36  ;;  %7558 = vmatprep.subr.bf16.mxu0 %v7821_v16  ;;  %v6131_v36 = vrot.slane %v6096_v38, 1  ;;  %v5817_v18 = vld [vmem:[#allocation2 + $0xb8] sm:$0x1]  ;;  %v7823_v40 = vld [vmem:[#allocation14 + $0x20] sm:$0xff]   ;;  %v5851_v1 = vrot.slane %v5816_v19, 1  ;;  %v5989_v28 = vshll.u32 %v10027_v47, 16 }
 0x68d   : > { %5128 = vrot.lane.b32.xlu1 %v5113_v34, %s10613_s28  ;;  %7534 = vmatprep.subr.bf16.mxu1 %v7817_v43  ;;  %v5953_v34 = vld [vmem:[#allocation2 + $0xc8] sm:$0x1]  ;;  %v6407_v13 = vsel %vm1590_vm6, %v6405_v62, %v6406_v20  ;;  %v5655_v39 = vld [vmem:[#allocation2 + $0xd0] sm:$0xff]  ;;  %v5852_v50 = vrot.slane %v5817_v18, 1  ;;  %v6267_v38 = vshrl.u32 %v10022_v60, 16 }
 0x68e   : > { %v5675_v9 = vld [vmem:[#allocation2 + $0xc8] sm:$0x1]  ;;  %5663 = vst.msk [vmem:[#allocation3 + $0x28] sm:$0xff] %vm1403_vm8, %v5655_v39  ;;  %v5991_v20 = vrot.slane %v5989_v28, 1  ;;  %v6229_v19 = vld [vmem:[#allocation2 + $0xb8] sm:$0x1] }
 0x68f   : > { %5918 = vrot.lane.b32.xlu0 %v10027_v47, %s8133_s25  ;;  %7559 = vmatpush3.bf16.msra.mxu0 %v7821_v16  ;;  %v6271_v16 = vrot.slane %v6269_v51, 1  ;;  %v7824_v31 = vld [vmem:[#allocation14 + $0x28] sm:$0xff]   ;;  %v7825_v51 = vld [vmem:[#allocation14 + $0x30] sm:$0xff]   ;;  %v6262_v18 = vshll.u32 %v6229_v19, 16 }
 0x690   : > { %7535 = vmatpush3.bf16.msra.mxu1 %v7817_v43  ;;  %v6132_v43 = vrot.slane %v6097_v17, 1  ;;  %7560 = vmatprep.subr.bf16.mxu0 %v7822_v32  ;;  %v5853_v17 = vsel %vm1590_vm6, %v5851_v1, %v5852_v50  ;;  %v6379_v28 = vld [vmem:[#allocation2 + $0xe8] sm:$0x1]  ;;  %v5822_v50 = vld [vmem:[#allocation2 + $0xe0] sm:$0xfe] }
 0x691   : > { %5780 = vrot.lane.b32.xlu1 %v5705_v22, %s10570_s20  ;;  %7536 = vmatprep.subr.bf16.mxu1 %v7819_v35  ;;  %v6129_v22 = vrot.slane %v6095_v10, 1  ;;  %v6272_v10 = vor.u32 %v6271_v16, %v6267_v38  ;;  %v6264_v1 = vrot.slane %v6262_v18, 1  ;;  %v5823_v38 = vld [vmem:[#allocation2 + $0xe8] sm:$0x1] }
 0x692   : > { %v6133_v37 = vsel %vm1590_vm6, %v6131_v36, %v6132_v43  ;;  %v5738_v36 = vshll.u32 %v5675_v9, 16 }
 0x693   : > { %6430 = vrot.lane.b32.xlu0 %v6410_v29, %s8137_s1  ;;  %7561 = vmatpush3.bf16.msra.mxu0 %v7822_v32  ;;  %v6006_v29 = vshll.u32 %v5953_v34, 16  ;;  %v6130_v41 = vsel %vm1590_vm6, %v6128_v56, %v6129_v22  ;;  %v7826_v22 = vld [vmem:[#allocation14 + $0x38] sm:$0xff]  }
 0x694   : > { %7537 = vmatpush3.bf16.msra.mxu1 %v7819_v35  ;;  %v5951_v35 = vld [vmem:[#allocation2 + $0xb8] sm:$0x1]  ;;  %7562 = vmatprep.subr.bf16.mxu0 %v7823_v40  ;;  %v5740_v56 = vrot.slane %v5738_v36, 1  ;;  %v6101_v36 = vld [vmem:[#allocation2 + $0xe8] sm:$0x1] }
 0x695   : > { %5920 = vrot.lane.b32.xlu1 %v10022_v60, %s8133_s25  ;;  %v5994_v62 = vshll.u32 %v5951_v35, 16  ;;  %v6008_v7 = vrot.slane %v6006_v29, 1  ;;  %v5987_v60 = vshrl.u32 %v10027_v47, 16 }
 0x697   : > { %5874 = vrot.lane.b32.xlu0 %v5856_v59, %s8132_s9  ;;  %v6276_v59 = vrot.slane %v6274_v27, 1  ;;  %7563 = vmatpush3.bf16.msra.mxu0 %v7823_v40  ;;  %v5996_v34 = vrot.slane %v5994_v62, 1  ;;  %v5992_v43 = vor.u32 %v5991_v20, %v5987_v60  ;;  %v5673_v27 = vld [vmem:[#allocation2 + $0xb8] sm:$0x1]  ;;  %v5860_v62 = vrot.slane %v5822_v50, 1 }
 0x698   : > { %7564 = vmatprep.subr.bf16.mxu0 %v7824_v31  ;;  %v5726_v35 = vshll.u32 %v5673_v27, 16  ;;  %v6100_v20 = vld [vmem:[#allocation2 + $0xe0] sm:$0xfe]  ;;  %v6099_v60 = vld [vmem:[#allocation2 + $0xd8] sm:$0x1] }
 0x699   : > { %6196 = vrot.lane.b32.xlu1 %v10027_v47, %s8136_s14  ;;  %v6277_v32 = vsel %vm1428_vm5, %v6272_v10, %v6276_v59  ;;  %v5997_v40 = vsel %vm1428_vm5, %v5992_v43, %v5996_v34  ;;  %v5741_v47 = vsel %vm1428_vm5, %v6272_v10, %v5740_v56  ;;  %v6265_v16 = vsel %vm1428_vm5, %v5992_v43, %v6264_v1  ;;  %v5820_v34 = vld [vmem:[#allocation2 + $0xd0] sm:$0xfe] }
 0x69a   : > { %v5728_v29 = vrot.slane %v5726_v35, 1  ;;  %v6137_v27 = vrot.slane %v6100_v20, 1  ;;  %v6138_v35 = vrot.slane %v6101_v36, 1  ;;  %v6013_v36 = vshll.u32 %v10053_v2, 16 }
 0x69b   : > { %6428 = vrot.lane.b32.xlu0 %v6407_v13, %s8137_s1  ;;  %7565 = vmatpush3.bf16.msra.mxu0 %v7824_v31  ;;  %v6009_v13 = vsel %vm1428_vm5, %v6272_v10, %v6008_v7  ;;  %v5861_v31 = vrot.slane %v5823_v38, 1  ;;  %v6377_v7 = vld [vmem:[#allocation2 + $0xd8] sm:$0x1]  ;;  %v5857_v38 = vrot.slane %v5820_v34, 1 }
 0x69c   : > { %7566 = vmatprep.subr.bf16.mxu0 %v7825_v51  ;;  %v5729_v9 = vsel %vm1428_vm5, %v5992_v43, %v5728_v29  ;;  %v6235_v43 = vld [vmem:[#allocation2 + $0xe8] sm:$0x1]  ;;  %v6412_v18 = vrot.slane %v6377_v7, 1 }
 0x69d   : > { %6152 = vrot.lane.b32.xlu1 %v6133_v37, %s8134_s23  ;;  %v6378_v37 = vld [vmem:[#allocation2 + $0xe0] sm:$0xfe]  ;;  %v5862_v19 = vsel %vm1590_vm6, %v5860_v62, %v5861_v31  ;;  %v6298_v50 = vshll.u32 %v6235_v43, 16  ;;  %v6139_v31 = vsel %vm1590_vm6, %v6137_v27, %v6138_v35  ;;  %v5679_v43 = vld [vmem:[#allocation2 + $0xe8] sm:$0x1]  ;;  %v6015_v35 = vrot.slane %v6013_v36, 1 }
 0x69e   : > { %v6414_v39 = vrot.slane %v6378_v37, 1  ;;  %v6381_v36 = vld [vmem:[#allocation2 + $0xf8] sm:$0x1] }
 0x69f   : > { %6150 = vrot.lane.b32.xlu0 %v6130_v41, %s8134_s23  ;;  %7567 = vmatpush3.bf16.msra.mxu0 %v7825_v51  ;;  %v6415_v41 = vrot.slane %v6379_v28, 1 }
 0x6a0   : > { %7568 = vmatprep.subr.bf16.mxu0 %v7826_v22 }
 0x6a1   : > { %5872 = vrot.lane.b32.xlu1 %v5853_v17, %s8132_s9  ;;  %v6416_v59 = vsel %vm1590_vm6, %v6414_v39, %v6415_v41  ;;  %v6376_v17 = vld [vmem:[#allocation2 + $0xd0] sm:$0xfe]  ;;  %v6135_v39 = vrot.slane %v6099_v60, 1  ;;  %v6291_v60 = vshrl.u32 %v10047_v23, 16 }
 0x6a2   : > { %v6411_v51 = vrot.slane %v6376_v17, 1  ;;  %v5955_v17 = vld [vmem:[#allocation2 + $0xd8] sm:$0x1] }
 0x6a3   : > { %6342 = vrot.lane.b32.xlu0 %v6277_v32, %s10613_s28  ;;  %7569 = vmatpush3.bf16.msra.mxu0 %v7826_v22  ;;  %v6098_v32 = vld [vmem:[#allocation2 + $0xd0] sm:$0xfe]  ;;  %v5957_v22 = vld [vmem:[#allocation2 + $0xe8] sm:$0x1] }
 0x6a4   : > { %v6134_v37 = vrot.slane %v6098_v32, 1  ;;  %v6413_v28 = vsel %vm1590_vm6, %v6411_v51, %v6412_v18  ;;  %v6030_v62 = vshll.u32 %v5957_v22, 16  ;;  %v6018_v18 = vshll.u32 %v5955_v17, 16 }
 0x6a5   : > { %6064 = vrot.lane.b32.xlu1 %v6009_v13, %s10568_s24  ;;  %v5821_v13 = vld [vmem:[#allocation2 + $0xd8] sm:$0x1] }
 0x6a6   : > { %v6136_v32 = vsel %vm1590_vm6, %v6134_v37, %v6135_v39 }
 0x6a7   : > { %6062 = vrot.lane.b32.xlu0 %v5997_v40, %s10568_s24  ;;  %s10623_s24 = sld [smem:[#allocation34_spill]]  ;;  %v6293_v40 = vshll.u32 %v10047_v23, 16 }
 0x6a9   : > { %5786 = vrot.lane.b32.xlu1 %v5741_v47, %s10570_s20  ;;  %v6295_v20 = vrot.slane %v6293_v40, 1  ;;  %v6032_v40 = vrot.slane %v6030_v62, 1 }
 0x6ab   : > { %6202 = vrot.lane.b32.xlu0 %v10047_v23, %s8136_s14 }
 0x6ad   : > { %6340 = vrot.lane.b32.xlu1 %v6265_v16, %s10613_s28  ;;  %v10142_v10 = vld [vmem:[%s10623_s24] ss:$0 sm:$0xff] }
 0x6af   : > { %5922 = vrot.lane.b32.xlu0 %v10053_v2, %s8133_s25 }
 0x6b1   : > { %5784 = vrot.lane.b32.xlu1 %v5729_v9, %s10570_s20 }
 0x6b3   : > { %6434 = vrot.lane.b32.xlu0 %v6416_v59, %s8137_s1  ;;  %v5858_v59 = vrot.slane %v5821_v13, 1 }
 0x6b5   : > { %5924 = vrot.lane.b32.xlu1 %v10047_v23, %s8133_s25  ;;  %v5859_v27 = vsel %vm1590_vm6, %v5857_v38, %v5858_v59  ;;  %v6233_v23 = vld [vmem:[#allocation2 + $0xd8] sm:$0x1] }
 0x6b6   : > { %v7508_v56 = vpop.f32.mrb[64].mxu1  ;;  %v5677_v38 = vld [vmem:[#allocation2 + $0xd8] sm:$0x1] }
 0x6b7   : > { %5878 = vrot.lane.b32.xlu0 %v5862_v19, %s8132_s9  ;;  %v5356_v47 = vadd.f32 %v7508_v56, %v10142_v10  ;;  %v5347_v1 = vpop.f32.mrb[65].mxu1  ;;  %v6300_v56 = vrot.slane %v6298_v50, 1 }
 0x6b8   : > { %v5348_v16 = vadd.f32 %v10142_v10, %v5347_v1  ;;  %v7509_v29 = vpop.f32.mrb[66].mxu1  ;;  %v6296_v1 = vor.u32 %v6295_v20, %v6291_v60 }
 0x6b9   : > { %6200 = vrot.lane.b32.xlu1 %v10053_v2, %s8136_s14  ;;  %v5359_v9 = vadd.f32 %v7509_v29, %v10142_v10  ;;  %v5350_v41 = vpop.f32.mrb[67].mxu1  ;;  %v5412_v19 = vmax.f32 %v5356_v47, 0.0  ;;  %v5762_v29 = vshll.u32 %v5679_v43, 16  ;;  %v6418_v43 = vrot.slane %v6381_v36, 1 }
 0x6ba   : > { %v5351_v7 = vadd.f32 %v10142_v10, %v5350_v41  ;;  %v5410_v34 = vmax.f32 %v5348_v16, 0.0  ;;  %v6301_v37 = vsel %vm1428_vm5, %v6296_v1, %v6300_v56  ;;  %v6011_v16 = vshrl.u32 %v10053_v2, 16  ;;  %v6380_v2 = vld [vmem:[#allocation2 + $0xf0] sm:$0xfe] }
 0x6bb   : > { %6432 = vrot.lane.b32.xlu0 %v6413_v28, %s8137_s1  ;;  %v5413_v51 = vmax.f32 %v5359_v9, 0.0  ;;  %v6020_v28 = vrot.slane %v6018_v18, 1  ;;  %v6033_v39 = vsel %vm1428_vm5, %v6296_v1, %v6032_v40  ;;  %v5764_v9 = vrot.slane %v5762_v29, 1  ;;  %v5959_v40 = vld [vmem:[#allocation2 + $0xf8] sm:$0x1] }
 0x6bc   : > { %v5411_v13 = vmax.f32 %v5351_v7, 0.0  ;;  %v6016_v50 = vor.u32 %v6015_v35, %v6011_v16  ;;  %v6286_v41 = vshll.u32 %v6233_v23, 16  ;;  %v6037_v29 = vshll.u32 %v10081_v30, 16  ;;  %v6104_v23 = vld [vmem:[#allocation2 + $0x100] sm:$0xfe] }
 0x6bd   : > { %6156 = vrot.lane.b32.xlu1 %v6139_v31, %s8134_s23  ;;  %v10162_v22 = vpack.c.bf16 %v5413_v51, %v5412_v19  ;;  %v5765_v62 = vsel %vm1428_vm5, %v6296_v1, %v5764_v9  ;;  %v5750_v31 = vshll.u32 %v5677_v38, 16  ;;  %v6417_v19 = vrot.slane %v6380_v2, 1  ;;  %v6102_v51 = vld [vmem:[#allocation2 + $0xf0] sm:$0xfe]  ;;  %v6105_v16 = vld [vmem:[#allocation2 + $0x108] sm:$0x1] }
 0x6be   : > { %v10166_v47 = vpack.c.bf16 %v5411_v13, %v5410_v34  ;;  %v6021_v59 = vsel %vm1428_vm5, %v6016_v50, %v6020_v28  ;;  %v6288_v17 = vrot.slane %v6286_v41, 1  ;;  %v6317_v34 = vshll.u32 %v10074_v58, 16  ;;  %v6103_v13 = vld [vmem:[#allocation2 + $0xf8] sm:$0x1] }
 0x6bf   : > { %6154 = vrot.lane.b32.xlu0 %v6136_v32, %s8134_s23  ;;  %v5752_v20 = vrot.slane %v5750_v31, 1  ;;  %v6239_v32 = vld [vmem:[#allocation2 + $0x108] sm:$0x1]  ;;  %v6419_v56 = vsel %vm1590_vm6, %v6417_v19, %v6418_v43  ;;  %v6140_v18 = vrot.slane %v6102_v51, 1  ;;  %v6141_v1 = vrot.slane %v6103_v13, 1 }
 0x6c0   : > { %v6289_v7 = vsel %vm1428_vm5, %v6016_v50, %v6288_v17  ;;  %v6319_v35 = vrot.slane %v6317_v34, 1  ;;  %v6315_v28 = vshrl.u32 %v10074_v58, 16  ;;  %v6143_v9 = vrot.slane %v6104_v23, 1  ;;  %v5961_v31 = vld [vmem:[#allocation2 + $0x108] sm:$0x1] }
 0x6c1   : > { %5876 = vrot.lane.b32.xlu1 %v5859_v27, %s8132_s9  ;;  %v5753_v60 = vsel %vm1428_vm5, %v6016_v50, %v5752_v20  ;;  %v6322_v27 = vshll.u32 %v6239_v32, 16  ;;  %v6042_v50 = vshll.u32 %v5959_v40, 16  ;;  %v6039_v38 = vrot.slane %v6037_v29, 1  ;;  %v5825_v19 = vld [vmem:[#allocation2 + $0xf8] sm:$0x1] }
 0x6c2   : > { %v6320_v41 = vor.u32 %v6319_v35, %v6315_v28  ;;  %v6144_v17 = vrot.slane %v6105_v16, 1  ;;  %v6382_v43 = vld [vmem:[#allocation2 + $0x100] sm:$0xfe]  ;;  %v6237_v35 = vld [vmem:[#allocation2 + $0xf8] sm:$0x1] }
 0x6c3   : > { %6346 = vrot.lane.b32.xlu0 %v6301_v37, %s10613_s28  ;;  %v6142_v37 = vsel %vm1590_vm6, %v6140_v18, %v6141_v1  ;;  %v6044_v36 = vrot.slane %v6042_v50, 1  ;;  %v6383_v1 = vld [vmem:[#allocation2 + $0x108] sm:$0x1] }
 0x6c5   : > { %6068 = vrot.lane.b32.xlu1 %v6033_v39, %s10624_s7  ;;  %v6324_v39 = vrot.slane %v6322_v27, 1  ;;  %v6054_v27 = vshll.u32 %v5961_v31, 16  ;;  %v6310_v31 = vshll.u32 %v6237_v35, 16 }
 0x6c7   : > { %6066 = vrot.lane.b32.xlu0 %v6021_v59, %s10624_s7  ;;  %v5824_v59 = vld [vmem:[#allocation2 + $0xf0] sm:$0xfe]  ;;  %v6325_v20 = vsel %vm1428_vm5, %v6320_v41, %v6324_v39  ;;  %v6420_v39 = vrot.slane %v6382_v43, 1  ;;  %v6312_v43 = vrot.slane %v6310_v31, 1 }
 0x6c9   : > { %5790 = vrot.lane.b32.xlu1 %v5765_v62, %s10570_s20 }
 0x6cb   : > { %6206 = vrot.lane.b32.xlu0 %v10074_v58, %s8136_s14 }
 0x6cd   : > { %6344 = vrot.lane.b32.xlu1 %v6289_v7, %s10613_s28 }
 0x6cf   : > { %5926 = vrot.lane.b32.xlu0 %v10081_v30, %s8133_s25 }
 0x6d1   : > { %5788 = vrot.lane.b32.xlu1 %v5753_v60, %s10570_s20  ;;  %v5863_v60 = vrot.slane %v5824_v59, 1 }
 0x6d3   : > { %6436 = vrot.lane.b32.xlu0 %v6419_v56, %s8137_s1  ;;  %v6145_v56 = vsel %vm1590_vm6, %v6143_v9, %v6144_v17  ;;  %v6056_v17 = vrot.slane %v6054_v27, 1 }
 0x6d5   : > { %5928 = vrot.lane.b32.xlu1 %v10074_v58, %s8133_s25  ;;  %v6035_v58 = vshrl.u32 %v10081_v30, 16 }
 0x6d6   : > { %v7512_v62 = vpop.f32.mrb[68].mxu1 }
 0x6d7   : > { %6158 = vrot.lane.b32.xlu0 %v6142_v37, %s8134_s23  ;;  %v5372_v2 = vadd.f32 %v7512_v62, %v10142_v10  ;;  %v5363_v7 = vpop.f32.mrb[69].mxu1  ;;  %v6040_v18 = vor.u32 %v6039_v38, %v6035_v58  ;;  %v6421_v62 = vrot.slane %v6383_v1, 1 }
 0x6d8   : > { %v5364_v51 = vadd.f32 %v10142_v10, %v5363_v7  ;;  %v7513_v32 = vpop.f32.mrb[70].mxu1  ;;  %v5681_v7 = vld [vmem:[#allocation2 + $0xf8] sm:$0x1] }
 0x6d9   : > { %6204 = vrot.lane.b32.xlu1 %v10081_v30, %s8136_s14  ;;  %v5375_v34 = vadd.f32 %v7513_v32, %v10142_v10  ;;  %v5366_v13 = vpop.f32.mrb[71].mxu1  ;;  %v5864_v30 = vrot.slane %v5825_v19, 1  ;;  %v5416_v29 = vmax.f32 %v5372_v2, 0.0  ;;  %v6045_v37 = vsel %vm1428_vm5, %v6040_v18, %v6044_v36  ;;  %v7840_v19 = vld [vmem:[#allocation2] sm:$0xff]  ;;  %v6241_v32 = vld [vmem:[#allocation2 + $0x118] sm:$0x1] }
 0x6da   : > { %v5367_v40 = vadd.f32 %v10142_v10, %v5366_v13  ;;  %v5414_v50 = vmax.f32 %v5364_v51, 0.0  ;;  %v6329_v51 = vshll.u32 %v7840_v19, 16  ;;  %v6327_v13 = vshrl.u32 %v7840_v19, 16  ;;  %s10630_s14 = sshll.u32 %s8488_s18, 8 }
 0x6db   : > { %6350 = vrot.lane.b32.xlu0 %v6325_v20, %s10613_s28  ;;  %v5417_v23 = vmax.f32 %v5375_v34, 0.0  ;;  %v5865_v38 = vsel %vm1590_vm6, %v5863_v60, %v5864_v30  ;;  %v6422_v20 = vsel %vm1590_vm6, %v6420_v39, %v6421_v62  ;;  %v6057_v60 = vsel %vm1428_vm5, %v6320_v41, %v6056_v17  ;;  %v6385_v39 = vld [vmem:[#allocation2 + $0x118] sm:$0x1] }
 0x6dc   : > { %v10207_v16 = vpop.permute.xlu0 %6194  ;;  %v10209_v28 = vpop.permute.xlu1 %5916  ;;  %v5415_v9 = vmax.f32 %v5367_v40, 0.0  ;;  %v5774_v34 = vshll.u32 %v5681_v7, 16  ;;  %v6334_v27 = vshll.u32 %v6241_v32, 16  ;;  %v6313_v40 = vsel %vm1428_vm5, %v6040_v18, %v6312_v43 }
 0x6dd   : > { %6160 = vrot.lane.b32.xlu1 %v6145_v56, %s8134_s23  ;;  %v10213_v59 = vpack.c.bf16 %v5417_v23, %v5416_v29  ;;  %v6331_v56 = vrot.slane %v6329_v51, 1  ;;  %v6424_v62 = vrot.slane %v6385_v39, 1  ;;  %s10625_s23 = sld [smem:[#allocation35_spill]] }
 0x6de   : > { %v10215_v2 = vpack.c.bf16 %v5415_v9, %v5414_v50  ;;  %v5776_v30 = vrot.slane %v5774_v34, 1  ;;  %v6336_v23 = vrot.slane %v6334_v27, 1 }
 0x6df   : > { %6070 = vrot.lane.b32.xlu0 %v6045_v37, %s10624_s7  ;;  %v6332_v29 = vor.u32 %v6331_v56, %v6327_v13  ;;  %v6384_v37 = vld [vmem:[#allocation2 + $0x110] sm:$0xfe] }
 0x6e0   : > { %v5915_v58 = vpop.permute.xlu0 %5914  ;;  %v4985_v36 = vpop.permute.xlu1 %4984  ;;  %v5777_v41 = vsel %vm1428_vm5, %v6040_v18, %v5776_v30 }
 0x6e1   : > { %5880 = vrot.lane.b32.xlu1 %v5865_v38, %s8132_s9  ;;  %5938 = vst.msk [vmem:[#allocation3] sm:$0xff] %vm1688_vm13, %v5915_v58  ;;  %v6337_v9 = vsel %vm1428_vm5, %v6332_v29, %v6336_v23  ;;  %v6423_v38 = vrot.slane %v6384_v37, 1 }
 0x6e2   : > { %5001 = vst.msk [vmem:[#allocation3 + $0x38] sm:$0xff] %vm1972_vm0, %v4985_v36 }
 0x6e3   : > { %6438 = vrot.lane.b32.xlu0 %v6422_v20, %s8137_s1  ;;  %v6425_v7 = vsel %vm1590_vm6, %v6423_v38, %v6424_v62 }
 0x6e5   : > { %6072 = vrot.lane.b32.xlu1 %v6057_v60, %s10624_s7  ;;  %s7161_s7 = sshll.u32 %s8237_s19, 12 }
 0x6e8   : > { %v6427_v1 = vpop.permute.xlu0 %6426 }
 0x6e9   : > { %6348 = vrot.lane.b32.xlu1 %v6313_v40, %s10613_s28  ;;  %v6149_v35 = vpop.permute.xlu1 %6148 }
 0x6ec   : > { %v5871_v50 = vpop.permute.xlu0 %5870 }
 0x6ed   : > { %5792 = vrot.lane.b32.xlu1 %v5777_v41, %s10570_s20  ;;  %s8139_s20 = smov [#allocation17]  }
 0x6ee   : > { %s8043_s0 = sshll.u32 %s8139_s20, 4  ;;  %s8044_s0 = int_to_ptr.vmem [resolvable:$false] %s8043_s0 }
 0x6ef   : > { %v5217_v17 = vpop.permute.xlu1 %5216 }
 0x6f1   : > { %6352 = vrot.lane.b32.xlu1 %v6337_v9, %s10613_s28  ;;  %v6147_v31 = vpop.permute.xlu0 %6146 }
 0x6f2   : > { %v7516_v58 = vpop.f32.mrb[72].mxu1 }
 0x6f3   : > { %v5869_v20 = vpop.permute.xlu1 %5868  ;;  %v5388_v18 = vadd.f32 %v7516_v58, %v10142_v10  ;;  %v5379_v19 = vpop.f32.mrb[73].mxu1 }
 0x6f4   : > { %v5380_v32 = vadd.f32 %v10142_v10, %v5379_v19  ;;  %v7517_v60 = vpop.f32.mrb[74].mxu1 }
 0x6f5   : > { %6440 = vrot.lane.b32.xlu1 %v6425_v7, %s8137_s1  ;;  %v6339_v36 = vpop.permute.xlu0 %6338  ;;  %v5391_v43 = vadd.f32 %v7517_v60, %v10142_v10  ;;  %v5382_v34 = vpop.f32.mrb[75].mxu1  ;;  %v5420_v27 = vmax.f32 %v5388_v18, 0.0  ;;  %s10330_s1 = scalar_lea.vmem [#allocation17], %s10630_s14  ;;  %s10664_s14 = sld [smem:[#allocation36_spill]] }
 0x6f6   : > { %v5383_v13 = vadd.f32 %v10142_v10, %v5382_v34  ;;  %v5418_v30 = vmax.f32 %v5380_v32, 0.0  ;;  %s6889_s9 = sshll.u32 %s10330_s1, 4  ;;  %s10456_s9 = int_to_ptr.vmem [resolvable:$true] %s6889_s9 }
 0x6f7   : > { %v6061_v51 = vpop.permute.xlu1 %6060  ;;  %v5421_v40 = vmax.f32 %v5391_v43, 0.0  ;;  %s8039_s3 = scalar_lea.vmem %s10456_s9, 4096  ;;  %p8046_p11 = scmp.lt.s32.totalorder %s10456_s9, %s8044_s0 }
 0x6f8   : > { %v5419_v29 = vmax.f32 %v5383_v13, 0.0  ;;  %p8040_p6 = scmp.ne.s32.totalorder %s10456_s9, %s8039_s3 }
 0x6f9   : > { %v6059_v56 = vpop.permute.xlu0 %6058  ;;  %v5431_v37 = vpack.c.bf16 %v5421_v40, %v5420_v27 }
 0x6fa   : > { %6082 = vst.msk [vmem:[#allocation3] sm:$0xff] %vm1833_vm14, %v6059_v56  ;;  %v5430_v39 = vpack.c.bf16 %v5419_v29, %v5418_v30  ;;  %p8041_p10 = pnand %p8040_p6, %p10665_p5 }
 0x6fb   : > { %6170 = vst.msk [vmem:[#allocation3] sm:$0xff] %vm1922_vm15, %v6147_v31  ;;  %v5783_v23 = vpop.permute.xlu1 %5782  ;;  %s10453_s28 = scalar_lea.hbm %s10664_s14, %s7161_s7  ;;  %s8045_s7 = scalar_lea.vmem %s8044_s0, 8192 }
 0x6fc   : > { %6218 = vst.msk [vmem:[#allocation3] sm:$0xff] %vm1972_vm0, %v10207_v16  ;;  %p8042_p1 = pneg %p8041_p10  ;;  %p8047_p12 = scmp.lt.s32.totalorder %s8045_s7, %s8039_s3 }
 0x6fd   : > { %5804 = vst.msk [vmem:[#allocation3 + $0x10] sm:$0xff] %vm1549_vm9, %v5783_v23  ;;  %v6199_v41 = vpop.permute.xlu0 %6198 }
 0x6fe   : > { %6362 = vst.msk [vmem:[#allocation3] sm:$0xff] %vm2117_vm1, %v6339_v36  ;;  %p8048_p13 = por %p8047_p12, %p8046_p11 }
 0x6ff   : > { %5892 = vst.msk [vmem:[#allocation3 + $0x10] sm:$0xff] %vm1639_vm10, %v5871_v50  ;;  %v5129_v9 = vpop.permute.xlu1 %5128 }
 0x700   : > { %6450 = vst.msk [vmem:[#allocation3] sm:$0xff] %vm2206_vm2, %v6427_v1  ;;  %p8049_p8 = pnand %p8048_p13, %p8042_p1 }
 0x701   : > { %5145 = vst.msk [vmem:[#allocation3 + $0x38] sm:$0xff] %vm2117_vm1, %v5129_v9  ;;  %v5919_v38 = vpop.permute.xlu0 %5918 }
 0x702   : > { %5233 = vst.msk [vmem:[#allocation3 + $0x38] sm:$0xff] %vm2206_vm2, %v5217_v17  ;;  %v5657_v17 = vld [vmem:[#allocation2 + $0xf0] sm:$0xff] }
 0x703   : > { %5940 = vst.msk [vmem:[#allocation3 + $0x10] sm:$0xff] %vm1688_vm13, %v5919_v38  ;;  %v5781_v62 = vpop.permute.xlu1 %5780 }
 0x704   : > { %5803 = vst.msk [vmem:[#allocation3 + $0x8] sm:$0xff] %vm1549_vm9, %v5781_v62 }
 0x705   : > { %5891 = vst.msk [vmem:[#allocation3 + $0x8] sm:$0xff] %vm1639_vm10, %v5869_v20  ;;  %v6431_v16 = vpop.permute.xlu0 %6430 }
 0x706   : > { %5939 = vst.msk [vmem:[#allocation3 + $0x8] sm:$0xff] %vm1688_vm13, %v10209_v28 }
 0x707   : > { %v6458_v31 = vld [vmem:[#allocation3] sm:$0xff]  ;;  %6083 = vst.msk [vmem:[#allocation3 + $0x8] sm:$0xff] %vm1833_vm14, %v6061_v51  ;;  %v5921_v1 = vpop.permute.xlu1 %5920 }
 0x708   : > { %7570 = vmatprep.mubr.bf16.mxu0 %v6458_v31  ;;  %6171 = vst.msk [vmem:[#allocation3 + $0x8] sm:$0xff] %vm1922_vm15, %v6149_v35 }
 0x709   : > { %v5241_v50 = vld [vmem:[#allocation3 + $0x38] sm:$0xff]  ;;  %v5875_v7 = vpop.permute.xlu0 %5874 }
 0x70a   : > { %7519 = vmatmul.mubr.bf16.gmra.mrb[76].mxu1 %v5241_v50  ;;  %5665 = vst.msk [vmem:[#allocation3 + $0x38] sm:$0xff] %vm1403_vm8, %v5657_v17 }
 0x70b   : > { %7538 = vmatprep.mubr.bf16.mxu1 %v10166_v47  ;;  %v6197_v20 = vpop.permute.xlu1 %6196 }
 0x70c   : > { %6219 = vst.msk [vmem:[#allocation3 + $0x8] sm:$0xff] %vm1972_vm0, %v6197_v20 }
 0x70d   : > { %v6429_v58 = vpop.permute.xlu0 %6428 }
 0x70f   : > { %v6153_v36 = vpop.permute.xlu1 %6152 }
 0x711   : > { %v6151_v28 = vpop.permute.xlu0 %6150 }
 0x712   : > { %7539 = vmatmul.mubr.bf16.vlgmr.msra.gmra.mrb[80].mxu1 %v10162_v22 }
 0x713   : > { %7542 = vmatprep.mubr.bf16.mxu1 %v10215_v2  ;;  %v5873_v18 = vpop.permute.xlu1 %5872 }
 0x715   : > { %v6343_v35 = vpop.permute.xlu0 %6342 }
 0x717   : > { %v6065_v19 = vpop.permute.xlu1 %6064 }
 0x719   : > { %v6063_v51 = vpop.permute.xlu0 %6062 }
 0x71a   : > { %7543 = vmatmul.mubr.bf16.gmra.mrb[84].mxu1 %v10213_v59  ;;  %6084 = vst.msk [vmem:[#allocation3 + $0x10] sm:$0xff] %vm1833_vm14, %v6063_v51 }
 0x71b   : > { %7546 = vmatprep.mubr.bf16.mxu1 %v5430_v39  ;;  %6172 = vst.msk [vmem:[#allocation3 + $0x10] sm:$0xff] %vm1922_vm15, %v6151_v28  ;;  %v5787_v47 = vpop.permute.xlu1 %5786 }
 0x71c   : > { %6220 = vst.msk [vmem:[#allocation3 + $0x10] sm:$0xff] %vm1972_vm0, %v6199_v41 }
 0x71d   : > { %5806 = vst.msk [vmem:[#allocation3 + $0x20] sm:$0xff] %vm1549_vm9, %v5787_v47  ;;  %v6203_v22 = vpop.permute.xlu0 %6202 }
 0x71e   : > { %6364 = vst.msk [vmem:[#allocation3 + $0x10] sm:$0xff] %vm2117_vm1, %v6343_v35 }
 0x71f   : > { %5894 = vst.msk [vmem:[#allocation3 + $0x20] sm:$0xff] %vm1639_vm10, %v5875_v7  ;;  %v6341_v2 = vpop.permute.xlu1 %6340 }
 0x720   : > { %6452 = vst.msk [vmem:[#allocation3 + $0x10] sm:$0xff] %vm2206_vm2, %v6431_v16 }
 0x721   : > { %6363 = vst.msk [vmem:[#allocation3 + $0x8] sm:$0xff] %vm2117_vm1, %v6341_v2  ;;  %v5923_v59 = vpop.permute.xlu0 %5922 }
 0x722   : > { %6451 = vst.msk [vmem:[#allocation3 + $0x8] sm:$0xff] %vm2206_vm2, %v6429_v58  ;;  %7547 = vmatmul.mubr.bf16.gmra.mrb[88].mxu1 %v5431_v37 }
 0x723   : > { %5942 = vst.msk [vmem:[#allocation3 + $0x20] sm:$0xff] %vm1688_vm13, %v5923_v59  ;;  %v5785_v32 = vpop.permute.xlu1 %5784 }
 0x724   : > { %5805 = vst.msk [vmem:[#allocation3 + $0x18] sm:$0xff] %vm1549_vm9, %v5785_v32 }
 0x725   : > { %5893 = vst.msk [vmem:[#allocation3 + $0x18] sm:$0xff] %vm1639_vm10, %v5873_v18  ;;  %v6435_v60 = vpop.permute.xlu0 %6434 }
 0x726   : > { %5941 = vst.msk [vmem:[#allocation3 + $0x18] sm:$0xff] %vm1688_vm13, %v5921_v1 }
 0x727   : > { %6085 = vst.msk [vmem:[#allocation3 + $0x18] sm:$0xff] %vm1833_vm14, %v6065_v19  ;;  %v5925_v43 = vpop.permute.xlu1 %5924  ;;  %v6460_v13 = vld [vmem:[#allocation3 + $0x10] sm:$0xff] }
 0x728   : > { %6173 = vst.msk [vmem:[#allocation3 + $0x18] sm:$0xff] %vm1922_vm15, %v6153_v36 }
 0x729   : > { %v6459_v34 = vld [vmem:[#allocation3 + $0x8] sm:$0xff]  ;;  %v5879_v56 = vpop.permute.xlu0 %5878 }
 0x72a   : > { %7571 = vmatmul.mubr.bf16.vlgmr.msra.gmra.mrb[96].mxu0 %v6459_v34  ;;  %v7828_v34 = vld [vmem:[#allocation16 + $0x8] sm:$0xff]  }
 0x72b   : > { %7574 = vmatprep.mubr.bf16.mxu0 %v6460_v13  ;;  %v6201_v27 = vpop.permute.xlu1 %6200 }
 0x72c   : > { %6221 = vst.msk [vmem:[#allocation3 + $0x18] sm:$0xff] %vm1972_vm0, %v6201_v27  ;;  %v7830_v27 = vld [vmem:[#allocation16 + $0x18] sm:$0xff]  }
 0x72d   : > { %v6433_v40 = vpop.permute.xlu0 %6432 }
 0x72f   : > { %v6157_v30 = vpop.permute.xlu1 %6156 }
 0x731   : > { %v6155_v29 = vpop.permute.xlu0 %6154 }
 0x733   : > { %v5877_v23 = vpop.permute.xlu1 %5876 }
 0x735   : > { %v6347_v37 = vpop.permute.xlu0 %6346 }
 0x737   : > { %v6069_v39 = vpop.permute.xlu1 %6068 }
 0x739   : > { %v6067_v41 = vpop.permute.xlu0 %6066 }
 0x73a   : > { %6086 = vst.msk [vmem:[#allocation3 + $0x20] sm:$0xff] %vm1833_vm14, %v6067_v41 }
 0x73b   : > { %6174 = vst.msk [vmem:[#allocation3 + $0x20] sm:$0xff] %vm1922_vm15, %v6155_v29  ;;  %v5791_v9 = vpop.permute.xlu1 %5790  ;;  %v7834_v29 = vld [vmem:[#allocation16 + $0x38] sm:$0xff]  }
 0x73c   : > { %6222 = vst.msk [vmem:[#allocation3 + $0x20] sm:$0xff] %vm1972_vm0, %v6203_v22 }
 0x73d   : > { %5808 = vst.msk [vmem:[#allocation3 + $0x30] sm:$0xff] %vm1549_vm9, %v5791_v9  ;;  %v6207_v38 = vpop.permute.xlu0 %6206 }
 0x73e   : > { %6366 = vst.msk [vmem:[#allocation3 + $0x20] sm:$0xff] %vm2117_vm1, %v6347_v37 }
 0x73f   : > { %5896 = vst.msk [vmem:[#allocation3 + $0x30] sm:$0xff] %vm1639_vm10, %v5879_v56  ;;  %v6345_v62 = vpop.permute.xlu1 %6344  ;;  %v7829_v56 = vld [vmem:[#allocation16 + $0x10] sm:$0xff]  }
 0x740   : > { %6454 = vst.msk [vmem:[#allocation3 + $0x20] sm:$0xff] %vm2206_vm2, %v6435_v60 }
 0x741   : > { %6365 = vst.msk [vmem:[#allocation3 + $0x18] sm:$0xff] %vm2117_vm1, %v6345_v62  ;;  %v5927_v16 = vpop.permute.xlu0 %5926 }
 0x742   : > { %6453 = vst.msk [vmem:[#allocation3 + $0x18] sm:$0xff] %vm2206_vm2, %v6433_v40  ;;  %v7832_v40 = vld [vmem:[#allocation16 + $0x28] sm:$0xff]  }
 0x743   : > { %5944 = vst.msk [vmem:[#allocation3 + $0x30] sm:$0xff] %vm1688_vm13, %v5927_v16  ;;  %v5789_v31 = vpop.permute.xlu1 %5788 }
 0x744   : > { %5807 = vst.msk [vmem:[#allocation3 + $0x28] sm:$0xff] %vm1549_vm9, %v5789_v31 }
 0x745   : > { %5895 = vst.msk [vmem:[#allocation3 + $0x28] sm:$0xff] %vm1639_vm10, %v5877_v23  ;;  %v6437_v1 = vpop.permute.xlu0 %6436 }
 0x746   : > { %5943 = vst.msk [vmem:[#allocation3 + $0x28] sm:$0xff] %vm1688_vm13, %v5925_v43  ;;  %v7827_v43 = vld [vmem:[#allocation16] sm:$0xff]  }
 0x747   : > { %6087 = vst.msk [vmem:[#allocation3 + $0x28] sm:$0xff] %vm1833_vm14, %v6069_v39  ;;  %v5929_v50 = vpop.permute.xlu1 %5928  ;;  %v6462_v7 = vld [vmem:[#allocation3 + $0x20] sm:$0xff]  ;;  %7586 = vmatprep.subr.bf16.mxu1 %v7827_v43 }
 0x748   : > { %6175 = vst.msk [vmem:[#allocation3 + $0x28] sm:$0xff] %vm1922_vm15, %v6157_v30  ;;  %7587 = vmatpush3.bf16.msra.mxu1 %v7827_v43  ;;  %v7833_v30 = vld [vmem:[#allocation16 + $0x30] sm:$0xff]   ;;  %v10628_v43 = vmax.f32 %v9405_v44, 0.0 }
 0x749   : > { %v6461_v17 = vld [vmem:[#allocation3 + $0x18] sm:$0xff]  ;;  %v6159_v20 = vpop.permute.xlu0 %6158  ;;  %7588 = vmatprep.subr.bf16.mxu1 %v7828_v34 }
 0x74a   : > { %7575 = vmatmul.mubr.bf16.gmra.mrb[100].mxu0 %v6461_v17 }
 0x74b   : > { %7578 = vmatprep.mubr.bf16.mxu0 %v6462_v7  ;;  %v6205_v58 = vpop.permute.xlu1 %6204  ;;  %v10314_v7 = vld [vmem:[%s10625_s23] ss:$0 sm:$0xff] }
 0x74c   : > { %6223 = vst.msk [vmem:[#allocation3 + $0x28] sm:$0xff] %vm1972_vm0, %v6205_v58  ;;  %7589 = vmatpush3.bf16.msra.mxu1 %v7828_v34 }
 0x74d   : > { %v6351_v36 = vpop.permute.xlu0 %6350  ;;  %7590 = vmatprep.subr.bf16.mxu1 %v7829_v56 }
 0x74f   : > { %v6161_v28 = vpop.permute.xlu1 %6160 }
 0x750   : > { %7591 = vmatpush3.bf16.msra.mxu1 %v7829_v56  ;;  %v10629_v56 = vmax.f32 %v9407_v54, 0.0 }
 0x751   : > { %v6071_v18 = vpop.permute.xlu0 %6070  ;;  %7592 = vmatprep.subr.bf16.mxu1 %v7830_v27 }
 0x752   : > { %6088 = vst.msk [vmem:[#allocation3 + $0x30] sm:$0xff] %vm1833_vm14, %v6071_v18 }
 0x753   : > { %6176 = vst.msk [vmem:[#allocation3 + $0x30] sm:$0xff] %vm1922_vm15, %v6159_v20  ;;  %v5881_v35 = vpop.permute.xlu1 %5880 }
 0x754   : > { %6224 = vst.msk [vmem:[#allocation3 + $0x30] sm:$0xff] %vm1972_vm0, %v6207_v38  ;;  %7593 = vmatpush3.bf16.msra.mxu1 %v7830_v27 }
 0x755   : > { %6368 = vst.msk [vmem:[#allocation3 + $0x30] sm:$0xff] %vm2117_vm1, %v6351_v36  ;;  %v6439_v19 = vpop.permute.xlu0 %6438 }
 0x756   : > { %6456 = vst.msk [vmem:[#allocation3 + $0x30] sm:$0xff] %vm2206_vm2, %v6439_v19 }
 0x757   : > { %v6073_v51 = vpop.permute.xlu1 %6072 }
 0x75b   : > { %v6349_v47 = vpop.permute.xlu1 %6348 }
 0x75c   : > { %6367 = vst.msk [vmem:[#allocation3 + $0x28] sm:$0xff] %vm2117_vm1, %v6349_v47 }
 0x75d   : > { %6455 = vst.msk [vmem:[#allocation3 + $0x28] sm:$0xff] %vm2206_vm2, %v6437_v1  ;;  %v6464_v32 = vld [vmem:[#allocation3 + $0x30] sm:$0xff] }
 0x75f   : > { %v5793_v22 = vpop.permute.xlu1 %5792 }
 0x760   : > { %5809 = vst.msk [vmem:[#allocation3 + $0x38] sm:$0xff] %vm1549_vm9, %v5793_v22 }
 0x761   : > { %5897 = vst.msk [vmem:[#allocation3 + $0x38] sm:$0xff] %vm1639_vm10, %v5881_v35 }
 0x762   : > { %5945 = vst.msk [vmem:[#allocation3 + $0x38] sm:$0xff] %vm1688_vm13, %v5929_v50 }
 0x763   : > { %6089 = vst.msk [vmem:[#allocation3 + $0x38] sm:$0xff] %vm1833_vm14, %v6073_v51  ;;  %v6353_v2 = vpop.permute.xlu1 %6352 }
 0x764   : > { %6177 = vst.msk [vmem:[#allocation3 + $0x38] sm:$0xff] %vm1922_vm15, %v6161_v28  ;;  %v6463_v59 = vld [vmem:[#allocation3 + $0x28] sm:$0xff] }
 0x765   : > { %6225 = vst.msk [vmem:[#allocation3 + $0x38] sm:$0xff] %vm1972_vm0, %v9889_v53  ;;  %7579 = vmatmul.mubr.bf16.gmra.mrb[104].mxu0 %v6463_v59  ;;  %v7831_v53 = vld [vmem:[#allocation16 + $0x20] sm:$0xff]  }
 0x766   : > { %6369 = vst.msk [vmem:[#allocation3 + $0x38] sm:$0xff] %vm2117_vm1, %v6353_v2  ;;  %7582 = vmatprep.mubr.bf16.mxu0 %v6464_v32  ;;  %7594 = vmatprep.subr.bf16.mxu1 %v7831_v53  ;;  %v10627_v2 = vmax.f32 %v9402_v63, 0.0 }
 0x767   : > { %v6441_v60 = vpop.permute.xlu1 %6440  ;;  %7595 = vmatpush3.bf16.msra.mxu1 %v7831_v53 }
 0x768   : > { %6457 = vst.msk [vmem:[#allocation3 + $0x38] sm:$0xff] %vm2206_vm2, %v6441_v60  ;;  %7596 = vmatprep.subr.bf16.mxu1 %v7832_v40 }
 0x76b   : > { %7597 = vmatpush3.bf16.msra.mxu1 %v7832_v40 }
 0x76c   : > { %7598 = vmatprep.subr.bf16.mxu1 %v7833_v30 }
 0x76f   : > { %v6465_v13 = vld [vmem:[#allocation3 + $0x38] sm:$0xff]  ;;  %7599 = vmatpush3.bf16.msra.mxu1 %v7833_v30 }
 0x770   : > { %7583 = vmatmul.mubr.bf16.gmra.mrb[108].mxu0 %v6465_v13  ;;  %7600 = vmatprep.subr.bf16.mxu1 %v7834_v29 }
 0x773   : > { %7601 = vmatpush3.bf16.msra.mxu1 %v7834_v29  ;;  %v10631_v29 = vmax.f32 %v9429_v12, 0.0 }
 0x7dd   : > { %v7520_v23 = vpop.f32.mrb[76].mxu1 }
 0x7de   : > { %v5404_v37 = vadd.f32 %v7520_v23, %v10142_v10  ;;  %v5395_v39 = vpop.f32.mrb[77].mxu1 }
 0x7df   : > { %v5396_v41 = vadd.f32 %v10142_v10, %v5395_v39  ;;  %v7521_v9 = vpop.f32.mrb[78].mxu1 }
 0x7e0   : > { %v5407_v38 = vadd.f32 %v7521_v9, %v10142_v10  ;;  %v5398_v62 = vpop.f32.mrb[79].mxu1  ;;  %v5424_v31 = vmax.f32 %v5404_v37, 0.0 }
 0x7e1   : > { %v5399_v16 = vadd.f32 %v10142_v10, %v5398_v62  ;;  %v5422_v50 = vmax.f32 %v5396_v41, 0.0  ;;  %v10626_v10 = vmax.f32 %v9397_v45, 0.0  ;;  %v10632_v41 = vmax.f32 %v9434_v24, 0.0 }
 0x7e2   : > { %v5425_v1 = vmax.f32 %v5407_v38, 0.0 }
 0x7e3   : > { %v5423_v17 = vmax.f32 %v5399_v16, 0.0  ;;  %v10633_v16 = vmax.f32 %v9437_v33, 0.0 }
 0x7e4   : > { %v5433_v20 = vpack.c.bf16 %v5425_v1, %v5424_v31 }
 0x7e5   : > { %v5432_v58 = vpack.c.bf16 %v5423_v17, %v5422_v50  ;;  %v7540_v36 = vpop.f32.mrb[80].mxu1  ;;  %v10634_v50 = vmax.f32 %v9439_v21, 0.0 }
 0x7e6   : > { %v5548_v28 = vadd.f32 %v7540_v36, %v10314_v7  ;;  %v5539_v18 = vpop.f32.mrb[81].mxu1 }
 0x7e7   : > { %v5540_v35 = vadd.f32 %v10314_v7, %v5539_v18  ;;  %v7541_v19 = vpop.f32.mrb[82].mxu1  ;;  %7550 = vmatprep.mubr.bf16.mxu1 %v5432_v58  ;;  %v10635_v18 = vmax.f32 %v9461_v52, 0.0  ;;  %v7121_v52 = vld [vmem:[%s10623_s24] ss:$0 sm:$0xff] }
 0x7e8   : > { %v5604_v51 = vadd.f32 %v5548_v28, %v10626_v10  ;;  %v5551_v47 = vadd.f32 %v7541_v19, %v10314_v7  ;;  %v5542_v22 = vpop.f32.mrb[83].mxu1  ;;  %7551 = vmatmul.mubr.bf16.gmra.mrb[92].mxu1 %v5433_v20  ;;  %v10636_v10 = vmax.f32 %v9466_v4, 0.0 }
 0x7e9   : > { %v5602_v59 = vadd.f32 %v5540_v35, %v10627_v2  ;;  %v5543_v32 = vadd.f32 %v10314_v7, %v5542_v22  ;;  %v10637_v2 = vmax.f32 %v9469_v6, 0.0 }
 0x7ea   : > { %v5620_v60 = vmax.f32 %v5604_v51, 0.0  ;;  %v5605_v34 = vadd.f32 %v5551_v47, %v10628_v43 }
 0x7eb   : > { %v5618_v13 = vmax.f32 %v5602_v59, 0.0  ;;  %v5603_v27 = vadd.f32 %v5543_v32, %v10629_v56 }
 0x7ec   : > { %5636 = vst [vmem:[%s10330_s1 + $0x10] sm:$0xff] %v5620_v60  ;;  %v5621_v45 = vmax.f32 %v5605_v34, 0.0  ;;  %v10638_v60 = vmax.f32 %v9471_v42, 0.0 }
 0x7ed   : > { %5634 = vst [vmem:[%s10330_s1] sm:$0xff] %v5618_v13  ;;  %v5619_v63 = vmax.f32 %v5603_v27, 0.0  ;;  %v7544_v53 = vpop.f32.mrb[84].mxu1 }
 0x7ee   : > { %5637 = vst [vmem:[%s10330_s1 + $0x18] sm:$0xff] %v5621_v45  ;;  %v5564_v44 = vadd.f32 %v7544_v53, %v10314_v7  ;;  %v5555_v40 = vpop.f32.mrb[85].mxu1 }
 0x7ef   : > { %5635 = vst [vmem:[%s10330_s1 + $0x8] sm:$0xff] %v5619_v63  ;;  %v5556_v54 = vadd.f32 %v10314_v7, %v5555_v40  ;;  %v7545_v30 = vpop.f32.mrb[86].mxu1 }
 0x7f0   : > { %v5608_v23 = vadd.f32 %v5564_v44, %v10631_v29  ;;  %v5567_v37 = vadd.f32 %v7545_v30, %v10314_v7  ;;  %v5558_v39 = vpop.f32.mrb[87].mxu1 }
 0x7f1   : > { %v5606_v9 = vadd.f32 %v5556_v54, %v10632_v41  ;;  %v5559_v38 = vadd.f32 %v10314_v7, %v5558_v39 }
 0x7f2   : > { %v5624_v62 = vmax.f32 %v5608_v23, 0.0  ;;  %v5609_v31 = vadd.f32 %v5567_v37, %v10633_v16 }
 0x7f3   : > { %v5622_v1 = vmax.f32 %v5606_v9, 0.0  ;;  %v5607_v17 = vadd.f32 %v5559_v38, %v10634_v50 }
 0x7f4   : > { %5640 = vst [vmem:[%s10330_s1 + $0x30] sm:$0xff] %v5624_v62  ;;  %v5625_v12 = vmax.f32 %v5609_v31, 0.0 }
 0x7f5   : > { %5638 = vst [vmem:[%s10330_s1 + $0x20] sm:$0xff] %v5622_v1  ;;  %v5623_v20 = vmax.f32 %v5607_v17, 0.0  ;;  %v7548_v58 = vpop.f32.mrb[88].mxu1 }
 0x7f6   : > { %5641 = vst [vmem:[%s10330_s1 + $0x38] sm:$0xff] %v5625_v12  ;;  %v5580_v24 = vadd.f32 %v7548_v58, %v10314_v7  ;;  %v5571_v36 = vpop.f32.mrb[89].mxu1 }
 0x7f7   : > { %5639 = vst [vmem:[%s10330_s1 + $0x28] sm:$0xff] %v5623_v20  ;;  %v5572_v28 = vadd.f32 %v10314_v7, %v5571_v36  ;;  %v7549_v33 = vpop.f32.mrb[90].mxu1 }
 0x7f8   : > { %v5612_v21 = vadd.f32 %v5580_v24, %v10635_v18  ;;  %v5583_v35 = vadd.f32 %v7549_v33, %v10314_v7  ;;  %v5574_v19 = vpop.f32.mrb[91].mxu1 }
 0x7f9   : > { %v5610_v51 = vadd.f32 %v5572_v28, %v10636_v10  ;;  %v5575_v47 = vadd.f32 %v10314_v7, %v5574_v19 }
 0x7fa   : > { %v5628_v22 = vmax.f32 %v5612_v21, 0.0  ;;  %v5613_v59 = vadd.f32 %v5583_v35, %v10637_v2 }
 0x7fb   : > { %v5626_v32 = vmax.f32 %v5610_v51, 0.0  ;;  %v5611_v43 = vadd.f32 %v5575_v47, %v10638_v60 }
 0x7fc   : > { %5644 = vst [vmem:[%s10330_s1 + $0x50] sm:$0xff] %v5628_v22  ;;  %v5629_v34 = vmax.f32 %v5613_v59, 0.0 }
 0x7fd   : > { %5642 = vst [vmem:[%s10330_s1 + $0x40] sm:$0xff] %v5626_v32  ;;  %v5627_v4 = vmax.f32 %v5611_v43, 0.0  ;;  %v7572_v13 = vpop.f32.mrb[96].mxu0 }
 0x7fe   : > { %5645 = vst [vmem:[%s10330_s1 + $0x58] sm:$0xff] %v5629_v34  ;;  %v6580_v56 = vadd.f32 %v7572_v13, %v7121_v52  ;;  %v6571_v27 = vpop.f32.mrb[97].mxu0 }
 0x7ff   : > { %5643 = vst [vmem:[%s10330_s1 + $0x48] sm:$0xff] %v5627_v4  ;;  %v6572_v45 = vadd.f32 %v7121_v52, %v6571_v27  ;;  %v7573_v6 = vpop.f32.mrb[98].mxu0 }
 0x800   : > { %v6583_v63 = vadd.f32 %v7573_v6, %v7121_v52  ;;  %v6574_v53 = vpop.f32.mrb[99].mxu0  ;;  %v6636_v42 = vmax.f32 %v6580_v56, 0.0 }
 0x801   : > { %v6575_v44 = vadd.f32 %v7121_v52, %v6574_v53  ;;  %v6634_v54 = vmax.f32 %v6572_v45, 0.0 }
 0x802   : > { %v6637_v40 = vmax.f32 %v6583_v63, 0.0 }
 0x803   : > { %v6635_v30 = vmax.f32 %v6575_v44, 0.0 }
 0x804   : > { %v6651_v29 = vpack.c.bf16 %v6637_v40, %v6636_v42 }
 0x805   : > { %v6650_v23 = vpack.c.bf16 %v6635_v30, %v6634_v54 }
 0x807   : > { %7602 = vmatprep.mubr.bf16.mxu1 %v6650_v23 }
 0x808   : > { %7603 = vmatmul.mubr.bf16.vlgmr.msra.gmra.mrb[96].mxu1 %v6651_v29 }
 0x81d   : > { %v7576_v37 = vpop.f32.mrb[100].mxu0 }
 0x81e   : > { %v6596_v39 = vadd.f32 %v7576_v37, %v7121_v52  ;;  %v6587_v41 = vpop.f32.mrb[101].mxu0 }
 0x81f   : > { %v6588_v9 = vadd.f32 %v7121_v52, %v6587_v41  ;;  %v7577_v38 = vpop.f32.mrb[102].mxu0 }
 0x820   : > { %v6599_v62 = vadd.f32 %v7577_v38, %v7121_v52  ;;  %v6590_v16 = vpop.f32.mrb[103].mxu0  ;;  %v6640_v1 = vmax.f32 %v6596_v39, 0.0 }
 0x821   : > { %v6591_v31 = vadd.f32 %v7121_v52, %v6590_v16  ;;  %v6638_v17 = vmax.f32 %v6588_v9, 0.0  ;;  %v10640_v9 = vmax.f32 %v9498_v26, 0.0 }
 0x822   : > { %v6641_v50 = vmax.f32 %v6599_v62, 0.0 }
 0x823   : > { %v6639_v12 = vmax.f32 %v6591_v31, 0.0  ;;  %v10641_v31 = vmax.f32 %v9501_v25, 0.0 }
 0x824   : > { %v6653_v20 = vpack.c.bf16 %v6641_v50, %v6640_v1 }
 0x825   : > { %v6652_v58 = vpack.c.bf16 %v6639_v12, %v6638_v17  ;;  %v10642_v17 = vmax.f32 %v9503_v8, 0.0  ;;  %v10643_v8 = vmax.f32 %v9721_v14, 0.0 }
 0x827   : > { %7606 = vmatprep.mubr.bf16.mxu1 %v6652_v58 }
 0x828   : > { %7607 = vmatmul.mubr.bf16.gmra.mrb[100].mxu1 %v6653_v20 }
 0x838   : > { %v7580_v24 = vpop.f32.mrb[104].mxu0 }
 0x839   : > { %v6612_v36 = vadd.f32 %v7580_v24, %v7121_v52  ;;  %v6603_v28 = vpop.f32.mrb[105].mxu0 }
 0x83a   : > { %v6604_v33 = vadd.f32 %v7121_v52, %v6603_v28  ;;  %v7581_v18 = vpop.f32.mrb[106].mxu0 }
 0x83b   : > { %v6615_v21 = vadd.f32 %v7581_v18, %v7121_v52  ;;  %v6606_v35 = vpop.f32.mrb[107].mxu0  ;;  %v6644_v10 = vmax.f32 %v6612_v36, 0.0 }
 0x83c   : > { %v6607_v19 = vadd.f32 %v7121_v52, %v6606_v35  ;;  %v6642_v47 = vmax.f32 %v6604_v33, 0.0 }
 0x83d   : > { %v6645_v51 = vmax.f32 %v6615_v21, 0.0  ;;  %v10644_v21 = vmax.f32 %v9725_v5, 0.0 }
 0x83e   : > { %v6643_v22 = vmax.f32 %v6607_v19, 0.0 }
 0x83f   : > { %v6655_v2 = vpack.c.bf16 %v6645_v51, %v6644_v10  ;;  %v10645_v51 = vmax.f32 %v9731_v61, 0.0 }
 0x840   : > { %v6654_v59 = vpack.c.bf16 %v6643_v22, %v6642_v47 }
 0x842   : > { %7610 = vmatprep.mubr.bf16.mxu1 %v6654_v59 }
 0x843   : > { %v7584_v32 = vpop.f32.mrb[108].mxu0  ;;  %7611 = vmatmul.mubr.bf16.gmra.mrb[104].mxu1 %v6655_v2  ;;  %v10646_v2 = vmax.f32 %v9737_v48, 0.0  ;;  %v10647_v48 = vmax.f32 %v9767_v49, 0.0 }
 0x844   : > { %v6628_v60 = vadd.f32 %v7584_v32, %v7121_v52  ;;  %v6619_v43 = vpop.f32.mrb[109].mxu0 }
 0x845   : > { %v6620_v34 = vadd.f32 %v7121_v52, %v6619_v43  ;;  %v7585_v4 = vpop.f32.mrb[110].mxu0 }
 0x846   : > { %v6631_v13 = vadd.f32 %v7585_v4, %v7121_v52  ;;  %v6622_v56 = vpop.f32.mrb[111].mxu0  ;;  %v6648_v45 = vmax.f32 %v6628_v60, 0.0 }
 0x847   : > { %v6623_v27 = vadd.f32 %v7121_v52, %v6622_v56  ;;  %v6646_v63 = vmax.f32 %v6620_v34, 0.0  ;;  %v10639_v52 = vmax.f32 %v9493_v57, 0.0 }
 0x848   : > { %v6649_v6 = vmax.f32 %v6631_v13, 0.0 }
 0x849   : > { %v6647_v53 = vmax.f32 %v6623_v27, 0.0  ;;  %v10648_v27 = vmax.f32 %v9777_v55, 0.0 }
 0x84a   : > { %v6657_v44 = vpack.c.bf16 %v6649_v6, %v6648_v45 }
 0x84b   : > { %v6656_v42 = vpack.c.bf16 %v6647_v53, %v6646_v63  ;;  %v10649_v53 = vmax.f32 %v9783_v11, 0.0 }
 0x84d   : > { %7614 = vmatprep.mubr.bf16.mxu1 %v6656_v42 }
 0x84e   : > { %7615 = vmatmul.mubr.bf16.gmra.mrb[108].mxu1 %v6657_v44 }
 0x8bb   : > { %v7552_v40 = vpop.f32.mrb[92].mxu1 }
 0x8bc   : > { %v5596_v54 = vadd.f32 %v7552_v40, %v10314_v7  ;;  %v5587_v30 = vpop.f32.mrb[93].mxu1  ;;  %v10650_v40 = vmax.f32 %v9789_v46, 0.0  ;;  %v10651_v46 = vmax.f32 %v9814_v0, 0.0 }
 0x8bd   : > { %v5588_v29 = vadd.f32 %v10314_v7, %v5587_v30  ;;  %v7553_v23 = vpop.f32.mrb[94].mxu1 }
 0x8be   : > { %v5616_v37 = vadd.f32 %v5596_v54, %v10639_v52  ;;  %v5599_v39 = vadd.f32 %v7553_v23, %v10314_v7  ;;  %v5590_v41 = vpop.f32.mrb[95].mxu1 }
 0x8bf   : > { %v5614_v38 = vadd.f32 %v5588_v29, %v10640_v9  ;;  %v5591_v62 = vadd.f32 %v10314_v7, %v5590_v41  ;;  %v10652_v9 = vmax.f32 %v9822_v3, 0.0 }
 0x8c0   : > { %v5632_v16 = vmax.f32 %v5616_v37, 0.0  ;;  %v5617_v1 = vadd.f32 %v5599_v39, %v10641_v31  ;;  %v10653_v31 = vmax.f32 %v9825_v15, 0.0 }
 0x8c1   : > { %v5630_v50 = vmax.f32 %v5614_v38, 0.0  ;;  %v5615_v12 = vadd.f32 %v5591_v62, %v10642_v17  ;;  %v10654_v17 = vld [vmem:[#allocation26_spill] sm:$0xff] }
 0x8c2   : > { %5648 = vst [vmem:[%s10330_s1 + $0x70] sm:$0xff] %v5632_v16  ;;  %v5633_v20 = vmax.f32 %v5617_v1, 0.0 }
 0x8c3   : > { %5646 = vst [vmem:[%s10330_s1 + $0x60] sm:$0xff] %v5630_v50  ;;  %v5631_v57 = vmax.f32 %v5615_v12, 0.0  ;;  %v10655_v12 = vmax.f32 %v10654_v17, 0.0 }
 0x8c4   : > { %5649 = vst [vmem:[%s10330_s1 + $0x78] sm:$0xff] %v5633_v20 }
 0x8c5   : > { %5647 = vst [vmem:[%s10330_s1 + $0x68] sm:$0xff] %v5631_v57 }
 0x8db   : > { %v7604_v58 = vpop.f32.mrb[96].mxu1 }
 0x8dc   : > { %v6772_v26 = vadd.f32 %v7604_v58, %v10314_v7  ;;  %v6763_v24 = vpop.f32.mrb[97].mxu1 }
 0x8dd   : > { %v6764_v25 = vadd.f32 %v10314_v7, %v6763_v24  ;;  %v7605_v36 = vpop.f32.mrb[98].mxu1 }
 0x8de   : > { %v6828_v28 = vadd.f32 %v6772_v26, %v10643_v8  ;;  %v6775_v33 = vadd.f32 %v7605_v36, %v10314_v7  ;;  %v6766_v18 = vpop.f32.mrb[99].mxu1 }
 0x8df   : > { %v6826_v35 = vadd.f32 %v6764_v25, %v10644_v21  ;;  %v6767_v19 = vadd.f32 %v10314_v7, %v6766_v18  ;;  %v10656_v25 = vld [vmem:[#allocation23_spill] sm:$0xff]  ;;  %v10658_v18 = vld [vmem:[#allocation24_spill] sm:$0xff] }
 0x8e0   : > { %v6844_v10 = vmax.f32 %v6828_v28, 0.0  ;;  %v6829_v47 = vadd.f32 %v6775_v33, %v10645_v51  ;;  %v10657_v36 = vmax.f32 %v10656_v25, 0.0  ;;  %v10659_v21 = vmax.f32 %v10658_v18, 0.0  ;;  %v10660_v51 = vld [vmem:[#allocation25_spill] sm:$0xff] }
 0x8e1   : > { %v6842_v22 = vmax.f32 %v6826_v35, 0.0  ;;  %v6827_v59 = vadd.f32 %v6767_v19, %v10646_v2 }
 0x8e2   : > { %7141 = vst [vmem:[%s10330_s1 + $0x90] sm:$0xff] %v6844_v10  ;;  %v6845_v32 = vmax.f32 %v6829_v47, 0.0  ;;  %v10661_v47 = vmax.f32 %v10660_v51, 0.0 }
 0x8e3   : > { %7139 = vst [vmem:[%s10330_s1 + $0x80] sm:$0xff] %v6842_v22  ;;  %v6843_v14 = vmax.f32 %v6827_v59, 0.0  ;;  %v10662_v59 = vld [vmem:[#allocation27_spill] sm:$0xff] }
 0x8e4   : > { %7142 = vst [vmem:[%s10330_s1 + $0x98] sm:$0xff] %v6845_v32  ;;  %v10663_v32 = vmax.f32 %v10662_v59, 0.0 }
 0x8e5   : > { %7140 = vst [vmem:[%s10330_s1 + $0x88] sm:$0xff] %v6843_v14 }
 0x8fb   : > { %v7608_v60 = vpop.f32.mrb[100].mxu1 }
 0x8fc   : > { %v6788_v5 = vadd.f32 %v7608_v60, %v10314_v7  ;;  %v6779_v43 = vpop.f32.mrb[101].mxu1 }
 0x8fd   : > { %v6780_v61 = vadd.f32 %v10314_v7, %v6779_v43  ;;  %v7609_v34 = vpop.f32.mrb[102].mxu1 }
 0x8fe   : > { %v6832_v4 = vadd.f32 %v6788_v5, %v10647_v48  ;;  %v6791_v13 = vadd.f32 %v7609_v34, %v10314_v7  ;;  %v6782_v56 = vpop.f32.mrb[103].mxu1 }
 0x8ff   : > { %v6830_v45 = vadd.f32 %v6780_v61, %v10648_v27  ;;  %v6783_v6 = vadd.f32 %v10314_v7, %v6782_v56 }
 0x900   : > { %v6848_v63 = vmax.f32 %v6832_v4, 0.0  ;;  %v6833_v44 = vadd.f32 %v6791_v13, %v10649_v53 }
 0x901   : > { %v6846_v42 = vmax.f32 %v6830_v45, 0.0  ;;  %v6831_v54 = vadd.f32 %v6783_v6, %v10650_v40 }
 0x902   : > { %7145 = vst [vmem:[%s10330_s1 + $0xb0] sm:$0xff] %v6848_v63  ;;  %v6849_v30 = vmax.f32 %v6833_v44, 0.0 }
 0x903   : > { %7143 = vst [vmem:[%s10330_s1 + $0xa0] sm:$0xff] %v6846_v42  ;;  %v6847_v49 = vmax.f32 %v6831_v54, 0.0 }
 0x904   : > { %7146 = vst [vmem:[%s10330_s1 + $0xb8] sm:$0xff] %v6849_v30 }
 0x905   : > { %7144 = vst [vmem:[%s10330_s1 + $0xa8] sm:$0xff] %v6847_v49 }
 0x916   : > { %v7612_v29 = vpop.f32.mrb[104].mxu1 }
 0x917   : > { %v6804_v55 = vadd.f32 %v7612_v29, %v10314_v7  ;;  %v6795_v23 = vpop.f32.mrb[105].mxu1 }
 0x918   : > { %v6796_v11 = vadd.f32 %v10314_v7, %v6795_v23  ;;  %v7613_v52 = vpop.f32.mrb[106].mxu1 }
 0x919   : > { %v6836_v37 = vadd.f32 %v6804_v55, %v10651_v46  ;;  %v6807_v39 = vadd.f32 %v7613_v52, %v10314_v7  ;;  %v6798_v41 = vpop.f32.mrb[107].mxu1 }
 0x91a   : > { %v6834_v38 = vadd.f32 %v6796_v11, %v10652_v9  ;;  %v6799_v62 = vadd.f32 %v10314_v7, %v6798_v41 }
 0x91b   : > { %v6852_v16 = vmax.f32 %v6836_v37, 0.0  ;;  %v6837_v1 = vadd.f32 %v6807_v39, %v10653_v31 }
 0x91c   : > { %v6850_v50 = vmax.f32 %v6834_v38, 0.0  ;;  %v6835_v20 = vadd.f32 %v6799_v62, %v10655_v12 }
 0x91d   : > { %7149 = vst [vmem:[%s10330_s1 + $0xd0] sm:$0xff] %v6852_v16  ;;  %v6853_v0 = vmax.f32 %v6837_v1, 0.0 }
 0x91e   : > { %7147 = vst [vmem:[%s10330_s1 + $0xc0] sm:$0xff] %v6850_v50  ;;  %v6851_v57 = vmax.f32 %v6835_v20, 0.0 }
 0x91f   : > { %7150 = vst [vmem:[%s10330_s1 + $0xd8] sm:$0xff] %v6853_v0 }
 0x920   : > { %7148 = vst [vmem:[%s10330_s1 + $0xc8] sm:$0xff] %v6851_v57 }
 0x921   : > { %v7616_v3 = vpop.f32.mrb[108].mxu1 }
 0x922   : > { %v6820_v58 = vadd.f32 %v7616_v3, %v10314_v7  ;;  %v6811_v26 = vpop.f32.mrb[109].mxu1 }
 0x923   : > { %v6812_v15 = vadd.f32 %v10314_v7, %v6811_v26  ;;  %v7617_v24 = vpop.f32.mrb[110].mxu1 }
 0x924   : > { %v6840_v8 = vadd.f32 %v6820_v58, %v10657_v36  ;;  %v6823_v28 = vadd.f32 %v7617_v24, %v10314_v7  ;;  %v6814_v33 = vpop.f32.mrb[111].mxu1 }
 0x925   : > { %v6838_v35 = vadd.f32 %v6812_v15, %v10659_v21  ;;  %v6815_v19 = vadd.f32 %v10314_v7, %v6814_v33 }
 0x926   : > { %v6856_v10 = vmax.f32 %v6840_v8, 0.0  ;;  %v6841_v22 = vadd.f32 %v6823_v28, %v10661_v47 }
 0x927   : > { %v6854_v2 = vmax.f32 %v6838_v35, 0.0  ;;  %v6839_v14 = vadd.f32 %v6815_v19, %v10663_v32 }
 0x928   : > { %7153 = vst [vmem:[%s10330_s1 + $0xf0] sm:$0xff] %v6856_v10  ;;  %v6857_v60 = vmax.f32 %v6841_v22, 0.0 }
 0x929   : > { %7151 = vst [vmem:[%s10330_s1 + $0xe0] sm:$0xff] %v6854_v2  ;;  %v6855_v7 = vmax.f32 %v6839_v14, 0.0 }
 0x92a   : > { %7154 = vst [vmem:[%s10330_s1 + $0xf8] sm:$0xff] %v6857_v60 }
 0x92b   : > { %7152 = vst [vmem:[%s10330_s1 + $0xe8] sm:$0xff] %v6855_v7 }
 0x92c   : > { %8052 = shalt.err (!%p8049_p8)
}
 0x92d   : > { %s8053_s1 = scalar_lea.hbm %s10453_s28, 4096  ;;  %s8057_s20 = scalar_lea.hbm %s10664_s14, 8192 }
 0x92e   : > { %p8054_p7 = scmp.ne.s32.totalorder %s10453_s28, %s8053_s1  ;;  %p8058_p3 = scmp.lt.u32.totalorder %s10453_s28, %s10664_s14 }
 0x92f   : > { %p8059_p0 = scmp.lt.u32.totalorder %s8057_s20, %s8053_s1  ;;  %p8061_p6 = scmp.lt.u32.totalorder %s8053_s1, %s10453_s28 }
 0x930   : > { %p8055_p9 = pnand %p8054_p7, %p10665_p5 }
 0x931   : > { %p8060_p2 = por %p8059_p0, %p8058_p3 }
 0x932   : > { %p8056_p4 = pneg %p8055_p9 }
 0x933   : > { %p8062_p10 = por %p8061_p6, %p8060_p2 }
 0x935   : > { %p8063_p1 = pnand %p8062_p10, %p8056_p4 }
 0x937   : > { %8066 = shalt.err (!%p8063_p1)
}
 0x938   : > { %s8140_s3 = smov 128   ;;  %s10666_s7 = smov 8  }
 0x939   : > { %s10667_s2 = scalar_lea.sflag [#allocation7], %s8488_s18 }
 0x93a   : > { %7644 = dma.vmem_to_hbm [thread:$0]  (%p10665_p5), %s10456_s9, 4096, %s10453_s28, %s10667_s2, %s8140_s3, %s8140_s3, %s10666_s7  }
 0x93b PF: > { %s6904_s19 = sand.u32 1, %s8105_s29   ;;  %p10668_p11 = scmp.ne.s32.totalorder %s10588_s17, 0 }
 0x93c   : > { %p10669_p12 = scmp.ge.s32.totalorder %s8117_s16, 2  ;;  %s6905_s1 = scalar_lea.sflag [#allocation7], %s6904_s19 }
 0x93e   : > { %p7670_p13 = pnand %p10669_p12, %p10668_p11 }
 0x940   : > { %8100 = dma.done.wait (!%p7670_p13), %s6905_s1, 4096  }
 0x941   : > { %8102 = vsyncadd (!%p7670_p13), %s6905_s1, 4294963200  ;;  %p30_p8 = scmp.ge.s32.totalorder %s8406_s21, 4   ;;  %s10670_s29 = smov %s8109_s30 }
 0x942   : > { %s10671_s30 = smov %s8113_s15  ;;  %s10672_s15 = smov %s8417_s26 }
 0x943   : > { %s10673_s16 = smov %s8406_s21  ;;  %32 = sbr.rel (!%p30_p8) target bundleno = 18 (0x12), region = 152 }
 0x94a   :  { %6910 = vsyncpa [#allocation6], 1 }
 0x94b   :  { %6912 = vsyncpa [#allocation6 + $0x1], 1 }
 0x94c   :  { %6913 = vsyncpa [#allocation9], 1 }
 0x94d   :  { %6914 = vsyncpa [#allocation12], 1 }
 0x94e   :  { %6915 = vsyncpa [#allocation15], 1 }
 0x94f   :  { %6916 = vsyncpa [#allocation7], 1 }
 0x950   :  { %6918 = vsyncpa [#allocation7 + $0x1], 1 }

</bundles_post_ra>
